<compile_context>
chip_gen: v5e
topology: v5e:2x2
jax: 0.10.0
libtpu: 0.0.40
codegen_flags: <defaults>
</compile_context>

<pallas_src>
import math
import numpy as np
import jax
import jax.numpy as jnp
from jax.experimental import pallas as pl
from jax.experimental.pallas import tpu as pltpu

BN_EPS = 1e-5


# ----------------------------------------------------------------------------
# Interpolation operators (exact PyTorch semantics), precomputed as matrices.
# ----------------------------------------------------------------------------
def _nearest_matrix(in_size, out_size):
    # F.interpolate(mode='nearest'): src = floor(dst * in / out)
    m = np.zeros((out_size, in_size), np.float32)
    for j in range(out_size):
        src = min(int(math.floor(j * in_size / out_size)), in_size - 1)
        m[j, src] = 1.0
    return m


def _cubic_weight(x, a=-0.75):
    x = abs(x)
    if x <= 1.0:
        return (a + 2.0) * x ** 3 - (a + 3.0) * x ** 2 + 1.0
    if x < 2.0:
        return a * x ** 3 - 5.0 * a * x ** 2 + 8.0 * a * x - 4.0 * a
    return 0.0


def _bicubic_matrix(in_size, out_size):
    # F.interpolate(mode='bicubic', align_corners=False, antialias=False), a=-0.75
    m = np.zeros((out_size, in_size), np.float32)
    scale = in_size / out_size
    for j in range(out_size):
        src = (j + 0.5) * scale - 0.5
        f = math.floor(src)
        t = src - f
        for k in range(-1, 3):
            idx = min(max(f + k, 0), in_size - 1)
            m[j, idx] += _cubic_weight(k - t)
    return m


# ----------------------------------------------------------------------------
# Pallas kernel: single fused step (batch folded into the pixel axis).
# ----------------------------------------------------------------------------
def _apn_kernel(x3_ref, x2_ref, x4_ref, mnear_ref, mcub_ref,
                wr1_ref, br1_ref, wg_a_ref, wg_b_ref, bg_ref,
                wgrp0_ref, wgrp1_ref, bgrp_ref, wr3_ref, br3_ref, v2_ref,
                out_ref):
    f32, bf16 = jnp.float32, jnp.bfloat16
    x3 = x3_ref[...]          # (M3, 2C) bf16  stacked res3 pixels
    x2 = x2_ref[...]          # (M2, C)  bf16  stacked res2 pixels
    x4 = x4_ref[...]          # (M4, 4C) f32   stacked res4 pixels

    # --- r1: nearest-upsample res3 -> res2 grid (0/1 selection matrix, exact
    #     in bf16), then 1x1 conv (+folded BN) + ReLU.
    x3_up = jnp.dot(mnear_ref[...], x3, preferred_element_type=f32)          # (M2, 2C)
    h1 = jnp.maximum(
        jnp.dot(x3_up.astype(bf16), wr1_ref[...],
                preferred_element_type=f32) + br1_ref[...], 0.0)             # (M2, C)
    h1b = h1.astype(bf16)

    # --- gconv1 on cat([h1, x2]) WITHOUT materializing the concat:
    #     dense 1x1 path split by input halves, grouped(2) 1x1 path uses the
    #     halves directly (block-diagonal weights).
    g_dense = jnp.maximum(
        jnp.dot(h1b, wg_a_ref[...], preferred_element_type=f32)
        + jnp.dot(x2, wg_b_ref[...], preferred_element_type=f32)
        + bg_ref[...], 0.0)                                                  # (M2, 2C)
    ga = jnp.dot(h1b, wgrp0_ref[...], preferred_element_type=f32)            # (M2, C)
    gb = jnp.dot(x2, wgrp1_ref[...], preferred_element_type=f32)             # (M2, C)
    g_grp = jnp.maximum(
        jnp.concatenate([ga, gb], axis=-1) + bgrp_ref[...], 0.0)             # lane-aligned
    fused = (g_dense + g_grp).astype(bf16)                                   # (M2, 2C)

    # --- r3: bicubic-downsample -> res4 grid, then 1x1 conv (+folded BN) + ReLU
    dn = jnp.dot(mcub_ref[...], fused, preferred_element_type=f32)           # (M4, 2C)
    h3 = jnp.maximum(
        jnp.dot(dn.astype(bf16), wr3_ref[...],
                preferred_element_type=f32) + br3_ref[...], 0.0)             # (M4, 4C)

    # --- res = r3(...) * v_2 + res4   (v_2 read as an SMEM scalar)
    out_ref[...] = h3 * v2_ref[0, 0] + x4


# ----------------------------------------------------------------------------
# Parameters (deterministic, matching the torch __init__ shapes) + BN folding.
# Weights stored in bf16 (post-fold); biases kept in f32.
# ----------------------------------------------------------------------------
def _fold_bn(w, b, gamma, beta, mean, var):
    s = gamma / jnp.sqrt(var + BN_EPS)
    return w * s[None, :], ((b - mean) * s + beta)[None, :]


def make_params(key, channels):
    c1, c2, c4 = channels, 2 * channels, 4 * channels
    keys = iter(jax.random.split(key, 32))
    bf16 = jnp.bfloat16

    def conv_w(cin, cout):
        # torch init: nn.init.normal_(weight, std=0.01); bias = 0
        return 0.01 * jax.random.normal(next(keys), (cin, cout), jnp.float32)

    def bn_params(c):
        # deterministic synthetic BN affine params + running stats (eval mode)
        gamma = 1.0 + 0.1 * jax.random.normal(next(keys), (c,), jnp.float32)
        beta = 0.1 * jax.random.normal(next(keys), (c,), jnp.float32)
        mean = 0.1 * jax.random.normal(next(keys), (c,), jnp.float32)
        var = 0.5 + jnp.abs(jax.random.normal(next(keys), (c,), jnp.float32))
        return gamma, beta, mean, var

    p = {}
    # r1 = Interp(2C -> C)
    wr1, br1 = _fold_bn(conv_w(c2, c1), jnp.zeros((c1,), jnp.float32), *bn_params(c1))
    p["wr1"], p["br1"] = wr1.astype(bf16), br1
    # gconv1.conv_g : dense 1x1, 2C -> 2C; split rows so the kernel can skip the concat.
    wg, bg = _fold_bn(conv_w(c2, c2), jnp.zeros((c2,), jnp.float32), *bn_params(c2))
    p["wg_a"], p["wg_b"], p["bg"] = wg[:c1].astype(bf16), wg[c1:].astype(bf16), bg
    # gconv1.conv   : groups=2 1x1, 2C -> 2C (block-diagonal)
    wgrp = 0.01 * jax.random.normal(next(keys), (2, c1, c1), jnp.float32)
    gamma, beta, mean, var = bn_params(c2)
    s = gamma / jnp.sqrt(var + BN_EPS)
    wgrp = wgrp * s.reshape(2, 1, c1)
    p["wgrp0"], p["wgrp1"] = wgrp[0].astype(bf16), wgrp[1].astype(bf16)
    p["bgrp"] = ((jnp.zeros((c2,), jnp.float32) - mean) * s + beta)[None, :]
    # r3 = Interp(2C -> 4C)
    wr3, br3 = _fold_bn(conv_w(c2, c4), jnp.zeros((c4,), jnp.float32), *bn_params(c4))
    p["wr3"], p["br3"] = wr3.astype(bf16), br3
    # v_2 scalar parameter (uninitialized in torch; pick a deterministic value)
    p["v2"] = jnp.full((1, 1), 0.5, jnp.float32)
    return p


# ----------------------------------------------------------------------------
# Wrapper (NCHW in / NCHW out) and pure-JAX reference.
# ----------------------------------------------------------------------------
def _prepare(res2, res3, res4, params):
    n, c1, h2, w2 = res2.shape
    _, c2, h3, w3 = res3.shape
    _, c4, h4, w4 = res4.shape
    bf16 = jnp.bfloat16
    # batch folded into the pixel axis -> (N*P, C) slabs
    x2 = jnp.transpose(res2, (0, 2, 3, 1)).reshape(n * h2 * w2, c1).astype(bf16)
    x3 = jnp.transpose(res3, (0, 2, 3, 1)).reshape(n * h3 * w3, c2).astype(bf16)
    x4 = jnp.transpose(res4, (0, 2, 3, 1)).reshape(n * h4 * w4, c4)  # keep f32
    # block-diagonal interpolation maps over the stacked pixel axis
    # (fine for small N; for large N apply per-batch instead)
    mnear_s = np.kron(_nearest_matrix(h3, h2), _nearest_matrix(w3, w2))
    mcub_s = np.kron(_bicubic_matrix(h2, h4), _bicubic_matrix(w2, w4))
    eye_n = np.eye(n, dtype=np.float32)
    mnear = jnp.asarray(np.kron(eye_n, mnear_s)).astype(bf16)   # 0/1 -> exact
    mcub = jnp.asarray(np.kron(eye_n, mcub_s)).astype(bf16)
    ops = (x3, x2, x4, mnear, mcub,
           params["wr1"], params["br1"],
           params["wg_a"], params["wg_b"], params["bg"],
           params["wgrp0"], params["wgrp1"], params["bgrp"],
           params["wr3"], params["br3"], params["v2"])
    return ops, (n, c4, h4, w4)


def apn_forward(res2, res3, res4, params):
    ops, (n, c4, h4, w4) = _prepare(res2, res3, res4, params)
    m4 = n * h4 * w4
    vmem = pl.BlockSpec(memory_space=pltpu.MemorySpace.VMEM)
    smem = pl.BlockSpec(memory_space=pltpu.MemorySpace.SMEM)
    in_specs = [vmem] * (len(ops) - 1) + [smem]   # v_2 scalar lives in SMEM
    out = pl.pallas_call(
        _apn_kernel,
        out_shape=jax.ShapeDtypeStruct((m4, c4), jnp.float32),
        in_specs=in_specs,
        out_specs=vmem,
        compiler_params=pltpu.CompilerParams(vmem_limit_bytes=16 << 20),
    )(*ops)
    return jnp.transpose(out.reshape(n, h4, w4, c4), (0, 3, 1, 2))


def apn_forward_ref(res2, res3, res4, params):
    ops, (n, c4, h4, w4) = _prepare(res2, res3, res4, params)
    (x3, x2, x4, mnear, mcub, wr1, br1, wg_a, wg_b, bg,
     wgrp0, wgrp1, bgrp, wr3, br3, v2) = ops
    f = lambda a: a.astype(jnp.float32)
    x3f, x2f = f(x3), f(x2)
    h1 = jax.nn.relu(f(mnear) @ x3f @ f(wr1) + br1)
    g_d = jax.nn.relu(h1 @ f(wg_a) + x2f @ f(wg_b) + bg)
    g_g = jax.nn.relu(
        jnp.concatenate([h1 @ f(wgrp0), x2f @ f(wgrp1)], axis=-1) + bgrp)
    fused = g_d + g_g
    h3 = jax.nn.relu(f(mcub) @ fused @ f(wr3) + br3)
    out = h3 * v2[0, 0] + x4
    return jnp.transpose(out.reshape(n, h4, w4, c4), (0, 3, 1, 2))


if __name__ == "__main__":
    # gconv1 is hard-wired to 512 input channels in the module => channels = 256.
    # Spatial dims kept tiny (FPN-like strides: res2 > res3 > res4).
    channels = 256
    N, H2, W2, H3, W3, H4, W4 = 2, 8, 8, 4, 4, 2, 2

    key = jax.random.PRNGKey(0)
    k2, k3, k4, kp = jax.random.split(key, 4)
    res2 = jax.random.normal(k2, (N, channels, H2, W2), jnp.float32)
    res3 = jax.random.normal(k3, (N, 2 * channels, H3, W3), jnp.float32)
    res4 = jax.random.normal(k4, (N, 4 * channels, H4, W4), jnp.float32)
    params = make_params(kp, channels)

    out = jax.block_until_ready(apn_forward(res2, res3, res4, params))
    ref = jax.block_until_ready(apn_forward_ref(res2, res3, res4, params))

    assert out.shape == (N, 4 * channels, H4, W4), out.shape
    max_err = float(jnp.max(jnp.abs(out - ref)))
    assert math.isfinite(max_err) and max_err < 5e-2, f"max_err={max_err}"
    print("KERNEL_OK")
</pallas_src>

<mosaic_0001>
module attributes {stable_mosaic.version = 11 : i64} {
  func.func @_apn_kernel(%arg0: memref<32x512xbf16, #tpu.memory_space<vmem>>, %arg1: memref<128x256xbf16, #tpu.memory_space<vmem>>, %arg2: memref<8x1024xf32, #tpu.memory_space<vmem>>, %arg3: memref<128x32xbf16, #tpu.memory_space<vmem>>, %arg4: memref<8x128xbf16, #tpu.memory_space<vmem>>, %arg5: memref<512x256xbf16, #tpu.memory_space<vmem>>, %arg6: memref<1x256xf32, #tpu.memory_space<vmem>>, %arg7: memref<256x512xbf16, #tpu.memory_space<vmem>>, %arg8: memref<256x512xbf16, #tpu.memory_space<vmem>>, %arg9: memref<1x512xf32, #tpu.memory_space<vmem>>, %arg10: memref<256x256xbf16, #tpu.memory_space<vmem>>, %arg11: memref<256x256xbf16, #tpu.memory_space<vmem>>, %arg12: memref<1x512xf32, #tpu.memory_space<vmem>>, %arg13: memref<512x1024xbf16, #tpu.memory_space<vmem>>, %arg14: memref<1x1024xf32, #tpu.memory_space<vmem>>, %arg15: memref<1x1xf32, #tpu.memory_space<smem>>, %arg16: memref<8x1024xf32, #tpu.memory_space<vmem>>) attributes {dimension_semantics = [], scalar_prefetch = 0 : i64, scratch_operands = 0 : i64, tpu.core_type = #tpu.core_type<tc>} {
    %c0 = arith.constant 0 : index
    %c0_0 = arith.constant 0 : index
    %0 = vector.load %arg0[%c0, %c0_0] : memref<32x512xbf16, #tpu.memory_space<vmem>>, vector<32x512xbf16>
    %c0_1 = arith.constant 0 : index
    %c0_2 = arith.constant 0 : index
    %1 = vector.load %arg1[%c0_1, %c0_2] : memref<128x256xbf16, #tpu.memory_space<vmem>>, vector<128x256xbf16>
    %c0_3 = arith.constant 0 : index
    %c0_4 = arith.constant 0 : index
    %2 = vector.load %arg2[%c0_3, %c0_4] : memref<8x1024xf32, #tpu.memory_space<vmem>>, vector<8x1024xf32>
    %c0_5 = arith.constant 0 : index
    %c0_6 = arith.constant 0 : index
    %3 = vector.load %arg3[%c0_5, %c0_6] : memref<128x32xbf16, #tpu.memory_space<vmem>>, vector<128x32xbf16>
    %cst = arith.constant dense<0.000000e+00> : vector<128x512xf32>
    %4 = tpu.matmul %3, %0, %cst {dimension_numbers = #tpu.dot_dimension_numbers<[1], [0], [0], [1], [0, 0, 1, 1], [], []>} : vector<128x32xbf16>, vector<32x512xbf16>, vector<128x512xf32> -> vector<128x512xf32>
    %5 = arith.truncf %4 : vector<128x512xf32> to vector<128x512xbf16>
    %c0_7 = arith.constant 0 : index
    %c0_8 = arith.constant 0 : index
    %6 = vector.load %arg5[%c0_7, %c0_8] : memref<512x256xbf16, #tpu.memory_space<vmem>>, vector<512x256xbf16>
    %cst_9 = arith.constant dense<0.000000e+00> : vector<128x256xf32>
    %7 = tpu.matmul %5, %6, %cst_9 {dimension_numbers = #tpu.dot_dimension_numbers<[1], [0], [0], [1], [0, 0, 1, 1], [], []>} : vector<128x512xbf16>, vector<512x256xbf16>, vector<128x256xf32> -> vector<128x256xf32>
    %c0_10 = arith.constant 0 : index
    %c0_11 = arith.constant 0 : index
    %8 = vector.load %arg6[%c0_10, %c0_11] : memref<1x256xf32, #tpu.memory_space<vmem>>, vector<1x256xf32>
    %9 = vector.broadcast %8 : vector<1x256xf32> to vector<128x256xf32>
    %10 = arith.addf %7, %9 : vector<128x256xf32>
    %cst_12 = arith.constant 0.000000e+00 : f32
    %11 = vector.broadcast %cst_12 : f32 to vector<128x256xf32>
    %12 = arith.maximumf %10, %11 : vector<128x256xf32>
    %13 = arith.truncf %12 : vector<128x256xf32> to vector<128x256xbf16>
    %c0_13 = arith.constant 0 : index
    %c0_14 = arith.constant 0 : index
    %14 = vector.load %arg7[%c0_13, %c0_14] : memref<256x512xbf16, #tpu.memory_space<vmem>>, vector<256x512xbf16>
    %cst_15 = arith.constant dense<0.000000e+00> : vector<128x512xf32>
    %15 = tpu.matmul %13, %14, %cst_15 {dimension_numbers = #tpu.dot_dimension_numbers<[1], [0], [0], [1], [0, 0, 1, 1], [], []>} : vector<128x256xbf16>, vector<256x512xbf16>, vector<128x512xf32> -> vector<128x512xf32>
    %c0_16 = arith.constant 0 : index
    %c0_17 = arith.constant 0 : index
    %16 = vector.load %arg8[%c0_16, %c0_17] : memref<256x512xbf16, #tpu.memory_space<vmem>>, vector<256x512xbf16>
    %cst_18 = arith.constant dense<0.000000e+00> : vector<128x512xf32>
    %17 = tpu.matmul %1, %16, %cst_18 {dimension_numbers = #tpu.dot_dimension_numbers<[1], [0], [0], [1], [0, 0, 1, 1], [], []>} : vector<128x256xbf16>, vector<256x512xbf16>, vector<128x512xf32> -> vector<128x512xf32>
    %18 = arith.addf %15, %17 : vector<128x512xf32>
    %c0_19 = arith.constant 0 : index
    %c0_20 = arith.constant 0 : index
    %19 = vector.load %arg9[%c0_19, %c0_20] : memref<1x512xf32, #tpu.memory_space<vmem>>, vector<1x512xf32>
    %20 = vector.broadcast %19 : vector<1x512xf32> to vector<128x512xf32>
    %21 = arith.addf %18, %20 : vector<128x512xf32>
    %cst_21 = arith.constant 0.000000e+00 : f32
    %22 = vector.broadcast %cst_21 : f32 to vector<128x512xf32>
    %23 = arith.maximumf %21, %22 : vector<128x512xf32>
    %c0_22 = arith.constant 0 : index
    %c0_23 = arith.constant 0 : index
    %24 = vector.load %arg10[%c0_22, %c0_23] : memref<256x256xbf16, #tpu.memory_space<vmem>>, vector<256x256xbf16>
    %cst_24 = arith.constant dense<0.000000e+00> : vector<128x256xf32>
    %25 = tpu.matmul %13, %24, %cst_24 {dimension_numbers = #tpu.dot_dimension_numbers<[1], [0], [0], [1], [0, 0, 1, 1], [], []>} : vector<128x256xbf16>, vector<256x256xbf16>, vector<128x256xf32> -> vector<128x256xf32>
    %c0_25 = arith.constant 0 : index
    %c0_26 = arith.constant 0 : index
    %26 = vector.load %arg11[%c0_25, %c0_26] : memref<256x256xbf16, #tpu.memory_space<vmem>>, vector<256x256xbf16>
    %cst_27 = arith.constant dense<0.000000e+00> : vector<128x256xf32>
    %27 = tpu.matmul %1, %26, %cst_27 {dimension_numbers = #tpu.dot_dimension_numbers<[1], [0], [0], [1], [0, 0, 1, 1], [], []>} : vector<128x256xbf16>, vector<256x256xbf16>, vector<128x256xf32> -> vector<128x256xf32>
    %28 = tpu.concatenate %25, %27 in 1 : vector<128x256xf32>, vector<128x256xf32> -> vector<128x512xf32>
    %c0_28 = arith.constant 0 : index
    %c0_29 = arith.constant 0 : index
    %29 = vector.load %arg12[%c0_28, %c0_29] : memref<1x512xf32, #tpu.memory_space<vmem>>, vector<1x512xf32>
    %30 = vector.broadcast %29 : vector<1x512xf32> to vector<128x512xf32>
    %31 = arith.addf %28, %30 : vector<128x512xf32>
    %cst_30 = arith.constant 0.000000e+00 : f32
    %32 = vector.broadcast %cst_30 : f32 to vector<128x512xf32>
    %33 = arith.maximumf %31, %32 : vector<128x512xf32>
    %34 = arith.addf %23, %33 : vector<128x512xf32>
    %35 = arith.truncf %34 : vector<128x512xf32> to vector<128x512xbf16>
    %c0_31 = arith.constant 0 : index
    %c0_32 = arith.constant 0 : index
    %36 = vector.load %arg4[%c0_31, %c0_32] : memref<8x128xbf16, #tpu.memory_space<vmem>>, vector<8x128xbf16>
    %cst_33 = arith.constant dense<0.000000e+00> : vector<8x512xf32>
    %37 = tpu.matmul %36, %35, %cst_33 {dimension_numbers = #tpu.dot_dimension_numbers<[1], [0], [0], [1], [0, 0, 1, 1], [], []>} : vector<8x128xbf16>, vector<128x512xbf16>, vector<8x512xf32> -> vector<8x512xf32>
    %38 = arith.truncf %37 : vector<8x512xf32> to vector<8x512xbf16>
    %c0_34 = arith.constant 0 : index
    %c0_35 = arith.constant 0 : index
    %39 = vector.load %arg13[%c0_34, %c0_35] : memref<512x1024xbf16, #tpu.memory_space<vmem>>, vector<512x1024xbf16>
    %cst_36 = arith.constant dense<0.000000e+00> : vector<8x1024xf32>
    %40 = tpu.matmul %38, %39, %cst_36 {dimension_numbers = #tpu.dot_dimension_numbers<[1], [0], [0], [1], [0, 0, 1, 1], [], []>} : vector<8x512xbf16>, vector<512x1024xbf16>, vector<8x1024xf32> -> vector<8x1024xf32>
    %c0_37 = arith.constant 0 : index
    %c0_38 = arith.constant 0 : index
    %41 = vector.load %arg14[%c0_37, %c0_38] : memref<1x1024xf32, #tpu.memory_space<vmem>>, vector<1x1024xf32>
    %42 = vector.broadcast %41 : vector<1x1024xf32> to vector<8x1024xf32>
    %43 = arith.addf %40, %42 : vector<8x1024xf32>
    %cst_39 = arith.constant 0.000000e+00 : f32
    %44 = vector.broadcast %cst_39 : f32 to vector<8x1024xf32>
    %45 = arith.maximumf %43, %44 : vector<8x1024xf32>
    %c0_40 = arith.constant 0 : index
    %c0_41 = arith.constant 0 : index
    %46 = memref.load %arg15[%c0_40, %c0_41] : memref<1x1xf32, #tpu.memory_space<smem>>
    %47 = vector.broadcast %46 : f32 to vector<8x1024xf32>
    %48 = arith.mulf %45, %47 : vector<8x1024xf32>
    %49 = arith.addf %48, %2 : vector<8x1024xf32>
    %c0_42 = arith.constant 0 : index
    %c0_43 = arith.constant 0 : index
    %50 = vector.load %arg16[%c0_42, %c0_43] : memref<8x1024xf32, #tpu.memory_space<vmem>>, vector<8x1024xf32>
    tpu.vector_store %arg16[%c0_42, %c0_43], %49 {strides = array<i32>} : memref<8x1024xf32, #tpu.memory_space<vmem>>, vector<8x1024xf32>,
    return
  }
}

</mosaic_0001>

<bundles_post_ra>
// kernel: tpu_custom_call.1
= control target key start
LH: loop header
LB: loop body
LE: loop exit
PB: predicated region body
PF: predicated region fallthrough
CT: control target
= control target key end

     0   :  { %s10814_s0 = inlined_call_operand.vmem [shape: bf16[32,512], index: 0, kind: input, shape index: {}]   ;;  %s10815_s1 = inlined_call_operand.hbm [shape: bf16[128,256], index: 1, kind: input, shape index: {}]   ;;  %s10816_s2 = inlined_call_operand.hbm [shape: f32[8,1024], index: 2, kind: input, shape index: {}]   ;;  %s10817_s3 = inlined_call_operand.vmem [shape: bf16[128,32], index: 3, kind: input, shape index: {}]   ;;  %s10818_s4 = inlined_call_operand.vmem [shape: bf16[8,128], index: 4, kind: input, shape index: {}]   ;;  %s10819_s5 = inlined_call_operand.hbm [shape: bf16[512,256], index: 5, kind: input, shape index: {}]   ;;  %s10820_s6 = inlined_call_operand.vmem [shape: f32[1,256], index: 6, kind: input, shape index: {}]   ;;  %s10821_s7 = inlined_call_operand.hbm [shape: bf16[256,512], index: 7, kind: input, shape index: {}]   ;;  %s10822_s8 = inlined_call_operand.hbm [shape: bf16[256,512], index: 8, kind: input, shape index: {}]   ;;  %s10823_s9 = inlined_call_operand.vmem [shape: f32[1,512], index: 9, kind: input, shape index: {}]   ;;  %s10824_s10 = inlined_call_operand.hbm [shape: bf16[256,256], index: 10, kind: input, shape index: {}]   ;;  %s10825_s11 = inlined_call_operand.hbm [shape: bf16[256,256], index: 11, kind: input, shape index: {}]   ;;  %s10826_s12 = inlined_call_operand.vmem [shape: f32[1,512], index: 12, kind: input, shape index: {}]   ;;  %s10827_s13 = inlined_call_operand.hbm [shape: bf16[512,1024], index: 13, kind: input, shape index: {}]   ;;  %s10828_s14 = inlined_call_operand.vmem [shape: f32[1,1024], index: 14, kind: input, shape index: {}]   ;;  %s10829_s15 = inlined_call_operand.<no memory space> [shape: f32[1,1], index: 15, kind: input, shape index: {}]   ;;  %s10830_s16 = inlined_call_operand.hbm [shape: f32[8,1024], index: 16, kind: output, shape index: {}]  }
   0x1   :  { %10864 = sst [smem:[#allocation76_spill]] %s10814_s0 }
   0x2   :  { %22 = vsyncpa [#allocation4], 0 }
   0x3   :  { %23 = vsyncpa [#allocation7], 0 }
   0x4   :  { %24 = vsyncpa [#allocation10], 0 }
   0x5   :  { %25 = vsyncpa [#allocation13], 0 }
   0x6   :  { %26 = vsyncpa [#allocation16], 0  ;;  %s48_s23 = sshll.u32 %s10816_s2, 4  ;;  %s49_s23 = int_to_ptr.hbm [resolvable:$true] %s48_s23 }
   0x7   :  { %27 = vsyncpa [#allocation5], 0  ;;  %s9247_s24 = smov [#allocation6]   ;;  %s77_s28 = sshll.u32 %s10821_s7, 4  ;;  %s78_s28 = int_to_ptr.hbm [resolvable:$true] %s77_s28 }
   0x8   :  { %s50_s25 = sshll.u32 %s9247_s24, 4  ;;  %s9248_s29 = smov [#allocation9]   ;;  %s51_s25 = int_to_ptr.vmem [resolvable:$true] %s50_s25 }
   0x9   :  { %53 = dma.hbm_to_vmem [thread:$0]  %s49_s23, 1024, %s51_s25, [#allocation7]  }
   0xa   :  { %s79_s30 = sshll.u32 %s9248_s29, 4  ;;  %s9249_s0 = smov 256   ;;  %s80_s30 = int_to_ptr.vmem [resolvable:$true] %s79_s30 }
   0xb   :  { %s9250_s17 = smov 16   ;;  %s105_s19 = sshll.u32 %s10824_s10, 4  ;;  %s106_s19 = int_to_ptr.hbm [resolvable:$true] %s105_s19 }
   0xc   :  { %85 = dma.hbm_to_vmem [thread:$0]  %s78_s28, 8192, %s80_s30, [#allocation10], %s9249_s0, %s9249_s0, %s9250_s17  }
   0xd   :  { %s9251_s20 = smov [#allocation12]   ;;  %s34_s23 = sshll.u32 %s10815_s1, 4  ;;  %s35_s23 = int_to_ptr.hbm [resolvable:$true] %s34_s23 }
   0xe   :  { %s107_s21 = sshll.u32 %s9251_s20, 4  ;;  %s9252_s24 = smov 128   ;;  %s108_s21 = int_to_ptr.vmem [resolvable:$true] %s107_s21 }
   0xf   :  { %s9253_s25 = smov 8   ;;  %s9254_s26 = smov [#allocation3]  }
  0x10   :  { %113 = dma.hbm_to_vmem [thread:$0]  %s106_s19, 4096, %s108_s21, [#allocation13], %s9252_s24, %s9252_s24, %s9253_s25  }
  0x11   :  { %s36_s27 = sshll.u32 %s9254_s26, 4  ;;  %s62_s10 = sshll.u32 %s10819_s5, 4  ;;  %s37_s27 = int_to_ptr.vmem [resolvable:$true] %s36_s27  ;;  %s63_s10 = int_to_ptr.hbm [resolvable:$true] %s62_s10 }
  0x12   :  { %42 = dma.hbm_to_vmem [thread:$0]  %s35_s23, 2048, %s37_s27, [#allocation4], %s9252_s24, %s9252_s24, %s9253_s25  }
  0x13   :  { %s90_s2 = sshll.u32 %s10822_s8, 4  ;;  %s9255_s18 = smov [#allocation8]   ;;  %s91_s2 = int_to_ptr.hbm [resolvable:$true] %s90_s2 }
  0x14   :  { %s64_s20 = sshll.u32 %s9255_s18, 4  ;;  %s9256_s19 = smov [#allocation11]   ;;  %s65_s20 = int_to_ptr.vmem [resolvable:$true] %s64_s20 }
  0x15   :  { %70 = dma.hbm_to_vmem [thread:$0]  %s63_s10, 8192, %s65_s20, [#allocation7], %s9252_s24, %s9252_s24, %s9253_s25  }
  0x16   :  { %s92_s5 = sshll.u32 %s9256_s19, 4  ;;  %s118_s22 = sshll.u32 %s10825_s11, 4  ;;  %s93_s5 = int_to_ptr.vmem [resolvable:$true] %s92_s5  ;;  %s119_s22 = int_to_ptr.hbm [resolvable:$true] %s118_s22 }
  0x17   :  { %98 = dma.hbm_to_vmem [thread:$0]  %s91_s2, 8192, %s93_s5, [#allocation10], %s9249_s0, %s9249_s0, %s9250_s17  }
  0x18   :  { %s133_s26 = sshll.u32 %s10827_s13, 4  ;;  %s9257_s27 = smov [#allocation14]   ;;  %s134_s26 = int_to_ptr.hbm [resolvable:$true] %s133_s26 }
  0x19   :  { %s120_s28 = sshll.u32 %s9257_s27, 4  ;;  %s9258_s29 = smov [#allocation15]   ;;  %s121_s28 = int_to_ptr.vmem [resolvable:$true] %s120_s28 }
  0x1a   :  { %126 = dma.hbm_to_vmem [thread:$0]  %s119_s22, 4096, %s121_s28, [#allocation13], %s9252_s24, %s9252_s24, %s9253_s25  }
  0x1b   :  { %s135_s11 = sshll.u32 %s9258_s29, 4  ;;  %s9259_s10 = smov 512   ;;  %s136_s11 = int_to_ptr.vmem [resolvable:$true] %s135_s11 }
  0x1c   :  { %s9260_s1 = smov 32  }
  0x1d   :  { %141 = dma.hbm_to_vmem [thread:$0]  %s134_s26, 32768, %s136_s11, [#allocation16], %s9259_s10, %s9259_s10, %s9260_s1  }
  0x1e   :  { %9235 = dma.done.wait [#allocation4], 2048  }
  0x1f   :  { %9236 = vsyncadd [#allocation4], 4294965248 }
  0x20   :  { %9237 = dma.done.wait [#allocation7], 9216  }
  0x21   :  { %9238 = vsyncadd [#allocation7], 4294958080 }
  0x22   :  { %9239 = dma.done.wait [#allocation10], 16384  }
  0x23   :  { %9240 = vsyncadd [#allocation10], 4294950912 }
  0x24   :  { %9241 = dma.done.wait [#allocation13], 8192  }
  0x25   :  { %9242 = vsyncadd [#allocation13], 4294959104 }
  0x26   :  { %9243 = dma.done.wait [#allocation16], 32768  }
  0x27   :  { %9244 = vsyncadd [#allocation16], 4294934528  ;;  %s10865_s17 = sld [smem:[#allocation76_spill]]  ;;  %v8484_v24 = vld [vmem:[%s10817_s3] sm:$0xff]  ;;  %vm307_vm0 = vcmask 261120   ;;  %v8485_v25 = vld [vmem:[%s10817_s3 + $0x8] sm:$0xff] }
  0x28   :  { %v8486_v26 = vld [vmem:[%s10817_s3 + $0x10] sm:$0xff]  ;;  %v8487_v27 = vld [vmem:[%s10817_s3 + $0x18] sm:$0xff]  ;;  %v8488_v28 = vld [vmem:[%s10817_s3 + $0x20] sm:$0xff]  ;;  %s6238_s22 = sshll.u32 %s10830_s16, 4  ;;  %s6239_s22 = int_to_ptr.hbm [resolvable:$true] %s6238_s22 }
  0x29   :  { %v6406_v29 = vld [vmem:[#allocation8 + $0x70] sm:$0xf]  ;;  %v8507_v30 = vld [vmem:[#allocation8 + $0x74] sm:$0xf0]  ;;  %v6398_v34 = vld [vmem:[#allocation8 + $0x60] sm:$0xf] }
  0x2a   :  { %v6470_v31 = vld [vmem:[#allocation8 + $0xf0] sm:$0xf]  ;;  %v6407_v32 = vor.u32 %v8507_v30, %v6406_v29  ;;  %v8523_v33 = vld [vmem:[#allocation8 + $0xf4] sm:$0xf0]  ;;  %v8505_v35 = vld [vmem:[#allocation8 + $0x64] sm:$0xf0] }
  0x2b   :  { %v6471_v36 = vor.u32 %v8523_v33, %v6470_v31  ;;  %v6462_v37 = vld [vmem:[#allocation8 + $0xe0] sm:$0xf]  ;;  %v8521_v38 = vld [vmem:[#allocation8 + $0xe4] sm:$0xf0]  ;;  %v6534_v39 = vld [vmem:[#allocation8 + $0x170] sm:$0xf]  ;;  %v6399_v40 = vor.u32 %v8505_v35, %v6398_v34 }
  0x2c   :  { %v8539_v41 = vld [vmem:[#allocation8 + $0x174] sm:$0xf0]  ;;  %v6598_v42 = vld [vmem:[#allocation8 + $0x1f0] sm:$0xf]  ;;  %v6463_v44 = vor.u32 %v8521_v38, %v6462_v37  ;;  %v8489_v47 = vld [vmem:[%s10817_s3 + $0x28] sm:$0xff] }
  0x2d   :  { %v6302_v0 = vld [vmem:[%s10865_s17 + $0x20] sm:$0xf]  ;;  %v8466_v1 = vld [vmem:[%s10865_s17 + $0x2c] sm:$0xf0]  ;;  %v8464_v2 = vld [vmem:[%s10865_s17 + $0x24] sm:$0xf]  ;;  %v6535_v45 = vor.u32 %v8539_v41, %v6534_v39 }
  0x2e   :  { %v6303_v3 = vor.u32 %v8466_v1, %v6302_v0  ;;  %v6304_v4 = vld [vmem:[%s10865_s17 + $0x30] sm:$0xf0]  ;;  %v6310_v5 = vld [vmem:[%s10865_s17 + $0x28] sm:$0xf]  ;;  %v8467_v6 = vld [vmem:[%s10865_s17 + $0x34] sm:$0xf0] }
  0x2f   :  { %v6307_v7 = vor.u32 %v8464_v2, %v6304_v4  ;;  %v6311_v8 = vor.u32 %v8467_v6, %v6310_v5  ;;  %v8465_v9 = vld [vmem:[%s10865_s17 + $0x2c] sm:$0xf]  ;;  %v6312_v10 = vld [vmem:[%s10865_s17 + $0x38] sm:$0xf0]  ;;  %v6286_v11 = vld [vmem:[%s10865_s17] sm:$0xf] }
  0x30   :  { %338 = vmatpush.bf16.msra.mxu0 %v6303_v3  ;;  %v6315_v12 = vor.u32 %v8465_v9, %v6312_v10  ;;  %v8462_v13 = vld [vmem:[%s10865_s17 + $0xc] sm:$0xf0]  ;;  %v8460_v14 = vld [vmem:[%s10865_s17 + $0x4] sm:$0xf]  ;;  %v6288_v15 = vld [vmem:[%s10865_s17 + $0x10] sm:$0xf0] }
  0x31   :  { %387 = vmatpush.bf16.msra.mxu1 %v6307_v7  ;;  %436 = vmatpush.bf16.msra.mxu2 %v6311_v8  ;;  %v6287_v16 = vor.u32 %v8462_v13, %v6286_v11  ;;  %v6291_v17 = vor.u32 %v8460_v14, %v6288_v15  ;;  %v6294_v18 = vld [vmem:[%s10865_s17 + $0x8] sm:$0xf]  ;;  %v8463_v19 = vld [vmem:[%s10865_s17 + $0x14] sm:$0xf0]  ;;  %v8461_v20 = vld [vmem:[%s10865_s17 + $0xc] sm:$0xf] }
  0x32   :  { %485 = vmatpush.bf16.msra.mxu3 %v6315_v12  ;;  %v6295_v21 = vor.u32 %v8463_v19, %v6294_v18  ;;  %v6296_v22 = vld [vmem:[%s10865_s17 + $0x18] sm:$0xf0]  ;;  %v8555_v43 = vld [vmem:[#allocation8 + $0x1f4] sm:$0xf0]  ;;  %v6390_v48 = vld [vmem:[#allocation8 + $0x50] sm:$0xf] }
  0x33   :  { %v6299_v23 = vor.u32 %v8461_v20, %v6296_v22  ;;  %v6599_v46 = vor.u32 %v8555_v43, %v6598_v42  ;;  %v8503_v49 = vld [vmem:[#allocation8 + $0x54] sm:$0xf0]  ;;  %v6454_v50 = vld [vmem:[#allocation8 + $0xd0] sm:$0xf]  ;;  %v6526_v54 = vld [vmem:[#allocation8 + $0x160] sm:$0xf] }
  0x34   :  { %339 = vmatpush.bf16.msra.mxu0 %v6287_v16  ;;  %v6391_v51 = vor.u32 %v8503_v49, %v6390_v48  ;;  %v8519_v52 = vld [vmem:[#allocation8 + $0xd4] sm:$0xf0]  ;;  %v8537_v55 = vld [vmem:[#allocation8 + $0x164] sm:$0xf0]  ;;  %v6590_v56 = vld [vmem:[#allocation8 + $0x1e0] sm:$0xf] }
  0x35   :  { %388 = vmatpush.bf16.msra.mxu1 %v6291_v17  ;;  %437 = vmatpush.bf16.msra.mxu2 %v6295_v21  ;;  %v6455_v53 = vor.u32 %v8519_v52, %v6454_v50  ;;  %v6527_v57 = vor.u32 %v8537_v55, %v6526_v54  ;;  %v8553_v58 = vld [vmem:[#allocation8 + $0x1e4] sm:$0xf0]  ;;  %v6382_v59 = vld [vmem:[#allocation8 + $0x40] sm:$0xf]  ;;  %v6518_v1 = vld [vmem:[#allocation8 + $0x150] sm:$0xf] }
  0x36   :  { %486 = vmatpush.bf16.msra.mxu3 %v6299_v23  ;;  %v8501_v60 = vld [vmem:[#allocation8 + $0x44] sm:$0xf0]  ;;  %v6591_v61 = vor.u32 %v8553_v58, %v6590_v56  ;;  %v6446_v63 = vld [vmem:[#allocation8 + $0xc0] sm:$0xf]  ;;  %v8535_v3 = vld [vmem:[#allocation8 + $0x154] sm:$0xf0] }
  0x37   :  { %6316 = vmatmul.msk.bf16.vlgmr.msra.gmra.mxu0 %vm307_vm0, %v8484_v24  ;;  %v6383_v62 = vor.u32 %v8501_v60, %v6382_v59  ;;  %v8517_v0 = vld [vmem:[#allocation8 + $0xc4] sm:$0xf0]  ;;  %v6582_v4 = vld [vmem:[#allocation8 + $0x1d0] sm:$0xf]  ;;  %v8551_v5 = vld [vmem:[#allocation8 + $0x1d4] sm:$0xf0]  ;;  %v6519_v6 = vor.u32 %v8535_v3, %v6518_v1 }
  0x38   :  { %6324 = vmatmul.msk.bf16.vlgmr.msra.gmra.mxu1 %vm307_vm0, %v8484_v24  ;;  %6332 = vmatmul.msk.bf16.vlgmr.msra.gmra.mxu2 %vm307_vm0, %v8484_v24  ;;  %v6447_v2 = vor.u32 %v8517_v0, %v6446_v63  ;;  %v6583_v7 = vor.u32 %v8551_v5, %v6582_v4  ;;  %v6374_v8 = vld [vmem:[#allocation8 + $0x30] sm:$0xf]  ;;  %v8499_v9 = vld [vmem:[#allocation8 + $0x34] sm:$0xf0]  ;;  %v6510_v13 = vld [vmem:[#allocation8 + $0x140] sm:$0xf] }
  0x39   :  { %6340 = vmatmul.msk.bf16.vlgmr.msra.gmra.mxu3 %vm307_vm0, %v8484_v24  ;;  %950 = vmatpush.bf16.msrb.mxu0 %v6407_v32  ;;  %v6438_v10 = vld [vmem:[#allocation8 + $0xb0] sm:$0xf]  ;;  %v6375_v11 = vor.u32 %v8499_v9, %v6374_v8  ;;  %v8515_v12 = vld [vmem:[#allocation8 + $0xb4] sm:$0xf0]  ;;  %v8533_v14 = vld [vmem:[#allocation8 + $0x144] sm:$0xf0] }
  0x3a   :  { %999 = vmatpush.bf16.msrb.mxu1 %v6471_v36  ;;  %1048 = vmatpush.bf16.msrb.mxu2 %v6535_v45  ;;  %v6439_v15 = vor.u32 %v8515_v12, %v6438_v10  ;;  %v6574_v16 = vld [vmem:[#allocation8 + $0x1c0] sm:$0xf]  ;;  %v8549_v17 = vld [vmem:[#allocation8 + $0x1c4] sm:$0xf0]  ;;  %v6511_v18 = vor.u32 %v8533_v14, %v6510_v13  ;;  %v8490_v20 = vld [vmem:[%s10817_s3 + $0x30] sm:$0xff] }
  0x3b   :  { %1097 = vmatpush.bf16.msrb.mxu3 %v6599_v46  ;;  %v6575_v19 = vor.u32 %v8549_v17, %v6574_v16  ;;  %v6366_v21 = vld [vmem:[#allocation8 + $0x20] sm:$0xf]  ;;  %v8497_v22 = vld [vmem:[#allocation8 + $0x24] sm:$0xf0]  ;;  %v6566_v29 = vld [vmem:[#allocation8 + $0x1b0] sm:$0xf] }
  0x3c   :  { %v6430_v23 = vld [vmem:[#allocation8 + $0xa0] sm:$0xf]  ;;  %v6367_v24 = vor.u32 %v8497_v22, %v6366_v21  ;;  %v8547_v31 = vld [vmem:[#allocation8 + $0x1b4] sm:$0xf0]  ;;  %v6358_v32 = vld [vmem:[#allocation8 + $0x10] sm:$0xf] }
  0x3d   :  { %951 = vmatpush.bf16.msrb.mxu0 %v6399_v40  ;;  %v8495_v33 = vld [vmem:[#allocation8 + $0x14] sm:$0xf0]  ;;  %v6567_v34 = vor.u32 %v8547_v31, %v6566_v29  ;;  %v6422_v36 = vld [vmem:[#allocation8 + $0x90] sm:$0xf]  ;;  %v6494_v39 = vld [vmem:[#allocation8 + $0x120] sm:$0xf] }
  0x3e   :  { %1000 = vmatpush.bf16.msrb.mxu1 %v6463_v44  ;;  %1049 = vmatpush.bf16.msrb.mxu2 %v6527_v57  ;;  %v6359_v35 = vor.u32 %v8495_v33, %v6358_v32  ;;  %v8511_v37 = vld [vmem:[#allocation8 + $0x94] sm:$0xf0]  ;;  %v8529_v40 = vld [vmem:[#allocation8 + $0x124] sm:$0xf0]  ;;  %v6558_v41 = vld [vmem:[#allocation8 + $0x1a0] sm:$0xf] }
  0x3f   :  { %1098 = vmatpush.bf16.msrb.mxu3 %v6591_v61  ;;  %v6423_v38 = vor.u32 %v8511_v37, %v6422_v36  ;;  %v6495_v42 = vor.u32 %v8529_v40, %v6494_v39  ;;  %v8545_v43 = vld [vmem:[#allocation8 + $0x1a4] sm:$0xf0]  ;;  %v6350_v45 = vld [vmem:[#allocation8] sm:$0xf]  ;;  %v8527_v52 = vld [vmem:[#allocation8 + $0x114] sm:$0xf0] }
  0x40   :  { %v6559_v44 = vor.u32 %v8545_v43, %v6558_v41  ;;  %v8493_v46 = vld [vmem:[#allocation8 + $0x4] sm:$0xf0]  ;;  %v8543_v55 = vld [vmem:[#allocation8 + $0x194] sm:$0xf0]  ;;  %v6478_v57 = vld [vmem:[#allocation8 + $0x100] sm:$0xf] }
  0x41   :  { %952 = vmatpush.bf16.msrb.mxu0 %v6391_v51  ;;  %v6351_v48 = vor.u32 %v8493_v46, %v6350_v45  ;;  %v8509_v49 = vld [vmem:[#allocation8 + $0x84] sm:$0xf0]  ;;  %v6486_v51 = vld [vmem:[#allocation8 + $0x110] sm:$0xf]  ;;  %v6542_v59 = vld [vmem:[#allocation8 + $0x180] sm:$0xf] }
  0x42   :  { %1001 = vmatpush.bf16.msrb.mxu1 %v6455_v53  ;;  %1050 = vmatpush.bf16.msrb.mxu2 %v6519_v6  ;;  %v6550_v53 = vld [vmem:[#allocation8 + $0x190] sm:$0xf]  ;;  %v6487_v54 = vor.u32 %v8527_v52, %v6486_v51  ;;  %v8525_v58 = vld [vmem:[#allocation8 + $0x104] sm:$0xf0] }
  0x43   :  { %1099 = vmatpush.bf16.msrb.mxu3 %v6583_v7  ;;  %v6551_v56 = vor.u32 %v8543_v55, %v6550_v53  ;;  %v6479_v60 = vor.u32 %v8525_v58, %v6478_v57  ;;  %v8541_v61 = vld [vmem:[#allocation8 + $0x184] sm:$0xf0]  ;;  %v6408_v57 = vld [vmem:[#allocation8 + $0x78] sm:$0xf0]  ;;  %v8522_v58 = vld [vmem:[#allocation8 + $0xf4] sm:$0xf] }
  0x44   :  { %v6543_v63 = vor.u32 %v8541_v61, %v6542_v59 }
  0x45   :  { %953 = vmatpush.bf16.msrb.mxu0 %v6383_v62  ;;  %v8491_v62 = vld [vmem:[%s10817_s3 + $0x38] sm:$0xff] }
  0x46   :  { %1002 = vmatpush.bf16.msrb.mxu1 %v6447_v2  ;;  %1051 = vmatpush.bf16.msrb.mxu2 %v6511_v18 }
  0x47   :  { %6317 = vmatmul.msk.bf16.gmra.mxu0 %vm307_vm0, %v8485_v25  ;;  %1100 = vmatpush.bf16.msrb.mxu3 %v6575_v19 }
  0x48   :  { %6325 = vmatmul.msk.bf16.gmra.mxu1 %vm307_vm0, %v8485_v25  ;;  %6333 = vmatmul.msk.bf16.gmra.mxu2 %vm307_vm0, %v8485_v25 }
  0x49   :  { %6341 = vmatmul.msk.bf16.gmra.mxu3 %vm307_vm0, %v8485_v25  ;;  %954 = vmatpush.bf16.msrb.mxu0 %v6375_v11  ;;  %v8513_v25 = vld [vmem:[#allocation8 + $0xa4] sm:$0xf0] }
  0x4a   :  { %1003 = vmatpush.bf16.msrb.mxu1 %v6439_v15 }
  0x4b   :  { %1101 = vmatpush.bf16.msrb.mxu3 %v6567_v34 }
  0x4d   :  { %955 = vmatpush.bf16.msrb.mxu0 %v6367_v24 }
  0x4f   :  { %1102 = vmatpush.bf16.msrb.mxu3 %v6559_v44 }
  0x51   :  { %956 = vmatpush.bf16.msrb.mxu0 %v6359_v35 }
  0x53   :  { %1103 = vmatpush.bf16.msrb.mxu3 %v6551_v56  ;;  %v8506_v56 = vld [vmem:[#allocation8 + $0x74] sm:$0xf] }
  0x54   :  { %v6411_v59 = vor.u32 %v8506_v56, %v6408_v57  ;;  %v8534_v57 = vld [vmem:[#allocation8 + $0x154] sm:$0xf] }
  0x55   :  { %957 = vmatpush.bf16.msrb.mxu0 %v6351_v48 }
  0x57   :  { %6318 = vmatmul.msk.bf16.gmra.mxu0 %vm307_vm0, %v8486_v26  ;;  %1104 = vmatpush.bf16.msrb.mxu3 %v6543_v63  ;;  %v8504_v63 = vld [vmem:[#allocation8 + $0x64] sm:$0xf] }
  0x58   :  { %6326 = vmatmul.msk.bf16.gmra.mxu1 %vm307_vm0, %v8486_v26  ;;  %6334 = vmatmul.msk.bf16.gmra.mxu2 %vm307_vm0, %v8486_v26 }
  0x59   :  { %6342 = vmatmul.msk.bf16.gmra.mxu3 %vm307_vm0, %v8486_v26  ;;  %v6431_v26 = vor.u32 %v8513_v25, %v6430_v23  ;;  %1146 = vmatpush.bf16.msra.mxu0 %v6411_v59  ;;  %v8550_v59 = vld [vmem:[#allocation8 + $0x1d4] sm:$0xf] }
  0x5b   :  { %1004 = vmatpush.bf16.msrb.mxu1 %v6431_v26 }
  0x5f   :  { %1005 = vmatpush.bf16.msrb.mxu1 %v6423_v38 }
  0x67   :  { %6319 = vmatmul.msk.bf16.gmra.mxu0 %vm307_vm0, %v8487_v27 }
  0x68   :  { %6327 = vmatmul.msk.bf16.gmra.mxu1 %vm307_vm0, %v8487_v27  ;;  %6335 = vmatmul.msk.bf16.gmra.mxu2 %vm307_vm0, %v8487_v27 }
  0x69   :  { %6343 = vmatmul.msk.bf16.gmra.mxu3 %vm307_vm0, %v8487_v27  ;;  %v6502_v27 = vld [vmem:[#allocation8 + $0x130] sm:$0xf] }
  0x77   :  { %6320 = vmatmul.msk.bf16.gmra.mxu0 %vm307_vm0, %v8488_v28 }
  0x78   :  { %6328 = vmatmul.msk.bf16.gmra.mxu1 %vm307_vm0, %v8488_v28  ;;  %6336 = vmatmul.msk.bf16.gmra.mxu2 %vm307_vm0, %v8488_v28 }
  0x79   :  { %6344 = vmatmul.msk.bf16.gmra.mxu3 %vm307_vm0, %v8488_v28  ;;  %v8531_v28 = vld [vmem:[#allocation8 + $0x134] sm:$0xf0] }
  0x7a   :  { %v6503_v30 = vor.u32 %v8531_v28, %v6502_v27 }
  0x7c   :  { %1052 = vmatpush.bf16.msrb.mxu2 %v6503_v30 }
  0x80   :  { %1053 = vmatpush.bf16.msrb.mxu2 %v6495_v42 }
  0x84   :  { %1054 = vmatpush.bf16.msrb.mxu2 %v6487_v54 }
  0x87   :  { %6321 = vmatmul.msk.bf16.gmra.mxu0 %vm307_vm0, %v8489_v47 }
  0x88   :  { %6329 = vmatmul.msk.bf16.gmra.mxu1 %vm307_vm0, %v8489_v47  ;;  %6337 = vmatmul.msk.bf16.gmra.mxu2 %vm307_vm0, %v8489_v47 }
  0x89   :  { %6345 = vmatmul.msk.bf16.gmra.mxu3 %vm307_vm0, %v8489_v47  ;;  %v6414_v47 = vld [vmem:[#allocation8 + $0x80] sm:$0xf]  ;;  %1055 = vmatpush.bf16.msrb.mxu2 %v6479_v60  ;;  %v6472_v60 = vld [vmem:[#allocation8 + $0xf8] sm:$0xf0] }
  0x8a   :  { %v6415_v50 = vor.u32 %v8509_v49, %v6414_v47  ;;  %v6475_v61 = vor.u32 %v8522_v58, %v6472_v60  ;;  %v6520_v58 = vld [vmem:[#allocation8 + $0x158] sm:$0xf0] }
  0x8c   :  { %1006 = vmatpush.bf16.msrb.mxu1 %v6415_v50 }
  0x90   :  { %1195 = vmatpush.bf16.msra.mxu1 %v6475_v61  ;;  %v6523_v61 = vor.u32 %v8534_v57, %v6520_v58  ;;  %v6496_v57 = vld [vmem:[#allocation8 + $0x128] sm:$0xf0] }
  0x97   :  { %6322 = vmatmul.msk.bf16.gmra.mxu0 %vm307_vm0, %v8490_v20 }
  0x98   :  { %6330 = vmatmul.msk.bf16.gmra.mxu1 %vm307_vm0, %v8490_v20  ;;  %6338 = vmatmul.msk.bf16.gmra.mxu2 %vm307_vm0, %v8490_v20 }
  0x99   :  { %6346 = vmatmul.msk.bf16.gmra.mxu3 %vm307_vm0, %v8490_v20 }
  0xa7   :  { %6323 = vmatmul.msk.bf16.gmra.mxu0 %vm307_vm0, %v8491_v62 }
  0xa8   :  { %6331 = vmatmul.msk.bf16.gmra.mxu1 %vm307_vm0, %v8491_v62  ;;  %6339 = vmatmul.msk.bf16.gmra.mxu2 %vm307_vm0, %v8491_v62 }
  0xa9   :  { %6347 = vmatmul.msk.bf16.gmra.mxu3 %vm307_vm0, %v8491_v62 }
  0xb4   :  { %v341_v0 = vpop.f32.mrf.mxu0 }
  0xb5   :  { %v390_v1 = vpop.f32.mrf.mxu1 }
  0xbb   :  { %v439_v2 = vpop.f32.mrf.mxu2 }
  0xbc   :  { %v488_v3 = vpop.f32.mrf.mxu3  ;;  %v343_v4 = vpop.f32.mrf.mxu0 }
  0xbd   :  { %v9493_v5 = vpack.c.bf16 %v343_v4, %v341_v0  ;;  %v392_v6 = vpop.f32.mrf.mxu1  ;;  %v6400_v0 = vld [vmem:[#allocation8 + $0x68] sm:$0xf0] }
  0xbe   :  { %v9495_v7 = vpack.c.bf16 %v392_v6, %v390_v1  ;;  %v8520_v1 = vld [vmem:[#allocation8 + $0xe4] sm:$0xf]  ;;  %v6403_v6 = vor.u32 %v8504_v63, %v6400_v0  ;;  %v8498_v0 = vld [vmem:[#allocation8 + $0x34] sm:$0xf] }
  0xbf   :  { %958 = vmatmul.bf16.vlgmr.msrb.gmra.mxu0 %v9493_v5 }
  0xc0   :  { %1007 = vmatmul.bf16.vlgmr.msrb.gmra.mxu1 %v9495_v7  ;;  %1147 = vmatpush.bf16.msra.mxu0 %v6403_v6  ;;  %v6440_v6 = vld [vmem:[#allocation8 + $0xb8] sm:$0xf0] }
  0xc3   :  { %v441_v8 = vpop.f32.mrf.mxu2 }
  0xc4   :  { %v9499_v9 = vpack.c.bf16 %v441_v8, %v439_v2  ;;  %v490_v10 = vpop.f32.mrf.mxu3  ;;  %v346_v11 = vpop.f32.mrf.mxu0  ;;  %v6464_v8 = vld [vmem:[#allocation8 + $0xe8] sm:$0xf0] }
  0xc5   :  { %v9501_v12 = vpack.c.bf16 %v490_v10, %v488_v3  ;;  %v395_v13 = vpop.f32.mrf.mxu1 }
  0xc6   :  { %1056 = vmatmul.bf16.vlgmr.msrb.gmra.mxu2 %v9499_v9 }
  0xc7   :  { %1105 = vmatmul.bf16.vlgmr.msrb.gmra.mxu3 %v9501_v12 }
  0xcb   :  { %v444_v14 = vpop.f32.mrf.mxu2 }
  0xcc   :  { %v493_v15 = vpop.f32.mrf.mxu3  ;;  %v348_v16 = vpop.f32.mrf.mxu0 }
  0xcd   :  { %v397_v17 = vpop.f32.mrf.mxu1  ;;  %v9505_v18 = vpack.c.bf16 %v348_v16, %v346_v11  ;;  %v8554_v16 = vld [vmem:[#allocation8 + $0x1f4] sm:$0xf] }
  0xce   :  { %v9507_v19 = vpack.c.bf16 %v397_v17, %v395_v13  ;;  %v6467_v13 = vor.u32 %v8520_v1, %v6464_v8  ;;  %v6376_v1 = vld [vmem:[#allocation8 + $0x38] sm:$0xf0] }
  0xcf   :  { %963 = vmatmul.bf16.gmra.mxu0 %v9505_v18 }
  0xd0   :  { %1012 = vmatmul.bf16.gmra.mxu1 %v9507_v19 }
  0xd1   :  { %1196 = vmatpush.bf16.msra.mxu1 %v6467_v13  ;;  %v8532_v13 = vld [vmem:[#allocation8 + $0x144] sm:$0xf] }
  0xd3   :  { %v446_v20 = vpop.f32.mrf.mxu2 }
  0xd4   :  { %v495_v21 = vpop.f32.mrf.mxu3  ;;  %v351_v22 = vpop.f32.mrf.mxu0  ;;  %v9511_v23 = vpack.c.bf16 %v446_v20, %v444_v14  ;;  %v8538_v14 = vld [vmem:[#allocation8 + $0x174] sm:$0xf]  ;;  %v6600_v20 = vld [vmem:[#allocation8 + $0x1f8] sm:$0xf0] }
  0xd5   :  { %v400_v24 = vpop.f32.mrf.mxu1  ;;  %v9513_v25 = vpack.c.bf16 %v495_v21, %v493_v15  ;;  %v6536_v15 = vld [vmem:[#allocation8 + $0x178] sm:$0xf0]  ;;  %v6603_v21 = vor.u32 %v8554_v16, %v6600_v20  ;;  %v6576_v16 = vld [vmem:[#allocation8 + $0x1c8] sm:$0xf0] }
  0xd6   :  { %1061 = vmatmul.bf16.gmra.mxu2 %v9511_v23  ;;  %v6539_v17 = vor.u32 %v8538_v14, %v6536_v15  ;;  %v8548_v14 = vld [vmem:[#allocation8 + $0x1c4] sm:$0xf] }
  0xd7   :  { %1110 = vmatmul.bf16.gmra.mxu3 %v9513_v25  ;;  %v6579_v20 = vor.u32 %v8548_v14, %v6576_v16 }
  0xd8   :  { %1244 = vmatpush.bf16.msra.mxu2 %v6539_v17  ;;  %1293 = vmatpush.bf16.msra.mxu3 %v6603_v21  ;;  %v8496_v21 = vld [vmem:[#allocation8 + $0x24] sm:$0xf] }
  0xdb   :  { %v449_v26 = vpop.f32.mrf.mxu2 }
  0xdc   :  { %v498_v27 = vpop.f32.mrf.mxu3  ;;  %v353_v28 = vpop.f32.mrf.mxu0 }
  0xdd   :  { %v402_v29 = vpop.f32.mrf.mxu1  ;;  %v9517_v30 = vpack.c.bf16 %v353_v28, %v351_v22  ;;  %v8502_v22 = vld [vmem:[#allocation8 + $0x54] sm:$0xf]  ;;  %v6456_v28 = vld [vmem:[#allocation8 + $0xd8] sm:$0xf0] }
  0xde   :  { %v9519_v31 = vpack.c.bf16 %v402_v29, %v400_v24  ;;  %v6392_v24 = vld [vmem:[#allocation8 + $0x58] sm:$0xf0] }
  0xdf   :  { %968 = vmatmul.bf16.gmra.mxu0 %v9517_v30 }
  0xe0   :  { %1017 = vmatmul.bf16.gmra.mxu1 %v9519_v31 }
  0xe3   :  { %v451_v32 = vpop.f32.mrf.mxu2 }
  0xe4   :  { %v500_v33 = vpop.f32.mrf.mxu3  ;;  %v356_v34 = vpop.f32.mrf.mxu0  ;;  %v9523_v35 = vpack.c.bf16 %v451_v32, %v449_v26  ;;  %v8518_v26 = vld [vmem:[#allocation8 + $0xd4] sm:$0xf]  ;;  %v8536_v32 = vld [vmem:[#allocation8 + $0x164] sm:$0xf] }
  0xe5   :  { %v405_v36 = vpop.f32.mrf.mxu1  ;;  %v9525_v37 = vpack.c.bf16 %v500_v33, %v498_v27  ;;  %v6395_v27 = vor.u32 %v8502_v22, %v6392_v24  ;;  %v6459_v29 = vor.u32 %v8518_v26, %v6456_v28  ;;  %v6528_v33 = vld [vmem:[#allocation8 + $0x168] sm:$0xf0]  ;;  %v8512_v24 = vld [vmem:[#allocation8 + $0xa4] sm:$0xf] }
  0xe6   :  { %1066 = vmatmul.bf16.gmra.mxu2 %v9523_v35  ;;  %v6368_v22 = vld [vmem:[#allocation8 + $0x28] sm:$0xf0] }
  0xe7   :  { %1115 = vmatmul.bf16.gmra.mxu3 %v9525_v37  ;;  %1148 = vmatpush.bf16.msra.mxu0 %v6395_v27 }
  0xe8   :  { %1197 = vmatpush.bf16.msra.mxu1 %v6459_v29  ;;  %v6371_v29 = vor.u32 %v8496_v21, %v6368_v22  ;;  %v8542_v21 = vld [vmem:[#allocation8 + $0x194] sm:$0xf] }
  0xeb   :  { %v454_v38 = vpop.f32.mrf.mxu2 }
  0xec   :  { %v503_v39 = vpop.f32.mrf.mxu3  ;;  %v358_v40 = vpop.f32.mrf.mxu0 }
  0xed   :  { %v407_v41 = vpop.f32.mrf.mxu1  ;;  %v9529_v42 = vpack.c.bf16 %v358_v40, %v356_v34  ;;  %v8552_v34 = vld [vmem:[#allocation8 + $0x1e4] sm:$0xf] }
  0xee   :  { %v9531_v43 = vpack.c.bf16 %v407_v41, %v405_v36  ;;  %v6531_v36 = vor.u32 %v8536_v32, %v6528_v33  ;;  %v8500_v41 = vld [vmem:[#allocation8 + $0x44] sm:$0xf]  ;;  %v6432_v32 = vld [vmem:[#allocation8 + $0xa8] sm:$0xf0] }
  0xef   :  { %973 = vmatmul.bf16.gmra.mxu0 %v9529_v42 }
  0xf0   :  { %1022 = vmatmul.bf16.gmra.mxu1 %v9531_v43  ;;  %1245 = vmatpush.bf16.msra.mxu2 %v6531_v36  ;;  %v6435_v36 = vor.u32 %v8512_v24, %v6432_v32  ;;  %v6480_v32 = vld [vmem:[#allocation8 + $0x108] sm:$0xf0] }
  0xf3   :  { %v456_v44 = vpop.f32.mrf.mxu2 }
  0xf4   :  { %v505_v45 = vpop.f32.mrf.mxu3  ;;  %v361_v46 = vpop.f32.mrf.mxu0  ;;  %v9535_v47 = vpack.c.bf16 %v456_v44, %v454_v38  ;;  %v6592_v38 = vld [vmem:[#allocation8 + $0x1e8] sm:$0xf0]  ;;  %1246 = vmatpush.bf16.msra.mxu2 %v6523_v61  ;;  %v8544_v61 = vld [vmem:[#allocation8 + $0x1a4] sm:$0xf] }
  0xf5   :  { %v410_v48 = vpop.f32.mrf.mxu1  ;;  %v9537_v49 = vpack.c.bf16 %v505_v45, %v503_v39  ;;  %v6595_v40 = vor.u32 %v8552_v34, %v6592_v38  ;;  %v6384_v44 = vld [vmem:[#allocation8 + $0x48] sm:$0xf0]  ;;  %v8516_v45 = vld [vmem:[#allocation8 + $0xc4] sm:$0xf]  ;;  %v8530_v38 = vld [vmem:[#allocation8 + $0x134] sm:$0xf] }
  0xf6   :  { %1071 = vmatmul.bf16.gmra.mxu2 %v9535_v47 }
  0xf7   :  { %1120 = vmatmul.bf16.gmra.mxu3 %v9537_v49 }
  0xf8   :  { %1294 = vmatpush.bf16.msra.mxu3 %v6595_v40  ;;  %v6504_v40 = vld [vmem:[#allocation8 + $0x138] sm:$0xf0] }
  0xfb   :  { %v459_v50 = vpop.f32.mrf.mxu2 }
  0xfc   :  { %v508_v51 = vpop.f32.mrf.mxu3  ;;  %v363_v52 = vpop.f32.mrf.mxu0 }
  0xfd   :  { %v9541_v53 = vpack.c.bf16 %v363_v52, %v361_v46  ;;  %v412_v54 = vpop.f32.mrf.mxu1 }
  0xfe   :  { %v9543_v55 = vpack.c.bf16 %v412_v54, %v410_v48 }
  0xff   :  { %978 = vmatmul.bf16.gmra.mxu0 %v9541_v53 }
 0x100   :  { %1027 = vmatmul.bf16.gmra.mxu1 %v9543_v55 }
 0x103   :  { %v461_v62 = vpop.f32.mrf.mxu2 }
 0x104   :  { %v9547_v2 = vpack.c.bf16 %v461_v62, %v459_v50  ;;  %v510_v3 = vpop.f32.mrf.mxu3  ;;  %v366_v4 = vpop.f32.mrf.mxu0  ;;  %v6387_v50 = vor.u32 %v8500_v41, %v6384_v44  ;;  %v6584_v62 = vld [vmem:[#allocation8 + $0x1d8] sm:$0xf0]  ;;  %v8546_v41 = vld [vmem:[#allocation8 + $0x1b4] sm:$0xf]  ;;  %v6507_v44 = vor.u32 %v8530_v38, %v6504_v40  ;;  %v6544_v40 = vld [vmem:[#allocation8 + $0x188] sm:$0xf0] }
 0x105   :  { %v9549_v10 = vpack.c.bf16 %v510_v3, %v508_v51  ;;  %v415_v11 = vpop.f32.mrf.mxu1  ;;  %v6448_v51 = vld [vmem:[#allocation8 + $0xc8] sm:$0xf0]  ;;  %v6587_v63 = vor.u32 %v8550_v59, %v6584_v62  ;;  %v8514_v3 = vld [vmem:[#allocation8 + $0xb4] sm:$0xf] }
 0x106   :  { %1076 = vmatmul.bf16.gmra.mxu2 %v9547_v2  ;;  %v6451_v56 = vor.u32 %v8516_v45, %v6448_v51  ;;  %1149 = vmatpush.bf16.msra.mxu0 %v6387_v50  ;;  %v6443_v8 = vor.u32 %v8514_v3, %v6440_v6  ;;  %v6568_v45 = vld [vmem:[#allocation8 + $0x1b8] sm:$0xf0]  ;;  %v8510_v51 = vld [vmem:[#allocation8 + $0x94] sm:$0xf]  ;;  %v6560_v62 = vld [vmem:[#allocation8 + $0x1a8] sm:$0xf0] }
 0x107   :  { %1125 = vmatmul.bf16.gmra.mxu3 %v9549_v10  ;;  %v6360_v50 = vld [vmem:[#allocation8 + $0x18] sm:$0xf0]  ;;  %v6352_v3 = vld [vmem:[#allocation8 + $0x8] sm:$0xf0] }
 0x108   :  { %1198 = vmatpush.bf16.msra.mxu1 %v6451_v56  ;;  %1295 = vmatpush.bf16.msra.mxu3 %v6587_v63  ;;  %v8528_v56 = vld [vmem:[#allocation8 + $0x124] sm:$0xf]  ;;  %v6563_v63 = vor.u32 %v8544_v61, %v6560_v62 }
 0x109   :  { %v6499_v59 = vor.u32 %v8528_v56, %v6496_v57 }
 0x10b   :  { %v464_v39 = vpop.f32.mrf.mxu2 }
 0x10c   :  { %v513_v46 = vpop.f32.mrf.mxu3  ;;  %v368_v48 = vpop.f32.mrf.mxu0  ;;  %1199 = vmatpush.bf16.msra.mxu1 %v6443_v8  ;;  %1296 = vmatpush.bf16.msra.mxu3 %v6579_v20  ;;  %v6488_v20 = vld [vmem:[#allocation8 + $0x118] sm:$0xf0] }
 0x10d   :  { %v9553_v52 = vpack.c.bf16 %v368_v48, %v366_v4  ;;  %v417_v54 = vpop.f32.mrf.mxu1  ;;  %v6379_v4 = vor.u32 %v8498_v0, %v6376_v1  ;;  %v8494_v48 = vld [vmem:[#allocation8 + $0x14] sm:$0xf]  ;;  %v8492_v1 = vld [vmem:[#allocation8 + $0x4] sm:$0xf] }
 0x10e   :  { %v9555_v60 = vpack.c.bf16 %v417_v54, %v415_v11  ;;  %v6512_v11 = vld [vmem:[#allocation8 + $0x148] sm:$0xf0]  ;;  %v6424_v54 = vld [vmem:[#allocation8 + $0x98] sm:$0xf0] }
 0x10f   :  { %983 = vmatmul.bf16.gmra.mxu0 %v9553_v52  ;;  %v6515_v15 = vor.u32 %v8532_v13, %v6512_v11  ;;  %v6427_v58 = vor.u32 %v8510_v51, %v6424_v54  ;;  %v6355_v13 = vor.u32 %v8492_v1, %v6352_v3  ;;  %v6416_v11 = vld [vmem:[#allocation8 + $0x88] sm:$0xf0] }
 0x110   :  { %1032 = vmatmul.bf16.gmra.mxu1 %v9555_v60  ;;  %1150 = vmatpush.bf16.msra.mxu0 %v6379_v4  ;;  %v8508_v4 = vld [vmem:[#allocation8 + $0x84] sm:$0xf] }
 0x111   :  { %1247 = vmatpush.bf16.msra.mxu2 %v6515_v15  ;;  %1200 = vmatpush.bf16.msra.mxu1 %v6435_v36  ;;  %v6419_v16 = vor.u32 %v8508_v4, %v6416_v11  ;;  %v8540_v36 = vld [vmem:[#allocation8 + $0x184] sm:$0xf] }
 0x113   :  { %v466_v17 = vpop.f32.mrf.mxu2 }
 0x114   :  { %v9559_v26 = vpack.c.bf16 %v466_v17, %v464_v39  ;;  %v515_v27 = vpop.f32.mrf.mxu3  ;;  %v371_v28 = vpop.f32.mrf.mxu0  ;;  %1151 = vmatpush.bf16.msra.mxu0 %v6371_v29  ;;  %v6571_v39 = vor.u32 %v8546_v41, %v6568_v45  ;;  %v8526_v17 = vld [vmem:[#allocation8 + $0x114] sm:$0xf]  ;;  %v6547_v41 = vor.u32 %v8540_v36, %v6544_v40 }
 0x115   :  { %v9561_v33 = vpack.c.bf16 %v515_v27, %v513_v46  ;;  %v420_v34 = vpop.f32.mrf.mxu1  ;;  %1248 = vmatpush.bf16.msra.mxu2 %v6507_v44  ;;  %v6363_v46 = vor.u32 %v8494_v48, %v6360_v50  ;;  %1201 = vmatpush.bf16.msra.mxu1 %v6427_v58  ;;  %v6491_v24 = vor.u32 %v8526_v17, %v6488_v20  ;;  %v6552_v27 = vld [vmem:[#allocation8 + $0x198] sm:$0xf0] }
 0x116   :  { %1081 = vmatmul.bf16.gmra.mxu2 %v9559_v26  ;;  %1297 = vmatpush.bf16.msra.mxu3 %v6571_v39  ;;  %v6555_v29 = vor.u32 %v8542_v21, %v6552_v27 }
 0x117   :  { %1130 = vmatmul.bf16.gmra.mxu3 %v9561_v33 }
 0x118   :  { %1152 = vmatpush.bf16.msra.mxu0 %v6363_v46 }
 0x119   :  { %1249 = vmatpush.bf16.msra.mxu2 %v6499_v59  ;;  %1202 = vmatpush.bf16.msra.mxu1 %v6419_v16 }
 0x11a   :  { %1298 = vmatpush.bf16.msra.mxu3 %v6563_v63 }
 0x11b   :  { %v469_v0 = vpop.f32.mrf.mxu2 }
 0x11c   :  { %v518_v6 = vpop.f32.mrf.mxu3  ;;  %v373_v8 = vpop.f32.mrf.mxu0  ;;  %1153 = vmatpush.bf16.msra.mxu0 %v6355_v13 }
 0x11d   :  { %v9565_v14 = vpack.c.bf16 %v373_v8, %v371_v28  ;;  %v422_v15 = vpop.f32.mrf.mxu1  ;;  %1250 = vmatpush.bf16.msra.mxu2 %v6491_v24  ;;  %v8524_v28 = vld [vmem:[#allocation8 + $0x104] sm:$0xf] }
 0x11e   :  { %v9567_v22 = vpack.c.bf16 %v422_v15, %v420_v34  ;;  %1299 = vmatpush.bf16.msra.mxu3 %v6555_v29  ;;  %v6483_v38 = vor.u32 %v8524_v28, %v6480_v32 }
 0x11f   :  { %988 = vmatmul.bf16.gmra.mxu0 %v9565_v14 }
 0x120   :  { %1037 = vmatmul.bf16.gmra.mxu1 %v9567_v22 }
 0x121   :  { %1251 = vmatpush.bf16.msra.mxu2 %v6483_v38 }
 0x122   :  { %1300 = vmatpush.bf16.msra.mxu3 %v6547_v41 }
 0x123   :  { %v471_v44 = vpop.f32.mrf.mxu2 }
 0x124   :  { %v9571_v34 = vpack.c.bf16 %v471_v44, %v469_v0  ;;  %v520_v45 = vpop.f32.mrf.mxu3  ;;  %v376_v39 = vpop.f32.mrf.mxu0  ;;  %v9591_v0 = vld [vmem:[%s10820_s6] sm:$0x3] }
 0x125   :  { %v9573_v48 = vpack.c.bf16 %v520_v45, %v518_v6  ;;  %v425_v50 = vpop.f32.mrf.mxu1  ;;  %v9595_v1 = vperm.slane %v9591_v0, 0 }
 0x126   :  { %1086 = vmatmul.bf16.gmra.mxu2 %v9571_v34 }
 0x127   :  { %1135 = vmatmul.bf16.gmra.mxu3 %v9573_v48 }
 0x12b   :  { %v474_v51 = vpop.f32.mrf.mxu2 }
 0x12c   :  { %v523_v46 = vpop.f32.mrf.mxu3  ;;  %v378_v54 = vpop.f32.mrf.mxu0 }
 0x12d   :  { %v9577_v56 = vpack.c.bf16 %v378_v54, %v376_v39  ;;  %v427_v57 = vpop.f32.mrf.mxu1 }
 0x12e   :  { %v9579_v58 = vpack.c.bf16 %v427_v57, %v425_v50 }
 0x12f   :  { %993 = vmatmul.bf16.gmra.mxu0 %v9577_v56 }
 0x130   :  { %1042 = vmatmul.bf16.gmra.mxu1 %v9579_v58 }
 0x133   :  { %v476_v59 = vpop.f32.mrf.mxu2 }
 0x134   :  { %v9583_v61 = vpack.c.bf16 %v476_v59, %v474_v51  ;;  %v525_v62 = vpop.f32.mrf.mxu3 }
 0x135   :  { %v9585_v63 = vpack.c.bf16 %v525_v62, %v523_v46 }
 0x136   :  { %1091 = vmatmul.bf16.gmra.mxu2 %v9583_v61 }
 0x137   :  { %1140 = vmatmul.bf16.gmra.mxu3 %v9585_v63 }
 0x13c   :  { %v959_v3 = vpop.f32.mrf.mxu0 }
 0x13d   :  { %v960_v4 = vadd.f32 %v959_v3, %v9595_v1  ;;  %v1008_v6 = vpop.f32.mrf.mxu1 }
 0x13f   :  { %v1009_v8 = vadd.f32 %v1008_v6, %v960_v4  ;;  %1154 = vmatmul.bf16.vlgmr.msra.gmra.mxu0 %v9493_v5 }
 0x140   :  { %1203 = vmatmul.bf16.vlgmr.msra.gmra.mxu1 %v9495_v7 }
 0x144   :  { %v961_v13 = vpop.f32.mrf.mxu0 }
 0x145   :  { %v962_v11 = vadd.f32 %v961_v13, %v9595_v1  ;;  %v1010_v15 = vpop.f32.mrf.mxu1 }
 0x146   :  { %1252 = vmatmul.bf16.vlgmr.msra.gmra.mxu2 %v9499_v9 }
 0x147   :  { %v1011_v16 = vadd.f32 %v1010_v15, %v962_v11  ;;  %1301 = vmatmul.bf16.vlgmr.msra.gmra.mxu3 %v9501_v12 }
 0x149   :  { %v1057_v17 = vpop.f32.mrf.mxu2 }
 0x14a   :  { %v1058_v20 = vadd.f32 %v1057_v17, %v1009_v8  ;;  %v1106_v21 = vpop.f32.mrf.mxu3 }
 0x14c   :  { %v1107_v24 = vadd.f32 %v1106_v21, %v1058_v20  ;;  %v964_v27 = vpop.f32.mrf.mxu0 }
 0x14d   :  { %v965_v29 = vadd.f32 %v964_v27, %v9595_v1  ;;  %v1013_v28 = vpop.f32.mrf.mxu1 }
 0x14e   :  { %v1342_v41 = vmax.f32 %v1107_v24, 0.0 }
 0x14f   :  { %v1014_v5 = vadd.f32 %v1013_v28, %v965_v29  ;;  %1159 = vmatmul.bf16.gmra.mxu0 %v9505_v18 }
 0x150   :  { %1208 = vmatmul.bf16.gmra.mxu1 %v9507_v19 }
 0x151   :  { %v1059_v7 = vpop.f32.mrf.mxu2 }
 0x152   :  { %v1060_v32 = vadd.f32 %v1059_v7, %v1011_v16  ;;  %v1108_v36 = vpop.f32.mrf.mxu3 }
 0x154   :  { %v1109_v9 = vadd.f32 %v1108_v36, %v1060_v32  ;;  %v966_v38 = vpop.f32.mrf.mxu0 }
 0x155   :  { %v967_v12 = vadd.f32 %v966_v38, %v9595_v1  ;;  %v1015_v40 = vpop.f32.mrf.mxu1 }
 0x156   :  { %v1344_v44 = vmax.f32 %v1109_v9, 0.0  ;;  %1257 = vmatmul.bf16.gmra.mxu2 %v9511_v23 }
 0x157   :  { %v1016_v45 = vadd.f32 %v1015_v40, %v967_v12  ;;  %1306 = vmatmul.bf16.gmra.mxu3 %v9513_v25 }
 0x158   :  { %v9609_v39 = vpack.c.bf16 %v1344_v44, %v1342_v41 }
 0x159   :  { %v1062_v18 = vpop.f32.mrf.mxu2 }
 0x15a   :  { %v1063_v50 = vadd.f32 %v1062_v18, %v1014_v5  ;;  %v1111_v19 = vpop.f32.mrf.mxu3 }
 0x15c   :  { %v1112_v51 = vadd.f32 %v1111_v19, %v1063_v50  ;;  %v969_v46 = vpop.f32.mrf.mxu0 }
 0x15d   :  { %v970_v54 = vadd.f32 %v969_v46, %v9595_v1  ;;  %v1018_v57 = vpop.f32.mrf.mxu1  ;;  %v8650_v46 = vld [vmem:[#allocation11 + $0xec] sm:$0xf0] }
 0x15e   :  { %v1346_v13 = vmax.f32 %v1112_v51, 0.0  ;;  %v6782_v51 = vld [vmem:[#allocation11 + $0xe0] sm:$0xf] }
 0x15f   :  { %v1019_v59 = vadd.f32 %v1018_v57, %v970_v54  ;;  %1164 = vmatmul.bf16.gmra.mxu0 %v9517_v30  ;;  %v6910_v54 = vld [vmem:[#allocation11 + $0x1e0] sm:$0xf] }
 0x160   :  { %1213 = vmatmul.bf16.gmra.mxu1 %v9519_v31 }
 0x161   :  { %v1064_v62 = vpop.f32.mrf.mxu2 }
 0x162   :  { %v1065_v23 = vadd.f32 %v1064_v62, %v1016_v45  ;;  %v1113_v3 = vpop.f32.mrf.mxu3 }
 0x164   :  { %v1114_v4 = vadd.f32 %v1113_v3, %v1065_v23  ;;  %v971_v25 = vpop.f32.mrf.mxu0  ;;  %v6766_v3 = vld [vmem:[#allocation11 + $0xc0] sm:$0xf] }
 0x165   :  { %v972_v6 = vadd.f32 %v971_v25, %v9595_v1  ;;  %v1020_v8 = vpop.f32.mrf.mxu1  ;;  %v6894_v25 = vld [vmem:[#allocation11 + $0x1c0] sm:$0xf] }
 0x166   :  { %v1348_v11 = vmax.f32 %v1114_v4, 0.0  ;;  %1262 = vmatmul.bf16.gmra.mxu2 %v9523_v35  ;;  %v8646_v4 = vld [vmem:[#allocation11 + $0xcc] sm:$0xf0] }
 0x167   :  { %v1021_v15 = vadd.f32 %v1020_v8, %v972_v6  ;;  %1311 = vmatmul.bf16.gmra.mxu3 %v9525_v37 }
 0x168   :  { %v9617_v16 = vpack.c.bf16 %v1348_v11, %v1346_v13  ;;  %v6767_v13 = vor.u32 %v8646_v4, %v6766_v3  ;;  %v8672_v3 = vld [vmem:[#allocation11 + $0x1a4] sm:$0xf] }
 0x169   :  { %v1067_v30 = vpop.f32.mrf.mxu2 }
 0x16a   :  { %v1068_v17 = vadd.f32 %v1067_v30, %v1019_v59  ;;  %v1116_v31 = vpop.f32.mrf.mxu3 }
 0x16c   :  { %v1117_v20 = vadd.f32 %v1116_v31, %v1068_v17  ;;  %v974_v21 = vpop.f32.mrf.mxu0  ;;  %v6784_v17 = vld [vmem:[#allocation11 + $0xf0] sm:$0xf0]  ;;  %v8680_v31 = vld [vmem:[#allocation11 + $0x1e4] sm:$0xf] }
 0x16d   :  { %v975_v24 = vadd.f32 %v974_v21, %v9595_v1  ;;  %v1023_v27 = vpop.f32.mrf.mxu1 }
 0x16e   :  { %v1350_v9 = vmax.f32 %v1117_v20, 0.0 }
 0x16f   :  { %v1024_v29 = vadd.f32 %v1023_v27, %v975_v24  ;;  %1169 = vmatmul.bf16.gmra.mxu0 %v9529_v42  ;;  %v6912_v27 = vld [vmem:[#allocation11 + $0x1f0] sm:$0xf0] }
 0x170   :  { %1218 = vmatmul.bf16.gmra.mxu1 %v9531_v43 }
 0x171   :  { %v1069_v28 = vpop.f32.mrf.mxu2 }
 0x172   :  { %v1070_v35 = vadd.f32 %v1069_v28, %v1021_v15  ;;  %v1118_v5 = vpop.f32.mrf.mxu3  ;;  %v6915_v28 = vor.u32 %v8680_v31, %v6912_v27  ;;  %v8636_v31 = vld [vmem:[#allocation11 + $0x84] sm:$0xf] }
 0x174   :  { %v1119_v7 = vadd.f32 %v1118_v5, %v1070_v35  ;;  %v976_v37 = vpop.f32.mrf.mxu0  ;;  %v6750_v35 = vld [vmem:[#allocation11 + $0xa0] sm:$0xf]  ;;  %v8642_v5 = vld [vmem:[#allocation11 + $0xac] sm:$0xf0]  ;;  %2065 = vmatpush.bf16.msrb.mxu3 %v6915_v28  ;;  %v6864_v28 = vld [vmem:[#allocation11 + $0x190] sm:$0xf0] }
 0x175   :  { %v977_v32 = vadd.f32 %v976_v37, %v9595_v1  ;;  %v1025_v36 = vpop.f32.mrf.mxu1 }
 0x176   :  { %v1352_v38 = vmax.f32 %v1119_v7, 0.0  ;;  %1267 = vmatmul.bf16.gmra.mxu2 %v9535_v47  ;;  %v6783_v47 = vor.u32 %v8650_v46, %v6782_v51  ;;  %v6878_v7 = vld [vmem:[#allocation11 + $0x1a0] sm:$0xf] }
 0x177   :  { %v1026_v12 = vadd.f32 %v1025_v36, %v977_v32  ;;  %1316 = vmatmul.bf16.gmra.mxu3 %v9537_v49  ;;  %v8682_v49 = vld [vmem:[#allocation11 + $0x1ec] sm:$0xf0]  ;;  %v6751_v32 = vor.u32 %v8642_v5, %v6750_v35  ;;  %v6862_v51 = vld [vmem:[#allocation11 + $0x180] sm:$0xf] }
 0x178   :  { %v9625_v40 = vpack.c.bf16 %v1352_v38, %v1350_v9  ;;  %v6911_v59 = vor.u32 %v8682_v49, %v6910_v54  ;;  %1918 = vmatpush.bf16.msrb.mxu0 %v6783_v47  ;;  %v8674_v36 = vld [vmem:[#allocation11 + $0x1ac] sm:$0xf0]  ;;  %v6702_v5 = vld [vmem:[#allocation11 + $0x40] sm:$0xf] }
 0x179   :  { %v1072_v42 = vpop.f32.mrf.mxu2  ;;  %v6879_v38 = vor.u32 %v8674_v36, %v6878_v7  ;;  %v8670_v49 = vld [vmem:[#allocation11 + $0x18c] sm:$0xf0] }
 0x17a   :  { %v1073_v41 = vadd.f32 %v1072_v42, %v1024_v29  ;;  %v1121_v43 = vpop.f32.mrf.mxu3  ;;  %1967 = vmatpush.bf16.msrb.mxu1 %v6911_v59  ;;  %v8676_v42 = vld [vmem:[#allocation11 + $0x1c4] sm:$0xf]  ;;  %v8630_v7 = vld [vmem:[#allocation11 + $0x4c] sm:$0xf0] }
 0x17c   :  { %v1122_v44 = vadd.f32 %v1121_v43, %v1073_v41  ;;  %v979_v45 = vpop.f32.mrf.mxu0  ;;  %1919 = vmatpush.bf16.msrb.mxu0 %v6767_v13  ;;  %v6718_v13 = vld [vmem:[#allocation11 + $0x60] sm:$0xf] }
 0x17d   :  { %v980_v18 = vadd.f32 %v979_v45, %v9595_v1  ;;  %v1028_v50 = vpop.f32.mrf.mxu1 }
 0x17e   :  { %v1354_v20 = vmax.f32 %v1122_v44, 0.0  ;;  %v6896_v44 = vld [vmem:[#allocation11 + $0x1d0] sm:$0xf0] }
 0x17f   :  { %v1029_v19 = vadd.f32 %v1028_v50, %v980_v18  ;;  %1174 = vmatmul.bf16.gmra.mxu0 %v9541_v53  ;;  %v8678_v53 = vld [vmem:[#allocation11 + $0x1cc] sm:$0xf0]  ;;  %v6899_v45 = vor.u32 %v8676_v42, %v6896_v44  ;;  %v6734_v18 = vld [vmem:[#allocation11 + $0x80] sm:$0xf] }
 0x180   :  { %1223 = vmatmul.bf16.gmra.mxu1 %v9543_v55  ;;  %v6895_v30 = vor.u32 %v8678_v53, %v6894_v25  ;;  %v8648_v55 = vld [vmem:[#allocation11 + $0xe4] sm:$0xf]  ;;  %1920 = vmatpush.bf16.msrb.mxu0 %v6751_v32  ;;  %v8638_v50 = vld [vmem:[#allocation11 + $0x8c] sm:$0xf0]  ;;  %v6880_v25 = vld [vmem:[#allocation11 + $0x1b0] sm:$0xf0] }
 0x181   :  { %v1074_v57 = vpop.f32.mrf.mxu2  ;;  %v6787_v24 = vor.u32 %v8648_v55, %v6784_v17  ;;  %v6735_v47 = vor.u32 %v8638_v50, %v6734_v18  ;;  %2066 = vmatpush.bf16.msrb.mxu3 %v6899_v45  ;;  %v8634_v53 = vld [vmem:[#allocation11 + $0x6c] sm:$0xf0]  ;;  %v6830_v32 = vld [vmem:[#allocation11 + $0x140] sm:$0xf]  ;;  %v6848_v18 = vld [vmem:[#allocation11 + $0x170] sm:$0xf0] }
 0x182   :  { %v1075_v62 = vadd.f32 %v1074_v57, %v1026_v12  ;;  %v1123_v23 = vpop.f32.mrf.mxu3  ;;  %1968 = vmatpush.bf16.msrb.mxu1 %v6895_v30  ;;  %v6768_v12 = vld [vmem:[#allocation11 + $0xd0] sm:$0xf0]  ;;  %v8666_v30 = vld [vmem:[#allocation11 + $0x16c] sm:$0xf0] }
 0x183   :  { %2016 = vmatpush.bf16.msrb.mxu2 %v6787_v24 }
 0x184   :  { %v1124_v6 = vadd.f32 %v1123_v23, %v1075_v62  ;;  %v981_v8 = vpop.f32.mrf.mxu0  ;;  %v8640_v62 = vld [vmem:[#allocation11 + $0xa4] sm:$0xf]  ;;  %v6752_v23 = vld [vmem:[#allocation11 + $0xb0] sm:$0xf0]  ;;  %1921 = vmatpush.bf16.msrb.mxu0 %v6735_v47  ;;  %v8626_v47 = vld [vmem:[#allocation11 + $0x2c] sm:$0xf0] }
 0x185   :  { %v982_v11 = vadd.f32 %v981_v8, %v9595_v1  ;;  %v1030_v15 = vpop.f32.mrf.mxu1  ;;  %v6755_v4 = vor.u32 %v8640_v62, %v6752_v23  ;;  %v6883_v8 = vor.u32 %v8672_v3, %v6880_v25  ;;  %v6704_v23 = vld [vmem:[#allocation11 + $0x50] sm:$0xf0]  ;;  %v8660_v3 = vld [vmem:[#allocation11 + $0x144] sm:$0xf] }
 0x186   :  { %v1356_v21 = vmax.f32 %v1124_v6, 0.0  ;;  %1272 = vmatmul.bf16.gmra.mxu2 %v9547_v2  ;;  %v8644_v2 = vld [vmem:[#allocation11 + $0xc4] sm:$0xf]  ;;  %1969 = vmatpush.bf16.msrb.mxu1 %v6879_v38  ;;  %v8662_v38 = vld [vmem:[#allocation11 + $0x14c] sm:$0xf0] }
 0x187   :  { %v1031_v29 = vadd.f32 %v1030_v15, %v982_v11  ;;  %1321 = vmatmul.bf16.gmra.mxu3 %v9549_v10  ;;  %v6771_v10 = vor.u32 %v8644_v2, %v6768_v12  ;;  %v6846_v11 = vld [vmem:[#allocation11 + $0x160] sm:$0xf]  ;;  %v6719_v15 = vor.u32 %v8634_v53, %v6718_v13  ;;  %v6831_v42 = vor.u32 %v8662_v38, %v6830_v32 }
 0x188   :  { %v9633_v37 = vpack.c.bf16 %v1356_v21, %v1354_v20  ;;  %2067 = vmatpush.bf16.msrb.mxu3 %v6883_v8  ;;  %v6847_v17 = vor.u32 %v8666_v30, %v6846_v11  ;;  %v6736_v20 = vld [vmem:[#allocation11 + $0x90] sm:$0xf0]  ;;  %v8668_v21 = vld [vmem:[#allocation11 + $0x184] sm:$0xf]  ;;  %v6670_v53 = vld [vmem:[#allocation11] sm:$0xf] }
 0x189   :  { %v1077_v9 = vpop.f32.mrf.mxu2  ;;  %2017 = vmatpush.bf16.msrb.mxu2 %v6771_v10  ;;  %1922 = vmatpush.bf16.msrb.mxu0 %v6719_v15  ;;  %v6867_v35 = vor.u32 %v8668_v21, %v6864_v28  ;;  %v6832_v8 = vld [vmem:[#allocation11 + $0x150] sm:$0xf0]  ;;  %v8622_v11 = vld [vmem:[#allocation11 + $0xc] sm:$0xf0]  ;;  %v6798_v15 = vld [vmem:[#allocation11 + $0x100] sm:$0xf] }
 0x18a   :  { %v1078_v41 = vadd.f32 %v1077_v9, %v1029_v19  ;;  %v1126_v43 = vpop.f32.mrf.mxu3  ;;  %v6863_v19 = vor.u32 %v8670_v49, %v6862_v51  ;;  %v6703_v9 = vor.u32 %v8630_v7, %v6702_v5  ;;  %v6814_v49 = vld [vmem:[#allocation11 + $0x120] sm:$0xf]  ;;  %v6835_v13 = vor.u32 %v8660_v3, %v6832_v8  ;;  %v8656_v28 = vld [vmem:[#allocation11 + $0x124] sm:$0xf] }
 0x18c   :  { %v9635_v46 = vadd.f32 %v1126_v43, %v1078_v41  ;;  %v984_v54 = vpop.f32.mrf.mxu0  ;;  %1970 = vmatpush.bf16.msrb.mxu1 %v6863_v19  ;;  %2068 = vmatpush.bf16.msrb.mxu3 %v6867_v35  ;;  %v6720_v41 = vld [vmem:[#allocation11 + $0x70] sm:$0xf0]  ;;  %v8664_v43 = vld [vmem:[#allocation11 + $0x164] sm:$0xf]  ;;  %v8658_v19 = vld [vmem:[#allocation11 + $0x12c] sm:$0xf0] }
 0x18d   :  { %v985_v57 = vadd.f32 %v984_v54, %v9595_v1  ;;  %v1033_v59 = vpop.f32.mrf.mxu1  ;;  %2018 = vmatpush.bf16.msrb.mxu2 %v6755_v4  ;;  %1923 = vmatpush.bf16.msrb.mxu0 %v6703_v9  ;;  %v6851_v51 = vor.u32 %v8664_v43, %v6848_v18  ;;  %v6686_v54 = vld [vmem:[#allocation11 + $0x20] sm:$0xf]  ;;  %v6815_v62 = vor.u32 %v8658_v19, %v6814_v49  ;;  %v6816_v35 = vld [vmem:[#allocation11 + $0x130] sm:$0xf0]  ;;  %v8652_v9 = vld [vmem:[#allocation11 + $0x104] sm:$0xf] }
 0x18e   :  { %v1358_v10 = vmax.f32 %v9635_v46, 0.0  ;;  %v6819_v7 = vor.u32 %v8656_v28, %v6816_v35 }
 0x18f   :  { %v1034_v6 = vadd.f32 %v1033_v59, %v985_v57  ;;  %1179 = vmatmul.bf16.gmra.mxu0 %v9553_v52  ;;  %v6739_v52 = vor.u32 %v8636_v31, %v6736_v20  ;;  %v6687_v59 = vor.u32 %v8626_v47, %v6686_v54  ;;  %v8654_v31 = vld [vmem:[#allocation11 + $0x10c] sm:$0xf0] }
 0x190   :  { %1228 = vmatmul.bf16.gmra.mxu1 %v9555_v60  ;;  %2069 = vmatpush.bf16.msrb.mxu3 %v6851_v51 }
 0x191   :  { %v1079_v55 = vpop.f32.mrf.mxu2  ;;  %1971 = vmatpush.bf16.msrb.mxu1 %v6847_v17  ;;  %2019 = vmatpush.bf16.msrb.mxu2 %v6739_v52  ;;  %v6671_v17 = vor.u32 %v8622_v11, %v6670_v53  ;;  %v8469_v53 = vld [vmem:[#allocation3 + $0x4] sm:$0xf0]  ;;  %v9663_v11 = vperm.slane %v9591_v0, 1 }
 0x192   :  { %v1080_v24 = vadd.f32 %v1079_v55, %v1031_v29  ;;  %v1128_v27 = vpop.f32.mrf.mxu3  ;;  %v8632_v29 = vld [vmem:[#allocation11 + $0x64] sm:$0xf]  ;;  %1924 = vmatpush.bf16.msrb.mxu0 %v6687_v59 }
 0x193   :  { %v6723_v45 = vor.u32 %v8632_v29, %v6720_v41 }
 0x194   :  { %v1129_v60 = vadd.f32 %v1128_v27, %v1080_v24  ;;  %v986_v36 = vpop.f32.mrf.mxu0  ;;  %2070 = vmatpush.bf16.msrb.mxu3 %v6835_v13  ;;  %v6799_v24 = vor.u32 %v8654_v31, %v6798_v15  ;;  %v6688_v27 = vld [vmem:[#allocation11 + $0x30] sm:$0xf0]  ;;  %v8468_v15 = vld [vmem:[#allocation3 + $0x4] sm:$0xf] }
 0x195   :  { %v987_v2 = vadd.f32 %v986_v36, %v9595_v1  ;;  %v1035_v12 = vpop.f32.mrf.mxu1  ;;  %1972 = vmatpush.bf16.msrb.mxu1 %v6831_v42  ;;  %2020 = vmatpush.bf16.msrb.mxu2 %v6723_v45  ;;  %v6672_v36 = vld [vmem:[#allocation11 + $0x10] sm:$0xf0] }
 0x196   :  { %v1360_v44 = vmax.f32 %v1129_v60, 0.0  ;;  %1277 = vmatmul.bf16.gmra.mxu2 %v9559_v26  ;;  %v8628_v26 = vld [vmem:[#allocation11 + $0x44] sm:$0xf]  ;;  %1925 = vmatpush.bf16.msrb.mxu0 %v6671_v17  ;;  %v6800_v42 = vld [vmem:[#allocation11 + $0x110] sm:$0xf0] }
 0x197   :  { %v1036_v50 = vadd.f32 %v1035_v12, %v987_v2  ;;  %1326 = vmatmul.bf16.gmra.mxu3 %v9561_v33  ;;  %v6707_v33 = vor.u32 %v8628_v26, %v6704_v23  ;;  %v8620_v60 = vld [vmem:[#allocation11 + $0x4] sm:$0xf]  ;;  %v6803_v29 = vor.u32 %v8652_v9, %v6800_v42  ;;  %v6614_v9 = vld [vmem:[#allocation3 + $0x10] sm:$0xf]  ;;  %v6616_v42 = vld [vmem:[#allocation3 + $0x18] sm:$0xf0] }
 0x198   :  { %v9644_v57 = vpack.c.bf16 %v1360_v44, %v1358_v10  ;;  %2071 = vmatpush.bf16.msrb.mxu3 %v6819_v7  ;;  %v6675_v12 = vor.u32 %v8620_v60, %v6672_v36 }
 0x199   :  { %v1082_v46 = vpop.f32.mrf.mxu2  ;;  %1973 = vmatpush.bf16.msrb.mxu1 %v6815_v62  ;;  %2021 = vmatpush.bf16.msrb.mxu2 %v6707_v33 }
 0x19a   :  { %v1083_v4 = vadd.f32 %v1082_v46, %v1034_v6  ;;  %v1131_v25 = vpop.f32.mrf.mxu3  ;;  %v8624_v6 = vld [vmem:[#allocation11 + $0x24] sm:$0xf] }
 0x19b   :  { %v6691_v52 = vor.u32 %v8624_v6, %v6688_v27 }
 0x19c   :  { %v1132_v30 = vadd.f32 %v1131_v25, %v1083_v4  ;;  %v989_v55 = vpop.f32.mrf.mxu0  ;;  %2072 = vmatpush.bf16.msrb.mxu3 %v6803_v29 }
 0x19d   :  { %v990_v20 = vadd.f32 %v989_v55, %v9595_v1  ;;  %v1038_v21 = vpop.f32.mrf.mxu1  ;;  %1974 = vmatpush.bf16.msrb.mxu1 %v6799_v24  ;;  %2022 = vmatpush.bf16.msrb.mxu2 %v6691_v52 }
 0x19e   :  { %v1362_v44 = vmax.f32 %v1132_v30, 0.0  ;;  %v6608_v30 = vld [vmem:[#allocation3 + $0x8] sm:$0xf0] }
 0x19f   :  { %v1039_v5 = vadd.f32 %v1038_v21, %v990_v20  ;;  %1184 = vmatmul.bf16.gmra.mxu0 %v9565_v14 }
 0x1a0   :  { %1233 = vmatmul.bf16.gmra.mxu1 %v9567_v22 }
 0x1a1   :  { %v1084_v32 = vpop.f32.mrf.mxu2  ;;  %2023 = vmatpush.bf16.msrb.mxu2 %v6675_v12  ;;  %v8470_v12 = vld [vmem:[#allocation3 + $0x14] sm:$0xf] }
 0x1a2   :  { %v1085_v38 = vadd.f32 %v1084_v32, %v1036_v50  ;;  %v1133_v2 = vpop.f32.mrf.mxu3 }
 0x1a4   :  { %v1134_v41 = vadd.f32 %v1133_v2, %v1085_v38  ;;  %v991_v43 = vpop.f32.mrf.mxu0  ;;  %v8471_v38 = vld [vmem:[#allocation3 + $0x14] sm:$0xf0] }
 0x1a5   :  { %v992_v14 = vadd.f32 %v991_v43, %v9595_v1  ;;  %v1040_v10 = vpop.f32.mrf.mxu1  ;;  %v9677_v43 = vor.u32 %v8471_v38, %v6614_v9  ;;  %v8474_v9 = vld [vmem:[#allocation3 + $0x34] sm:$0xf]  ;;  %v6632_v38 = vld [vmem:[#allocation3 + $0x38] sm:$0xf0] }
 0x1a6   :  { %v1364_v22 = vmax.f32 %v1134_v41, 0.0  ;;  %1282 = vmatmul.bf16.gmra.mxu2 %v9571_v34 }
 0x1a7   :  { %v1041_v45 = vadd.f32 %v1040_v10, %v992_v14  ;;  %1331 = vmatmul.bf16.gmra.mxu3 %v9573_v48  ;;  %10868 = vst [vmem:[#allocation26_spill] sm:$0xff] %v9677_v43 }
 0x1a8   :  { %v9652_v18 = vpack.c.bf16 %v1364_v22, %v1362_v44  ;;  %v9679_v44 = vor.u32 %v8470_v12, %v6616_v42 }
 0x1a9   :  { %v1087_v50 = vpop.f32.mrf.mxu2 }
 0x1aa   :  { %v1088_v51 = vadd.f32 %v1087_v50, %v1039_v5  ;;  %v1136_v54 = vpop.f32.mrf.mxu3  ;;  %10869 = vst [vmem:[#allocation27_spill] sm:$0xff] %v9679_v44 }
 0x1ac   :  { %v1137_v47 = vadd.f32 %v1136_v54, %v1088_v51  ;;  %v994_v49 = vpop.f32.mrf.mxu0 }
 0x1ad   :  { %v995_v59 = vadd.f32 %v994_v49, %v9595_v1  ;;  %v1043_v19 = vpop.f32.mrf.mxu1 }
 0x1ae   :  { %v1366_v25 = vmax.f32 %v1137_v47, 0.0 }
 0x1af   :  { %v1044_v46 = vadd.f32 %v1043_v19, %v995_v59  ;;  %1189 = vmatmul.bf16.gmra.mxu0 %v9577_v56  ;;  %v6606_v56 = vld [vmem:[#allocation3] sm:$0xf] }
 0x1b0   :  { %1238 = vmatmul.bf16.gmra.mxu1 %v9579_v58  ;;  %v9665_v17 = vor.u32 %v8469_v53, %v6606_v56 }
 0x1b1   :  { %v1089_v62 = vpop.f32.mrf.mxu2 }
 0x1b2   :  { %v1090_v34 = vadd.f32 %v1089_v62, %v1041_v45  ;;  %v1138_v26 = vpop.f32.mrf.mxu3  ;;  %10866 = vst [vmem:[#allocation24_spill] sm:$0xff] %v9665_v17 }
 0x1b4   :  { %v1139_v23 = vadd.f32 %v1138_v26, %v1090_v34  ;;  %v996_v48 = vpop.f32.mrf.mxu0 }
 0x1b5   :  { %v997_v3 = vadd.f32 %v996_v48, %v9595_v1  ;;  %v1045_v4 = vpop.f32.mrf.mxu1  ;;  %v6622_v48 = vld [vmem:[#allocation3 + $0x20] sm:$0xf] }
 0x1b6   :  { %v1368_v33 = vmax.f32 %v1139_v23, 0.0  ;;  %1287 = vmatmul.bf16.gmra.mxu2 %v9583_v61  ;;  %v9667_v61 = vor.u32 %v8468_v15, %v6608_v30 }
 0x1b7   :  { %v1046_v8 = vadd.f32 %v1045_v4, %v997_v3  ;;  %1336 = vmatmul.bf16.gmra.mxu3 %v9585_v63  ;;  %v8473_v3 = vld [vmem:[#allocation3 + $0x24] sm:$0xf0] }
 0x1b8   :  { %v9660_v13 = vpack.c.bf16 %v1368_v33, %v1366_v25  ;;  %10867 = vst [vmem:[#allocation25_spill] sm:$0xff] %v9667_v61  ;;  %v8472_v25 = vld [vmem:[#allocation3 + $0x24] sm:$0xf]  ;;  %v6624_v33 = vld [vmem:[#allocation3 + $0x28] sm:$0xf0]  ;;  %v9689_v53 = vor.u32 %v8473_v3, %v6622_v48 }
 0x1b9   :  { %v1092_v58 = vpop.f32.mrf.mxu2  ;;  %v9691_v30 = vor.u32 %v8472_v25, %v6624_v33  ;;  %v6638_v48 = vld [vmem:[#allocation3 + $0x40] sm:$0xf]  ;;  %v8477_v3 = vld [vmem:[#allocation3 + $0x44] sm:$0xf0]  ;;  %v8476_v25 = vld [vmem:[#allocation3 + $0x44] sm:$0xf] }
 0x1ba   :  { %v1093_v55 = vadd.f32 %v1092_v58, %v1044_v46  ;;  %v1141_v1 = vpop.f32.mrf.mxu3  ;;  %10870 = vst [vmem:[#allocation28_spill] sm:$0xff] %v9689_v53  ;;  %v6640_v33 = vld [vmem:[#allocation3 + $0x48] sm:$0xf0] }
 0x1bb   :  { %10871 = vst [vmem:[#allocation29_spill] sm:$0xff] %v9691_v30 }
 0x1bc   :  { %v1142_v31 = vadd.f32 %v1141_v1, %v1093_v55  ;;  %v1155_v20 = vpop.f32.mrf.mxu0 }
 0x1bd   :  { %v1156_v63 = vadd.f32 %v1155_v20, %v9663_v11  ;;  %v1204_v21 = vpop.f32.mrf.mxu1 }
 0x1be   :  { %v1370_v7 = vmax.f32 %v1142_v31, 0.0 }
 0x1bf   :  { %v1205_v24 = vadd.f32 %v1204_v21, %v1156_v63  ;;  %1926 = vmatmul.bf16.vlgmr.msrb.gmra.mxu0 %v9665_v17 }
 0x1c0   :  { %1975 = vmatmul.bf16.vlgmr.msrb.gmra.mxu1 %v9667_v61 }
 0x1c1   :  { %v1094_v0 = vpop.f32.mrf.mxu2 }
 0x1c2   :  { %v1095_v6 = vadd.f32 %v1094_v0, %v1046_v8  ;;  %v1143_v27 = vpop.f32.mrf.mxu3 }
 0x1c4   :  { %v1144_v52 = vadd.f32 %v1143_v27, %v1095_v6  ;;  %v1157_v28 = vpop.f32.mrf.mxu0 }
 0x1c5   :  { %v1158_v35 = vadd.f32 %v1157_v28, %v9663_v11  ;;  %v1206_v5 = vpop.f32.mrf.mxu1 }
 0x1c6   :  { %v1372_v32 = vmax.f32 %v1144_v52, 0.0  ;;  %2024 = vmatmul.bf16.vlgmr.msrb.gmra.mxu2 %v9665_v17 }
 0x1c7   :  { %v1207_v60 = vadd.f32 %v1206_v5, %v1158_v35  ;;  %2073 = vmatmul.bf16.vlgmr.msrb.gmra.mxu3 %v9667_v61 }
 0x1c8   :  { %v9675_v36 = vpack.c.bf16 %v1372_v32, %v1370_v7  ;;  %v6630_v7 = vld [vmem:[#allocation3 + $0x30] sm:$0xf]  ;;  %v8475_v32 = vld [vmem:[#allocation3 + $0x34] sm:$0xf0] }
 0x1c9   :  { %v1253_v2 = vpop.f32.mrf.mxu2  ;;  %v9701_v42 = vor.u32 %v8475_v32, %v6630_v7  ;;  %v6774_v32 = vld [vmem:[#allocation11 + $0xc8] sm:$0xf] }
 0x1ca   :  { %v1254_v29 = vadd.f32 %v1253_v2, %v1205_v24  ;;  %v1302_v41 = vpop.f32.mrf.mxu3 }
 0x1cb   :  { %10872 = vst [vmem:[#allocation30_spill] sm:$0xff] %v9701_v42 }
 0x1cc   :  { %v1303_v14 = vadd.f32 %v1302_v41, %v1254_v29  ;;  %v1160_v10 = vpop.f32.mrf.mxu0 }
 0x1cd   :  { %v1161_v22 = vadd.f32 %v1160_v10, %v9663_v11  ;;  %v1209_v45 = vpop.f32.mrf.mxu1 }
 0x1ce   :  { %v1343_v62 = vmax.f32 %v1303_v14, 0.0  ;;  %v9703_v14 = vor.u32 %v8474_v9, %v6632_v38  ;;  %v6902_v9 = vld [vmem:[#allocation11 + $0x1c8] sm:$0xf] }
 0x1cf   :  { %v1210_v50 = vadd.f32 %v1209_v45, %v1161_v22  ;;  %1931 = vmatmul.bf16.gmra.mxu0 %v9677_v43 }
 0x1d0   :  { %1980 = vmatmul.bf16.gmra.mxu1 %v9679_v44  ;;  %10873 = vst [vmem:[#allocation31_spill] sm:$0xff] %v9703_v14 }
 0x1d1   :  { %v1255_v51 = vpop.f32.mrf.mxu2 }
 0x1d2   :  { %v1256_v54 = vadd.f32 %v1255_v51, %v1207_v60  ;;  %v1304_v47 = vpop.f32.mrf.mxu3 }
 0x1d4   :  { %v1305_v49 = vadd.f32 %v1304_v47, %v1256_v54  ;;  %v1162_v59 = vpop.f32.mrf.mxu0 }
 0x1d5   :  { %v1163_v19 = vadd.f32 %v1162_v59, %v9663_v11  ;;  %v1211_v46 = vpop.f32.mrf.mxu1 }
 0x1d6   :  { %v1345_v34 = vmax.f32 %v1305_v49, 0.0  ;;  %2029 = vmatmul.bf16.gmra.mxu2 %v9677_v43 }
 0x1d7   :  { %v1212_v26 = vadd.f32 %v1211_v46, %v1163_v19  ;;  %2078 = vmatmul.bf16.gmra.mxu3 %v9679_v44 }
 0x1d8   :  { %v9687_v23 = vpack.c.bf16 %v1345_v34, %v1343_v62 }
 0x1d9   :  { %v1258_v4 = vpop.f32.mrf.mxu2 }
 0x1da   :  { %v1259_v8 = vadd.f32 %v1258_v4, %v1210_v50  ;;  %v1307_v56 = vpop.f32.mrf.mxu3 }
 0x1dc   :  { %v1308_v58 = vadd.f32 %v1307_v56, %v1259_v8  ;;  %v1165_v15 = vpop.f32.mrf.mxu0 }
 0x1dd   :  { %v1166_v55 = vadd.f32 %v1165_v15, %v9663_v11  ;;  %v1214_v1 = vpop.f32.mrf.mxu1 }
 0x1de   :  { %v1347_v52 = vmax.f32 %v1308_v58, 0.0  ;;  %v9713_v58 = vor.u32 %v8477_v3, %v6638_v48  ;;  %v6758_v48 = vld [vmem:[#allocation11 + $0xa8] sm:$0xf]  ;;  %v8643_v3 = vld [vmem:[#allocation11 + $0xb4] sm:$0xf0] }
 0x1df   :  { %v1215_v31 = vadd.f32 %v1214_v1, %v1166_v55  ;;  %1936 = vmatmul.bf16.gmra.mxu0 %v9689_v53  ;;  %v9715_v1 = vor.u32 %v8476_v25, %v6640_v33  ;;  %v8478_v33 = vld [vmem:[#allocation3 + $0x54] sm:$0xf] }
 0x1e0   :  { %1985 = vmatmul.bf16.gmra.mxu1 %v9691_v30  ;;  %10874 = vst [vmem:[#allocation32_spill] sm:$0xff] %v9713_v58 }
 0x1e1   :  { %v1260_v20 = vpop.f32.mrf.mxu2  ;;  %10875 = vst [vmem:[#allocation33_spill] sm:$0xff] %v9715_v1 }
 0x1e2   :  { %v1261_v63 = vadd.f32 %v1260_v20, %v1212_v26  ;;  %v1309_v21 = vpop.f32.mrf.mxu3 }
 0x1e4   :  { %v1310_v24 = vadd.f32 %v1309_v21, %v1261_v63  ;;  %v1167_v0 = vpop.f32.mrf.mxu0  ;;  %v6790_v21 = vld [vmem:[#allocation11 + $0xe8] sm:$0xf] }
 0x1e5   :  { %v1168_v6 = vadd.f32 %v1167_v0, %v9663_v11  ;;  %v1216_v27 = vpop.f32.mrf.mxu1  ;;  %v6918_v0 = vld [vmem:[#allocation11 + $0x1e8] sm:$0xf] }
 0x1e6   :  { %v1349_v28 = vmax.f32 %v1310_v24, 0.0  ;;  %2034 = vmatmul.bf16.gmra.mxu2 %v9689_v53  ;;  %v8651_v24 = vld [vmem:[#allocation11 + $0xf4] sm:$0xf0] }
 0x1e7   :  { %v1217_v35 = vadd.f32 %v1216_v27, %v1168_v6  ;;  %2083 = vmatmul.bf16.gmra.mxu3 %v9691_v30  ;;  %v8683_v6 = vld [vmem:[#allocation11 + $0x1f4] sm:$0xf0] }
 0x1e8   :  { %v9699_v5 = vpack.c.bf16 %v1349_v28, %v1347_v52  ;;  %v6791_v52 = vor.u32 %v8651_v24, %v6790_v21  ;;  %v6919_v28 = vor.u32 %v8683_v6, %v6918_v0  ;;  %v6776_v21 = vld [vmem:[#allocation11 + $0xd8] sm:$0xf0]  ;;  %v8677_v24 = vld [vmem:[#allocation11 + $0x1cc] sm:$0xf] }
 0x1e9   :  { %v1263_v60 = vpop.f32.mrf.mxu2 }
 0x1ea   :  { %v1264_v2 = vadd.f32 %v1263_v60, %v1215_v31  ;;  %v1312_v12 = vpop.f32.mrf.mxu3  ;;  %2114 = vmatpush.bf16.msra.mxu0 %v6791_v52  ;;  %2163 = vmatpush.bf16.msra.mxu1 %v6919_v28  ;;  %v8647_v60 = vld [vmem:[#allocation11 + $0xd4] sm:$0xf0]  ;;  %v6904_v52 = vld [vmem:[#allocation11 + $0x1d8] sm:$0xf0] }
 0x1ec   :  { %v1313_v29 = vadd.f32 %v1312_v12, %v1264_v2  ;;  %v1170_v41 = vpop.f32.mrf.mxu0  ;;  %v6775_v12 = vor.u32 %v8647_v60, %v6774_v32  ;;  %v8639_v32 = vld [vmem:[#allocation11 + $0x94] sm:$0xf0]  ;;  %v6870_v60 = vld [vmem:[#allocation11 + $0x188] sm:$0xf] }
 0x1ed   :  { %v1171_v10 = vadd.f32 %v1170_v41, %v9663_v11  ;;  %v1219_v22 = vpop.f32.mrf.mxu1 }
 0x1ee   :  { %v1351_v46 = vmax.f32 %v1313_v29, 0.0  ;;  %v8679_v29 = vld [vmem:[#allocation11 + $0x1d4] sm:$0xf0]  ;;  %2115 = vmatpush.bf16.msra.mxu0 %v6775_v12 }
 0x1ef   :  { %v1220_v45 = vadd.f32 %v1219_v22, %v1171_v10  ;;  %1941 = vmatmul.bf16.gmra.mxu0 %v9701_v42  ;;  %v6903_v22 = vor.u32 %v8679_v29, %v6902_v9  ;;  %v8671_v29 = vld [vmem:[#allocation11 + $0x194] sm:$0xf0] }
 0x1f0   :  { %1990 = vmatmul.bf16.gmra.mxu1 %v9703_v14 }
 0x1f1   :  { %v1265_v50 = vpop.f32.mrf.mxu2  ;;  %2164 = vmatpush.bf16.msra.mxu1 %v6903_v22  ;;  %v8641_v22 = vld [vmem:[#allocation11 + $0xac] sm:$0xf] }
 0x1f2   :  { %v1266_v51 = vadd.f32 %v1265_v50, %v1217_v35  ;;  %v1314_v54 = vpop.f32.mrf.mxu3  ;;  %v6792_v50 = vld [vmem:[#allocation11 + $0xf8] sm:$0xf0] }
 0x1f4   :  { %v1315_v47 = vadd.f32 %v1314_v54, %v1266_v51  ;;  %v1172_v49 = vpop.f32.mrf.mxu0  ;;  %v8681_v51 = vld [vmem:[#allocation11 + $0x1ec] sm:$0xf] }
 0x1f5   :  { %v1173_v59 = vadd.f32 %v1172_v49, %v9663_v11  ;;  %v1221_v19 = vpop.f32.mrf.mxu1  ;;  %v6646_v49 = vld [vmem:[#allocation3 + $0x50] sm:$0xf] }
 0x1f6   :  { %v1353_v62 = vmax.f32 %v1315_v47, 0.0  ;;  %2039 = vmatmul.bf16.gmra.mxu2 %v9701_v42 }
 0x1f7   :  { %v1222_v34 = vadd.f32 %v1221_v19, %v1173_v59  ;;  %2088 = vmatmul.bf16.gmra.mxu3 %v9703_v14  ;;  %v8479_v59 = vld [vmem:[#allocation3 + $0x54] sm:$0xf0] }
 0x1f8   :  { %v9711_v26 = vpack.c.bf16 %v1353_v62, %v1351_v46  ;;  %v6920_v46 = vld [vmem:[#allocation11 + $0x1f8] sm:$0xf0]  ;;  %v9725_v28 = vor.u32 %v8479_v59, %v6646_v49  ;;  %v6726_v59 = vld [vmem:[#allocation11 + $0x68] sm:$0xf] }
 0x1f9   :  { %v1268_v4 = vpop.f32.mrf.mxu2 }
 0x1fa   :  { %v1269_v8 = vadd.f32 %v1268_v4, %v1220_v45  ;;  %v1317_v56 = vpop.f32.mrf.mxu3  ;;  %v8649_v45 = vld [vmem:[#allocation11 + $0xec] sm:$0xf]  ;;  %v6886_v4 = vld [vmem:[#allocation11 + $0x1a8] sm:$0xf]  ;;  %10876 = vst [vmem:[#allocation34_spill] sm:$0xff] %v9725_v28 }
 0x1fb   :  { %v6795_v19 = vor.u32 %v8649_v45, %v6792_v50  ;;  %v6760_v45 = vld [vmem:[#allocation11 + $0xb8] sm:$0xf0]  ;;  %v8673_v50 = vld [vmem:[#allocation11 + $0x1ac] sm:$0xf] }
 0x1fc   :  { %v1318_v15 = vadd.f32 %v1317_v56, %v1269_v8  ;;  %v1175_v55 = vpop.f32.mrf.mxu0  ;;  %v6648_v8 = vld [vmem:[#allocation3 + $0x58] sm:$0xf0]  ;;  %v6759_v56 = vor.u32 %v8643_v3, %v6758_v48  ;;  %v8667_v3 = vld [vmem:[#allocation11 + $0x174] sm:$0xf0] }
 0x1fd   :  { %v1176_v31 = vadd.f32 %v1175_v55, %v9663_v11  ;;  %v1224_v20 = vpop.f32.mrf.mxu1  ;;  %2212 = vmatpush.bf16.msra.mxu2 %v6795_v19  ;;  %v8635_v19 = vld [vmem:[#allocation11 + $0x74] sm:$0xf0] }
 0x1fe   :  { %v1355_v54 = vmax.f32 %v1318_v15, 0.0  ;;  %v8675_v15 = vld [vmem:[#allocation11 + $0x1b4] sm:$0xf0]  ;;  %2116 = vmatpush.bf16.msra.mxu0 %v6759_v56  ;;  %v6727_v48 = vor.u32 %v8635_v19, %v6726_v59  ;;  %v6822_v19 = vld [vmem:[#allocation11 + $0x128] sm:$0xf] }
 0x1ff   :  { %v1225_v63 = vadd.f32 %v1224_v20, %v1176_v31  ;;  %1946 = vmatmul.bf16.gmra.mxu0 %v9713_v58  ;;  %v6887_v31 = vor.u32 %v8675_v15, %v6886_v4  ;;  %v8645_v20 = vld [vmem:[#allocation11 + $0xcc] sm:$0xf]  ;;  %v8627_v59 = vld [vmem:[#allocation11 + $0x34] sm:$0xf0] }
 0x200   :  { %1995 = vmatmul.bf16.gmra.mxu1 %v9715_v1  ;;  %v8637_v4 = vld [vmem:[#allocation11 + $0x8c] sm:$0xf] }
 0x201   :  { %v1270_v27 = vpop.f32.mrf.mxu2  ;;  %2165 = vmatpush.bf16.msra.mxu1 %v6887_v31  ;;  %v8669_v31 = vld [vmem:[#allocation11 + $0x18c] sm:$0xf] }
 0x202   :  { %v1271_v35 = vadd.f32 %v1270_v27, %v1222_v34  ;;  %v1319_v7 = vpop.f32.mrf.mxu3  ;;  %v6923_v34 = vor.u32 %v8681_v51, %v6920_v46  ;;  %v6779_v27 = vor.u32 %v8645_v20, %v6776_v21  ;;  %v6763_v51 = vor.u32 %v8641_v22, %v6760_v45  ;;  %v6854_v46 = vld [vmem:[#allocation11 + $0x168] sm:$0xf]  ;;  %v6872_v20 = vld [vmem:[#allocation11 + $0x198] sm:$0xf0] }
 0x203   :  { %v6855_v15 = vor.u32 %v8667_v3, %v6854_v46  ;;  %v6875_v21 = vor.u32 %v8669_v31, %v6872_v20  ;;  %v8481_v22 = vld [vmem:[#allocation3 + $0x64] sm:$0xf0]  ;;  %v8659_v3 = vld [vmem:[#allocation11 + $0x134] sm:$0xf0] }
 0x204   :  { %v1320_v38 = vadd.f32 %v1319_v7, %v1271_v35  ;;  %v1177_v2 = vpop.f32.mrf.mxu0  ;;  %2261 = vmatpush.bf16.msra.mxu3 %v6923_v34  ;;  %v6907_v35 = vor.u32 %v8677_v24, %v6904_v52  ;;  %v6742_v7 = vld [vmem:[#allocation11 + $0x88] sm:$0xf]  ;;  %2213 = vmatpush.bf16.msra.mxu2 %v6779_v27 }
 0x205   :  { %v1178_v41 = vadd.f32 %v1177_v2, %v9663_v11  ;;  %v1226_v10 = vpop.f32.mrf.mxu1  ;;  %v9729_v2 = vor.u32 %v8478_v33, %v6648_v8  ;;  %v6743_v12 = vor.u32 %v8639_v32, %v6742_v7  ;;  %v6744_v33 = vld [vmem:[#allocation11 + $0x98] sm:$0xf0]  ;;  %v6710_v24 = vld [vmem:[#allocation11 + $0x48] sm:$0xf]  ;;  %v8663_v7 = vld [vmem:[#allocation11 + $0x154] sm:$0xf0] }
 0x206   :  { %v1357_v47 = vmax.f32 %v1320_v38, 0.0  ;;  %2044 = vmatmul.bf16.gmra.mxu2 %v9713_v58 }
 0x207   :  { %v1227_v62 = vadd.f32 %v1226_v10, %v1178_v41  ;;  %2093 = vmatmul.bf16.gmra.mxu3 %v9715_v1  ;;  %10877 = vst [vmem:[#allocation35_spill] sm:$0xff] %v9729_v2  ;;  %v6871_v10 = vor.u32 %v8671_v29, %v6870_v60  ;;  %2117 = vmatpush.bf16.msra.mxu0 %v6743_v12  ;;  %v6728_v12 = vld [vmem:[#allocation11 + $0x78] sm:$0xf0]  ;;  %v8665_v29 = vld [vmem:[#allocation11 + $0x16c] sm:$0xf] }
 0x208   :  { %v9723_v25 = vpack.c.bf16 %v1357_v47, %v1355_v54  ;;  %2262 = vmatpush.bf16.msra.mxu3 %v6907_v35  ;;  %v6888_v54 = vld [vmem:[#allocation11 + $0x1b8] sm:$0xf0]  ;;  %2214 = vmatpush.bf16.msra.mxu2 %v6763_v51 }
 0x209   :  { %v1273_v55 = vpop.f32.mrf.mxu2  ;;  %v6891_v49 = vor.u32 %v8673_v50, %v6888_v54  ;;  %2166 = vmatpush.bf16.msra.mxu1 %v6871_v10  ;;  %v6654_v10 = vld [vmem:[#allocation3 + $0x60] sm:$0xf]  ;;  %v6856_v50 = vld [vmem:[#allocation11 + $0x178] sm:$0xf0] }
 0x20a   :  { %v1274_v0 = vadd.f32 %v1273_v55, %v1225_v63  ;;  %v1322_v6 = vpop.f32.mrf.mxu3  ;;  %v6747_v55 = vor.u32 %v8637_v4, %v6744_v33  ;;  %v6859_v54 = vor.u32 %v8665_v29, %v6856_v50  ;;  %v6823_v33 = vor.u32 %v8659_v3, %v6822_v19  ;;  %v8625_v29 = vld [vmem:[#allocation11 + $0x2c] sm:$0xf]  ;;  %v6808_v3 = vld [vmem:[#allocation11 + $0x118] sm:$0xf0] }
 0x20b   :  { %2118 = vmatpush.bf16.msra.mxu0 %v6727_v48  ;;  %v6656_v48 = vld [vmem:[#allocation3 + $0x68] sm:$0xf0] }
 0x20c   :  { %v9727_v9 = vadd.f32 %v1322_v6, %v1274_v0  ;;  %v1180_v38 = vpop.f32.mrf.mxu0  ;;  %2263 = vmatpush.bf16.msra.mxu3 %v6891_v49  ;;  %v8631_v0 = vld [vmem:[#allocation11 + $0x54] sm:$0xf0]  ;;  %v6838_v6 = vld [vmem:[#allocation11 + $0x148] sm:$0xf]  ;;  %2215 = vmatpush.bf16.msra.mxu2 %v6747_v55  ;;  %v8653_v19 = vld [vmem:[#allocation11 + $0x10c] sm:$0xf] }
 0x20d   :  { %v1181_v63 = vadd.f32 %v1180_v38, %v9663_v11  ;;  %v1229_v41 = vpop.f32.mrf.mxu1  ;;  %v6711_v35 = vor.u32 %v8631_v0, %v6710_v24  ;;  %2167 = vmatpush.bf16.msra.mxu1 %v6855_v15  ;;  %v8633_v38 = vld [vmem:[#allocation11 + $0x6c] sm:$0xf]  ;;  %v6694_v49 = vld [vmem:[#allocation11 + $0x28] sm:$0xf]  ;;  %v9743_v24 = vor.u32 %v8481_v22, %v6654_v10  ;;  %v6824_v22 = vld [vmem:[#allocation11 + $0x138] sm:$0xf0] }
 0x20e   :  { %v6731_v45 = vor.u32 %v8633_v38, %v6728_v12  ;;  %v8661_v15 = vld [vmem:[#allocation11 + $0x14c] sm:$0xf] }
 0x20f   :  { %v9732_v47 = vadd.f32 %v1229_v41, %v1181_v63  ;;  %1951 = vmatmul.bf16.gmra.mxu0 %v9725_v28  ;;  %v1359_v63 = vmax.f32 %v9727_v9, 0.0  ;;  %v6695_v9 = vor.u32 %v8627_v59, %v6694_v49  ;;  %10878 = vst [vmem:[#allocation36_spill] sm:$0xff] %v9743_v24  ;;  %v8621_v49 = vld [vmem:[#allocation11 + $0xc] sm:$0xf]  ;;  %v6680_v59 = vld [vmem:[#allocation11 + $0x18] sm:$0xf0] }
 0x210   :  { %2000 = vmatmul.bf16.gmra.mxu1 %v9729_v2  ;;  %2264 = vmatpush.bf16.msra.mxu3 %v6875_v21  ;;  %v6840_v21 = vld [vmem:[#allocation11 + $0x158] sm:$0xf0] }
 0x211   :  { %v1275_v34 = vpop.f32.mrf.mxu2  ;;  %2119 = vmatpush.bf16.msra.mxu0 %v6711_v35  ;;  %2216 = vmatpush.bf16.msra.mxu2 %v6731_v45  ;;  %v6843_v0 = vor.u32 %v8661_v15, %v6840_v21  ;;  %v6662_v21 = vld [vmem:[#allocation3 + $0x70] sm:$0xf] }
 0x212   :  { %v1276_v8 = vadd.f32 %v1275_v34, %v1227_v62  ;;  %v1324_v56 = vpop.f32.mrf.mxu3  ;;  %v6839_v62 = vor.u32 %v8663_v7, %v6838_v6  ;;  %v8480_v34 = vld [vmem:[#allocation3 + $0x64] sm:$0xf]  ;;  %v6678_v6 = vld [vmem:[#allocation11 + $0x8] sm:$0xf] }
 0x214   :  { %v1325_v27 = vadd.f32 %v1324_v56, %v1276_v8  ;;  %v1182_v52 = vpop.f32.mrf.mxu0  ;;  %2168 = vmatpush.bf16.msra.mxu1 %v6839_v62  ;;  %v8629_v8 = vld [vmem:[#allocation11 + $0x4c] sm:$0xf]  ;;  %v6712_v56 = vld [vmem:[#allocation11 + $0x58] sm:$0xf0]  ;;  %2265 = vmatpush.bf16.msra.mxu3 %v6859_v54  ;;  %v8655_v62 = vld [vmem:[#allocation11 + $0x114] sm:$0xf0] }
 0x215   :  { %v1183_v32 = vadd.f32 %v1182_v52, %v9663_v11  ;;  %v1231_v60 = vpop.f32.mrf.mxu1  ;;  %v6715_v20 = vor.u32 %v8629_v8, %v6712_v56  ;;  %v6806_v52 = vld [vmem:[#allocation11 + $0x108] sm:$0xf]  ;;  %2120 = vmatpush.bf16.msra.mxu0 %v6695_v9  ;;  %v6683_v9 = vor.u32 %v8621_v49, %v6680_v59 }
 0x216   :  { %v1361_v41 = vmax.f32 %v1325_v27, 0.0  ;;  %2049 = vmatmul.bf16.gmra.mxu2 %v9725_v28  ;;  %v8623_v27 = vld [vmem:[#allocation11 + $0x14] sm:$0xf0]  ;;  %v6807_v12 = vor.u32 %v8655_v62, %v6806_v52  ;;  %v6664_v52 = vld [vmem:[#allocation3 + $0x78] sm:$0xf0] }
 0x217   :  { %v1232_v51 = vadd.f32 %v1231_v60, %v1183_v32  ;;  %2098 = vmatmul.bf16.gmra.mxu3 %v9729_v2  ;;  %v9745_v32 = vor.u32 %v8480_v34, %v6656_v48  ;;  %v6679_v60 = vor.u32 %v8623_v27, %v6678_v6  ;;  %2217 = vmatpush.bf16.msra.mxu2 %v6715_v20  ;;  %v8482_v27 = vld [vmem:[#allocation3 + $0x74] sm:$0xf] }
 0x218   :  { %v9740_v46 = vpack.c.bf16 %v1361_v41, %v1359_v63  ;;  %2169 = vmatpush.bf16.msra.mxu1 %v6823_v33  ;;  %v6696_v63 = vld [vmem:[#allocation11 + $0x38] sm:$0xf0]  ;;  %v8657_v41 = vld [vmem:[#allocation11 + $0x12c] sm:$0xf]  ;;  %2266 = vmatpush.bf16.msra.mxu3 %v6843_v0  ;;  %v8483_v0 = vld [vmem:[#allocation3 + $0x74] sm:$0xf0] }
 0x219   :  { %v1278_v4 = vpop.f32.mrf.mxu2  ;;  %10879 = vst [vmem:[#allocation37_spill] sm:$0xff] %v9745_v32  ;;  %v6699_v10 = vor.u32 %v8625_v29, %v6696_v63  ;;  %v6827_v50 = vor.u32 %v8657_v41, %v6824_v22  ;;  %2121 = vmatpush.bf16.msra.mxu0 %v6679_v60  ;;  %v9755_v62 = vor.u32 %v8483_v0, %v6662_v21 }
 0x21a   :  { %v1279_v55 = vadd.f32 %v1278_v4, %v9732_v47  ;;  %v1327_v31 = vpop.f32.mrf.mxu3  ;;  %v6811_v4 = vor.u32 %v8653_v19, %v6808_v3 }
 0x21b   :  { %2218 = vmatpush.bf16.msra.mxu2 %v6699_v10  ;;  %10880 = vst [vmem:[#allocation38_spill] sm:$0xff] %v9755_v62 }
 0x21c   :  { %v1328_v35 = vadd.f32 %v1327_v31, %v1279_v55  ;;  %v1185_v7 = vpop.f32.mrf.mxu0  ;;  %2170 = vmatpush.bf16.msra.mxu1 %v6807_v12  ;;  %2267 = vmatpush.bf16.msra.mxu3 %v6827_v50 }
 0x21d   :  { %v1186_v38 = vadd.f32 %v1185_v7, %v9663_v11  ;;  %v1234_v47 = vpop.f32.mrf.mxu1 }
 0x21e   :  { %v1363_v55 = vmax.f32 %v1328_v35, 0.0 }
 0x21f   :  { %v1235_v45 = vadd.f32 %v1234_v47, %v1186_v38  ;;  %1956 = vmatmul.bf16.gmra.mxu0 %v9743_v24  ;;  %2219 = vmatpush.bf16.msra.mxu2 %v6683_v9  ;;  %v9757_v47 = vor.u32 %v8482_v27, %v6664_v52 }
 0x220   :  { %2005 = vmatmul.bf16.gmra.mxu1 %v9745_v32  ;;  %2268 = vmatpush.bf16.msra.mxu3 %v6811_v4 }
 0x221   :  { %v1280_v54 = vpop.f32.mrf.mxu2  ;;  %10881 = vst [vmem:[#allocation39_spill] sm:$0xff] %v9757_v47 }
 0x222   :  { %v1281_v34 = vadd.f32 %v1280_v54, %v1232_v51  ;;  %v1329_v48 = vpop.f32.mrf.mxu3 }
 0x224   :  { %v1330_v33 = vadd.f32 %v1329_v48, %v1281_v34  ;;  %v1187_v8 = vpop.f32.mrf.mxu0 }
 0x225   :  { %v1188_v56 = vadd.f32 %v1187_v8, %v9663_v11  ;;  %v1236_v15 = vpop.f32.mrf.mxu1 }
 0x226   :  { %v1365_v31 = vmax.f32 %v1330_v33, 0.0  ;;  %2054 = vmatmul.bf16.gmra.mxu2 %v9743_v24 }
 0x227   :  { %v1237_v20 = vadd.f32 %v1236_v15, %v1188_v56  ;;  %2103 = vmatmul.bf16.gmra.mxu3 %v9745_v32 }
 0x228   :  { %v9753_v51 = vpack.c.bf16 %v1365_v31, %v1363_v55 }
 0x229   :  { %v1283_v6 = vpop.f32.mrf.mxu2 }
 0x22a   :  { %v1284_v7 = vadd.f32 %v1283_v6, %v1235_v45  ;;  %v1332_v60 = vpop.f32.mrf.mxu3 }
 0x22c   :  { %v1333_v38 = vadd.f32 %v1332_v60, %v1284_v7  ;;  %v1190_v35 = vpop.f32.mrf.mxu0 }
 0x22d   :  { %v1191_v12 = vadd.f32 %v1190_v35, %v9663_v11  ;;  %v1239_v29 = vpop.f32.mrf.mxu1 }
 0x22e   :  { %v1367_v59 = vmax.f32 %v1333_v38, 0.0 }
 0x22f   :  { %v1240_v63 = vadd.f32 %v1239_v29, %v1191_v12  ;;  %1961 = vmatmul.bf16.gmra.mxu0 %v9755_v62 }
 0x230   :  { %2010 = vmatmul.bf16.gmra.mxu1 %v9757_v47 }
 0x231   :  { %v1285_v41 = vpop.f32.mrf.mxu2 }
 0x232   :  { %v1286_v10 = vadd.f32 %v1285_v41, %v1237_v20  ;;  %v1334_v22 = vpop.f32.mrf.mxu3 }
 0x234   :  { %v1335_v50 = vadd.f32 %v1334_v22, %v1286_v10  ;;  %v1192_v45 = vpop.f32.mrf.mxu0 }
 0x235   :  { %v1193_v54 = vadd.f32 %v1192_v45, %v9663_v11  ;;  %v1241_v49 = vpop.f32.mrf.mxu1 }
 0x236   :  { %v1369_v19 = vmax.f32 %v1335_v50, 0.0  ;;  %2059 = vmatmul.bf16.gmra.mxu2 %v9755_v62 }
 0x237   :  { %v1242_v34 = vadd.f32 %v1241_v49, %v1193_v54  ;;  %2108 = vmatmul.bf16.gmra.mxu3 %v9757_v47 }
 0x238   :  { %v9765_v48 = vpack.c.bf16 %v1369_v19, %v1367_v59 }
 0x239   :  { %v1288_v9 = vpop.f32.mrf.mxu2 }
 0x23a   :  { %v1289_v3 = vadd.f32 %v1288_v9, %v1240_v63  ;;  %v1337_v4 = vpop.f32.mrf.mxu3 }
 0x23c   :  { %v1338_v33 = vadd.f32 %v1337_v4, %v1289_v3  ;;  %v1927_v8 = vpop.f32.mrf.mxu0 }
 0x23d   :  { %v1976_v56 = vpop.f32.mrf.mxu1 }
 0x23e   :  { %v9767_v15 = vadd.f32 %v1976_v56, %v1927_v8  ;;  %v1371_v6 = vmax.f32 %v1338_v33, 0.0 }
 0x23f   :  { %2122 = vmatmul.bf16.vlgmr.msra.gmra.mxu0 %v9665_v17 }
 0x240   :  { %2171 = vmatmul.bf16.vlgmr.msra.gmra.mxu1 %v9667_v61 }
 0x241   :  { %v1290_v11 = vpop.f32.mrf.mxu2 }
 0x242   :  { %v1291_v55 = vadd.f32 %v1290_v11, %v1242_v34  ;;  %v1339_v31 = vpop.f32.mrf.mxu3 }
 0x244   :  { %v1340_v20 = vadd.f32 %v1339_v31, %v1291_v55  ;;  %v1929_v21 = vpop.f32.mrf.mxu0 }
 0x245   :  { %v1978_v0 = vpop.f32.mrf.mxu1 }
 0x246   :  { %v1373_v27 = vmax.f32 %v1340_v20, 0.0  ;;  %v9771_v52 = vadd.f32 %v1978_v0, %v1929_v21  ;;  %2220 = vmatmul.bf16.vlgmr.msra.gmra.mxu2 %v9665_v17  ;;  %v8600_v17 = vld [vmem:[#allocation9 + $0x164] sm:$0xf] }
 0x247   :  { %2269 = vmatmul.bf16.vlgmr.msra.gmra.mxu3 %v9667_v61  ;;  %v6976_v61 = vld [vmem:[#allocation9 + $0x70] sm:$0xf0] }
 0x248   :  { %v9775_v7 = vpack.c.bf16 %v1373_v27, %v1371_v6 }
 0x249   :  { %v2025_v60 = vpop.f32.mrf.mxu2 }
 0x24a   :  { %v2074_v38 = vpop.f32.mrf.mxu3 }
 0x24b   :  { %v9777_v35 = vadd.f32 %v2074_v38, %v2025_v60 }
 0x24c   :  { %v1932_v12 = vpop.f32.mrf.mxu0 }
 0x24d   :  { %v1981_v29 = vpop.f32.mrf.mxu1 }
 0x24e   :  { %v9779_v63 = vadd.f32 %v1981_v29, %v1932_v12 }
 0x24f   :  { %2127 = vmatmul.bf16.gmra.mxu0 %v9677_v43 }
 0x250   :  { %2176 = vmatmul.bf16.gmra.mxu1 %v9679_v44 }
 0x251   :  { %v2027_v41 = vpop.f32.mrf.mxu2 }
 0x252   :  { %v2076_v10 = vpop.f32.mrf.mxu3 }
 0x253   :  { %v9783_v22 = vadd.f32 %v2076_v10, %v2027_v41 }
 0x254   :  { %v1934_v50 = vpop.f32.mrf.mxu0 }
 0x255   :  { %v1983_v45 = vpop.f32.mrf.mxu1 }
 0x256   :  { %v9785_v54 = vadd.f32 %v1983_v45, %v1934_v50  ;;  %2225 = vmatmul.bf16.gmra.mxu2 %v9677_v43  ;;  %v8608_v43 = vld [vmem:[#allocation9 + $0x1a4] sm:$0xf] }
 0x257   :  { %2274 = vmatmul.bf16.gmra.mxu3 %v9679_v44  ;;  %v7008_v44 = vld [vmem:[#allocation9 + $0xb0] sm:$0xf0] }
 0x259   :  { %v2030_v49 = vpop.f32.mrf.mxu2 }
 0x25a   :  { %v2079_v59 = vpop.f32.mrf.mxu3 }
 0x25b   :  { %v9789_v19 = vadd.f32 %v2079_v59, %v2030_v49 }
 0x25c   :  { %v1937_v34 = vpop.f32.mrf.mxu0 }
 0x25d   :  { %v1986_v9 = vpop.f32.mrf.mxu1 }
 0x25e   :  { %v9791_v3 = vadd.f32 %v1986_v9, %v1937_v34 }
 0x25f   :  { %2132 = vmatmul.bf16.gmra.mxu0 %v9689_v53 }
 0x260   :  { %2181 = vmatmul.bf16.gmra.mxu1 %v9691_v30 }
 0x261   :  { %v2032_v4 = vpop.f32.mrf.mxu2 }
 0x262   :  { %v2081_v33 = vpop.f32.mrf.mxu3 }
 0x263   :  { %v9795_v8 = vadd.f32 %v2081_v33, %v2032_v4  ;;  %v7038_v4 = vld [vmem:[#allocation9 + $0xe0] sm:$0xf]  ;;  %v8586_v33 = vld [vmem:[#allocation9 + $0xec] sm:$0xf0] }
 0x264   :  { %v1939_v56 = vpop.f32.mrf.mxu0 }
 0x265   :  { %v1988_v11 = vpop.f32.mrf.mxu1 }
 0x266   :  { %v9797_v55 = vadd.f32 %v1988_v11, %v1939_v56  ;;  %2230 = vmatmul.bf16.gmra.mxu2 %v9689_v53  ;;  %v7166_v56 = vld [vmem:[#allocation9 + $0x1e0] sm:$0xf]  ;;  %v7039_v11 = vor.u32 %v8586_v33, %v7038_v4  ;;  %v8616_v53 = vld [vmem:[#allocation9 + $0x1e4] sm:$0xf] }
 0x267   :  { %2279 = vmatmul.bf16.gmra.mxu3 %v9691_v30  ;;  %v7040_v30 = vld [vmem:[#allocation9 + $0xf0] sm:$0xf0] }
 0x268   :  { %2630 = vmatpush.bf16.msrb.mxu0 %v7039_v11 }
 0x269   :  { %v2035_v31 = vpop.f32.mrf.mxu2 }
 0x26a   :  { %v2084_v20 = vpop.f32.mrf.mxu3 }
 0x26b   :  { %v9801_v21 = vadd.f32 %v2084_v20, %v2035_v31  ;;  %v8618_v31 = vld [vmem:[#allocation9 + $0x1ec] sm:$0xf0] }
 0x26c   :  { %v1942_v0 = vpop.f32.mrf.mxu0 }
 0x26d   :  { %v1991_v6 = vpop.f32.mrf.mxu1 }
 0x26e   :  { %v9803_v27 = vadd.f32 %v1991_v6, %v1942_v0  ;;  %v7167_v0 = vor.u32 %v8618_v31, %v7166_v56  ;;  %v7168_v56 = vld [vmem:[#allocation9 + $0x1f0] sm:$0xf0]  ;;  %v7006_v31 = vld [vmem:[#allocation9 + $0xa0] sm:$0xf] }
 0x26f   :  { %2137 = vmatmul.bf16.gmra.mxu0 %v9701_v42  ;;  %v7171_v11 = vor.u32 %v8616_v53, %v7168_v56  ;;  %v8574_v56 = vld [vmem:[#allocation9 + $0x8c] sm:$0xf0] }
 0x270   :  { %2186 = vmatmul.bf16.gmra.mxu1 %v9703_v14 }
 0x271   :  { %v2037_v60 = vpop.f32.mrf.mxu2  ;;  %2679 = vmatpush.bf16.msrb.mxu1 %v7167_v0  ;;  %v7134_v0 = vld [vmem:[#allocation9 + $0x1a0] sm:$0xf]  ;;  %2777 = vmatpush.bf16.msrb.mxu3 %v7171_v11 }
 0x272   :  { %v2086_v38 = vpop.f32.mrf.mxu3 }
 0x273   :  { %v9807_v12 = vadd.f32 %v2086_v38, %v2037_v60  ;;  %v7022_v38 = vld [vmem:[#allocation9 + $0xc0] sm:$0xf] }
 0x274   :  { %v1944_v29 = vpop.f32.mrf.mxu0 }
 0x275   :  { %v1993_v41 = vpop.f32.mrf.mxu1 }
 0x276   :  { %v9809_v10 = vadd.f32 %v1993_v41, %v1944_v29  ;;  %2235 = vmatmul.bf16.gmra.mxu2 %v9701_v42  ;;  %v8582_v29 = vld [vmem:[#allocation9 + $0xcc] sm:$0xf0]  ;;  %v7150_v41 = vld [vmem:[#allocation9 + $0x1c0] sm:$0xf]  ;;  %v8584_v42 = vld [vmem:[#allocation9 + $0xe4] sm:$0xf] }
 0x277   :  { %2284 = vmatmul.bf16.gmra.mxu3 %v9703_v14  ;;  %v7043_v33 = vor.u32 %v8584_v42, %v7040_v30  ;;  %v7152_v42 = vld [vmem:[#allocation9 + $0x1d0] sm:$0xf0] }
 0x279   :  { %v2040_v50 = vpop.f32.mrf.mxu2  ;;  %2728 = vmatpush.bf16.msrb.mxu2 %v7043_v33 }
 0x27a   :  { %v2089_v45 = vpop.f32.mrf.mxu3 }
 0x27b   :  { %v9813_v49 = vadd.f32 %v2089_v45, %v2040_v50  ;;  %v7023_v45 = vor.u32 %v8582_v29, %v7022_v38  ;;  %v8610_v38 = vld [vmem:[#allocation9 + $0x1ac] sm:$0xf0] }
 0x27c   :  { %v1947_v59 = vpop.f32.mrf.mxu0 }
 0x27d   :  { %v1996_v34 = vpop.f32.mrf.mxu1  ;;  %2631 = vmatpush.bf16.msrb.mxu0 %v7023_v45 }
 0x27e   :  { %v9815_v9 = vadd.f32 %v1996_v34, %v1947_v59  ;;  %v8614_v59 = vld [vmem:[#allocation9 + $0x1cc] sm:$0xf0] }
 0x27f   :  { %2142 = vmatmul.bf16.gmra.mxu0 %v9713_v58  ;;  %v7151_v14 = vor.u32 %v8614_v59, %v7150_v41  ;;  %v7135_v41 = vor.u32 %v8610_v38, %v7134_v0  ;;  %v7024_v59 = vld [vmem:[#allocation9 + $0xd0] sm:$0xf0]  ;;  %v8576_v38 = vld [vmem:[#allocation9 + $0xa4] sm:$0xf] }
 0x280   :  { %2191 = vmatmul.bf16.gmra.mxu1 %v9715_v1 }
 0x281   :  { %v2042_v20 = vpop.f32.mrf.mxu2  ;;  %2680 = vmatpush.bf16.msrb.mxu1 %v7151_v14  ;;  %v6990_v14 = vld [vmem:[#allocation9 + $0x80] sm:$0xf] }
 0x282   :  { %v2091_v6 = vpop.f32.mrf.mxu3 }
 0x283   :  { %v9819_v60 = vadd.f32 %v2091_v6, %v2042_v20  ;;  %v8578_v20 = vld [vmem:[#allocation9 + $0xac] sm:$0xf0] }
 0x284   :  { %v1949_v50 = vpop.f32.mrf.mxu0  ;;  %v7007_v6 = vor.u32 %v8578_v20, %v7006_v31  ;;  %v6991_v31 = vor.u32 %v8574_v56, %v6990_v14  ;;  %v8606_v20 = vld [vmem:[#allocation9 + $0x18c] sm:$0xf0]  ;;  %v8572_v14 = vld [vmem:[#allocation9 + $0x84] sm:$0xf]  ;;  %v6992_v56 = vld [vmem:[#allocation9 + $0x90] sm:$0xf0] }
 0x285   :  { %v1998_v34 = vpop.f32.mrf.mxu1  ;;  %2681 = vmatpush.bf16.msrb.mxu1 %v7135_v41 }
 0x286   :  { %v9821_v4 = vadd.f32 %v1998_v34, %v1949_v50  ;;  %2240 = vmatmul.bf16.gmra.mxu2 %v9713_v58  ;;  %v8580_v50 = vld [vmem:[#allocation9 + $0xc4] sm:$0xf]  ;;  %2632 = vmatpush.bf16.msrb.mxu0 %v7007_v6 }
 0x287   :  { %2289 = vmatmul.bf16.gmra.mxu3 %v9715_v1  ;;  %v8612_v34 = vld [vmem:[#allocation9 + $0x1c4] sm:$0xf]  ;;  %v7027_v30 = vor.u32 %v8580_v50, %v7024_v59  ;;  %v7118_v1 = vld [vmem:[#allocation9 + $0x180] sm:$0xf]  ;;  %v8570_v59 = vld [vmem:[#allocation9 + $0x6c] sm:$0xf0] }
 0x288   :  { %v7155_v53 = vor.u32 %v8612_v34, %v7152_v42  ;;  %v7119_v0 = vor.u32 %v8606_v20, %v7118_v1  ;;  %v6974_v50 = vld [vmem:[#allocation9 + $0x60] sm:$0xf]  ;;  %v8602_v1 = vld [vmem:[#allocation9 + $0x16c] sm:$0xf0]  ;;  %v7120_v20 = vld [vmem:[#allocation9 + $0x190] sm:$0xf0] }
 0x289   :  { %v2045_v29 = vpop.f32.mrf.mxu2  ;;  %2729 = vmatpush.bf16.msrb.mxu2 %v7027_v30  ;;  %v7102_v34 = vld [vmem:[#allocation9 + $0x160] sm:$0xf]  ;;  %v6975_v30 = vor.u32 %v8570_v59, %v6974_v50  ;;  %v8598_v59 = vld [vmem:[#allocation9 + $0x14c] sm:$0xf0] }
 0x28a   :  { %v2094_v58 = vpop.f32.mrf.mxu3  ;;  %2778 = vmatpush.bf16.msrb.mxu3 %v7155_v53  ;;  %2633 = vmatpush.bf16.msrb.mxu0 %v6991_v31  ;;  %v7103_v53 = vor.u32 %v8602_v1, %v7102_v34  ;;  %v6995_v31 = vor.u32 %v8572_v14, %v6992_v56  ;;  %v8568_v1 = vld [vmem:[#allocation9 + $0x64] sm:$0xf]  ;;  %v6942_v56 = vld [vmem:[#allocation9 + $0x20] sm:$0xf] }
 0x28b   :  { %v9825_v45 = vadd.f32 %v2094_v58, %v2045_v29  ;;  %v7011_v58 = vor.u32 %v8576_v38, %v7008_v44  ;;  %v7136_v29 = vld [vmem:[#allocation9 + $0x1b0] sm:$0xf0]  ;;  %2682 = vmatpush.bf16.msrb.mxu1 %v7119_v0  ;;  %v6958_v0 = vld [vmem:[#allocation9 + $0x40] sm:$0xf]  ;;  %v8566_v38 = vld [vmem:[#allocation9 + $0x4c] sm:$0xf0] }
 0x28c   :  { %v1952_v33 = vpop.f32.mrf.mxu0  ;;  %v7139_v41 = vor.u32 %v8608_v43, %v7136_v29  ;;  %v7086_v29 = vld [vmem:[#allocation9 + $0x140] sm:$0xf]  ;;  %v6959_v50 = vor.u32 %v8566_v38, %v6958_v0  ;;  %v8564_v38 = vld [vmem:[#allocation9 + $0x44] sm:$0xf] }
 0x28d   :  { %v2001_v11 = vpop.f32.mrf.mxu1  ;;  %2730 = vmatpush.bf16.msrb.mxu2 %v7011_v58  ;;  %v7087_v34 = vor.u32 %v8598_v59, %v7086_v29  ;;  %v6960_v29 = vld [vmem:[#allocation9 + $0x50] sm:$0xf0] }
 0x28e   :  { %v9827_v6 = vadd.f32 %v2001_v11, %v1952_v33  ;;  %2779 = vmatpush.bf16.msrb.mxu3 %v7139_v41  ;;  %v8604_v33 = vld [vmem:[#allocation9 + $0x184] sm:$0xf]  ;;  %2634 = vmatpush.bf16.msrb.mxu0 %v6975_v30 }
 0x28f   :  { %2147 = vmatmul.bf16.gmra.mxu0 %v9725_v28  ;;  %2683 = vmatpush.bf16.msrb.mxu1 %v7103_v53  ;;  %v7123_v43 = vor.u32 %v8604_v33, %v7120_v20  ;;  %v7104_v53 = vld [vmem:[#allocation9 + $0x170] sm:$0xf0]  ;;  %v8562_v33 = vld [vmem:[#allocation9 + $0x2c] sm:$0xf0] }
 0x290   :  { %2196 = vmatmul.bf16.gmra.mxu1 %v9729_v2  ;;  %v7107_v14 = vor.u32 %v8600_v17, %v7104_v53  ;;  %v8594_v20 = vld [vmem:[#allocation9 + $0x12c] sm:$0xf0]  ;;  %v7054_v53 = vld [vmem:[#allocation9 + $0x100] sm:$0xf] }
 0x291   :  { %v2047_v42 = vpop.f32.mrf.mxu2  ;;  %2731 = vmatpush.bf16.msrb.mxu2 %v6995_v31  ;;  %v6943_v31 = vor.u32 %v8562_v33, %v6942_v56  ;;  %v8590_v33 = vld [vmem:[#allocation9 + $0x10c] sm:$0xf0] }
 0x292   :  { %v2096_v44 = vpop.f32.mrf.mxu3  ;;  %2780 = vmatpush.bf16.msrb.mxu3 %v7123_v43  ;;  %2635 = vmatpush.bf16.msrb.mxu0 %v6959_v50  ;;  %v7088_v50 = vld [vmem:[#allocation9 + $0x150] sm:$0xf0] }
 0x293   :  { %v9831_v11 = vadd.f32 %v2096_v44, %v2047_v42  ;;  %v6979_v42 = vor.u32 %v8568_v1, %v6976_v61  ;;  %2684 = vmatpush.bf16.msrb.mxu1 %v7087_v34  ;;  %v7070_v44 = vld [vmem:[#allocation9 + $0x120] sm:$0xf]  ;;  %v6963_v61 = vor.u32 %v8564_v38, %v6960_v29  ;;  %v8558_v1 = vld [vmem:[#allocation9 + $0xc] sm:$0xf0]  ;;  %v7072_v38 = vld [vmem:[#allocation9 + $0x130] sm:$0xf0] }
 0x294   :  { %v1954_v58 = vpop.f32.mrf.mxu0  ;;  %v7071_v0 = vor.u32 %v8594_v20, %v7070_v44  ;;  %v6926_v34 = vld [vmem:[#allocation9] sm:$0xf]  ;;  %v7055_v44 = vor.u32 %v8590_v33, %v7054_v53  ;;  %v8560_v20 = vld [vmem:[#allocation9 + $0x24] sm:$0xf] }
 0x295   :  { %v2003_v41 = vpop.f32.mrf.mxu1  ;;  %2732 = vmatpush.bf16.msrb.mxu2 %v6979_v42  ;;  %v6927_v56 = vor.u32 %v8558_v1, %v6926_v34  ;;  %v7056_v34 = vld [vmem:[#allocation9 + $0x110] sm:$0xf0] }
 0x296   :  { %v9833_v30 = vadd.f32 %v2003_v41, %v1954_v58  ;;  %2245 = vmatmul.bf16.gmra.mxu2 %v9725_v28  ;;  %2781 = vmatpush.bf16.msrb.mxu3 %v7107_v14  ;;  %v8596_v58 = vld [vmem:[#allocation9 + $0x144] sm:$0xf] }
 0x297   :  { %2294 = vmatmul.bf16.gmra.mxu3 %v9729_v2  ;;  %2636 = vmatpush.bf16.msrb.mxu0 %v6943_v31  ;;  %v7091_v17 = vor.u32 %v8596_v58, %v7088_v50  ;;  %v6944_v2 = vld [vmem:[#allocation9 + $0x30] sm:$0xf0]  ;;  %v8592_v28 = vld [vmem:[#allocation9 + $0x124] sm:$0xf] }
 0x298   :  { %2685 = vmatpush.bf16.msrb.mxu1 %v7071_v0  ;;  %v7075_v0 = vor.u32 %v8592_v28, %v7072_v38  ;;  %v8556_v58 = vld [vmem:[#allocation9 + $0x4] sm:$0xf] }
 0x299   :  { %v2050_v43 = vpop.f32.mrf.mxu2  ;;  %2733 = vmatpush.bf16.msrb.mxu2 %v6963_v61  ;;  %v8588_v61 = vld [vmem:[#allocation9 + $0x104] sm:$0xf] }
 0x29a   :  { %v2099_v59 = vpop.f32.mrf.mxu3  ;;  %2782 = vmatpush.bf16.msrb.mxu3 %v7091_v17  ;;  %v7059_v53 = vor.u32 %v8588_v61, %v7056_v34 }
 0x29b   :  { %v9837_v41 = vadd.f32 %v2099_v59, %v2050_v43  ;;  %2637 = vmatpush.bf16.msrb.mxu0 %v6927_v56  ;;  %v6947_v43 = vor.u32 %v8560_v20, %v6944_v2  ;;  %v6928_v59 = vld [vmem:[#allocation9 + $0x10] sm:$0xf0] }
 0x29c   :  { %v1957_v42 = vpop.f32.mrf.mxu0  ;;  %2686 = vmatpush.bf16.msrb.mxu1 %v7055_v44  ;;  %v6931_v17 = vor.u32 %v8556_v58, %v6928_v59 }
 0x29d   :  { %v2006_v14 = vpop.f32.mrf.mxu1  ;;  %2734 = vmatpush.bf16.msrb.mxu2 %v6947_v43 }
 0x29e   :  { %v9839_v31 = vadd.f32 %v2006_v14, %v1957_v42  ;;  %2783 = vmatpush.bf16.msrb.mxu3 %v7075_v0 }
 0x29f   :  { %2152 = vmatmul.bf16.gmra.mxu0 %v9743_v24 }
 0x2a0   :  { %2201 = vmatmul.bf16.gmra.mxu1 %v9745_v32 }
 0x2a1   :  { %v2052_v29 = vpop.f32.mrf.mxu2  ;;  %2735 = vmatpush.bf16.msrb.mxu2 %v6931_v17 }
 0x2a2   :  { %v2101_v50 = vpop.f32.mrf.mxu3  ;;  %2784 = vmatpush.bf16.msrb.mxu3 %v7059_v53 }
 0x2a3   :  { %v9843_v1 = vadd.f32 %v2101_v50, %v2052_v29 }
 0x2a4   :  { %v1959_v2 = vpop.f32.mrf.mxu0 }
 0x2a5   :  { %v2008_v42 = vpop.f32.mrf.mxu1 }
 0x2a6   :  { %v9845_v56 = vadd.f32 %v2008_v42, %v1959_v2  ;;  %2250 = vmatmul.bf16.gmra.mxu2 %v9743_v24 }
 0x2a7   :  { %2299 = vmatmul.bf16.gmra.mxu3 %v9745_v32 }
 0x2a9   :  { %v2055_v28 = vpop.f32.mrf.mxu2 }
 0x2aa   :  { %v2104_v33 = vpop.f32.mrf.mxu3 }
 0x2ab   :  { %v9849_v14 = vadd.f32 %v2104_v33, %v2055_v28 }
 0x2ac   :  { %v1962_v44 = vpop.f32.mrf.mxu0 }
 0x2ad   :  { %10882 = vst [vmem:[#allocation40_spill] sm:$0xff] %v9849_v14  ;;  %v2011_v20 = vpop.f32.mrf.mxu1  ;;  %v8609_v14 = vld [vmem:[#allocation9 + $0x1ac] sm:$0xf] }
 0x2ae   :  { %v9851_v43 = vadd.f32 %v2011_v20, %v1962_v44 }
 0x2af   :  { %2157 = vmatmul.bf16.gmra.mxu0 %v9755_v62 }
 0x2b0   :  { %10883 = vst [vmem:[#allocation41_spill] sm:$0xff] %v9851_v43  ;;  %2206 = vmatmul.bf16.gmra.mxu1 %v9757_v47  ;;  %v7016_v43 = vld [vmem:[#allocation9 + $0xb8] sm:$0xf0] }
 0x2b1   :  { %v2057_v38 = vpop.f32.mrf.mxu2 }
 0x2b2   :  { %v2106_v0 = vpop.f32.mrf.mxu3 }
 0x2b3   :  { %v9855_v29 = vadd.f32 %v2106_v0, %v2057_v38 }
 0x2b4   :  { %v1964_v58 = vpop.f32.mrf.mxu0 }
 0x2b5   :  { %10884 = vst [vmem:[#allocation42_spill] sm:$0xff] %v9855_v29  ;;  %v2013_v59 = vpop.f32.mrf.mxu1  ;;  %v8617_v29 = vld [vmem:[#allocation9 + $0x1ec] sm:$0xf] }
 0x2b6   :  { %v9857_v61 = vadd.f32 %v2013_v59, %v1964_v58  ;;  %2255 = vmatmul.bf16.gmra.mxu2 %v9755_v62 }
 0x2b7   :  { %2304 = vmatmul.bf16.gmra.mxu3 %v9757_v47 }
 0x2b8   :  { %10885 = vst [vmem:[#allocation43_spill] sm:$0xff] %v9857_v61  ;;  %v7048_v61 = vld [vmem:[#allocation9 + $0xf8] sm:$0xf0] }
 0x2b9   :  { %v2060_v50 = vpop.f32.mrf.mxu2 }
 0x2ba   :  { %v2109_v17 = vpop.f32.mrf.mxu3 }
 0x2bb   :  { %v9861_v34 = vadd.f32 %v2109_v17, %v2060_v50 }
 0x2bc   :  { %v2123_v53 = vpop.f32.mrf.mxu0 }
 0x2bd   :  { %10886 = vst [vmem:[#allocation44_spill] sm:$0xff] %v9861_v34  ;;  %v2172_v2 = vpop.f32.mrf.mxu1  ;;  %v8585_v34 = vld [vmem:[#allocation9 + $0xec] sm:$0xf] }
 0x2be   :  { %v9863_v42 = vadd.f32 %v2172_v2, %v2123_v53 }
 0x2bf   :  { %2638 = vmatmul.bf16.vlgmr.msrb.gmra.mxu0 %v9609_v39 }
 0x2c0   :  { %10887 = vst [vmem:[#allocation45_spill] sm:$0xff] %v9863_v42  ;;  %2687 = vmatmul.bf16.vlgmr.msrb.gmra.mxu1 %v9687_v23 }
 0x2c1   :  { %v2062_v28 = vpop.f32.mrf.mxu2 }
 0x2c2   :  { %v2111_v33 = vpop.f32.mrf.mxu3 }
 0x2c3   :  { %v9867_v44 = vadd.f32 %v2111_v33, %v2062_v28 }
 0x2c4   :  { %v2125_v20 = vpop.f32.mrf.mxu0 }
 0x2c5   :  { %10888 = vst [vmem:[#allocation46_spill] sm:$0xff] %v9867_v44  ;;  %v2174_v38 = vpop.f32.mrf.mxu1 }
 0x2c6   :  { %v9869_v0 = vadd.f32 %v2174_v38, %v2125_v20  ;;  %2736 = vmatmul.bf16.vlgmr.msrb.gmra.mxu2 %v9609_v39 }
 0x2c7   :  { %2785 = vmatmul.bf16.vlgmr.msrb.gmra.mxu3 %v9687_v23 }
 0x2c8   :  { %10889 = vst [vmem:[#allocation47_spill] sm:$0xff] %v9869_v0 }
 0x2c9   :  { %v2221_v58 = vpop.f32.mrf.mxu2 }
 0x2ca   :  { %v2270_v59 = vpop.f32.mrf.mxu3 }
 0x2cb   :  { %v9873_v50 = vadd.f32 %v2270_v59, %v2221_v58 }
 0x2cc   :  { %v2128_v17 = vpop.f32.mrf.mxu0 }
 0x2cd   :  { %10890 = vst [vmem:[#allocation48_spill] sm:$0xff] %v9873_v50  ;;  %v2177_v53 = vpop.f32.mrf.mxu1 }
 0x2ce   :  { %v9875_v2 = vadd.f32 %v2177_v53, %v2128_v17 }
 0x2cf   :  { %2643 = vmatmul.bf16.gmra.mxu0 %v9617_v16 }
 0x2d0   :  { %10891 = vst [vmem:[#allocation49_spill] sm:$0xff] %v9875_v2  ;;  %2692 = vmatmul.bf16.gmra.mxu1 %v9699_v5 }
 0x2d1   :  { %v2223_v28 = vpop.f32.mrf.mxu2 }
 0x2d2   :  { %v2272_v33 = vpop.f32.mrf.mxu3 }
 0x2d3   :  { %v9879_v20 = vadd.f32 %v2272_v33, %v2223_v28 }
 0x2d4   :  { %v2130_v38 = vpop.f32.mrf.mxu0 }
 0x2d5   :  { %10892 = vst [vmem:[#allocation50_spill] sm:$0xff] %v9879_v20  ;;  %v2179_v47 = vpop.f32.mrf.mxu1 }
 0x2d6   :  { %v9881_v62 = vadd.f32 %v2179_v47, %v2130_v38  ;;  %2741 = vmatmul.bf16.gmra.mxu2 %v9617_v16 }
 0x2d7   :  { %2790 = vmatmul.bf16.gmra.mxu3 %v9699_v5 }
 0x2d8   :  { %10893 = vst [vmem:[#allocation51_spill] sm:$0xff] %v9881_v62 }
 0x2d9   :  { %v2226_v58 = vpop.f32.mrf.mxu2 }
 0x2da   :  { %v2275_v59 = vpop.f32.mrf.mxu3 }
 0x2db   :  { %v9885_v17 = vadd.f32 %v2275_v59, %v2226_v58 }
 0x2dc   :  { %v2133_v53 = vpop.f32.mrf.mxu0 }
 0x2dd   :  { %10894 = vst [vmem:[#allocation52_spill] sm:$0xff] %v9885_v17  ;;  %v2182_v32 = vpop.f32.mrf.mxu1 }
 0x2de   :  { %v9887_v24 = vadd.f32 %v2182_v32, %v2133_v53 }
 0x2df   :  { %2648 = vmatmul.bf16.gmra.mxu0 %v9625_v40 }
 0x2e0   :  { %10895 = vst [vmem:[#allocation53_spill] sm:$0xff] %v9887_v24  ;;  %2697 = vmatmul.bf16.gmra.mxu1 %v9711_v26 }
 0x2e1   :  { %v2228_v28 = vpop.f32.mrf.mxu2 }
 0x2e2   :  { %v2277_v33 = vpop.f32.mrf.mxu3 }
 0x2e3   :  { %v9891_v47 = vadd.f32 %v2277_v33, %v2228_v28 }
 0x2e4   :  { %v2135_v38 = vpop.f32.mrf.mxu0 }
 0x2e5   :  { %10896 = vst [vmem:[#allocation54_spill] sm:$0xff] %v9891_v47  ;;  %v2184_v62 = vpop.f32.mrf.mxu1 }
 0x2e6   :  { %v9893_v20 = vadd.f32 %v2184_v62, %v2135_v38  ;;  %2746 = vmatmul.bf16.gmra.mxu2 %v9625_v40 }
 0x2e7   :  { %2795 = vmatmul.bf16.gmra.mxu3 %v9711_v26 }
 0x2e8   :  { %10897 = vst [vmem:[#allocation55_spill] sm:$0xff] %v9893_v20 }
 0x2e9   :  { %v2231_v58 = vpop.f32.mrf.mxu2 }
 0x2ea   :  { %v2280_v59 = vpop.f32.mrf.mxu3 }
 0x2eb   :  { %v9897_v32 = vadd.f32 %v2280_v59, %v2231_v58 }
 0x2ec   :  { %v2138_v53 = vpop.f32.mrf.mxu0 }
 0x2ed   :  { %10898 = vst [vmem:[#allocation56_spill] sm:$0xff] %v9897_v32  ;;  %v2187_v24 = vpop.f32.mrf.mxu1 }
 0x2ee   :  { %v9899_v17 = vadd.f32 %v2187_v24, %v2138_v53 }
 0x2ef   :  { %2653 = vmatmul.bf16.gmra.mxu0 %v9633_v37 }
 0x2f0   :  { %10899 = vst [vmem:[#allocation57_spill] sm:$0xff] %v9899_v17  ;;  %2702 = vmatmul.bf16.gmra.mxu1 %v9723_v25 }
 0x2f1   :  { %v2233_v28 = vpop.f32.mrf.mxu2 }
 0x2f2   :  { %v2282_v33 = vpop.f32.mrf.mxu3 }
 0x2f3   :  { %v9903_v62 = vadd.f32 %v2282_v33, %v2233_v28  ;;  %v7046_v28 = vld [vmem:[#allocation9 + $0xe8] sm:$0xf]  ;;  %v8587_v33 = vld [vmem:[#allocation9 + $0xf4] sm:$0xf0] }
 0x2f4   :  { %v2140_v38 = vpop.f32.mrf.mxu0 }
 0x2f5   :  { %10900 = vst [vmem:[#allocation58_spill] sm:$0xff] %v9903_v62  ;;  %v2189_v20 = vpop.f32.mrf.mxu1  ;;  %v7174_v62 = vld [vmem:[#allocation9 + $0x1e8] sm:$0xf] }
 0x2f6   :  { %v9905_v47 = vadd.f32 %v2189_v20, %v2140_v38  ;;  %2751 = vmatmul.bf16.gmra.mxu2 %v9633_v37  ;;  %v7047_v20 = vor.u32 %v8587_v33, %v7046_v28  ;;  %v8619_v38 = vld [vmem:[#allocation9 + $0x1f4] sm:$0xf0] }
 0x2f7   :  { %2800 = vmatmul.bf16.gmra.mxu3 %v9723_v25  ;;  %v7175_v2 = vor.u32 %v8619_v38, %v7174_v62  ;;  %v7051_v62 = vor.u32 %v8585_v34, %v7048_v61  ;;  %v8579_v33 = vld [vmem:[#allocation9 + $0xb4] sm:$0xf0]  ;;  %v7160_v34 = vld [vmem:[#allocation9 + $0x1d8] sm:$0xf0] }
 0x2f8   :  { %10901 = vst [vmem:[#allocation59_spill] sm:$0xff] %v9905_v47  ;;  %2826 = vmatpush.bf16.msra.mxu0 %v7047_v20  ;;  %v7142_v20 = vld [vmem:[#allocation9 + $0x1a8] sm:$0xf] }
 0x2f9   :  { %v2236_v58 = vpop.f32.mrf.mxu2  ;;  %2875 = vmatpush.bf16.msra.mxu1 %v7175_v2  ;;  %2924 = vmatpush.bf16.msra.mxu2 %v7051_v62 }
 0x2fa   :  { %v2285_v59 = vpop.f32.mrf.mxu3 }
 0x2fb   :  { %v9909_v24 = vadd.f32 %v2285_v59, %v2236_v58  ;;  %v7030_v58 = vld [vmem:[#allocation9 + $0xc8] sm:$0xf]  ;;  %v8583_v59 = vld [vmem:[#allocation9 + $0xd4] sm:$0xf0] }
 0x2fc   :  { %v2143_v53 = vpop.f32.mrf.mxu0 }
 0x2fd   :  { %10902 = vst [vmem:[#allocation60_spill] sm:$0xff] %v9909_v24  ;;  %v2192_v17 = vpop.f32.mrf.mxu1  ;;  %v8615_v24 = vld [vmem:[#allocation9 + $0x1d4] sm:$0xf0] }
 0x2fe   :  { %v9911_v32 = vadd.f32 %v2192_v17, %v2143_v53  ;;  %v7158_v17 = vld [vmem:[#allocation9 + $0x1c8] sm:$0xf] }
 0x2ff   :  { %2658 = vmatmul.bf16.gmra.mxu0 %v9644_v57  ;;  %v7159_v42 = vor.u32 %v8615_v24, %v7158_v17  ;;  %v8611_v24 = vld [vmem:[#allocation9 + $0x1b4] sm:$0xf0]  ;;  %v7032_v17 = vld [vmem:[#allocation9 + $0xd8] sm:$0xf0] }
 0x300   :  { %10903 = vst [vmem:[#allocation61_spill] sm:$0xff] %v9911_v32  ;;  %2707 = vmatmul.bf16.gmra.mxu1 %v9740_v46  ;;  %v7031_v32 = vor.u32 %v8583_v59, %v7030_v58  ;;  %v7143_v59 = vor.u32 %v8611_v24, %v7142_v20  ;;  %v8577_v24 = vld [vmem:[#allocation9 + $0xac] sm:$0xf] }
 0x301   :  { %v2238_v47 = vpop.f32.mrf.mxu2  ;;  %2876 = vmatpush.bf16.msra.mxu1 %v7159_v42  ;;  %v6998_v42 = vld [vmem:[#allocation9 + $0x88] sm:$0xf] }
 0x302   :  { %v2287_v50 = vpop.f32.mrf.mxu3  ;;  %2827 = vmatpush.bf16.msra.mxu0 %v7031_v32 }
 0x303   :  { %v9915_v0 = vadd.f32 %v2287_v50, %v2238_v47  ;;  %v7176_v50 = vld [vmem:[#allocation9 + $0x1f8] sm:$0xf0]  ;;  %v7014_v47 = vld [vmem:[#allocation9 + $0xa8] sm:$0xf] }
 0x304   :  { %v2145_v53 = vpop.f32.mrf.mxu0  ;;  %v7179_v2 = vor.u32 %v8617_v29, %v7176_v50  ;;  %v7015_v38 = vor.u32 %v8579_v33, %v7014_v47  ;;  %v8575_v50 = vld [vmem:[#allocation9 + $0x94] sm:$0xf0] }
 0x305   :  { %10904 = vst [vmem:[#allocation62_spill] sm:$0xff] %v9915_v0  ;;  %v2194_v44 = vpop.f32.mrf.mxu1  ;;  %2877 = vmatpush.bf16.msra.mxu1 %v7143_v59  ;;  %v7126_v0 = vld [vmem:[#allocation9 + $0x188] sm:$0xf]  ;;  %v6999_v47 = vor.u32 %v8575_v50, %v6998_v42  ;;  %v8607_v33 = vld [vmem:[#allocation9 + $0x194] sm:$0xf0] }
 0x306   :  { %v9917_v28 = vadd.f32 %v2194_v44, %v2145_v53  ;;  %2756 = vmatmul.bf16.gmra.mxu2 %v9644_v57  ;;  %2973 = vmatpush.bf16.msra.mxu3 %v7179_v2  ;;  %v8581_v44 = vld [vmem:[#allocation9 + $0xcc] sm:$0xf]  ;;  %v7127_v20 = vor.u32 %v8607_v33, %v7126_v0  ;;  %v8603_v0 = vld [vmem:[#allocation9 + $0x174] sm:$0xf0]  ;;  %v7000_v50 = vld [vmem:[#allocation9 + $0x98] sm:$0xf0] }
 0x307   :  { %2805 = vmatmul.bf16.gmra.mxu3 %v9740_v46  ;;  %v8613_v53 = vld [vmem:[#allocation9 + $0x1cc] sm:$0xf]  ;;  %2828 = vmatpush.bf16.msra.mxu0 %v7015_v38  ;;  %v7035_v61 = vor.u32 %v8581_v44, %v7032_v17  ;;  %v6982_v44 = vld [vmem:[#allocation9 + $0x68] sm:$0xf]  ;;  %v8571_v17 = vld [vmem:[#allocation9 + $0x74] sm:$0xf0] }
 0x308   :  { %10905 = vst [vmem:[#allocation63_spill] sm:$0xff] %v9917_v28  ;;  %v7163_v29 = vor.u32 %v8613_v53, %v7160_v34  ;;  %v7110_v53 = vld [vmem:[#allocation9 + $0x168] sm:$0xf]  ;;  %v8573_v42 = vld [vmem:[#allocation9 + $0x8c] sm:$0xf] }
 0x309   :  { %v2241_v58 = vpop.f32.mrf.mxu2  ;;  %2925 = vmatpush.bf16.msra.mxu2 %v7035_v61  ;;  %2878 = vmatpush.bf16.msra.mxu1 %v7127_v20  ;;  %v6983_v61 = vor.u32 %v8571_v17, %v6982_v44  ;;  %v7128_v33 = vld [vmem:[#allocation9 + $0x198] sm:$0xf0]  ;;  %v6966_v20 = vld [vmem:[#allocation9 + $0x48] sm:$0xf]  ;;  %v8599_v17 = vld [vmem:[#allocation9 + $0x154] sm:$0xf0] }
 0x30a   :  { %v2290_v28 = vpop.f32.mrf.mxu3  ;;  %2974 = vmatpush.bf16.msra.mxu3 %v7163_v29  ;;  %v7111_v29 = vor.u32 %v8603_v0, %v7110_v53  ;;  %v8569_v0 = vld [vmem:[#allocation9 + $0x6c] sm:$0xf] }
 0x30b   :  { %v9921_v32 = vadd.f32 %v2290_v28, %v2241_v58  ;;  %2829 = vmatpush.bf16.msra.mxu0 %v6999_v47  ;;  %v7019_v28 = vor.u32 %v8577_v24, %v7016_v43  ;;  %v7144_v58 = vld [vmem:[#allocation9 + $0x1b8] sm:$0xf0]  ;;  %v7003_v47 = vor.u32 %v8573_v42, %v7000_v50  ;;  %v8567_v24 = vld [vmem:[#allocation9 + $0x54] sm:$0xf0]  ;;  %v6950_v50 = vld [vmem:[#allocation9 + $0x28] sm:$0xf] }
 0x30c   :  { %v2148_v62 = vpop.f32.mrf.mxu0  ;;  %v7147_v59 = vor.u32 %v8609_v14, %v7144_v58  ;;  %v7094_v58 = vld [vmem:[#allocation9 + $0x148] sm:$0xf]  ;;  %v6967_v44 = vor.u32 %v8567_v24, %v6966_v20  ;;  %v8565_v24 = vld [vmem:[#allocation9 + $0x4c] sm:$0xf] }
 0x30d   :  { %10906 = vst [vmem:[#allocation64_spill] sm:$0xff] %v9921_v32  ;;  %v2197_v2 = vpop.f32.mrf.mxu1  ;;  %2926 = vmatpush.bf16.msra.mxu2 %v7019_v28  ;;  %2879 = vmatpush.bf16.msra.mxu1 %v7111_v29  ;;  %v7095_v53 = vor.u32 %v8599_v17, %v7094_v58  ;;  %v8601_v32 = vld [vmem:[#allocation9 + $0x16c] sm:$0xf]  ;;  %v7112_v29 = vld [vmem:[#allocation9 + $0x178] sm:$0xf0] }
 0x30e   :  { %v9923_v38 = vadd.f32 %v2197_v2, %v2148_v62  ;;  %2975 = vmatpush.bf16.msra.mxu3 %v7147_v59  ;;  %v8605_v62 = vld [vmem:[#allocation9 + $0x18c] sm:$0xf]  ;;  %v7115_v42 = vor.u32 %v8601_v32, %v7112_v29  ;;  %v6968_v58 = vld [vmem:[#allocation9 + $0x58] sm:$0xf0]  ;;  %v7062_v29 = vld [vmem:[#allocation9 + $0x108] sm:$0xf] }
 0x30f   :  { %2663 = vmatmul.bf16.gmra.mxu0 %v9652_v18  ;;  %v7131_v14 = vor.u32 %v8605_v62, %v7128_v33  ;;  %v8563_v62 = vld [vmem:[#allocation9 + $0x34] sm:$0xf0] }
 0x310   :  { %10907 = vst [vmem:[#allocation65_spill] sm:$0xff] %v9923_v38  ;;  %2712 = vmatmul.bf16.gmra.mxu1 %v9753_v51  ;;  %2830 = vmatpush.bf16.msra.mxu0 %v6983_v61  ;;  %v6984_v38 = vld [vmem:[#allocation9 + $0x78] sm:$0xf0]  ;;  %v8595_v33 = vld [vmem:[#allocation9 + $0x134] sm:$0xf0] }
 0x311   :  { %v2243_v34 = vpop.f32.mrf.mxu2  ;;  %2927 = vmatpush.bf16.msra.mxu2 %v7003_v47  ;;  %2880 = vmatpush.bf16.msra.mxu1 %v7095_v53  ;;  %v6951_v47 = vor.u32 %v8563_v62, %v6950_v50  ;;  %v6934_v53 = vld [vmem:[#allocation9 + $0x8] sm:$0xf]  ;;  %v8591_v62 = vld [vmem:[#allocation9 + $0x114] sm:$0xf0] }
 0x312   :  { %v2292_v43 = vpop.f32.mrf.mxu3  ;;  %2976 = vmatpush.bf16.msra.mxu3 %v7131_v14 }
 0x313   :  { %v9927_v2 = vadd.f32 %v2292_v43, %v2243_v34  ;;  %v6987_v34 = vor.u32 %v8569_v0, %v6984_v38  ;;  %v7078_v43 = vld [vmem:[#allocation9 + $0x128] sm:$0xf]  ;;  %v6971_v38 = vor.u32 %v8565_v24, %v6968_v58  ;;  %v8559_v0 = vld [vmem:[#allocation9 + $0x14] sm:$0xf0]  ;;  %v7080_v24 = vld [vmem:[#allocation9 + $0x138] sm:$0xf0] }
 0x314   :  { %v2150_v28 = vpop.f32.mrf.mxu0  ;;  %2831 = vmatpush.bf16.msra.mxu0 %v6967_v44  ;;  %v7079_v20 = vor.u32 %v8595_v33, %v7078_v43  ;;  %v7096_v44 = vld [vmem:[#allocation9 + $0x158] sm:$0xf0]  ;;  %v6935_v50 = vor.u32 %v8559_v0, %v6934_v53  ;;  %v7063_v43 = vor.u32 %v8591_v62, %v7062_v29  ;;  %v8561_v33 = vld [vmem:[#allocation9 + $0x2c] sm:$0xf] }
 0x315   :  { %10908 = vst [vmem:[#allocation66_spill] sm:$0xff] %v9927_v2  ;;  %v2199_v59 = vpop.f32.mrf.mxu1  ;;  %2928 = vmatpush.bf16.msra.mxu2 %v6987_v34  ;;  %v8593_v2 = vld [vmem:[#allocation9 + $0x12c] sm:$0xf]  ;;  %v7064_v53 = vld [vmem:[#allocation9 + $0x118] sm:$0xf0] }
 0x316   :  { %v9929_v61 = vadd.f32 %v2199_v59, %v2150_v28  ;;  %2761 = vmatmul.bf16.gmra.mxu2 %v9652_v18  ;;  %2977 = vmatpush.bf16.msra.mxu3 %v7115_v42  ;;  %v8597_v28 = vld [vmem:[#allocation9 + $0x14c] sm:$0xf] }
 0x317   :  { %2810 = vmatmul.bf16.gmra.mxu3 %v9753_v51  ;;  %2881 = vmatpush.bf16.msra.mxu1 %v7079_v20  ;;  %v7099_v32 = vor.u32 %v8597_v28, %v7096_v44  ;;  %v7083_v20 = vor.u32 %v8593_v2, %v7080_v24  ;;  %v8557_v28 = vld [vmem:[#allocation9 + $0xc] sm:$0xf] }
 0x318   :  { %10909 = vst [vmem:[#allocation67_spill] sm:$0xff] %v9929_v61  ;;  %2832 = vmatpush.bf16.msra.mxu0 %v6951_v47  ;;  %v6952_v61 = vld [vmem:[#allocation9 + $0x38] sm:$0xf0] }
 0x319   :  { %v2246_v14 = vpop.f32.mrf.mxu2  ;;  %2929 = vmatpush.bf16.msra.mxu2 %v6971_v38  ;;  %v8589_v38 = vld [vmem:[#allocation9 + $0x10c] sm:$0xf] }
 0x31a   :  { %v2295_v17 = vpop.f32.mrf.mxu3  ;;  %2978 = vmatpush.bf16.msra.mxu3 %v7099_v32  ;;  %v7067_v29 = vor.u32 %v8589_v38, %v7064_v53 }
 0x31b   :  { %v9933_v59 = vadd.f32 %v2295_v17, %v2246_v14  ;;  %v6955_v14 = vor.u32 %v8561_v33, %v6952_v61  ;;  %2882 = vmatpush.bf16.msra.mxu1 %v7063_v43  ;;  %v6936_v17 = vld [vmem:[#allocation9 + $0x18] sm:$0xf0] }
 0x31c   :  { %v2153_v34 = vpop.f32.mrf.mxu0  ;;  %2833 = vmatpush.bf16.msra.mxu0 %v6935_v50  ;;  %v6939_v32 = vor.u32 %v8557_v28, %v6936_v17 }
 0x31d   :  { %v2202_v42 = vpop.f32.mrf.mxu1  ;;  %2930 = vmatpush.bf16.msra.mxu2 %v6955_v14 }
 0x31e   :  { %v9935_v47 = vadd.f32 %v2202_v42, %v2153_v34  ;;  %2979 = vmatpush.bf16.msra.mxu3 %v7083_v20 }
 0x31f   :  { %2668 = vmatmul.bf16.gmra.mxu0 %v9660_v13 }
 0x320   :  { %2717 = vmatmul.bf16.gmra.mxu1 %v9765_v48 }
 0x321   :  { %v2248_v58 = vpop.f32.mrf.mxu2  ;;  %2931 = vmatpush.bf16.msra.mxu2 %v6939_v32 }
 0x322   :  { %v2297_v44 = vpop.f32.mrf.mxu3  ;;  %2980 = vmatpush.bf16.msra.mxu3 %v7067_v29 }
 0x323   :  { %v9939_v0 = vadd.f32 %v2297_v44, %v2248_v58 }
 0x324   :  { %v2155_v61 = vpop.f32.mrf.mxu0 }
 0x325   :  { %v2204_v34 = vpop.f32.mrf.mxu1 }
 0x326   :  { %v9941_v50 = vadd.f32 %v2204_v34, %v2155_v61  ;;  %2766 = vmatmul.bf16.gmra.mxu2 %v9660_v13 }
 0x327   :  { %2815 = vmatmul.bf16.gmra.mxu3 %v9765_v48 }
 0x329   :  { %v2251_v2 = vpop.f32.mrf.mxu2 }
 0x32a   :  { %v2300_v62 = vpop.f32.mrf.mxu3 }
 0x32b   :  { %v9945_v42 = vadd.f32 %v2300_v62, %v2251_v2 }
 0x32c   :  { %v2158_v43 = vpop.f32.mrf.mxu0 }
 0x32d   :  { %v2207_v33 = vpop.f32.mrf.mxu1 }
 0x32e   :  { %v9947_v14 = vadd.f32 %v2207_v33, %v2158_v43 }
 0x32f   :  { %2673 = vmatmul.bf16.gmra.mxu0 %v9675_v36 }
 0x330   :  { %2722 = vmatmul.bf16.gmra.mxu1 %v9775_v7 }
 0x331   :  { %v2253_v24 = vpop.f32.mrf.mxu2 }
 0x332   :  { %v2302_v20 = vpop.f32.mrf.mxu3 }
 0x333   :  { %v9951_v58 = vadd.f32 %v2302_v20, %v2253_v24 }
 0x334   :  { %v2160_v28 = vpop.f32.mrf.mxu0 }
 0x335   :  { %v2209_v17 = vpop.f32.mrf.mxu1 }
 0x336   :  { %v9953_v38 = vadd.f32 %v2209_v17, %v2160_v28  ;;  %2771 = vmatmul.bf16.gmra.mxu2 %v9675_v36 }
 0x337   :  { %2820 = vmatmul.bf16.gmra.mxu3 %v9775_v7 }
 0x339   :  { %v2256_v44 = vpop.f32.mrf.mxu2 }
 0x33a   :  { %v2305_v32 = vpop.f32.mrf.mxu3 }
 0x33b   :  { %v9957_v53 = vadd.f32 %v2305_v32, %v2256_v44 }
 0x33c   :  { %v2639_v29 = vpop.f32.mrf.mxu0 }
 0x33d   :  { %v2640_v61 = vadd.f32 %v2639_v29, %v9767_v15  ;;  %v2688_v34 = vpop.f32.mrf.mxu1 }
 0x33f   :  { %v9960_v2 = vadd.f32 %v2688_v34, %v2640_v61  ;;  %2834 = vmatmul.bf16.vlgmr.msra.gmra.mxu0 %v9609_v39 }
 0x340   :  { %2883 = vmatmul.bf16.vlgmr.msra.gmra.mxu1 %v9687_v23 }
 0x341   :  { %v2258_v62 = vpop.f32.mrf.mxu2 }
 0x342   :  { %v2307_v43 = vpop.f32.mrf.mxu3 }
 0x343   :  { %v9964_v33 = vadd.f32 %v2307_v43, %v2258_v62 }
 0x344   :  { %v2641_v24 = vpop.f32.mrf.mxu0 }
 0x345   :  { %v2642_v20 = vadd.f32 %v2641_v24, %v9771_v52  ;;  %v2690_v28 = vpop.f32.mrf.mxu1 }
 0x346   :  { %2932 = vmatmul.bf16.vlgmr.msra.gmra.mxu2 %v9609_v39 }
 0x347   :  { %v9968_v17 = vadd.f32 %v2690_v28, %v2642_v20  ;;  %2981 = vmatmul.bf16.vlgmr.msra.gmra.mxu3 %v9687_v23 }
 0x349   :  { %v2737_v15 = vpop.f32.mrf.mxu2 }
 0x34a   :  { %v2738_v44 = vadd.f32 %v2737_v15, %v9777_v35  ;;  %v2786_v32 = vpop.f32.mrf.mxu3 }
 0x34c   :  { %v9972_v29 = vadd.f32 %v2786_v32, %v2738_v44  ;;  %v2644_v61 = vpop.f32.mrf.mxu0 }
 0x34d   :  { %v2645_v34 = vadd.f32 %v2644_v61, %v9779_v63  ;;  %v2693_v62 = vpop.f32.mrf.mxu1 }
 0x34f   :  { %v9975_v43 = vadd.f32 %v2693_v62, %v2645_v34  ;;  %2839 = vmatmul.bf16.gmra.mxu0 %v9617_v16 }
 0x350   :  { %2888 = vmatmul.bf16.gmra.mxu1 %v9699_v5 }
 0x351   :  { %v2739_v52 = vpop.f32.mrf.mxu2 }
 0x352   :  { %v2740_v24 = vadd.f32 %v2739_v52, %v9783_v22  ;;  %v2788_v20 = vpop.f32.mrf.mxu3 }
 0x354   :  { %v9980_v28 = vadd.f32 %v2788_v20, %v2740_v24  ;;  %v2646_v35 = vpop.f32.mrf.mxu0 }
 0x355   :  { %v2647_v15 = vadd.f32 %v2646_v35, %v9785_v54  ;;  %v2695_v44 = vpop.f32.mrf.mxu1 }
 0x356   :  { %2937 = vmatmul.bf16.gmra.mxu2 %v9617_v16 }
 0x357   :  { %v9984_v63 = vadd.f32 %v2695_v44, %v2647_v15  ;;  %2986 = vmatmul.bf16.gmra.mxu3 %v9699_v5 }
 0x359   :  { %v2742_v32 = vpop.f32.mrf.mxu2 }
 0x35a   :  { %v2743_v61 = vadd.f32 %v2742_v32, %v9789_v19  ;;  %v2791_v34 = vpop.f32.mrf.mxu3 }
 0x35c   :  { %v9988_v62 = vadd.f32 %v2791_v34, %v2743_v61  ;;  %v2649_v22 = vpop.f32.mrf.mxu0 }
 0x35d   :  { %v2650_v52 = vadd.f32 %v2649_v22, %v9791_v3  ;;  %v2698_v24 = vpop.f32.mrf.mxu1 }
 0x35f   :  { %v9991_v20 = vadd.f32 %v2698_v24, %v2650_v52  ;;  %2844 = vmatmul.bf16.gmra.mxu0 %v9625_v40 }
 0x360   :  { %2893 = vmatmul.bf16.gmra.mxu1 %v9711_v26 }
 0x361   :  { %v2744_v54 = vpop.f32.mrf.mxu2 }
 0x362   :  { %v2745_v35 = vadd.f32 %v2744_v54, %v9795_v8  ;;  %v2793_v15 = vpop.f32.mrf.mxu3 }
 0x364   :  { %v9996_v44 = vadd.f32 %v2793_v15, %v2745_v35  ;;  %v2651_v19 = vpop.f32.mrf.mxu0 }
 0x365   :  { %v2652_v32 = vadd.f32 %v2651_v19, %v9797_v55  ;;  %v2700_v61 = vpop.f32.mrf.mxu1 }
 0x366   :  { %2942 = vmatmul.bf16.gmra.mxu2 %v9625_v40 }
 0x367   :  { %v10000_v3 = vadd.f32 %v2700_v61, %v2652_v32  ;;  %2991 = vmatmul.bf16.gmra.mxu3 %v9711_v26 }
 0x369   :  { %10910 = vst [vmem:[#allocation68_spill] sm:$0xff] %v10000_v3  ;;  %v2747_v34 = vpop.f32.mrf.mxu2  ;;  %v7240_v3 = vld [vmem:[#allocation12 + $0x78] sm:$0xf0] }
 0x36a   :  { %v2748_v22 = vadd.f32 %v2747_v34, %v9801_v21  ;;  %v2796_v52 = vpop.f32.mrf.mxu3 }
 0x36c   :  { %v10004_v24 = vadd.f32 %v2796_v52, %v2748_v22  ;;  %v2654_v8 = vpop.f32.mrf.mxu0 }
 0x36d   :  { %v2655_v54 = vadd.f32 %v2654_v8, %v9803_v27  ;;  %v2703_v35 = vpop.f32.mrf.mxu1 }
 0x36e   :  { %10911 = vst [vmem:[#allocation69_spill] sm:$0xff] %v10004_v24 }
 0x36f   :  { %v10007_v15 = vadd.f32 %v2703_v35, %v2655_v54  ;;  %2849 = vmatmul.bf16.gmra.mxu0 %v9633_v37 }
 0x370   :  { %2898 = vmatmul.bf16.gmra.mxu1 %v9723_v25 }
 0x371   :  { %10912 = vst [vmem:[#allocation70_spill] sm:$0xff] %v10007_v15  ;;  %v2749_v55 = vpop.f32.mrf.mxu2 }
 0x372   :  { %v2750_v19 = vadd.f32 %v2749_v55, %v9807_v12  ;;  %v2798_v32 = vpop.f32.mrf.mxu3 }
 0x374   :  { %v10012_v61 = vadd.f32 %v2798_v32, %v2750_v19  ;;  %v2656_v21 = vpop.f32.mrf.mxu0 }
 0x375   :  { %v2657_v34 = vadd.f32 %v2656_v21, %v9809_v10  ;;  %v2705_v22 = vpop.f32.mrf.mxu1  ;;  %v7238_v10 = vld [vmem:[#allocation12 + $0x70] sm:$0xf]  ;;  %v8699_v21 = vld [vmem:[#allocation12 + $0x74] sm:$0xf0] }
 0x376   :  { %10913 = vst [vmem:[#allocation71_spill] sm:$0xff] %v10012_v61  ;;  %2947 = vmatmul.bf16.gmra.mxu2 %v9633_v37 }
 0x377   :  { %v10016_v27 = vadd.f32 %v2705_v22, %v2657_v34  ;;  %2996 = vmatmul.bf16.gmra.mxu3 %v9723_v25  ;;  %v7302_v34 = vld [vmem:[#allocation12 + $0xf0] sm:$0xf]  ;;  %v7239_v22 = vor.u32 %v8699_v21, %v7238_v10  ;;  %v8698_v21 = vld [vmem:[#allocation12 + $0x74] sm:$0xf] }
 0x379   :  { %10914 = vst [vmem:[#allocation72_spill] sm:$0xff] %v10016_v27  ;;  %v2752_v52 = vpop.f32.mrf.mxu2  ;;  %v8715_v27 = vld [vmem:[#allocation12 + $0xf4] sm:$0xf0]  ;;  %3352 = vmatpush.bf16.msrb.mxu0 %v7239_v22 }
 0x37a   :  { %v2753_v8 = vadd.f32 %v2752_v52, %v9813_v49  ;;  %v2801_v54 = vpop.f32.mrf.mxu3  ;;  %v7303_v49 = vor.u32 %v8715_v27, %v7302_v34  ;;  %v8714_v27 = vld [vmem:[#allocation12 + $0xf4] sm:$0xf] }
 0x37c   :  { %v10020_v35 = vadd.f32 %v2801_v54, %v2753_v8  ;;  %v2659_v12 = vpop.f32.mrf.mxu0  ;;  %3401 = vmatpush.bf16.msrb.mxu1 %v7303_v49  ;;  %v8697_v54 = vld [vmem:[#allocation12 + $0x64] sm:$0xf0]  ;;  %v7222_v49 = vld [vmem:[#allocation12 + $0x50] sm:$0xf] }
 0x37d   :  { %v2660_v55 = vadd.f32 %v2659_v12, %v9815_v9  ;;  %v2708_v19 = vpop.f32.mrf.mxu1  ;;  %v7230_v9 = vld [vmem:[#allocation12 + $0x60] sm:$0xf] }
 0x37e   :  { %10915 = vst [vmem:[#allocation73_spill] sm:$0xff] %v10020_v35  ;;  %v8713_v35 = vld [vmem:[#allocation12 + $0xe4] sm:$0xf0] }
 0x37f   :  { %v10023_v32 = vadd.f32 %v2708_v19, %v2660_v55  ;;  %2854 = vmatmul.bf16.gmra.mxu0 %v9644_v57  ;;  %v7231_v19 = vor.u32 %v8697_v54, %v7230_v9  ;;  %v8696_v54 = vld [vmem:[#allocation12 + $0x64] sm:$0xf] }
 0x380   :  { %2903 = vmatmul.bf16.gmra.mxu1 %v9740_v46 }
 0x381   :  { %10916 = vst [vmem:[#allocation74_spill] sm:$0xff] %v10023_v32  ;;  %v2754_v61 = vpop.f32.mrf.mxu2  ;;  %v7294_v32 = vld [vmem:[#allocation12 + $0xe0] sm:$0xf]  ;;  %3353 = vmatpush.bf16.msrb.mxu0 %v7231_v19  ;;  %v8712_v19 = vld [vmem:[#allocation12 + $0xe4] sm:$0xf] }
 0x382   :  { %v2755_v52 = vadd.f32 %v2754_v61, %v9819_v60  ;;  %v2803_v8 = vpop.f32.mrf.mxu3  ;;  %v7295_v10 = vor.u32 %v8713_v35, %v7294_v32  ;;  %v7243_v60 = vor.u32 %v8698_v21, %v7240_v3  ;;  %v7304_v61 = vld [vmem:[#allocation12 + $0xf8] sm:$0xf0]  ;;  %v8711_v35 = vld [vmem:[#allocation12 + $0xd4] sm:$0xf0]  ;;  %v7296_v21 = vld [vmem:[#allocation12 + $0xe8] sm:$0xf0] }
 0x383   :  { %v7307_v22 = vor.u32 %v8714_v27, %v7304_v61  ;;  %v7214_v27 = vld [vmem:[#allocation12 + $0x40] sm:$0xf]  ;;  %v8693_v61 = vld [vmem:[#allocation12 + $0x44] sm:$0xf0] }
 0x384   :  { %v10028_v12 = vadd.f32 %v2803_v8, %v2755_v52  ;;  %v2661_v55 = vpop.f32.mrf.mxu0  ;;  %3402 = vmatpush.bf16.msrb.mxu1 %v7295_v10  ;;  %v8695_v52 = vld [vmem:[#allocation12 + $0x54] sm:$0xf0]  ;;  %v7286_v8 = vld [vmem:[#allocation12 + $0xd0] sm:$0xf]  ;;  %3450 = vmatpush.bf16.msrb.mxu2 %v7243_v60  ;;  %v7299_v10 = vor.u32 %v8712_v19, %v7296_v21 }
 0x385   :  { %v2662_v15 = vadd.f32 %v2661_v55, %v9821_v4  ;;  %v2710_v24 = vpop.f32.mrf.mxu1  ;;  %v7223_v4 = vor.u32 %v8695_v52, %v7222_v49  ;;  %3499 = vmatpush.bf16.msrb.mxu3 %v7307_v22  ;;  %v7287_v9 = vor.u32 %v8711_v35, %v7286_v8  ;;  %v7232_v55 = vld [vmem:[#allocation12 + $0x68] sm:$0xf0]  ;;  %v7215_v49 = vor.u32 %v8693_v61, %v7214_v27  ;;  %v7278_v22 = vld [vmem:[#allocation12 + $0xc0] sm:$0xf]  ;;  %v8709_v52 = vld [vmem:[#allocation12 + $0xc4] sm:$0xf0] }
 0x386   :  { %2952 = vmatmul.bf16.gmra.mxu2 %v9644_v57  ;;  %v7270_v21 = vld [vmem:[#allocation12 + $0xb0] sm:$0xf] }
 0x387   :  { %v10032_v34 = vadd.f32 %v2710_v24, %v2662_v15  ;;  %3001 = vmatmul.bf16.gmra.mxu3 %v9740_v46  ;;  %3354 = vmatpush.bf16.msrb.mxu0 %v7223_v4  ;;  %v7235_v15 = vor.u32 %v8696_v54, %v7232_v55  ;;  %v7224_v4 = vld [vmem:[#allocation12 + $0x58] sm:$0xf0]  ;;  %v8710_v54 = vld [vmem:[#allocation12 + $0xd4] sm:$0xf] }
 0x388   :  { %3403 = vmatpush.bf16.msrb.mxu1 %v7287_v9  ;;  %v7288_v55 = vld [vmem:[#allocation12 + $0xd8] sm:$0xf0] }
 0x389   :  { %10917 = vst [vmem:[#allocation75_spill] sm:$0xff] %v10032_v34  ;;  %v2757_v32 = vpop.f32.mrf.mxu2  ;;  %3451 = vmatpush.bf16.msrb.mxu2 %v7235_v15  ;;  %3500 = vmatpush.bf16.msrb.mxu3 %v7299_v10  ;;  %v8691_v15 = vld [vmem:[#allocation12 + $0x34] sm:$0xf0] }
 0x38a   :  { %v2758_v3 = vadd.f32 %v2757_v32, %v9825_v45  ;;  %v2806_v24 = vpop.f32.mrf.mxu3  ;;  %v7279_v45 = vor.u32 %v8709_v52, %v7278_v22  ;;  %v8694_v32 = vld [vmem:[#allocation12 + $0x54] sm:$0xf]  ;;  %v8707_v10 = vld [vmem:[#allocation12 + $0xb4] sm:$0xf0]  ;;  %v8708_v22 = vld [vmem:[#allocation12 + $0xc4] sm:$0xf] }
 0x38b   :  { %3355 = vmatpush.bf16.msrb.mxu0 %v7215_v49  ;;  %v7227_v9 = vor.u32 %v8694_v32, %v7224_v4  ;;  %v7271_v61 = vor.u32 %v8707_v10, %v7270_v21  ;;  %v7216_v49 = vld [vmem:[#allocation12 + $0x48] sm:$0xf0]  ;;  %v7198_v4 = vld [vmem:[#allocation12 + $0x20] sm:$0xf] }
 0x38c   :  { %v10036_v34 = vadd.f32 %v2806_v24, %v2758_v3  ;;  %v2664_v60 = vpop.f32.mrf.mxu0  ;;  %3404 = vmatpush.bf16.msrb.mxu1 %v7279_v45  ;;  %v7291_v3 = vor.u32 %v8710_v54, %v7288_v55  ;;  %v7206_v24 = vld [vmem:[#allocation12 + $0x30] sm:$0xf]  ;;  %v7280_v45 = vld [vmem:[#allocation12 + $0xc8] sm:$0xf0]  ;;  %v8689_v54 = vld [vmem:[#allocation12 + $0x24] sm:$0xf0] }
 0x38d   :  { %v2665_v8 = vadd.f32 %v2664_v60, %v9827_v6  ;;  %v2713_v35 = vpop.f32.mrf.mxu1  ;;  %3452 = vmatpush.bf16.msrb.mxu2 %v7227_v9  ;;  %v7207_v6 = vor.u32 %v8691_v15, %v7206_v24  ;;  %v8692_v60 = vld [vmem:[#allocation12 + $0x44] sm:$0xf]  ;;  %v7283_v32 = vor.u32 %v8708_v22, %v7280_v45  ;;  %v7199_v24 = vor.u32 %v8689_v54, %v7198_v4  ;;  %v8705_v15 = vld [vmem:[#allocation12 + $0xa4] sm:$0xf0] }
 0x38e   :  { %3501 = vmatpush.bf16.msrb.mxu3 %v7291_v3  ;;  %v7262_v3 = vld [vmem:[#allocation12 + $0xa0] sm:$0xf] }
 0x38f   :  { %v10039_v19 = vadd.f32 %v2713_v35, %v2665_v8  ;;  %2859 = vmatmul.bf16.gmra.mxu0 %v9652_v18  ;;  %v7219_v35 = vor.u32 %v8692_v60, %v7216_v49  ;;  %v8706_v60 = vld [vmem:[#allocation12 + $0xb4] sm:$0xf]  ;;  %v7272_v49 = vld [vmem:[#allocation12 + $0xb8] sm:$0xf0] }
 0x390   :  { %2908 = vmatmul.bf16.gmra.mxu1 %v9753_v51  ;;  %3356 = vmatpush.bf16.msrb.mxu0 %v7207_v6  ;;  %v7208_v6 = vld [vmem:[#allocation12 + $0x38] sm:$0xf0] }
 0x391   :  { %v2759_v27 = vpop.f32.mrf.mxu2  ;;  %3405 = vmatpush.bf16.msrb.mxu1 %v7271_v61  ;;  %3453 = vmatpush.bf16.msrb.mxu2 %v7219_v35  ;;  %v8687_v35 = vld [vmem:[#allocation12 + $0x14] sm:$0xf0] }
 0x392   :  { %v2760_v52 = vadd.f32 %v2759_v27, %v9831_v11  ;;  %v2808_v8 = vpop.f32.mrf.mxu3  ;;  %3502 = vmatpush.bf16.msrb.mxu3 %v7283_v32  ;;  %v7263_v11 = vor.u32 %v8705_v15, %v7262_v3  ;;  %v8690_v27 = vld [vmem:[#allocation12 + $0x34] sm:$0xf]  ;;  %v8703_v32 = vld [vmem:[#allocation12 + $0x94] sm:$0xf0]  ;;  %v7200_v3 = vld [vmem:[#allocation12 + $0x28] sm:$0xf0] }
 0x393   :  { %v7211_v61 = vor.u32 %v8690_v27, %v7208_v6  ;;  %v7264_v27 = vld [vmem:[#allocation12 + $0xa8] sm:$0xf0]  ;;  %v7182_v6 = vld [vmem:[#allocation12] sm:$0xf] }
 0x394   :  { %v10044_v55 = vadd.f32 %v2808_v8, %v2760_v52  ;;  %v2666_v9 = vpop.f32.mrf.mxu0  ;;  %3357 = vmatpush.bf16.msrb.mxu0 %v7199_v24  ;;  %v7275_v52 = vor.u32 %v8706_v60, %v7272_v49  ;;  %v7190_v8 = vld [vmem:[#allocation12 + $0x10] sm:$0xf]  ;;  %v8704_v24 = vld [vmem:[#allocation12 + $0xa4] sm:$0xf]  ;;  %v8685_v60 = vld [vmem:[#allocation12 + $0x4] sm:$0xf0] }
 0x395   :  { %v2667_v21 = vadd.f32 %v2666_v9, %v9833_v30  ;;  %v2715_v10 = vpop.f32.mrf.mxu1  ;;  %3406 = vmatpush.bf16.msrb.mxu1 %v7263_v11  ;;  %v7254_v30 = vld [vmem:[#allocation12 + $0x90] sm:$0xf]  ;;  %3454 = vmatpush.bf16.msrb.mxu2 %v7211_v61  ;;  %v7191_v45 = vor.u32 %v8687_v35, %v7190_v8  ;;  %v8688_v9 = vld [vmem:[#allocation12 + $0x24] sm:$0xf]  ;;  %v7267_v11 = vor.u32 %v8704_v24, %v7264_v27  ;;  %v8701_v35 = vld [vmem:[#allocation12 + $0x84] sm:$0xf0] }
 0x396   :  { %2957 = vmatmul.bf16.gmra.mxu2 %v9652_v18  ;;  %3503 = vmatpush.bf16.msrb.mxu3 %v7275_v52  ;;  %v7255_v54 = vor.u32 %v8703_v32, %v7254_v30  ;;  %v7183_v8 = vor.u32 %v8685_v60, %v7182_v6  ;;  %v7246_v52 = vld [vmem:[#allocation12 + $0x80] sm:$0xf]  ;;  %v8700_v27 = vld [vmem:[#allocation12 + $0x84] sm:$0xf] }
 0x397   :  { %v10048_v22 = vadd.f32 %v2715_v10, %v2667_v21  ;;  %3006 = vmatmul.bf16.gmra.mxu3 %v9753_v51  ;;  %v7203_v10 = vor.u32 %v8688_v9, %v7200_v3  ;;  %v8702_v9 = vld [vmem:[#allocation12 + $0x94] sm:$0xf]  ;;  %v7256_v3 = vld [vmem:[#allocation12 + $0x98] sm:$0xf0] }
 0x398   :  { %3358 = vmatpush.bf16.msrb.mxu0 %v7191_v45  ;;  %v7192_v45 = vld [vmem:[#allocation12 + $0x18] sm:$0xf0] }
 0x399   :  { %v2762_v4 = vpop.f32.mrf.mxu2  ;;  %3407 = vmatpush.bf16.msrb.mxu1 %v7255_v54  ;;  %3455 = vmatpush.bf16.msrb.mxu2 %v7203_v10  ;;  %v7184_v10 = vld [vmem:[#allocation12 + $0x8] sm:$0xf0] }
 0x39a   :  { %v2763_v15 = vadd.f32 %v2762_v4, %v9837_v41  ;;  %v2811_v21 = vpop.f32.mrf.mxu3  ;;  %3504 = vmatpush.bf16.msrb.mxu3 %v7267_v11  ;;  %v7247_v41 = vor.u32 %v8701_v35, %v7246_v52  ;;  %v8686_v4 = vld [vmem:[#allocation12 + $0x14] sm:$0xf] }
 0x39b   :  { %v7195_v54 = vor.u32 %v8686_v4, %v7192_v45 }
 0x39c   :  { %v10052_v49 = vadd.f32 %v2811_v21, %v2763_v15  ;;  %v2669_v61 = vpop.f32.mrf.mxu0  ;;  %3359 = vmatpush.bf16.msrb.mxu0 %v7183_v8  ;;  %v7259_v15 = vor.u32 %v8702_v9, %v7256_v3 }
 0x39d   :  { %v2670_v30 = vadd.f32 %v2669_v61, %v9839_v31  ;;  %v2718_v32 = vpop.f32.mrf.mxu1  ;;  %3408 = vmatpush.bf16.msrb.mxu1 %v7247_v41  ;;  %3456 = vmatpush.bf16.msrb.mxu2 %v7195_v54  ;;  %v8684_v31 = vld [vmem:[#allocation12 + $0x4] sm:$0xf]  ;;  %v7248_v61 = vld [vmem:[#allocation12 + $0x88] sm:$0xf0] }
 0x39e   :  { %3505 = vmatpush.bf16.msrb.mxu3 %v7259_v15  ;;  %v7187_v60 = vor.u32 %v8684_v31, %v7184_v10  ;;  %v7251_v8 = vor.u32 %v8700_v27, %v7248_v61  ;;  %v10919_v15 = vld [vmem:[#allocation41_spill] sm:$0xff]  ;;  %v10920_v27 = vld [vmem:[#allocation42_spill] sm:$0xff] }
 0x39f   :  { %v10055_v24 = vadd.f32 %v2718_v32, %v2670_v30  ;;  %2864 = vmatmul.bf16.gmra.mxu0 %v9660_v13 }
 0x3a0   :  { %2913 = vmatmul.bf16.gmra.mxu1 %v9765_v48 }
 0x3a1   :  { %v2764_v21 = vpop.f32.mrf.mxu2  ;;  %3457 = vmatpush.bf16.msrb.mxu2 %v7187_v60 }
 0x3a2   :  { %v2765_v11 = vadd.f32 %v2764_v21, %v9843_v1  ;;  %v2813_v6 = vpop.f32.mrf.mxu3  ;;  %3506 = vmatpush.bf16.msrb.mxu3 %v7251_v8  ;;  %v10918_v1 = vld [vmem:[#allocation40_spill] sm:$0xff]  ;;  %v10921_v8 = vld [vmem:[#allocation43_spill] sm:$0xff] }
 0x3a4   :  { %v10060_v52 = vadd.f32 %v2813_v6, %v2765_v11  ;;  %v2671_v35 = vpop.f32.mrf.mxu0 }
 0x3a5   :  { %v2672_v30 = vadd.f32 %v2671_v35, %v9845_v56  ;;  %v2720_v32 = vpop.f32.mrf.mxu1 }
 0x3a6   :  { %2962 = vmatmul.bf16.gmra.mxu2 %v9660_v13 }
 0x3a7   :  { %v10064_v41 = vadd.f32 %v2720_v32, %v2672_v30  ;;  %3011 = vmatmul.bf16.gmra.mxu3 %v9765_v48 }
 0x3a9   :  { %v2767_v4 = vpop.f32.mrf.mxu2 }
 0x3aa   :  { %v2768_v45 = vadd.f32 %v2767_v4, %v10918_v1  ;;  %v2816_v9 = vpop.f32.mrf.mxu3  ;;  %v10922_v1 = vld [vmem:[#allocation44_spill] sm:$0xff] }
 0x3ac   :  { %v10068_v54 = vadd.f32 %v2816_v9, %v2768_v45  ;;  %v2674_v3 = vpop.f32.mrf.mxu0 }
 0x3ad   :  { %v2675_v21 = vadd.f32 %v2674_v3, %v10919_v15  ;;  %v2723_v31 = vpop.f32.mrf.mxu1 }
 0x3af   :  { %v10071_v10 = vadd.f32 %v2723_v31, %v2675_v21  ;;  %2869 = vmatmul.bf16.gmra.mxu0 %v9675_v36  ;;  %v10924_v21 = vld [vmem:[#allocation45_spill] sm:$0xff] }
 0x3b0   :  { %2918 = vmatmul.bf16.gmra.mxu1 %v9775_v7 }
 0x3b1   :  { %v2769_v56 = vpop.f32.mrf.mxu2 }
 0x3b2   :  { %v2770_v11 = vadd.f32 %v2769_v56, %v10920_v27  ;;  %v2818_v6 = vpop.f32.mrf.mxu3 }
 0x3b4   :  { %v10076_v60 = vadd.f32 %v2818_v6, %v2770_v11  ;;  %v2676_v61 = vpop.f32.mrf.mxu0  ;;  %v10925_v6 = vld [vmem:[#allocation46_spill] sm:$0xff] }
 0x3b5   :  { %v2677_v35 = vadd.f32 %v2676_v61, %v10921_v8  ;;  %v2725_v30 = vpop.f32.mrf.mxu1 }
 0x3b6   :  { %2967 = vmatmul.bf16.gmra.mxu2 %v9675_v36 }
 0x3b7   :  { %v10080_v32 = vadd.f32 %v2725_v30, %v2677_v35  ;;  %3016 = vmatmul.bf16.gmra.mxu3 %v9775_v7 }
 0x3b9   :  { %v2772_v4 = vpop.f32.mrf.mxu2 }
 0x3ba   :  { %v2773_v45 = vadd.f32 %v2772_v4, %v10922_v1  ;;  %v2821_v9 = vpop.f32.mrf.mxu3  ;;  %v10927_v4 = vld [vmem:[#allocation47_spill] sm:$0xff] }
 0x3bc   :  { %v10084_v3 = vadd.f32 %v2821_v9, %v2773_v45  ;;  %v2835_v15 = vpop.f32.mrf.mxu0 }
 0x3bd   :  { %v2836_v31 = vadd.f32 %v2835_v15, %v10924_v21  ;;  %v2884_v56 = vpop.f32.mrf.mxu1  ;;  %v10928_v21 = vld [vmem:[#allocation48_spill] sm:$0xff] }
 0x3be   :  { %10923 = vst [vmem:[#allocation40_spill] sm:$0xff] %v10084_v3 }
 0x3bf   :  { %v10087_v27 = vadd.f32 %v2884_v56, %v2836_v31  ;;  %3360 = vmatmul.bf16.vlgmr.msrb.gmra.mxu0 %v9609_v39 }
 0x3c0   :  { %3409 = vmatmul.bf16.vlgmr.msrb.gmra.mxu1 %v9687_v23 }
 0x3c1   :  { %v2774_v11 = vpop.f32.mrf.mxu2 }
 0x3c2   :  { %v2775_v61 = vadd.f32 %v2774_v11, %v10925_v6  ;;  %v2823_v8 = vpop.f32.mrf.mxu3  ;;  %v10929_v6 = vld [vmem:[#allocation49_spill] sm:$0xff] }
 0x3c4   :  { %v10092_v35 = vadd.f32 %v2823_v8, %v2775_v61  ;;  %v2837_v30 = vpop.f32.mrf.mxu0 }
 0x3c5   :  { %v2838_v1 = vadd.f32 %v2837_v30, %v10927_v4  ;;  %v2886_v45 = vpop.f32.mrf.mxu1  ;;  %v10931_v30 = vld [vmem:[#allocation50_spill] sm:$0xff] }
 0x3c6   :  { %10926 = vst [vmem:[#allocation41_spill] sm:$0xff] %v10092_v35  ;;  %3458 = vmatmul.bf16.vlgmr.msrb.gmra.mxu2 %v9609_v39 }
 0x3c7   :  { %v10096_v9 = vadd.f32 %v2886_v45, %v2838_v1  ;;  %3507 = vmatmul.bf16.vlgmr.msrb.gmra.mxu3 %v9687_v23 }
 0x3c9   :  { %v2933_v15 = vpop.f32.mrf.mxu2 }
 0x3ca   :  { %v2934_v31 = vadd.f32 %v2933_v15, %v10928_v21  ;;  %v2982_v56 = vpop.f32.mrf.mxu3  ;;  %v10933_v15 = vld [vmem:[#allocation51_spill] sm:$0xff] }
 0x3cc   :  { %v10100_v3 = vadd.f32 %v2982_v56, %v2934_v31  ;;  %v2840_v11 = vpop.f32.mrf.mxu0 }
 0x3cd   :  { %v2841_v61 = vadd.f32 %v2840_v11, %v10929_v6  ;;  %v2889_v8 = vpop.f32.mrf.mxu1  ;;  %v10935_v6 = vld [vmem:[#allocation52_spill] sm:$0xff] }
 0x3cf   :  { %v10103_v35 = vadd.f32 %v2889_v8, %v2841_v61  ;;  %3365 = vmatmul.bf16.gmra.mxu0 %v9617_v16 }
 0x3d0   :  { %3414 = vmatmul.bf16.gmra.mxu1 %v9699_v5 }
 0x3d1   :  { %10930 = vst [vmem:[#allocation42_spill] sm:$0xff] %v10103_v35  ;;  %v2935_v39 = vpop.f32.mrf.mxu2 }
 0x3d2   :  { %v2936_v4 = vadd.f32 %v2935_v39, %v10931_v30  ;;  %v2984_v23 = vpop.f32.mrf.mxu3  ;;  %v10937_v30 = vld [vmem:[#allocation53_spill] sm:$0xff] }
 0x3d4   :  { %v10108_v1 = vadd.f32 %v2984_v23, %v2936_v4  ;;  %v2842_v45 = vpop.f32.mrf.mxu0 }
 0x3d5   :  { %v2843_v21 = vadd.f32 %v2842_v45, %v10933_v15  ;;  %v2891_v31 = vpop.f32.mrf.mxu1  ;;  %v10939_v45 = vld [vmem:[#allocation54_spill] sm:$0xff] }
 0x3d6   :  { %10932 = vst [vmem:[#allocation43_spill] sm:$0xff] %v10108_v1  ;;  %3463 = vmatmul.bf16.gmra.mxu2 %v9617_v16 }
 0x3d7   :  { %v10112_v56 = vadd.f32 %v2891_v31, %v2843_v21  ;;  %3512 = vmatmul.bf16.gmra.mxu3 %v9699_v5 }
 0x3d9   :  { %10934 = vst [vmem:[#allocation44_spill] sm:$0xff] %v10112_v56  ;;  %v2938_v11 = vpop.f32.mrf.mxu2  ;;  %v7368_v56 = vld [vmem:[#allocation14 + $0x78] sm:$0xf0] }
 0x3da   :  { %v2939_v61 = vadd.f32 %v2938_v11, %v10935_v6  ;;  %v2987_v8 = vpop.f32.mrf.mxu3  ;;  %v10941_v11 = vld [vmem:[#allocation55_spill] sm:$0xff] }
 0x3dc   :  { %v10116_v35 = vadd.f32 %v2987_v8, %v2939_v61  ;;  %v2845_v39 = vpop.f32.mrf.mxu0 }
 0x3dd   :  { %v2846_v4 = vadd.f32 %v2845_v39, %v10937_v30  ;;  %v2894_v23 = vpop.f32.mrf.mxu1  ;;  %v10943_v30 = vld [vmem:[#allocation56_spill] sm:$0xff] }
 0x3de   :  { %10936 = vst [vmem:[#allocation45_spill] sm:$0xff] %v10116_v35 }
 0x3df   :  { %v10119_v1 = vadd.f32 %v2894_v23, %v2846_v4  ;;  %3370 = vmatmul.bf16.gmra.mxu0 %v9625_v40 }
 0x3e0   :  { %3419 = vmatmul.bf16.gmra.mxu1 %v9711_v26 }
 0x3e1   :  { %10938 = vst [vmem:[#allocation46_spill] sm:$0xff] %v10119_v1  ;;  %v2940_v16 = vpop.f32.mrf.mxu2 }
 0x3e2   :  { %v2941_v15 = vadd.f32 %v2940_v16, %v10939_v45  ;;  %v2989_v5 = vpop.f32.mrf.mxu3  ;;  %v10945_v45 = vld [vmem:[#allocation57_spill] sm:$0xff] }
 0x3e4   :  { %v10124_v21 = vadd.f32 %v2989_v5, %v2941_v15  ;;  %v2847_v31 = vpop.f32.mrf.mxu0 }
 0x3e5   :  { %v2848_v6 = vadd.f32 %v2847_v31, %v10941_v11  ;;  %v2896_v61 = vpop.f32.mrf.mxu1  ;;  %v10947_v31 = vld [vmem:[#allocation58_spill] sm:$0xff] }
 0x3e6   :  { %10940 = vst [vmem:[#allocation47_spill] sm:$0xff] %v10124_v21  ;;  %3468 = vmatmul.bf16.gmra.mxu2 %v9625_v40 }
 0x3e7   :  { %v10128_v8 = vadd.f32 %v2896_v61, %v2848_v6  ;;  %3517 = vmatmul.bf16.gmra.mxu3 %v9711_v26 }
 0x3e9   :  { %10942 = vst [vmem:[#allocation48_spill] sm:$0xff] %v10128_v8  ;;  %v2943_v39 = vpop.f32.mrf.mxu2 }
 0x3ea   :  { %v2944_v4 = vadd.f32 %v2943_v39, %v10943_v30  ;;  %v2992_v23 = vpop.f32.mrf.mxu3  ;;  %v10949_v39 = vld [vmem:[#allocation59_spill] sm:$0xff] }
 0x3ec   :  { %v10132_v1 = vadd.f32 %v2992_v23, %v2944_v4  ;;  %v2850_v16 = vpop.f32.mrf.mxu0 }
 0x3ed   :  { %v2851_v15 = vadd.f32 %v2850_v16, %v10945_v45  ;;  %v2899_v5 = vpop.f32.mrf.mxu1  ;;  %v10951_v45 = vld [vmem:[#allocation60_spill] sm:$0xff] }
 0x3ee   :  { %10944 = vst [vmem:[#allocation49_spill] sm:$0xff] %v10132_v1  ;;  %v10956_v1 = vld [vmem:[#allocation63_spill] sm:$0xff] }
 0x3ef   :  { %v10135_v21 = vadd.f32 %v2899_v5, %v2851_v15  ;;  %3375 = vmatmul.bf16.gmra.mxu0 %v9633_v37 }
 0x3f0   :  { %3424 = vmatmul.bf16.gmra.mxu1 %v9723_v25 }
 0x3f1   :  { %10946 = vst [vmem:[#allocation50_spill] sm:$0xff] %v10135_v21  ;;  %v2945_v40 = vpop.f32.mrf.mxu2 }
 0x3f2   :  { %v2946_v11 = vadd.f32 %v2945_v40, %v10947_v31  ;;  %v2994_v26 = vpop.f32.mrf.mxu3  ;;  %v10953_v31 = vld [vmem:[#allocation61_spill] sm:$0xff] }
 0x3f4   :  { %v10140_v6 = vadd.f32 %v2994_v26, %v2946_v11  ;;  %v2852_v61 = vpop.f32.mrf.mxu0 }
 0x3f5   :  { %v2853_v30 = vadd.f32 %v2852_v61, %v10949_v39  ;;  %v2901_v4 = vpop.f32.mrf.mxu1  ;;  %v7366_v61 = vld [vmem:[#allocation14 + $0x70] sm:$0xf] }
 0x3f6   :  { %10948 = vst [vmem:[#allocation51_spill] sm:$0xff] %v10140_v6  ;;  %3473 = vmatmul.bf16.gmra.mxu2 %v9633_v37  ;;  %v8731_v37 = vld [vmem:[#allocation14 + $0x74] sm:$0xf0]  ;;  %v7430_v39 = vld [vmem:[#allocation14 + $0xf0] sm:$0xf] }
 0x3f7   :  { %v10144_v23 = vadd.f32 %v2901_v4, %v2853_v30  ;;  %3522 = vmatmul.bf16.gmra.mxu3 %v9723_v25  ;;  %v7367_v25 = vor.u32 %v8731_v37, %v7366_v61  ;;  %v8747_v30 = vld [vmem:[#allocation14 + $0xf4] sm:$0xf0]  ;;  %v8730_v37 = vld [vmem:[#allocation14 + $0x74] sm:$0xf] }
 0x3f9   :  { %10950 = vst [vmem:[#allocation52_spill] sm:$0xff] %v10144_v23  ;;  %v2948_v16 = vpop.f32.mrf.mxu2  ;;  %3740 = vmatpush.bf16.msra.mxu0 %v7367_v25  ;;  %v8745_v23 = vld [vmem:[#allocation14 + $0xe4] sm:$0xf0]  ;;  %v7371_v25 = vor.u32 %v8730_v37, %v7368_v56  ;;  %v10958_v56 = vld [vmem:[#allocation64_spill] sm:$0xff] }
 0x3fa   :  { %v2949_v15 = vadd.f32 %v2948_v16, %v10951_v45  ;;  %v2997_v5 = vpop.f32.mrf.mxu3  ;;  %v7431_v16 = vor.u32 %v8747_v30, %v7430_v39  ;;  %v10955_v45 = vld [vmem:[#allocation62_spill] sm:$0xff]  ;;  %v7432_v30 = vld [vmem:[#allocation14 + $0xf8] sm:$0xf0]  ;;  %v7342_v37 = vld [vmem:[#allocation14 + $0x40] sm:$0xf] }
 0x3fb   :  { %v8746_v39 = vld [vmem:[#allocation14 + $0xf4] sm:$0xf]  ;;  %3838 = vmatpush.bf16.msra.mxu2 %v7371_v25 }
 0x3fc   :  { %v10148_v21 = vadd.f32 %v2997_v5, %v2949_v15  ;;  %v2855_v40 = vpop.f32.mrf.mxu0  ;;  %3789 = vmatpush.bf16.msra.mxu1 %v7431_v16  ;;  %v7435_v16 = vor.u32 %v8746_v39, %v7432_v30  ;;  %v8725_v39 = vld [vmem:[#allocation14 + $0x44] sm:$0xf0] }
 0x3fd   :  { %v2856_v11 = vadd.f32 %v2855_v40, %v10953_v31  ;;  %v2904_v26 = vpop.f32.mrf.mxu1  ;;  %v7358_v40 = vld [vmem:[#allocation14 + $0x60] sm:$0xf]  ;;  %v8729_v31 = vld [vmem:[#allocation14 + $0x64] sm:$0xf0] }
 0x3fe   :  { %10952 = vst [vmem:[#allocation53_spill] sm:$0xff] %v10148_v21  ;;  %v7422_v21 = vld [vmem:[#allocation14 + $0xe0] sm:$0xf]  ;;  %3887 = vmatpush.bf16.msra.mxu3 %v7435_v16 }
 0x3ff   :  { %v10151_v6 = vadd.f32 %v2904_v26, %v2856_v11  ;;  %3380 = vmatmul.bf16.gmra.mxu0 %v9644_v57  ;;  %v7423_v61 = vor.u32 %v8745_v23, %v7422_v21  ;;  %v8743_v21 = vld [vmem:[#allocation14 + $0xd4] sm:$0xf0]  ;;  %v7406_v16 = vld [vmem:[#allocation14 + $0xc0] sm:$0xf] }
 0x400   :  { %3429 = vmatmul.bf16.gmra.mxu1 %v9740_v46 }
 0x401   :  { %10954 = vst [vmem:[#allocation54_spill] sm:$0xff] %v10151_v6  ;;  %v2950_v4 = vpop.f32.mrf.mxu2  ;;  %v7359_v6 = vor.u32 %v8729_v31, %v7358_v40  ;;  %3790 = vmatpush.bf16.msra.mxu1 %v7423_v61  ;;  %v8728_v31 = vld [vmem:[#allocation14 + $0x64] sm:$0xf] }
 0x402   :  { %v2951_v15 = vadd.f32 %v2950_v4, %v10955_v45  ;;  %v2999_v5 = vpop.f32.mrf.mxu3  ;;  %v7350_v45 = vld [vmem:[#allocation14 + $0x50] sm:$0xf] }
 0x403   :  { %3741 = vmatpush.bf16.msra.mxu0 %v7359_v6  ;;  %v8744_v6 = vld [vmem:[#allocation14 + $0xe4] sm:$0xf] }
 0x404   :  { %v10156_v11 = vadd.f32 %v2999_v5, %v2951_v15  ;;  %v2857_v26 = vpop.f32.mrf.mxu0  ;;  %v8727_v15 = vld [vmem:[#allocation14 + $0x54] sm:$0xf0]  ;;  %v7414_v5 = vld [vmem:[#allocation14 + $0xd0] sm:$0xf] }
 0x405   :  { %v2858_v8 = vadd.f32 %v2857_v26, %v10956_v1  ;;  %v2906_v35 = vpop.f32.mrf.mxu1  ;;  %v7351_v1 = vor.u32 %v8727_v15, %v7350_v45  ;;  %v7415_v40 = vor.u32 %v8743_v21, %v7414_v5  ;;  %v7343_v45 = vor.u32 %v8725_v39, %v7342_v37  ;;  %v8741_v15 = vld [vmem:[#allocation14 + $0xc4] sm:$0xf0]  ;;  %v8739_v37 = vld [vmem:[#allocation14 + $0xb4] sm:$0xf0] }
 0x406   :  { %3478 = vmatmul.bf16.gmra.mxu2 %v9644_v57  ;;  %v7360_v57 = vld [vmem:[#allocation14 + $0x68] sm:$0xf0] }
 0x407   :  { %v10160_v4 = vadd.f32 %v2906_v35, %v2858_v8  ;;  %3527 = vmatmul.bf16.gmra.mxu3 %v9740_v46  ;;  %3742 = vmatpush.bf16.msra.mxu0 %v7351_v1  ;;  %v7363_v8 = vor.u32 %v8728_v31, %v7360_v57  ;;  %v7424_v46 = vld [vmem:[#allocation14 + $0xe8] sm:$0xf0]  ;;  %v7352_v1 = vld [vmem:[#allocation14 + $0x58] sm:$0xf0]  ;;  %v8742_v31 = vld [vmem:[#allocation14 + $0xd4] sm:$0xf] }
 0x408   :  { %3791 = vmatpush.bf16.msra.mxu1 %v7415_v40  ;;  %v7427_v61 = vor.u32 %v8744_v6, %v7424_v46  ;;  %v10960_v5 = vld [vmem:[#allocation65_spill] sm:$0xff]  ;;  %v7416_v57 = vld [vmem:[#allocation14 + $0xd8] sm:$0xf0]  ;;  %v7398_v46 = vld [vmem:[#allocation14 + $0xb0] sm:$0xf] }
 0x409   :  { %10957 = vst [vmem:[#allocation55_spill] sm:$0xff] %v10160_v4  ;;  %v2953_v23 = vpop.f32.mrf.mxu2  ;;  %3839 = vmatpush.bf16.msra.mxu2 %v7363_v8  ;;  %v8723_v8 = vld [vmem:[#allocation14 + $0x34] sm:$0xf0] }
 0x40a   :  { %v2954_v26 = vadd.f32 %v2953_v23, %v10958_v56  ;;  %v3002_v35 = vpop.f32.mrf.mxu3  ;;  %3888 = vmatpush.bf16.msra.mxu3 %v7427_v61  ;;  %v7407_v23 = vor.u32 %v8741_v15, %v7406_v16  ;;  %v8726_v56 = vld [vmem:[#allocation14 + $0x54] sm:$0xf]  ;;  %v7344_v16 = vld [vmem:[#allocation14 + $0x48] sm:$0xf0]  ;;  %v8740_v15 = vld [vmem:[#allocation14 + $0xc4] sm:$0xf] }
 0x40b   :  { %3743 = vmatpush.bf16.msra.mxu0 %v7343_v45  ;;  %v7355_v40 = vor.u32 %v8726_v56, %v7352_v1  ;;  %v8724_v45 = vld [vmem:[#allocation14 + $0x44] sm:$0xf]  ;;  %v7408_v56 = vld [vmem:[#allocation14 + $0xc8] sm:$0xf0] }
 0x40c   :  { %v10164_v30 = vadd.f32 %v3002_v35, %v2954_v26  ;;  %v2860_v25 = vpop.f32.mrf.mxu0  ;;  %3792 = vmatpush.bf16.msra.mxu1 %v7407_v23  ;;  %v7419_v26 = vor.u32 %v8742_v31, %v7416_v57  ;;  %v7334_v35 = vld [vmem:[#allocation14 + $0x30] sm:$0xf]  ;;  %v7347_v23 = vor.u32 %v8724_v45, %v7344_v16  ;;  %v7411_v1 = vor.u32 %v8740_v15, %v7408_v56  ;;  %v7326_v31 = vld [vmem:[#allocation14 + $0x20] sm:$0xf]  ;;  %v8721_v57 = vld [vmem:[#allocation14 + $0x24] sm:$0xf0] }
 0x40d   :  { %v2861_v21 = vadd.f32 %v2860_v25, %v10960_v5  ;;  %v2909_v4 = vpop.f32.mrf.mxu1  ;;  %3840 = vmatpush.bf16.msra.mxu2 %v7355_v40  ;;  %v7335_v61 = vor.u32 %v8723_v8, %v7334_v35  ;;  %v7399_v25 = vor.u32 %v8739_v37, %v7398_v46  ;;  %v7327_v35 = vor.u32 %v8721_v57, %v7326_v31  ;;  %v8737_v8 = vld [vmem:[#allocation14 + $0xa4] sm:$0xf0]  ;;  %v10963_v46 = vld [vmem:[#allocation67_spill] sm:$0xff]  ;;  %v8738_v45 = vld [vmem:[#allocation14 + $0xb4] sm:$0xf] }
 0x40e   :  { %10959 = vst [vmem:[#allocation56_spill] sm:$0xff] %v10164_v30  ;;  %3889 = vmatpush.bf16.msra.mxu3 %v7419_v26  ;;  %v7390_v26 = vld [vmem:[#allocation14 + $0xa0] sm:$0xf]  ;;  %v7400_v16 = vld [vmem:[#allocation14 + $0xb8] sm:$0xf0] }
 0x40f   :  { %v10167_v6 = vadd.f32 %v2909_v4, %v2861_v21  ;;  %3385 = vmatmul.bf16.gmra.mxu0 %v9652_v18  ;;  %v10962_v4 = vld [vmem:[#allocation66_spill] sm:$0xff]  ;;  %v8735_v31 = vld [vmem:[#allocation14 + $0x94] sm:$0xf0] }
 0x410   :  { %3434 = vmatmul.bf16.gmra.mxu1 %v9753_v51  ;;  %3744 = vmatpush.bf16.msra.mxu0 %v7335_v61  ;;  %v7336_v61 = vld [vmem:[#allocation14 + $0x38] sm:$0xf0]  ;;  %v7382_v56 = vld [vmem:[#allocation14 + $0x90] sm:$0xf] }
 0x411   :  { %10961 = vst [vmem:[#allocation57_spill] sm:$0xff] %v10167_v6  ;;  %v2955_v39 = vpop.f32.mrf.mxu2  ;;  %3793 = vmatpush.bf16.msra.mxu1 %v7399_v25  ;;  %3841 = vmatpush.bf16.msra.mxu2 %v7347_v23  ;;  %v8719_v23 = vld [vmem:[#allocation14 + $0x14] sm:$0xf0] }
 0x412   :  { %v2956_v5 = vadd.f32 %v2955_v39, %v10962_v4  ;;  %v3004_v21 = vpop.f32.mrf.mxu3  ;;  %3890 = vmatpush.bf16.msra.mxu3 %v7411_v1  ;;  %v7391_v39 = vor.u32 %v8737_v8, %v7390_v26  ;;  %v8722_v4 = vld [vmem:[#allocation14 + $0x34] sm:$0xf]  ;;  %v8720_v26 = vld [vmem:[#allocation14 + $0x24] sm:$0xf] }
 0x413   :  { %v7339_v25 = vor.u32 %v8722_v4, %v7336_v61  ;;  %v8717_v4 = vld [vmem:[#allocation14 + $0x4] sm:$0xf0] }
 0x414   :  { %v10172_v6 = vadd.f32 %v3004_v21, %v2956_v5  ;;  %v2862_v40 = vpop.f32.mrf.mxu0  ;;  %3745 = vmatpush.bf16.msra.mxu0 %v7327_v35  ;;  %v7403_v5 = vor.u32 %v8738_v45, %v7400_v16  ;;  %v7318_v21 = vld [vmem:[#allocation14 + $0x10] sm:$0xf]  ;;  %v8736_v35 = vld [vmem:[#allocation14 + $0xa4] sm:$0xf]  ;;  %v7374_v16 = vld [vmem:[#allocation14 + $0x80] sm:$0xf] }
 0x415   :  { %v2863_v37 = vadd.f32 %v2862_v40, %v10963_v46  ;;  %v2911_v30 = vpop.f32.mrf.mxu1  ;;  %3794 = vmatpush.bf16.msra.mxu1 %v7391_v39  ;;  %3842 = vmatpush.bf16.msra.mxu2 %v7339_v25  ;;  %v7319_v1 = vor.u32 %v8719_v23, %v7318_v21  ;;  %v7383_v40 = vor.u32 %v8735_v31, %v7382_v56  ;;  %v7310_v39 = vld [vmem:[#allocation14] sm:$0xf]  ;;  %v8718_v56 = vld [vmem:[#allocation14 + $0x14] sm:$0xf] }
 0x416   :  { %3483 = vmatmul.bf16.gmra.mxu2 %v9652_v18  ;;  %3891 = vmatpush.bf16.msra.mxu3 %v7403_v5  ;;  %v7328_v18 = vld [vmem:[#allocation14 + $0x28] sm:$0xf0]  ;;  %v7311_v25 = vor.u32 %v8717_v4, %v7310_v39  ;;  %v8733_v5 = vld [vmem:[#allocation14 + $0x84] sm:$0xf0]  ;;  %v8734_v31 = vld [vmem:[#allocation14 + $0x94] sm:$0xf] }
 0x417   :  { %v10176_v15 = vadd.f32 %v2911_v30, %v2863_v37  ;;  %3532 = vmatmul.bf16.gmra.mxu3 %v9753_v51  ;;  %v7331_v46 = vor.u32 %v8720_v26, %v7328_v18  ;;  %v7392_v51 = vld [vmem:[#allocation14 + $0xa8] sm:$0xf0] }
 0x418   :  { %3746 = vmatpush.bf16.msra.mxu0 %v7319_v1  ;;  %v7395_v37 = vor.u32 %v8736_v35, %v7392_v51  ;;  %v7320_v1 = vld [vmem:[#allocation14 + $0x18] sm:$0xf0]  ;;  %v7376_v39 = vld [vmem:[#allocation14 + $0x88] sm:$0xf0] }
 0x419   :  { %v2958_v57 = vpop.f32.mrf.mxu2  ;;  %3795 = vmatpush.bf16.msra.mxu1 %v7383_v40  ;;  %3843 = vmatpush.bf16.msra.mxu2 %v7331_v46  ;;  %v7384_v40 = vld [vmem:[#allocation14 + $0x98] sm:$0xf0] }
 0x41a   :  { %v2959_v8 = vadd.f32 %v2958_v57, %v9933_v59  ;;  %v3007_v30 = vpop.f32.mrf.mxu3  ;;  %3892 = vmatpush.bf16.msra.mxu3 %v7395_v37  ;;  %v7375_v59 = vor.u32 %v8733_v5, %v7374_v16  ;;  %v7323_v57 = vor.u32 %v8718_v56, %v7320_v1  ;;  %v7387_v18 = vor.u32 %v8734_v31, %v7384_v40 }
 0x41c   :  { %v10180_v61 = vadd.f32 %v3007_v30, %v2959_v8  ;;  %v2865_v45 = vpop.f32.mrf.mxu0  ;;  %3747 = vmatpush.bf16.msra.mxu0 %v7311_v25  ;;  %v7312_v8 = vld [vmem:[#allocation14 + $0x8] sm:$0xf0]  ;;  %v8732_v30 = vld [vmem:[#allocation14 + $0x84] sm:$0xf] }
 0x41d   :  { %v2866_v21 = vadd.f32 %v2865_v45, %v9935_v47  ;;  %v2914_v23 = vpop.f32.mrf.mxu1  ;;  %3796 = vmatpush.bf16.msra.mxu1 %v7375_v59  ;;  %3844 = vmatpush.bf16.msra.mxu2 %v7323_v57  ;;  %v8716_v47 = vld [vmem:[#allocation14 + $0x4] sm:$0xf]  ;;  %v7379_v4 = vor.u32 %v8732_v30, %v7376_v39 }
 0x41e   :  { %3893 = vmatpush.bf16.msra.mxu3 %v7387_v18  ;;  %v7315_v37 = vor.u32 %v8716_v47, %v7312_v8 }
 0x41f   :  { %v10183_v26 = vadd.f32 %v2914_v23, %v2866_v21  ;;  %3390 = vmatmul.bf16.gmra.mxu0 %v9660_v13 }
 0x420   :  { %3439 = vmatmul.bf16.gmra.mxu1 %v9765_v48 }
 0x421   :  { %10964 = vst [vmem:[#allocation58_spill] sm:$0xff] %v10183_v26  ;;  %v2960_v35 = vpop.f32.mrf.mxu2  ;;  %3845 = vmatpush.bf16.msra.mxu2 %v7315_v37 }
 0x422   :  { %v2961_v46 = vadd.f32 %v2960_v35, %v9939_v0  ;;  %v3009_v51 = vpop.f32.mrf.mxu3  ;;  %3894 = vmatpush.bf16.msra.mxu3 %v7379_v4 }
 0x424   :  { %v10188_v45 = vadd.f32 %v3009_v51, %v2961_v46  ;;  %v2867_v25 = vpop.f32.mrf.mxu0 }
 0x425   :  { %v2868_v16 = vadd.f32 %v2867_v25, %v9941_v50  ;;  %v2916_v5 = vpop.f32.mrf.mxu1 }
 0x426   :  { %3488 = vmatmul.bf16.gmra.mxu2 %v9660_v13 }
 0x427   :  { %v10192_v21 = vadd.f32 %v2916_v5, %v2868_v16  ;;  %3537 = vmatmul.bf16.gmra.mxu3 %v9765_v48  ;;  %v10971_v16 = vld [vmem:[#allocation24_spill] sm:$0xff] }
 0x429   :  { %10965 = vst [vmem:[#allocation59_spill] sm:$0xff] %v10192_v21  ;;  %v2963_v23 = vpop.f32.mrf.mxu2 }
 0x42a   :  { %v2964_v0 = vadd.f32 %v2963_v23, %v9945_v42  ;;  %v3012_v59 = vpop.f32.mrf.mxu3  ;;  %v10972_v23 = vld [vmem:[#allocation25_spill] sm:$0xff] }
 0x42c   :  { %v10196_v56 = vadd.f32 %v3012_v59, %v2964_v0  ;;  %v2870_v1 = vpop.f32.mrf.mxu0 }
 0x42d   :  { %v2871_v31 = vadd.f32 %v2870_v1, %v9947_v14  ;;  %v2919_v57 = vpop.f32.mrf.mxu1  ;;  %v10211_v14 = vld [vmem:[%s10823_s9] sm:$0xf] }
 0x42e   :  { %10966 = vst [vmem:[#allocation60_spill] sm:$0xff] %v10196_v56 }
 0x42f   :  { %v10199_v40 = vadd.f32 %v2919_v57, %v2871_v31  ;;  %3395 = vmatmul.bf16.gmra.mxu0 %v9675_v36 }
 0x430   :  { %3444 = vmatmul.bf16.gmra.mxu1 %v9775_v7 }
 0x431   :  { %10967 = vst [vmem:[#allocation61_spill] sm:$0xff] %v10199_v40  ;;  %v2965_v13 = vpop.f32.mrf.mxu2  ;;  %v10989_v40 = vld [vmem:[#allocation75_spill] sm:$0xff] }
 0x432   :  { %v2966_v50 = vadd.f32 %v2965_v13, %v9951_v58  ;;  %v3014_v48 = vpop.f32.mrf.mxu3  ;;  %v10219_v58 = vld [vmem:[%s10826_s12] sm:$0xf] }
 0x433   :  { %v10228_v39 = vperm.slane %v10219_v58, 0 }
 0x434   :  { %v10204_v18 = vadd.f32 %v3014_v48, %v2966_v50  ;;  %v2872_v42 = vpop.f32.mrf.mxu0 }
 0x435   :  { %v2873_v35 = vadd.f32 %v2872_v42, %v9953_v38  ;;  %v2921_v47 = vpop.f32.mrf.mxu1  ;;  %v10222_v38 = vperm.slane %v10211_v14, 0 }
 0x436   :  { %10968 = vst [vmem:[#allocation62_spill] sm:$0xff] %v10204_v18  ;;  %3493 = vmatmul.bf16.gmra.mxu2 %v9675_v36 }
 0x437   :  { %v10213_v8 = vadd.f32 %v2921_v47, %v2873_v35  ;;  %3542 = vmatmul.bf16.gmra.mxu3 %v9775_v7  ;;  %v3032_v7 = vadd.f32 %v10222_v38, %v9960_v2  ;;  %v3036_v2 = vadd.f32 %v10222_v38, %v9968_v17  ;;  %v10244_v35 = vperm.slane %v10211_v14, 1 }
 0x439   :  { %10969 = vst [vmem:[#allocation63_spill] sm:$0xff] %v10213_v8  ;;  %v2968_v30 = vpop.f32.mrf.mxu2  ;;  %v3033_v17 = vadd.f32 %v10244_v35, %v9972_v29 }
 0x43a   :  { %v2969_v36 = vadd.f32 %v2968_v30, %v9957_v53  ;;  %v3017_v46 = vpop.f32.mrf.mxu3  ;;  %v3096_v53 = vmax.f32 %v3032_v7, 0.0  ;;  %v10249_v30 = vperm.slane %v10219_v58, 1 }
 0x43c   :  { %v10225_v51 = vadd.f32 %v3017_v46, %v2969_v36  ;;  %v3361_v37 = vpop.f32.mrf.mxu0  ;;  %v3100_v36 = vmax.f32 %v3036_v2, 0.0 }
 0x43d   :  { %v3410_v4 = vpop.f32.mrf.mxu1 }
 0x43e   :  { %10970 = vst [vmem:[#allocation64_spill] sm:$0xff] %v10225_v51  ;;  %v3411_v25 = vadd.f32 %v3410_v4, %v3361_v37 }
 0x43f   :  { %3748 = vmatmul.bf16.vlgmr.msra.gmra.mxu0 %v10971_v16 }
 0x440   :  { %v3946_v5 = vadd.f32 %v10228_v39, %v3411_v25  ;;  %3797 = vmatmul.bf16.vlgmr.msra.gmra.mxu1 %v10972_v23 }
 0x441   :  { %v2970_v0 = vpop.f32.mrf.mxu2 }
 0x442   :  { %v4010_v59 = vmax.f32 %v3946_v5, 0.0  ;;  %v2971_v1 = vadd.f32 %v2970_v0, %v9964_v33  ;;  %v3019_v31 = vpop.f32.mrf.mxu3 }
 0x444   :  { %v10236_v57 = vadd.f32 %v4010_v59, %v3096_v53  ;;  %v10238_v13 = vadd.f32 %v3019_v31, %v2971_v1  ;;  %v3363_v50 = vpop.f32.mrf.mxu0  ;;  %v3097_v59 = vmax.f32 %v3033_v17, 0.0  ;;  %v10974_v31 = vld [vmem:[#allocation26_spill] sm:$0xff] }
 0x445   :  { %v3412_v48 = vpop.f32.mrf.mxu1 }
 0x446   :  { %10973 = vst [vmem:[#allocation65_spill] sm:$0xff] %v10238_v13  ;;  %v3413_v42 = vadd.f32 %v3412_v48, %v3363_v50  ;;  %3846 = vmatmul.bf16.vlgmr.msra.gmra.mxu2 %v10971_v16  ;;  %v10975_v50 = vld [vmem:[#allocation27_spill] sm:$0xff]  ;;  %v10984_v13 = vld [vmem:[#allocation72_spill] sm:$0xff] }
 0x447   :  { %3895 = vmatmul.bf16.vlgmr.msra.gmra.mxu3 %v10972_v23  ;;  %v3040_v23 = vadd.f32 %v10222_v38, %v9975_v43  ;;  %v3037_v43 = vadd.f32 %v10244_v35, %v9980_v28 }
 0x448   :  { %v3950_v33 = vadd.f32 %v10228_v39, %v3413_v42 }
 0x449   :  { %v3459_v47 = vpop.f32.mrf.mxu2  ;;  %v3104_v42 = vmax.f32 %v3040_v23, 0.0 }
 0x44a   :  { %v4014_v46 = vmax.f32 %v3950_v33, 0.0  ;;  %v3508_v37 = vpop.f32.mrf.mxu3 }
 0x44b   :  { %v3509_v4 = vadd.f32 %v3508_v37, %v3459_v47 }
 0x44c   :  { %v3366_v7 = vpop.f32.mrf.mxu0  ;;  %v10253_v25 = vadd.f32 %v4014_v46, %v3100_v36 }
 0x44d   :  { %v3947_v16 = vadd.f32 %v10249_v30, %v3509_v4  ;;  %v3415_v5 = vpop.f32.mrf.mxu1 }
 0x44e   :  { %v3416_v0 = vadd.f32 %v3415_v5, %v3366_v7  ;;  %v3044_v7 = vadd.f32 %v10222_v38, %v9984_v63  ;;  %v3101_v5 = vmax.f32 %v3037_v43, 0.0 }
 0x44f   :  { %v4011_v1 = vmax.f32 %v3947_v16, 0.0  ;;  %3753 = vmatmul.bf16.gmra.mxu0 %v10974_v31 }
 0x450   :  { %v3954_v29 = vadd.f32 %v10228_v39, %v3416_v0  ;;  %3802 = vmatmul.bf16.gmra.mxu1 %v10975_v50 }
 0x451   :  { %v10263_v48 = vadd.f32 %v4011_v1, %v3097_v59  ;;  %v3461_v2 = vpop.f32.mrf.mxu2  ;;  %v3108_v1 = vmax.f32 %v3044_v7, 0.0 }
 0x452   :  { %v4018_v33 = vmax.f32 %v3954_v29, 0.0  ;;  %v3510_v47 = vpop.f32.mrf.mxu3 }
 0x453   :  { %v3511_v36 = vadd.f32 %v3510_v47, %v3461_v2 }
 0x454   :  { %v10267_v46 = vadd.f32 %v4018_v33, %v3104_v42  ;;  %v3368_v37 = vpop.f32.mrf.mxu0  ;;  %v3041_v42 = vadd.f32 %v10244_v35, %v9988_v62  ;;  %v10976_v62 = vld [vmem:[#allocation28_spill] sm:$0xff] }
 0x455   :  { %v3951_v17 = vadd.f32 %v10249_v30, %v3511_v36  ;;  %v3417_v4 = vpop.f32.mrf.mxu1  ;;  %v3048_v36 = vadd.f32 %v10222_v38, %v9991_v20  ;;  %v3045_v20 = vadd.f32 %v10244_v35, %v9996_v44 }
 0x456   :  { %v3418_v16 = vadd.f32 %v3417_v4, %v3368_v37  ;;  %3851 = vmatmul.bf16.gmra.mxu2 %v10974_v31  ;;  %v3105_v4 = vmax.f32 %v3041_v42, 0.0 }
 0x457   :  { %v4015_v23 = vmax.f32 %v3951_v17, 0.0  ;;  %3900 = vmatmul.bf16.gmra.mxu3 %v10975_v50  ;;  %v10983_v17 = vld [vmem:[#allocation71_spill] sm:$0xff] }
 0x458   :  { %v3958_v0 = vadd.f32 %v10228_v39, %v3418_v16 }
 0x459   :  { %v3464_v28 = vpop.f32.mrf.mxu2  ;;  %v10275_v59 = vadd.f32 %v4015_v23, %v3101_v5  ;;  %v10977_v5 = vld [vmem:[#allocation29_spill] sm:$0xff] }
 0x45a   :  { %v4022_v29 = vmax.f32 %v3958_v0, 0.0  ;;  %v3513_v2 = vpop.f32.mrf.mxu3 }
 0x45b   :  { %v3514_v33 = vadd.f32 %v3513_v2, %v3464_v28  ;;  %v3112_v28 = vmax.f32 %v3048_v36, 0.0 }
 0x45c   :  { %v3371_v31 = vpop.f32.mrf.mxu0  ;;  %v10281_v47 = vadd.f32 %v4022_v29, %v3108_v1 }
 0x45d   :  { %v3955_v50 = vadd.f32 %v10249_v30, %v3514_v33  ;;  %v3420_v43 = vpop.f32.mrf.mxu1 }
 0x45e   :  { %v3421_v37 = vadd.f32 %v3420_v43, %v3371_v31  ;;  %v10978_v43 = vld [vmem:[#allocation68_spill] sm:$0xff] }
 0x45f   :  { %v4019_v7 = vmax.f32 %v3955_v50, 0.0  ;;  %3758 = vmatmul.bf16.gmra.mxu0 %v10976_v62 }
 0x460   :  { %v3962_v16 = vadd.f32 %v10228_v39, %v3421_v37  ;;  %3807 = vmatmul.bf16.gmra.mxu1 %v10977_v5  ;;  %v3052_v37 = vadd.f32 %v10222_v38, %v10978_v43 }
 0x461   :  { %v10291_v23 = vadd.f32 %v4019_v7, %v3105_v4  ;;  %v3466_v0 = vpop.f32.mrf.mxu2  ;;  %v3109_v4 = vmax.f32 %v3045_v20, 0.0 }
 0x462   :  { %v4026_v1 = vmax.f32 %v3962_v16, 0.0  ;;  %v3515_v29 = vpop.f32.mrf.mxu3 }
 0x463   :  { %v3516_v2 = vadd.f32 %v3515_v29, %v3466_v0  ;;  %v3116_v0 = vmax.f32 %v3052_v37, 0.0  ;;  %v10979_v29 = vld [vmem:[#allocation69_spill] sm:$0xff] }
 0x464   :  { %v10295_v33 = vadd.f32 %v4026_v1, %v3112_v28  ;;  %v3373_v42 = vpop.f32.mrf.mxu0 }
 0x465   :  { %v3959_v31 = vadd.f32 %v10249_v30, %v3516_v2  ;;  %v3422_v50 = vpop.f32.mrf.mxu1  ;;  %v3049_v2 = vadd.f32 %v10244_v35, %v10979_v29 }
 0x466   :  { %v3423_v63 = vadd.f32 %v3422_v50, %v3373_v42  ;;  %3856 = vmatmul.bf16.gmra.mxu2 %v10976_v62 }
 0x467   :  { %v4023_v36 = vmax.f32 %v3959_v31, 0.0  ;;  %3905 = vmatmul.bf16.gmra.mxu3 %v10977_v5 }
 0x468   :  { %v3966_v7 = vadd.f32 %v10228_v39, %v3423_v63  ;;  %v10980_v63 = vld [vmem:[#allocation70_spill] sm:$0xff] }
 0x469   :  { %v3469_v44 = vpop.f32.mrf.mxu2  ;;  %v10303_v16 = vadd.f32 %v4023_v36, %v3109_v4  ;;  %v3056_v50 = vadd.f32 %v10222_v38, %v10980_v63  ;;  %v3113_v4 = vmax.f32 %v3049_v2, 0.0 }
 0x46a   :  { %v4030_v28 = vmax.f32 %v3966_v7, 0.0  ;;  %v3518_v1 = vpop.f32.mrf.mxu3  ;;  %v10981_v7 = vld [vmem:[#allocation30_spill] sm:$0xff] }
 0x46b   :  { %v3519_v53 = vadd.f32 %v3518_v1, %v3469_v44  ;;  %v10982_v1 = vld [vmem:[#allocation31_spill] sm:$0xff] }
 0x46c   :  { %v3376_v62 = vpop.f32.mrf.mxu0  ;;  %v10309_v20 = vadd.f32 %v4030_v28, %v3116_v0 }
 0x46d   :  { %v3963_v5 = vadd.f32 %v10249_v30, %v3519_v53  ;;  %v3425_v31 = vpop.f32.mrf.mxu1  ;;  %v3120_v53 = vmax.f32 %v3056_v50, 0.0 }
 0x46e   :  { %v3426_v43 = vadd.f32 %v3425_v31, %v3376_v62  ;;  %v3053_v62 = vadd.f32 %v10244_v35, %v10983_v17 }
 0x46f   :  { %v4027_v36 = vmax.f32 %v3963_v5, 0.0  ;;  %3763 = vmatmul.bf16.gmra.mxu0 %v10981_v7 }
 0x470   :  { %v3970_v44 = vadd.f32 %v10228_v39, %v3426_v43  ;;  %3812 = vmatmul.bf16.gmra.mxu1 %v10982_v1  ;;  %v3060_v43 = vadd.f32 %v10222_v38, %v10984_v13 }
 0x471   :  { %v10319_v0 = vadd.f32 %v4027_v36, %v3113_v4  ;;  %v3471_v28 = vpop.f32.mrf.mxu2  ;;  %v3117_v4 = vmax.f32 %v3053_v62, 0.0 }
 0x472   :  { %v4034_v29 = vmax.f32 %v3970_v44, 0.0  ;;  %v3520_v42 = vpop.f32.mrf.mxu3  ;;  %v3124_v44 = vmax.f32 %v3060_v43, 0.0 }
 0x473   :  { %v3521_v31 = vadd.f32 %v3520_v42, %v3471_v28 }
 0x474   :  { %v10323_v63 = vadd.f32 %v4034_v29, %v3120_v53  ;;  %v3378_v2 = vpop.f32.mrf.mxu0  ;;  %v10985_v29 = vld [vmem:[#allocation73_spill] sm:$0xff] }
 0x475   :  { %v3967_v5 = vadd.f32 %v10249_v30, %v3521_v31  ;;  %v3427_v37 = vpop.f32.mrf.mxu1  ;;  %v3057_v31 = vadd.f32 %v10244_v35, %v10985_v29 }
 0x476   :  { %v3428_v51 = vadd.f32 %v3427_v37, %v3378_v2  ;;  %3861 = vmatmul.bf16.gmra.mxu2 %v10981_v7 }
 0x477   :  { %v4031_v50 = vmax.f32 %v3967_v5, 0.0  ;;  %3910 = vmatmul.bf16.gmra.mxu3 %v10982_v1 }
 0x478   :  { %v3974_v36 = vadd.f32 %v10228_v39, %v3428_v51  ;;  %v10986_v51 = vld [vmem:[#allocation74_spill] sm:$0xff] }
 0x479   :  { %v3474_v17 = vpop.f32.mrf.mxu2  ;;  %v10331_v42 = vadd.f32 %v4031_v50, %v3117_v4  ;;  %v3064_v2 = vadd.f32 %v10222_v38, %v10986_v51  ;;  %v3121_v4 = vmax.f32 %v3057_v31, 0.0 }
 0x47a   :  { %v4038_v28 = vmax.f32 %v3974_v36, 0.0  ;;  %v3523_v53 = vpop.f32.mrf.mxu3  ;;  %v10987_v36 = vld [vmem:[#allocation32_spill] sm:$0xff] }
 0x47b   :  { %v3524_v8 = vadd.f32 %v3523_v53, %v3474_v17  ;;  %v10988_v53 = vld [vmem:[#allocation33_spill] sm:$0xff] }
 0x47c   :  { %v3381_v37 = vpop.f32.mrf.mxu0  ;;  %v10337_v7 = vadd.f32 %v4038_v28, %v3124_v44 }
 0x47d   :  { %v3971_v1 = vadd.f32 %v10249_v30, %v3524_v8  ;;  %v3430_v62 = vpop.f32.mrf.mxu1  ;;  %v3128_v8 = vmax.f32 %v3064_v2, 0.0 }
 0x47e   :  { %v3431_v5 = vadd.f32 %v3430_v62, %v3381_v37  ;;  %v3061_v37 = vadd.f32 %v10244_v35, %v10028_v12 }
 0x47f   :  { %v4035_v50 = vmax.f32 %v3971_v1, 0.0  ;;  %3768 = vmatmul.bf16.gmra.mxu0 %v10987_v36 }
 0x480   :  { %v3978_v17 = vadd.f32 %v10228_v39, %v3431_v5  ;;  %3817 = vmatmul.bf16.gmra.mxu1 %v10988_v53  ;;  %v3068_v5 = vadd.f32 %v10222_v38, %v10989_v40 }
 0x481   :  { %v10347_v44 = vadd.f32 %v4035_v50, %v3121_v4  ;;  %v3476_v28 = vpop.f32.mrf.mxu2  ;;  %v3125_v4 = vmax.f32 %v3061_v37, 0.0 }
 0x482   :  { %v4042_v29 = vmax.f32 %v3978_v17, 0.0  ;;  %v3525_v13 = vpop.f32.mrf.mxu3  ;;  %v3132_v17 = vmax.f32 %v3068_v5, 0.0  ;;  %v10990_v5 = vld [vmem:[#allocation34_spill] sm:$0xff] }
 0x483   :  { %v3526_v62 = vadd.f32 %v3525_v13, %v3476_v28 }
 0x484   :  { %v10351_v51 = vadd.f32 %v4042_v29, %v3128_v8  ;;  %v3383_v31 = vpop.f32.mrf.mxu0  ;;  %v3065_v29 = vadd.f32 %v10244_v35, %v10036_v34 }
 0x485   :  { %v3975_v1 = vadd.f32 %v10249_v30, %v3526_v62  ;;  %v3432_v43 = vpop.f32.mrf.mxu1 }
 0x486   :  { %v3433_v18 = vadd.f32 %v3432_v43, %v3383_v31  ;;  %3866 = vmatmul.bf16.gmra.mxu2 %v10987_v36  ;;  %v3129_v31 = vmax.f32 %v3065_v29, 0.0 }
 0x487   :  { %v4039_v2 = vmax.f32 %v3975_v1, 0.0  ;;  %3915 = vmatmul.bf16.gmra.mxu3 %v10988_v53 }
 0x488   :  { %v3982_v50 = vadd.f32 %v10228_v39, %v3433_v18 }
 0x489   :  { %v3479_v12 = vpop.f32.mrf.mxu2  ;;  %v10359_v13 = vadd.f32 %v4039_v2, %v3125_v4  ;;  %v10991_v2 = vld [vmem:[#allocation35_spill] sm:$0xff] }
 0x48a   :  { %v4046_v28 = vmax.f32 %v3982_v50, 0.0  ;;  %v3528_v8 = vpop.f32.mrf.mxu3 }
 0x48b   :  { %v3529_v62 = vadd.f32 %v3528_v8, %v3479_v12 }
 0x48c   :  { %v3386_v43 = vpop.f32.mrf.mxu0  ;;  %v10365_v36 = vadd.f32 %v4046_v28, %v3132_v17  ;;  %v3069_v17 = vadd.f32 %v10244_v35, %v10044_v55 }
 0x48d   :  { %v3979_v53 = vadd.f32 %v10249_v30, %v3529_v62  ;;  %v3435_v37 = vpop.f32.mrf.mxu1 }
 0x48e   :  { %v3436_v4 = vadd.f32 %v3435_v37, %v3386_v43  ;;  %v3076_v43 = vadd.f32 %v10222_v38, %v10048_v22 }
 0x48f   :  { %v4043_v1 = vmax.f32 %v3979_v53, 0.0  ;;  %3773 = vmatmul.bf16.gmra.mxu0 %v10990_v5  ;;  %v3072_v53 = vadd.f32 %v10222_v38, %v10039_v19 }
 0x490   :  { %3822 = vmatmul.bf16.gmra.mxu1 %v10991_v2  ;;  %v3986_v8 = vadd.f32 %v10228_v39, %v3436_v4  ;;  %v3140_v18 = vmax.f32 %v3076_v43, 0.0 }
 0x491   :  { %v10372_v34 = vadd.f32 %v4043_v1, %v3129_v31  ;;  %v3481_v50 = vpop.f32.mrf.mxu2  ;;  %v3133_v31 = vmax.f32 %v3069_v17, 0.0 }
 0x492   :  { %v3530_v12 = vpop.f32.mrf.mxu3  ;;  %v4050_v55 = vmax.f32 %v3986_v8, 0.0 }
 0x493   :  { %v3531_v28 = vadd.f32 %v3530_v12, %v3481_v50 }
 0x494   :  { %v3388_v62 = vpop.f32.mrf.mxu0 }
 0x495   :  { %v3983_v40 = vadd.f32 %v10249_v30, %v3531_v28  ;;  %v3437_v29 = vpop.f32.mrf.mxu1  ;;  %v3136_v28 = vmax.f32 %v3072_v53, 0.0  ;;  %v10993_v53 = vld [vmem:[#allocation37_spill] sm:$0xff] }
 0x496   :  { %v3438_v37 = vadd.f32 %v3437_v29, %v3388_v62  ;;  %3871 = vmatmul.bf16.gmra.mxu2 %v10990_v5  ;;  %v10992_v29 = vld [vmem:[#allocation36_spill] sm:$0xff] }
 0x497   :  { %v4047_v1 = vmax.f32 %v3983_v40, 0.0  ;;  %3920 = vmatmul.bf16.gmra.mxu3 %v10991_v2  ;;  %v10389_v62 = vadd.f32 %v4050_v55, %v3136_v28  ;;  %v3073_v55 = vadd.f32 %v10244_v35, %v10052_v49 }
 0x498   :  { %v3990_v4 = vadd.f32 %v10228_v39, %v3438_v37 }
 0x499   :  { %v3484_v50 = vpop.f32.mrf.mxu2  ;;  %v10385_v12 = vadd.f32 %v4047_v1, %v3133_v31  ;;  %v3137_v49 = vmax.f32 %v3073_v55, 0.0 }
 0x49a   :  { %v4054_v56 = vmax.f32 %v3990_v4, 0.0  ;;  %v3533_v19 = vpop.f32.mrf.mxu3 }
 0x49b   :  { %v3534_v40 = vadd.f32 %v3533_v19, %v3484_v50 }
 0x49c   :  { %v3391_v5 = vpop.f32.mrf.mxu0  ;;  %v10391_v17 = vadd.f32 %v4054_v56, %v3140_v18  ;;  %v3077_v56 = vadd.f32 %v10244_v35, %v10060_v52 }
 0x49d   :  { %v3440_v2 = vpop.f32.mrf.mxu1  ;;  %v3987_v43 = vadd.f32 %v10249_v30, %v3534_v40  ;;  %v3084_v40 = vadd.f32 %v10222_v38, %v10064_v41 }
 0x49e   :  { %v3441_v37 = vadd.f32 %v3440_v2, %v3391_v5  ;;  %v3080_v2 = vadd.f32 %v10222_v38, %v10055_v24  ;;  %v3141_v8 = vmax.f32 %v3077_v56, 0.0 }
 0x49f   :  { %3778 = vmatmul.bf16.gmra.mxu0 %v10992_v29  ;;  %v4051_v28 = vmax.f32 %v3987_v43, 0.0  ;;  %v3148_v21 = vmax.f32 %v3084_v40, 0.0 }
 0x4a0   :  { %3827 = vmatmul.bf16.gmra.mxu1 %v10993_v53  ;;  %v3994_v4 = vadd.f32 %v10228_v39, %v3441_v37  ;;  %v3144_v24 = vmax.f32 %v3080_v2, 0.0 }
 0x4a1   :  { %v3486_v31 = vpop.f32.mrf.mxu2 }
 0x4a2   :  { %v3535_v1 = vpop.f32.mrf.mxu3  ;;  %v4058_v37 = vmax.f32 %v3994_v4, 0.0 }
 0x4a3   :  { %v3536_v18 = vadd.f32 %v3535_v1, %v3486_v31  ;;  %v10411_v31 = vadd.f32 %v4051_v28, %v3137_v49  ;;  %v10995_v28 = vld [vmem:[#allocation39_spill] sm:$0xff]  ;;  %v3081_v49 = vadd.f32 %v10244_v35, %v10068_v54 }
 0x4a4   :  { %v3393_v50 = vpop.f32.mrf.mxu0  ;;  %v4122_v55 = vadd.f32 %v4058_v37, %v3144_v24 }
 0x4a5   :  { %v3991_v19 = vadd.f32 %v10249_v30, %v3536_v18  ;;  %v3442_v5 = vpop.f32.mrf.mxu1  ;;  %v3145_v54 = vmax.f32 %v3081_v49, 0.0 }
 0x4a6   :  { %v3443_v22 = vadd.f32 %v3442_v5, %v3393_v50  ;;  %3876 = vmatmul.bf16.gmra.mxu2 %v10992_v29  ;;  %v10994_v5 = vld [vmem:[#allocation38_spill] sm:$0xff] }
 0x4a7   :  { %v4055_v52 = vmax.f32 %v3991_v19, 0.0  ;;  %3925 = vmatmul.bf16.gmra.mxu3 %v10993_v53 }
 0x4a8   :  { %v3998_v43 = vadd.f32 %v10228_v39, %v3443_v22 }
 0x4a9   :  { %v3489_v1 = vpop.f32.mrf.mxu2  ;;  %v10413_v18 = vadd.f32 %v4055_v52, %v3141_v8  ;;  %v3085_v52 = vadd.f32 %v10244_v35, %v10076_v60 }
 0x4aa   :  { %v4062_v26 = vmax.f32 %v3998_v43, 0.0  ;;  %v3538_v41 = vpop.f32.mrf.mxu3 }
 0x4ab   :  { %v4159_v29 = vpack.c.bf16 %v10413_v18, %v10411_v31  ;;  %v3539_v19 = vadd.f32 %v3538_v41, %v3489_v1  ;;  %v3088_v41 = vadd.f32 %v10222_v38, %v10071_v10 }
 0x4ac   :  { %v3396_v56 = vpop.f32.mrf.mxu0  ;;  %v4126_v50 = vadd.f32 %v4062_v26, %v3148_v21 }
 0x4ad   :  { %v3445_v53 = vpop.f32.mrf.mxu1  ;;  %v3995_v8 = vadd.f32 %v10249_v30, %v3539_v19  ;;  %v3152_v10 = vmax.f32 %v3088_v41, 0.0 }
 0x4ae   :  { %v4162_v4 = vpack.c.bf16 %v4126_v50, %v4122_v55  ;;  %v3446_v22 = vadd.f32 %v3445_v53, %v3396_v56  ;;  %v3092_v55 = vadd.f32 %v10222_v38, %v10080_v32  ;;  %v3149_v50 = vmax.f32 %v3085_v52, 0.0 }
 0x4af   :  { %3783 = vmatmul.bf16.gmra.mxu0 %v10994_v5  ;;  %v4059_v43 = vmax.f32 %v3995_v8, 0.0  ;;  %v10438_v32 = vperm.slane %v10211_v14, 2 }
 0x4b0   :  { %3832 = vmatmul.bf16.gmra.mxu1 %v10995_v28  ;;  %v4002_v26 = vadd.f32 %v10228_v39, %v3446_v22 }
 0x4b1   :  { %v3491_v2 = vpop.f32.mrf.mxu2  ;;  %v10433_v22 = vadd.f32 %v4059_v43, %v3145_v54  ;;  %v3034_v43 = vadd.f32 %v10438_v32, %v10087_v27 }
 0x4b2   :  { %v3540_v40 = vpop.f32.mrf.mxu3  ;;  %v4066_v19 = vmax.f32 %v4002_v26, 0.0 }
 0x4b3   :  { %v3541_v37 = vadd.f32 %v3540_v40, %v3491_v2  ;;  %v3156_v40 = vmax.f32 %v3092_v55, 0.0  ;;  %v3098_v54 = vmax.f32 %v3034_v43, 0.0 }
 0x4b4   :  { %v3398_v21 = vpop.f32.mrf.mxu0  ;;  %v4130_v52 = vadd.f32 %v4066_v19, %v3152_v10  ;;  %v10996_v19 = vld [vmem:[#allocation40_spill] sm:$0xff] }
 0x4b5   :  { %v3999_v1 = vadd.f32 %v10249_v30, %v3541_v37  ;;  %v3447_v24 = vpop.f32.mrf.mxu1 }
 0x4b6   :  { %v3448_v56 = vadd.f32 %v3447_v24, %v3398_v21  ;;  %3881 = vmatmul.bf16.gmra.mxu2 %v10994_v5 }
 0x4b7   :  { %v4063_v60 = vmax.f32 %v3999_v1, 0.0  ;;  %3930 = vmatmul.bf16.gmra.mxu3 %v10995_v28 }
 0x4b8   :  { %v4006_v53 = vadd.f32 %v10228_v39, %v3448_v56  ;;  %v10443_v39 = vperm.slane %v10219_v58, 2 }
 0x4b9   :  { %v3494_v8 = vpop.f32.mrf.mxu2  ;;  %v10435_v2 = vadd.f32 %v4063_v60, %v3149_v50 }
 0x4ba   :  { %v4070_v38 = vmax.f32 %v4006_v53, 0.0  ;;  %v3543_v5 = vpop.f32.mrf.mxu3  ;;  %v3089_v53 = vadd.f32 %v10244_v35, %v10996_v19 }
 0x4bb   :  { %v4163_v49 = vpack.c.bf16 %v10435_v2, %v10433_v22  ;;  %v3544_v26 = vadd.f32 %v3543_v5, %v3494_v8  ;;  %v10997_v22 = vld [vmem:[#allocation41_spill] sm:$0xff] }
 0x4bc   :  { %v4134_v28 = vadd.f32 %v4070_v38, %v3156_v40  ;;  %v3749_v37 = vpop.f32.mrf.mxu0  ;;  %v3093_v8 = vadd.f32 %v10244_v35, %v10997_v22 }
 0x4bd   :  { %v3798_v21 = vpop.f32.mrf.mxu1  ;;  %v4003_v55 = vadd.f32 %v10249_v30, %v3544_v26 }
 0x4be   :  { %v3799_v1 = vadd.f32 %v3798_v21, %v3749_v37  ;;  %v4166_v24 = vpack.c.bf16 %v4134_v28, %v4130_v52  ;;  %v3038_v52 = vadd.f32 %v10438_v32, %v10096_v9  ;;  %v3153_v37 = vmax.f32 %v3089_v53, 0.0  ;;  %v11000_v53 = vld [vmem:[#allocation42_spill] sm:$0xff] }
 0x4bf   :  { %v4067_v40 = vmax.f32 %v4003_v55, 0.0  ;;  %v3157_v26 = vmax.f32 %v3093_v8, 0.0  ;;  %v10459_v21 = vperm.slane %v10211_v14, 3  ;;  %v3042_v22 = vadd.f32 %v10438_v32, %v11000_v53 }
 0x4c0   :  { %v3948_v41 = vadd.f32 %v10443_v39, %v3799_v1  ;;  %4171 = vmatpush.bf16.msrb.mxu0 %v4166_v24  ;;  %v3102_v9 = vmax.f32 %v3038_v52, 0.0  ;;  %v11009_v53 = vpack.c.bf16 %v10359_v13, %v10347_v44  ;;  %v11011_v44 = vpack.c.bf16 %v10331_v42, %v10319_v0  ;;  %v11014_v0 = vld [vmem:[#allocation48_spill] sm:$0xff] }
 0x4c1   :  { %v3496_v56 = vpop.f32.mrf.mxu2  ;;  %v4131_v1 = vadd.f32 %v4067_v40, %v3153_v37  ;;  %v3035_v14 = vadd.f32 %v10459_v21, %v10100_v3  ;;  %v11002_v37 = vld [vmem:[#allocation43_spill] sm:$0xff]  ;;  %v3054_v42 = vadd.f32 %v10438_v32, %v11014_v0 }
 0x4c2   :  { %v4012_v50 = vmax.f32 %v3948_v41, 0.0  ;;  %v3545_v60 = vpop.f32.mrf.mxu3  ;;  %v10466_v41 = vperm.slane %v10219_v58, 3 }
 0x4c3   :  { %v3546_v2 = vadd.f32 %v3545_v60, %v3496_v56  ;;  %v10999_v60 = vpack.c.bf16 %v10365_v36, %v10351_v51  ;;  %v11001_v51 = vpack.c.bf16 %v10337_v7, %v10323_v63 }
 0x4c4   :  { %v10453_v10 = vadd.f32 %v4012_v50, %v3098_v54  ;;  %4172 = vmatpush.bf16.msrb.mxu0 %v4162_v4  ;;  %v3751_v27 = vpop.f32.mrf.mxu0  ;;  %v10998_v4 = vpack.c.bf16 %v10391_v17, %v10389_v62 }
 0x4c5   :  { %v4007_v38 = vadd.f32 %v10249_v30, %v3546_v2  ;;  %v3800_v5 = vpop.f32.mrf.mxu1  ;;  %v3099_v2 = vmax.f32 %v3035_v14, 0.0 }
 0x4c6   :  { %v3801_v28 = vadd.f32 %v3800_v5, %v3751_v27  ;;  %v3106_v5 = vmax.f32 %v3042_v22, 0.0 }
 0x4c7   :  { %v4071_v43 = vmax.f32 %v4007_v38, 0.0 }
 0x4c8   :  { %v3952_v35 = vadd.f32 %v10443_v39, %v3801_v28  ;;  %4173 = vmatpush.bf16.msrb.mxu0 %v10998_v4  ;;  %v11003_v4 = vpack.c.bf16 %v10309_v20, %v10295_v33  ;;  %v11005_v33 = vpack.c.bf16 %v10281_v47, %v10267_v46  ;;  %v11006_v20 = vpack.c.bf16 %v10385_v12, %v10372_v34  ;;  %v10518_v34 = vld [vmem:[%s10818_s4] sm:$0xf] }
 0x4c9   :  { %v4135_v24 = vadd.f32 %v4071_v43, %v3157_v26  ;;  %v3847_v30 = vpop.f32.mrf.mxu2  ;;  %v3039_v26 = vadd.f32 %v10459_v21, %v11002_v37  ;;  %v11008_v46 = vpack.c.bf16 %v10253_v25, %v10236_v57  ;;  %v11012_v37 = vld [vmem:[#allocation47_spill] sm:$0xff] }
 0x4ca   :  { %v4016_v55 = vmax.f32 %v3952_v35, 0.0  ;;  %v3896_v56 = vpop.f32.mrf.mxu3 }
 0x4cb   :  { %v3897_v54 = vadd.f32 %v3896_v56, %v3847_v30  ;;  %v4167_v50 = vpack.c.bf16 %v4135_v24, %v4131_v1 }
 0x4cc   :  { %4174 = vmatpush.bf16.msrb.mxu0 %v10999_v60  ;;  %v3754_v62 = vpop.f32.mrf.mxu0  ;;  %v10473_v17 = vadd.f32 %v4016_v55, %v3102_v9  ;;  %v3103_v9 = vmax.f32 %v3039_v26, 0.0  ;;  %v3047_v26 = vadd.f32 %v10459_v21, %v11012_v37 }
 0x4cd   :  { %v3949_v19 = vadd.f32 %v10466_v41, %v3897_v54  ;;  %4184 = vmatpush.bf16.msrb.mxu1 %v4167_v50  ;;  %v3803_v58 = vpop.f32.mrf.mxu1  ;;  %v11007_v50 = vld [vmem:[#allocation45_spill] sm:$0xff] }
 0x4ce   :  { %v3804_v8 = vadd.f32 %v3803_v58, %v3754_v62  ;;  %v3043_v60 = vadd.f32 %v10459_v21, %v11007_v50  ;;  %v11029_v50 = vld [vmem:[#allocation61_spill] sm:$0xff] }
 0x4cf   :  { %v4013_v27 = vmax.f32 %v3949_v19, 0.0  ;;  %v11028_v19 = vld [vmem:[#allocation62_spill] sm:$0xff] }
 0x4d0   :  { %v3956_v40 = vadd.f32 %v10443_v39, %v3804_v8  ;;  %4175 = vmatpush.bf16.msrb.mxu0 %v11001_v51  ;;  %v11010_v8 = vld [vmem:[#allocation46_spill] sm:$0xff] }
 0x4d1   :  { %v10484_v36 = vadd.f32 %v4013_v27, %v3099_v2  ;;  %4185 = vmatpush.bf16.msrb.mxu1 %v4163_v49  ;;  %v3849_v38 = vpop.f32.mrf.mxu2  ;;  %v11004_v49 = vld [vmem:[#allocation44_spill] sm:$0xff]  ;;  %v3050_v2 = vadd.f32 %v10438_v32, %v11010_v8  ;;  %v3107_v27 = vmax.f32 %v3043_v60, 0.0 }
 0x4d2   :  { %v4020_v52 = vmax.f32 %v3956_v40, 0.0  ;;  %v3898_v28 = vpop.f32.mrf.mxu3  ;;  %v3046_v24 = vadd.f32 %v10438_v32, %v11004_v49 }
 0x4d3   :  { %v3899_v43 = vadd.f32 %v3898_v28, %v3849_v38 }
 0x4d4   :  { %v10488_v35 = vadd.f32 %v4020_v52, %v3106_v5  ;;  %4176 = vmatpush.bf16.msrb.mxu0 %v11003_v4  ;;  %v3756_v1 = vpop.f32.mrf.mxu0  ;;  %v3110_v18 = vmax.f32 %v3046_v24, 0.0  ;;  %v3114_v5 = vmax.f32 %v3050_v2, 0.0 }
 0x4d5   :  { %v3953_v63 = vadd.f32 %v10466_v41, %v3899_v43  ;;  %4186 = vmatpush.bf16.msrb.mxu1 %v4159_v29  ;;  %v3805_v7 = vpop.f32.mrf.mxu1 }
 0x4d6   :  { %v3806_v30 = vadd.f32 %v3805_v7, %v3756_v1  ;;  %v11013_v7 = vpack.c.bf16 %v10303_v16, %v10291_v23  ;;  %v11016_v16 = vld [vmem:[#allocation49_spill] sm:$0xff] }
 0x4d7   :  { %v4017_v55 = vmax.f32 %v3953_v63, 0.0 }
 0x4d8   :  { %v3960_v56 = vadd.f32 %v10443_v39, %v3806_v30  ;;  %4177 = vmatpush.bf16.msrb.mxu0 %v11005_v33  ;;  %v3111_v30 = vmax.f32 %v3047_v26, 0.0 }
 0x4d9   :  { %4187 = vmatpush.bf16.msrb.mxu1 %v11006_v20  ;;  %v3852_v14 = vpop.f32.mrf.mxu2  ;;  %v10506_v31 = vadd.f32 %v4017_v55, %v3103_v9 }
 0x4da   :  { %v4024_v29 = vmax.f32 %v3960_v56, 0.0  ;;  %v3901_v54 = vpop.f32.mrf.mxu3  ;;  %v11015_v56 = vpack.c.bf16 %v10275_v59, %v10263_v48 }
 0x4db   :  { %v3902_v62 = vadd.f32 %v3901_v54, %v3852_v14  ;;  %v3118_v14 = vmax.f32 %v3054_v42, 0.0 }
 0x4dc   :  { %4178 = vmatpush.bf16.msrb.mxu0 %v11008_v46  ;;  %v3759_v47 = vpop.f32.mrf.mxu0  ;;  %v10520_v12 = vadd.f32 %v4024_v29, %v3110_v18  ;;  %v3051_v29 = vadd.f32 %v10459_v21, %v11016_v16  ;;  %v11017_v46 = vld [vmem:[#allocation50_spill] sm:$0xff] }
 0x4dd   :  { %v3957_v58 = vadd.f32 %v10466_v41, %v3902_v62  ;;  %4188 = vmatpush.bf16.msrb.mxu1 %v11009_v53  ;;  %v3808_v22 = vpop.f32.mrf.mxu1 }
 0x4de   :  { %v3809_v57 = vadd.f32 %v3808_v22, %v3759_v47  ;;  %v3058_v47 = vadd.f32 %v10438_v32, %v11017_v46  ;;  %v3115_v22 = vmax.f32 %v3051_v29, 0.0 }
 0x4df   :  { %v4021_v40 = vmax.f32 %v3957_v58, 0.0  ;;  %4179 = vmatmul.bf16.vlgmr.msrb.gmra.mxu0 %v10518_v34 }
 0x4e0   :  { %v3964_v51 = vadd.f32 %v10443_v39, %v3809_v57 }
 0x4e1   :  { %v10532_v38 = vadd.f32 %v4021_v40, %v3107_v27  ;;  %4189 = vmatpush.bf16.msrb.mxu1 %v11011_v44  ;;  %v3854_v13 = vpop.f32.mrf.mxu2  ;;  %v3122_v40 = vmax.f32 %v3058_v47, 0.0 }
 0x4e2   :  { %v4028_v52 = vmax.f32 %v3964_v51, 0.0  ;;  %v3903_v28 = vpop.f32.mrf.mxu3 }
 0x4e3   :  { %v3904_v43 = vadd.f32 %v3903_v28, %v3854_v13  ;;  %v11018_v13 = vld [vmem:[#allocation51_spill] sm:$0xff] }
 0x4e4   :  { %v10539_v4 = vadd.f32 %v4028_v52, %v3114_v5  ;;  %v3761_v1 = vpop.f32.mrf.mxu0  ;;  %v3055_v5 = vadd.f32 %v10459_v21, %v11018_v13  ;;  %v3063_v13 = vadd.f32 %v10459_v21, %v10156_v11 }
 0x4e5   :  { %v3961_v63 = vadd.f32 %v10466_v41, %v3904_v43  ;;  %4190 = vmatpush.bf16.msrb.mxu1 %v11013_v7  ;;  %v3810_v49 = vpop.f32.mrf.mxu1 }
 0x4e6   :  { %v3811_v24 = vadd.f32 %v3810_v49, %v3761_v1  ;;  %v11019_v1 = vld [vmem:[#allocation52_spill] sm:$0xff]  ;;  %v3119_v49 = vmax.f32 %v3055_v5, 0.0 }
 0x4e7   :  { %v4025_v9 = vmax.f32 %v3961_v63, 0.0  ;;  %v3062_v63 = vadd.f32 %v10438_v32, %v11019_v1 }
 0x4e8   :  { %v3968_v55 = vadd.f32 %v10443_v39, %v3811_v24 }
 0x4e9   :  { %4191 = vmatpush.bf16.msrb.mxu1 %v11015_v56  ;;  %v3857_v33 = vpop.f32.mrf.mxu2  ;;  %v10551_v20 = vadd.f32 %v4025_v9, %v3111_v30  ;;  %v3126_v9 = vmax.f32 %v3062_v63, 0.0 }
 0x4ea   :  { %v4032_v18 = vmax.f32 %v3968_v55, 0.0  ;;  %v3906_v23 = vpop.f32.mrf.mxu3 }
 0x4eb   :  { %v3907_v54 = vadd.f32 %v3906_v23, %v3857_v33  ;;  %v11020_v33 = vld [vmem:[#allocation53_spill] sm:$0xff]  ;;  %v11030_v23 = vld [vmem:[#allocation63_spill] sm:$0xff] }
 0x4ec   :  { %4192 = vmatmul.bf16.vlgmr.msrb.gmra.mxu1 %v10518_v34  ;;  %v3764_v60 = vpop.f32.mrf.mxu0  ;;  %v10558_v62 = vadd.f32 %v4032_v18, %v3118_v14  ;;  %v3059_v14 = vadd.f32 %v10459_v21, %v11020_v33 }
 0x4ed   :  { %v3965_v48 = vadd.f32 %v10466_v41, %v3907_v54  ;;  %v3813_v59 = vpop.f32.mrf.mxu1 }
 0x4ee   :  { %v3814_v58 = vadd.f32 %v3813_v59, %v3764_v60 }
 0x4ef   :  { %v4029_v8 = vmax.f32 %v3965_v48, 0.0  ;;  %v11021_v48 = vld [vmem:[#allocation54_spill] sm:$0xff] }
 0x4f0   :  { %v3972_v2 = vadd.f32 %v10443_v39, %v3814_v58  ;;  %v3066_v59 = vadd.f32 %v10438_v32, %v11021_v48  ;;  %v3123_v58 = vmax.f32 %v3059_v14, 0.0  ;;  %v11023_v48 = vld [vmem:[#allocation56_spill] sm:$0xff] }
 0x4f1   :  { %v10566_v57 = vadd.f32 %v4029_v8, %v3115_v22  ;;  %v3859_v27 = vpop.f32.mrf.mxu2 }
 0x4f2   :  { %v4036_v51 = vmax.f32 %v3972_v2, 0.0  ;;  %v3908_v44 = vpop.f32.mrf.mxu3 }
 0x4f3   :  { %v3909_v52 = vadd.f32 %v3908_v44, %v3859_v27 }
 0x4f4   :  { %v10570_v28 = vadd.f32 %v4036_v51, %v3122_v40  ;;  %v3766_v37 = vpop.f32.mrf.mxu0  ;;  %v3130_v40 = vmax.f32 %v3066_v59, 0.0  ;;  %v3067_v59 = vadd.f32 %v10459_v21, %v11023_v48 }
 0x4f5   :  { %v3969_v26 = vadd.f32 %v10466_v41, %v3909_v52  ;;  %v3815_v43 = vpop.f32.mrf.mxu1  ;;  %v7662_v52 = vld [vmem:[#allocation15 + $0x1c0] sm:$0xf] }
 0x4f6   :  { %v3816_v7 = vadd.f32 %v3815_v43, %v3766_v37  ;;  %v8808_v37 = vld [vmem:[#allocation15 + $0x1dc] sm:$0xf0] }
 0x4f7   :  { %v4033_v0 = vmax.f32 %v3969_v26, 0.0  ;;  %v7663_v1 = vor.u32 %v8808_v37, %v7662_v52  ;;  %v3131_v52 = vmax.f32 %v3067_v59, 0.0  ;;  %v8864_v59 = vld [vmem:[#allocation15 + $0x39c] sm:$0xf0] }
 0x4f8   :  { %v3976_v42 = vadd.f32 %v10443_v39, %v3816_v7 }
 0x4f9   :  { %v3862_v24 = vpop.f32.mrf.mxu2  ;;  %v10576_v30 = vadd.f32 %v4033_v0, %v3119_v49  ;;  %v11022_v49 = vld [vmem:[#allocation55_spill] sm:$0xff]  ;;  %5781 = vmatpush.bf16.msra.mxu0 %v7663_v1  ;;  %v8784_v1 = vld [vmem:[#allocation15 + $0x11c] sm:$0xf0] }
 0x4fa   :  { %v4040_v55 = vmax.f32 %v3976_v42, 0.0  ;;  %v3911_v56 = vpop.f32.mrf.mxu3  ;;  %v3070_v0 = vadd.f32 %v10438_v32, %v11022_v49  ;;  %v7918_v49 = vld [vmem:[#allocation15 + $0x3c0] sm:$0xf] }
 0x4fb   :  { %v3912_v18 = vadd.f32 %v3911_v56, %v3862_v24  ;;  %v3127_v24 = vmax.f32 %v3063_v13, 0.0  ;;  %v8800_v56 = vld [vmem:[#allocation15 + $0x19c] sm:$0xf0] }
 0x4fc   :  { %v3769_v16 = vpop.f32.mrf.mxu0  ;;  %v10582_v29 = vadd.f32 %v4040_v55, %v3126_v9  ;;  %v7630_v55 = vld [vmem:[#allocation15 + $0x180] sm:$0xf] }
 0x4fd   :  { %v3973_v54 = vadd.f32 %v10466_v41, %v3912_v18  ;;  %v3818_v60 = vpop.f32.mrf.mxu1  ;;  %v7631_v33 = vor.u32 %v8800_v56, %v7630_v55  ;;  %v3071_v56 = vadd.f32 %v10459_v21, %v10172_v6  ;;  %v3078_v6 = vadd.f32 %v10438_v32, %v10176_v15 }
 0x4fe   :  { %v3819_v46 = vadd.f32 %v3818_v60, %v3769_v16  ;;  %v4152_v47 = vpack.c.bf16 %v10582_v29, %v10570_v28  ;;  %v3134_v16 = vmax.f32 %v3070_v0, 0.0  ;;  %v8872_v0 = vld [vmem:[#allocation15 + $0x3dc] sm:$0xf0]  ;;  %v8809_v28 = vld [vmem:[#allocation15 + $0x1e4] sm:$0xf0] }
 0x4ff   :  { %v4037_v22 = vmax.f32 %v3973_v54, 0.0  ;;  %5782 = vmatpush.bf16.msra.mxu0 %v7631_v33  ;;  %v7534_v33 = vld [vmem:[#allocation15 + $0xc0] sm:$0xf] }
 0x500   :  { %v3980_v8 = vadd.f32 %v10443_v39, %v3819_v46 }
 0x501   :  { %v10590_v2 = vadd.f32 %v4037_v22, %v3123_v58  ;;  %v3864_v27 = vpop.f32.mrf.mxu2  ;;  %v7598_v58 = vld [vmem:[#allocation15 + $0x140] sm:$0xf] }
 0x502   :  { %v4044_v51 = vmax.f32 %v3980_v8, 0.0  ;;  %v3913_v44 = vpop.f32.mrf.mxu3  ;;  %v8792_v22 = vld [vmem:[#allocation15 + $0x15c] sm:$0xf0] }
 0x503   :  { %v3914_v5 = vadd.f32 %v3913_v44, %v3864_v27 }
 0x504   :  { %v10594_v26 = vadd.f32 %v4044_v51, %v3130_v40  ;;  %v3771_v43 = vpop.f32.mrf.mxu0  ;;  %v7599_v40 = vor.u32 %v8792_v22, %v7598_v58 }
 0x505   :  { %v3977_v63 = vadd.f32 %v10466_v41, %v3914_v5  ;;  %v3820_v7 = vpop.f32.mrf.mxu1 }
 0x506   :  { %v3821_v42 = vadd.f32 %v3820_v7, %v3771_v43  ;;  %5783 = vmatpush.bf16.msra.mxu0 %v7599_v40  ;;  %v7566_v43 = vld [vmem:[#allocation15 + $0x100] sm:$0xf] }
 0x507   :  { %v4041_v9 = vmax.f32 %v3977_v63, 0.0  ;;  %v7567_v7 = vor.u32 %v8784_v1, %v7566_v43  ;;  %v8768_v43 = vld [vmem:[#allocation15 + $0x9c] sm:$0xf0] }
 0x508   :  { %v3984_v11 = vadd.f32 %v10443_v39, %v3821_v42 }
 0x509   :  { %v3867_v14 = vpop.f32.mrf.mxu2  ;;  %v10600_v18 = vadd.f32 %v4041_v9, %v3127_v24  ;;  %v7919_v9 = vor.u32 %v8872_v0, %v7918_v49  ;;  %v7854_v49 = vld [vmem:[#allocation15 + $0x340] sm:$0xf] }
 0x50a   :  { %v4048_v54 = vmax.f32 %v3984_v11, 0.0  ;;  %v3916_v60 = vpop.f32.mrf.mxu3  ;;  %5784 = vmatpush.bf16.msra.mxu0 %v7567_v7  ;;  %v8856_v0 = vld [vmem:[#allocation15 + $0x35c] sm:$0xf0] }
 0x50b   :  { %v3917_v46 = vadd.f32 %v3916_v60, %v3867_v14  ;;  %5794 = vmatpush.bf16.msra.mxu1 %v7919_v9  ;;  %v8776_v14 = vld [vmem:[#allocation15 + $0xdc] sm:$0xf0]  ;;  %v7855_v9 = vor.u32 %v8856_v0, %v7854_v49 }
 0x50c   :  { %v3774_v27 = vpop.f32.mrf.mxu0  ;;  %v10606_v51 = vadd.f32 %v4048_v54, %v3134_v16  ;;  %v7886_v16 = vld [vmem:[#allocation15 + $0x380] sm:$0xf]  ;;  %v7535_v48 = vor.u32 %v8776_v14, %v7534_v33  ;;  %v3142_v33 = vmax.f32 %v3078_v6, 0.0 }
 0x50d   :  { %v3981_v44 = vadd.f32 %v10466_v41, %v3917_v46  ;;  %v3823_v13 = vpop.f32.mrf.mxu1  ;;  %v7887_v22 = vor.u32 %v8864_v59, %v7886_v16  ;;  %v8760_v16 = vld [vmem:[#allocation15 + $0x5c] sm:$0xf0] }
 0x50e   :  { %v4156_v5 = vpack.c.bf16 %v10606_v51, %v10594_v26  ;;  %v3824_v63 = vadd.f32 %v3823_v13, %v3774_v27  ;;  %v11024_v27 = vld [vmem:[#allocation57_spill] sm:$0xff]  ;;  %5785 = vmatpush.bf16.msra.mxu0 %v7535_v48  ;;  %v3135_v13 = vmax.f32 %v3071_v56, 0.0  ;;  %v7470_v56 = vld [vmem:[#allocation15 + $0x40] sm:$0xf] }
 0x50f   :  { %v4045_v37 = vmax.f32 %v3981_v44, 0.0  ;;  %v3074_v40 = vadd.f32 %v10438_v32, %v11024_v27  ;;  %5795 = vmatpush.bf16.msra.mxu1 %v7887_v22  ;;  %v8848_v22 = vld [vmem:[#allocation15 + $0x31c] sm:$0xf0]  ;;  %v7670_v51 = vld [vmem:[#allocation15 + $0x1c8] sm:$0xf] }
 0x510   :  { %v3988_v54 = vadd.f32 %v10443_v39, %v3824_v63 }
 0x511   :  { %v10611_v42 = vadd.f32 %v4045_v37, %v3131_v52  ;;  %v3869_v24 = vpop.f32.mrf.mxu2  ;;  %v7502_v37 = vld [vmem:[#allocation15 + $0x80] sm:$0xf] }
 0x512   :  { %v3918_v55 = vpop.f32.mrf.mxu3  ;;  %v4052_v1 = vmax.f32 %v3988_v54, 0.0  ;;  %v7503_v7 = vor.u32 %v8768_v43, %v7502_v37 }
 0x513   :  { %v3919_v11 = vadd.f32 %v3918_v55, %v3869_v24  ;;  %5796 = vmatpush.bf16.msra.mxu1 %v7855_v9 }
 0x514   :  { %v3776_v60 = vpop.f32.mrf.mxu0  ;;  %5786 = vmatpush.bf16.msra.mxu0 %v7503_v7  ;;  %v8804_v7 = vld [vmem:[#allocation15 + $0x1c4] sm:$0xf] }
 0x515   :  { %v3985_v46 = vadd.f32 %v10466_v41, %v3919_v11  ;;  %v3825_v58 = vpop.f32.mrf.mxu1  ;;  %v3138_v11 = vmax.f32 %v3074_v40, 0.0 }
 0x516   :  { %v3826_v44 = vadd.f32 %v3825_v58, %v3776_v60  ;;  %v7822_v60 = vld [vmem:[#allocation15 + $0x300] sm:$0xf]  ;;  %v7471_v58 = vor.u32 %v8760_v16, %v7470_v56 }
 0x517   :  { %v4049_v52 = vmax.f32 %v3985_v46, 0.0  ;;  %v10626_v48 = vadd.f32 %v4052_v1, %v3138_v11  ;;  %v7823_v6 = vor.u32 %v8848_v22, %v7822_v60  ;;  %v8840_v1 = vld [vmem:[#allocation15 + $0x2dc] sm:$0xf0]  ;;  %v7664_v11 = vld [vmem:[#allocation15 + $0x1e0] sm:$0xf0] }
 0x518   :  { %v3992_v63 = vadd.f32 %v10443_v39, %v3826_v44  ;;  %5787 = vmatpush.bf16.msra.mxu0 %v7471_v58  ;;  %v7758_v16 = vld [vmem:[#allocation15 + $0x280] sm:$0xf] }
 0x519   :  { %v3872_v24 = vpop.f32.mrf.mxu2  ;;  %v10622_v55 = vadd.f32 %v4049_v52, %v3135_v13  ;;  %5797 = vmatpush.bf16.msra.mxu1 %v7823_v6  ;;  %v7438_v13 = vld [vmem:[#allocation15] sm:$0xf] }
 0x51a   :  { %v4056_v15 = vmax.f32 %v3992_v63, 0.0  ;;  %v3921_v14 = vpop.f32.mrf.mxu3  ;;  %v8752_v52 = vld [vmem:[#allocation15 + $0x1c] sm:$0xf0] }
 0x51b   :  { %v3922_v27 = vadd.f32 %v3921_v14, %v3872_v24  ;;  %v7439_v43 = vor.u32 %v8752_v52, %v7438_v13  ;;  %v7790_v63 = vld [vmem:[#allocation15 + $0x2c0] sm:$0xf]  ;;  %v3075_v24 = vadd.f32 %v10459_v21, %v10180_v61  ;;  %v3079_v14 = vadd.f32 %v10459_v21, %v10188_v45 }
 0x51c   :  { %v10628_v59 = vadd.f32 %v4056_v15, %v3142_v33  ;;  %v3779_v46 = vpop.f32.mrf.mxu0  ;;  %v7791_v9 = vor.u32 %v8840_v1, %v7790_v63  ;;  %v7667_v15 = vor.u32 %v8804_v7, %v7664_v11  ;;  %v8832_v60 = vld [vmem:[#allocation15 + $0x29c] sm:$0xf0]  ;;  %v11025_v63 = vld [vmem:[#allocation58_spill] sm:$0xff]  ;;  %v11026_v1 = vld [vmem:[#allocation59_spill] sm:$0xff]  ;;  %v11036_v26 = vpack.c.bf16 %v10622_v55, %v10611_v42 }
 0x51d   :  { %v3828_v40 = vpop.f32.mrf.mxu1  ;;  %v3989_v49 = vadd.f32 %v10466_v41, %v3922_v27  ;;  %5788 = vmatpush.bf16.msra.mxu0 %v7439_v43  ;;  %v7759_v22 = vor.u32 %v8832_v60, %v7758_v16  ;;  %v8796_v27 = vld [vmem:[#allocation15 + $0x184] sm:$0xf]  ;;  %v3139_v43 = vmax.f32 %v3075_v24, 0.0  ;;  %v3082_v45 = vadd.f32 %v10438_v32, %v11025_v63  ;;  %v7726_v11 = vld [vmem:[#allocation15 + $0x240] sm:$0xf] }
 0x51e   :  { %v4160_v44 = vpack.c.bf16 %v10628_v59, %v10626_v48  ;;  %v3829_v37 = vadd.f32 %v3828_v40, %v3779_v46  ;;  %5798 = vmatpush.bf16.msra.mxu1 %v7791_v9  ;;  %v7632_v40 = vld [vmem:[#allocation15 + $0x1a0] sm:$0xf0]  ;;  %v3086_v7 = vadd.f32 %v10438_v32, %v11026_v1  ;;  %v3143_v9 = vmax.f32 %v3079_v14, 0.0 }
 0x51f   :  { %v4053_v6 = vmax.f32 %v3989_v49, 0.0  ;;  %v7635_v52 = vor.u32 %v8796_v27, %v7632_v40  ;;  %v8788_v16 = vld [vmem:[#allocation15 + $0x144] sm:$0xf]  ;;  %v3146_v1 = vmax.f32 %v3082_v45, 0.0  ;;  %v11035_v59 = vpack.c.bf16 %v10520_v12, %v10488_v35  ;;  %v7638_v35 = vld [vmem:[#allocation15 + $0x188] sm:$0xf] }
 0x520   :  { %v3996_v46 = vadd.f32 %v10443_v39, %v3829_v37  ;;  %v7600_v60 = vld [vmem:[#allocation15 + $0x160] sm:$0xf0]  ;;  %v8801_v12 = vld [vmem:[#allocation15 + $0x1a4] sm:$0xf0]  ;;  %v11039_v55 = vpack.c.bf16 %v10576_v30, %v10566_v57 }
 0x521   :  { %v3874_v0 = vpop.f32.mrf.mxu2  ;;  %5833 = vmatpush.bf16.msrb.mxu0 %v7667_v15  ;;  %v10644_v24 = vadd.f32 %v4053_v6, %v3139_v43  ;;  %v7603_v63 = vor.u32 %v8788_v16, %v7600_v60  ;;  %v7639_v42 = vor.u32 %v8801_v12, %v7638_v35  ;;  %v7928_v35 = vld [vmem:[#allocation15 + $0x3e8] sm:$0xf0] }
 0x522   :  { %v3923_v33 = vpop.f32.mrf.mxu3  ;;  %5799 = vmatpush.bf16.msra.mxu1 %v7759_v22  ;;  %v4060_v15 = vmax.f32 %v3996_v46, 0.0  ;;  %v7694_v22 = vld [vmem:[#allocation15 + $0x200] sm:$0xf]  ;;  %v7824_v46 = vld [vmem:[#allocation15 + $0x320] sm:$0xf0] }
 0x523   :  { %v3924_v56 = vadd.f32 %v3923_v33, %v3874_v0  ;;  %v8824_v33 = vld [vmem:[#allocation15 + $0x25c] sm:$0xf0] }
 0x524   :  { %v3781_v58 = vpop.f32.mrf.mxu0 }
 0x525   :  { %v3993_v61 = vadd.f32 %v10466_v41, %v3924_v56  ;;  %v3830_v13 = vpop.f32.mrf.mxu1  ;;  %5834 = vmatpush.bf16.msrb.mxu0 %v7635_v52  ;;  %v7727_v56 = vor.u32 %v8824_v33, %v7726_v11  ;;  %v10650_v52 = vadd.f32 %v4060_v15, %v3146_v1  ;;  %v8868_v11 = vld [vmem:[#allocation15 + $0x3c4] sm:$0xf] }
 0x526   :  { %v3831_v0 = vadd.f32 %v3830_v13, %v3781_v58  ;;  %v3150_v58 = vmax.f32 %v3086_v7, 0.0  ;;  %v8816_v13 = vld [vmem:[#allocation15 + $0x21c] sm:$0xf0]  ;;  %v8772_v15 = vld [vmem:[#allocation15 + $0xc4] sm:$0xf] }
 0x527   :  { %v4057_v37 = vmax.f32 %v3993_v61, 0.0  ;;  %5800 = vmatpush.bf16.msra.mxu1 %v7727_v56  ;;  %v7695_v43 = vor.u32 %v8816_v13, %v7694_v22  ;;  %v7536_v1 = vld [vmem:[#allocation15 + $0xe0] sm:$0xf0] }
 0x528   :  { %v4000_v49 = vadd.f32 %v10443_v39, %v3831_v0  ;;  %v7539_v22 = vor.u32 %v8772_v15, %v7536_v1  ;;  %v7888_v13 = vld [vmem:[#allocation15 + $0x3a0] sm:$0xf0] }
 0x529   :  { %v10646_v27 = vadd.f32 %v4057_v37, %v3143_v9  ;;  %v3877_v40 = vpop.f32.mrf.mxu2  ;;  %5835 = vmatpush.bf16.msrb.mxu0 %v7603_v63  ;;  %v8780_v9 = vld [vmem:[#allocation15 + $0x104] sm:$0xf] }
 0x52a   :  { %v4064_v14 = vmax.f32 %v4000_v49, 0.0  ;;  %v3926_v61 = vpop.f32.mrf.mxu3  ;;  %v7568_v37 = vld [vmem:[#allocation15 + $0x120] sm:$0xf0] }
 0x52b   :  { %v3927_v45 = vadd.f32 %v3926_v61, %v3877_v40  ;;  %v7571_v33 = vor.u32 %v8780_v9, %v7568_v37  ;;  %v7920_v49 = vld [vmem:[#allocation15 + $0x3e0] sm:$0xf0]  ;;  %5801 = vmatpush.bf16.msra.mxu1 %v7695_v43  ;;  %v11034_v48 = vpack.c.bf16 %v10646_v27, %v10644_v24  ;;  %v8785_v27 = vld [vmem:[#allocation15 + $0x124] sm:$0xf0] }
 0x52c   :  { %v10652_v0 = vadd.f32 %v4064_v14, %v3150_v58  ;;  %v3784_v6 = vpop.f32.mrf.mxu0  ;;  %v7923_v16 = vor.u32 %v8868_v11, %v7920_v49  ;;  %v8860_v58 = vld [vmem:[#allocation15 + $0x384] sm:$0xf]  ;;  %v3087_v11 = vadd.f32 %v10459_v21, %v11028_v19  ;;  %v3094_v19 = vadd.f32 %v10438_v32, %v11030_v23 }
 0x52d   :  { %v3833_v7 = vpop.f32.mrf.mxu1  ;;  %5836 = vmatpush.bf16.msrb.mxu0 %v7571_v33  ;;  %v3997_v63 = vadd.f32 %v10466_v41, %v3927_v45  ;;  %v7891_v61 = vor.u32 %v8860_v58, %v7888_v13  ;;  %v11027_v9 = vld [vmem:[#allocation60_spill] sm:$0xff] }
 0x52e   :  { %v4164_v56 = vpack.c.bf16 %v10652_v0, %v10650_v52  ;;  %v3834_v60 = vadd.f32 %v3833_v7, %v3784_v6  ;;  %v3083_v37 = vadd.f32 %v10459_v21, %v11027_v9  ;;  %v8764_v33 = vld [vmem:[#allocation15 + $0x84] sm:$0xf]  ;;  %v3090_v9 = vadd.f32 %v10438_v32, %v11029_v50 }
 0x52f   :  { %5846 = vmatpush.bf16.msrb.mxu1 %v7923_v16  ;;  %v7504_v49 = vld [vmem:[#allocation15 + $0xa0] sm:$0xf0]  ;;  %v4061_v16 = vmax.f32 %v3997_v63, 0.0  ;;  %v3158_v32 = vmax.f32 %v3094_v19, 0.0 }
 0x530   :  { %v4004_v6 = vadd.f32 %v10443_v39, %v3834_v60  ;;  %v8852_v45 = vld [vmem:[#allocation15 + $0x344] sm:$0xf]  ;;  %v7507_v58 = vor.u32 %v8764_v33, %v7504_v49  ;;  %v3154_v53 = vmax.f32 %v3090_v9, 0.0 }
 0x531   :  { %v3879_v14 = vpop.f32.mrf.mxu2  ;;  %5837 = vmatpush.bf16.msrb.mxu0 %v7539_v22  ;;  %v7856_v13 = vld [vmem:[#allocation15 + $0x360] sm:$0xf0]  ;;  %v3151_v22 = vmax.f32 %v3087_v11, 0.0 }
 0x532   :  { %v3928_v40 = vpop.f32.mrf.mxu3  ;;  %v8756_v63 = vld [vmem:[#allocation15 + $0x44] sm:$0xf] }
 0x533   :  { %v3929_v43 = vadd.f32 %v3928_v40, %v3879_v14  ;;  %5847 = vmatpush.bf16.msrb.mxu1 %v7891_v61  ;;  %v7859_v14 = vor.u32 %v8852_v45, %v7856_v13  ;;  %v3147_v40 = vmax.f32 %v3083_v37, 0.0  ;;  %v4068_v61 = vmax.f32 %v4004_v6, 0.0  ;;  %v8844_v33 = vld [vmem:[#allocation15 + $0x304] sm:$0xf] }
 0x534   :  { %v3786_v7 = vpop.f32.mrf.mxu0  ;;  %v7827_v37 = vor.u32 %v8844_v33, %v7824_v46  ;;  %v8828_v9 = vld [vmem:[#allocation15 + $0x284] sm:$0xf] }
 0x535   :  { %v4001_v15 = vadd.f32 %v10466_v41, %v3929_v43  ;;  %v3835_v1 = vpop.f32.mrf.mxu1  ;;  %5838 = vmatpush.bf16.msrb.mxu0 %v7507_v58  ;;  %v7472_v43 = vld [vmem:[#allocation15 + $0x60] sm:$0xf0]  ;;  %v4125_v49 = vadd.f32 %v4061_v16, %v3147_v40  ;;  %v4132_v6 = vadd.f32 %v4068_v61, %v3154_v53 }
 0x536   :  { %v3836_v60 = vadd.f32 %v3835_v1, %v3786_v7  ;;  %v7475_v50 = vor.u32 %v8756_v63, %v7472_v43  ;;  %v8836_v1 = vld [vmem:[#allocation15 + $0x2c4] sm:$0xf] }
 0x537   :  { %v4065_v8 = vmax.f32 %v4001_v15, 0.0  ;;  %5848 = vmatpush.bf16.msrb.mxu1 %v7859_v14  ;;  %v7440_v15 = vld [vmem:[#allocation15 + $0x20] sm:$0xf0] }
 0x538   :  { %v4008_v3 = vadd.f32 %v10443_v39, %v3836_v60  ;;  %v8748_v39 = vld [vmem:[#allocation15 + $0x4] sm:$0xf] }
 0x539   :  { %v4129_v54 = vadd.f32 %v4065_v8, %v3151_v22  ;;  %v3882_v25 = vpop.f32.mrf.mxu2  ;;  %5839 = vmatpush.bf16.msrb.mxu0 %v7475_v50  ;;  %v7443_v13 = vor.u32 %v8748_v39, %v7440_v15  ;;  %v7792_v16 = vld [vmem:[#allocation15 + $0x2e0] sm:$0xf0]  ;;  %v11032_v22 = vld [vmem:[#allocation65_spill] sm:$0xff]  ;;  %v11041_v15 = vpack.c.bf16 %v10506_v31, %v10484_v36 }
 0x53a   :  { %v4072_v23 = vmax.f32 %v4008_v3, 0.0  ;;  %v3931_v7 = vpop.f32.mrf.mxu3  ;;  %v7795_v60 = vor.u32 %v8836_v1, %v7792_v16  ;;  %v7760_v19 = vld [vmem:[#allocation15 + $0x2a0] sm:$0xf0]  ;;  %v7542_v1 = vld [vmem:[#allocation15 + $0xc8] sm:$0xf] }
 0x53b   :  { %v4165_v11 = vpack.c.bf16 %v4129_v54, %v4125_v49  ;;  %5849 = vmatpush.bf16.msrb.mxu1 %v7827_v37  ;;  %v3932_v58 = vadd.f32 %v3931_v7, %v3882_v25  ;;  %v7763_v53 = vor.u32 %v8828_v9, %v7760_v19  ;;  %v11031_v14 = vld [vmem:[#allocation64_spill] sm:$0xff]  ;;  %v3095_v25 = vadd.f32 %v10459_v21, %v11032_v22  ;;  %v7894_v16 = vld [vmem:[#allocation15 + $0x388] sm:$0xf] }
 0x53c   :  { %v4136_v45 = vadd.f32 %v4072_v23, %v3158_v32  ;;  %v3091_v40 = vadd.f32 %v10459_v21, %v11031_v14  ;;  %v8820_v63 = vld [vmem:[#allocation15 + $0x244] sm:$0xf]  ;;  %v8769_v9 = vld [vmem:[#allocation15 + $0xa4] sm:$0xf0] }
 0x53d   :  { %5840 = vmatpush.bf16.msrb.mxu0 %v7443_v13  ;;  %v4005_v3 = vadd.f32 %v10466_v41, %v3932_v58  ;;  %v7728_v43 = vld [vmem:[#allocation15 + $0x260] sm:$0xf0]  ;;  %v3159_v23 = vmax.f32 %v3095_v25, 0.0  ;;  %v8777_v13 = vld [vmem:[#allocation15 + $0xe4] sm:$0xf0] }
 0x53e   :  { %v4168_v8 = vpack.c.bf16 %v4136_v45, %v4132_v6  ;;  %v7731_v50 = vor.u32 %v8820_v63, %v7728_v43  ;;  %v3155_v32 = vmax.f32 %v3091_v40, 0.0  ;;  %v8812_v21 = vld [vmem:[#allocation15 + $0x204] sm:$0xf]  ;;  %v7862_v36 = vld [vmem:[#allocation15 + $0x348] sm:$0xf] }
 0x53f   :  { %5850 = vmatpush.bf16.msrb.mxu1 %v7795_v60  ;;  %v4069_v33 = vmax.f32 %v4005_v3, 0.0  ;;  %v7696_v37 = vld [vmem:[#allocation15 + $0x220] sm:$0xf0]  ;;  %v7510_v60 = vld [vmem:[#allocation15 + $0x88] sm:$0xf] }
 0x540   :  { %4197 = vmatpush.bf16.msrb.mxu2 %v4168_v8  ;;  %v7699_v52 = vor.u32 %v8812_v21, %v7696_v37  ;;  %v8865_v8 = vld [vmem:[#allocation15 + $0x3a4] sm:$0xf0]  ;;  %v7511_v19 = vor.u32 %v8769_v9, %v7510_v60  ;;  %v8797_v37 = vld [vmem:[#allocation15 + $0x18c] sm:$0xf] }
 0x541   :  { %v3884_v46 = vpop.f32.mrf.mxu2  ;;  %v4133_v6 = vadd.f32 %v4069_v33, %v3155_v32  ;;  %v8857_v31 = vld [vmem:[#allocation15 + $0x364] sm:$0xf0]  ;;  %v8805_v33 = vld [vmem:[#allocation15 + $0x1cc] sm:$0xf] }
 0x542   :  { %v3933_v54 = vpop.f32.mrf.mxu3  ;;  %v7863_v3 = vor.u32 %v8857_v31, %v7862_v36  ;;  %v8849_v14 = vld [vmem:[#allocation15 + $0x324] sm:$0xf0]  ;;  %v8845_v60 = vld [vmem:[#allocation15 + $0x30c] sm:$0xf] }
 0x543   :  { %v3934_v61 = vadd.f32 %v3933_v54, %v3884_v46  ;;  %5851 = vmatpush.bf16.msrb.mxu1 %v7763_v53  ;;  %v7478_v46 = vld [vmem:[#allocation15 + $0x48] sm:$0xf]  ;;  %v7832_v9 = vld [vmem:[#allocation15 + $0x328] sm:$0xf0] }
 0x544   :  { %4198 = vmatpush.bf16.msrb.mxu2 %v4164_v56  ;;  %v7926_v56 = vld [vmem:[#allocation15 + $0x3c8] sm:$0xf] }
 0x545   :  { %v4009_v49 = vadd.f32 %v10466_v41, %v3934_v61  ;;  %v11033_v41 = vpack.c.bf16 %v10558_v62, %v10539_v4  ;;  %v7671_v4 = vor.u32 %v8809_v28, %v7670_v51  ;;  %v8761_v54 = vld [vmem:[#allocation15 + $0x64] sm:$0xf0] }
 0x546   :  { %v7479_v40 = vor.u32 %v8761_v54, %v7478_v46  ;;  %v7446_v25 = vld [vmem:[#allocation15 + $0x8] sm:$0xf]  ;;  %v8110_v46 = vld [vmem:[#allocation15 + $0x540] sm:$0xf]  ;;  %v7448_v54 = vld [vmem:[#allocation15 + $0x28] sm:$0xf0] }
 0x547   :  { %v4073_v7 = vmax.f32 %v4009_v49, 0.0  ;;  %5852 = vmatpush.bf16.msrb.mxu1 %v7731_v50  ;;  %v8753_v61 = vld [vmem:[#allocation15 + $0x24] sm:$0xf0]  ;;  %v7672_v49 = vld [vmem:[#allocation15 + $0x1e8] sm:$0xf0] }
 0x548   :  { %4199 = vmatpush.bf16.msrb.mxu2 %v4160_v44  ;;  %v7798_v63 = vld [vmem:[#allocation15 + $0x2c8] sm:$0xf]  ;;  %v7447_v50 = vor.u32 %v8753_v61, %v7446_v25  ;;  %v8810_v25 = vld [vmem:[#allocation15 + $0x1ec] sm:$0xf0] }
 0x549   :  { %v4137_v45 = vadd.f32 %v4073_v7, %v3159_v23  ;;  %v8841_v43 = vld [vmem:[#allocation15 + $0x2e4] sm:$0xf0]  ;;  %v7675_v23 = vor.u32 %v8805_v33, %v7672_v49  ;;  %v8912_v33 = vld [vmem:[#allocation15 + $0x51c] sm:$0xf0] }
 0x54a   :  { %v7799_v32 = vor.u32 %v8841_v43, %v7798_v63  ;;  %v7766_v7 = vld [vmem:[#allocation15 + $0x288] sm:$0xf]  ;;  %v8078_v43 = vld [vmem:[#allocation15 + $0x500] sm:$0xf] }
 0x54b   :  { %v4169_v0 = vpack.c.bf16 %v4137_v45, %v4133_v6  ;;  %5853 = vmatpush.bf16.msrb.mxu1 %v7699_v52  ;;  %v8833_v21 = vld [vmem:[#allocation15 + $0x2a4] sm:$0xf0]  ;;  %v7640_v6 = vld [vmem:[#allocation15 + $0x1a8] sm:$0xf0]  ;;  %v8430_v49 = vld [vmem:[#allocation15 + $0x7c0] sm:$0xf] }
 0x54c   :  { %4200 = vmatpush.bf16.msrb.mxu2 %v4156_v5  ;;  %v11038_v5 = vpack.c.bf16 %v10600_v18, %v10590_v2  ;;  %v11040_v2 = vpack.c.bf16 %v10551_v20, %v10532_v38  ;;  %v7574_v18 = vld [vmem:[#allocation15 + $0x108] sm:$0xf]  ;;  %v7543_v38 = vor.u32 %v8777_v13, %v7542_v1  ;;  %v7895_v20 = vor.u32 %v8865_v8, %v7894_v16  ;;  %v8757_v16 = vld [vmem:[#allocation15 + $0x4c] sm:$0xf]  ;;  %v8142_v8 = vld [vmem:[#allocation15 + $0x580] sm:$0xf] }
 0x54d   :  { %4210 = vmatpush.bf16.msrb.mxu3 %v4169_v0  ;;  %v7575_v57 = vor.u32 %v8785_v27, %v7574_v18  ;;  %v7767_v45 = vor.u32 %v8833_v21, %v7766_v7  ;;  %v7643_v52 = vor.u32 %v8797_v37, %v7640_v6  ;;  %v7734_v0 = vld [vmem:[#allocation15 + $0x248] sm:$0xf]  ;;  %v8765_v27 = vld [vmem:[#allocation15 + $0x8c] sm:$0xf]  ;;  %v8079_v7 = vor.u32 %v8912_v33, %v8078_v43  ;;  %v9000_v21 = vld [vmem:[#allocation15 + $0x7dc] sm:$0xf0] }
 0x54e   :  { %v7702_v28 = vld [vmem:[#allocation15 + $0x208] sm:$0xf]  ;;  %v7646_v37 = vld [vmem:[#allocation15 + $0x190] sm:$0xf] }
 0x54f   :  { %v8802_v6 = vld [vmem:[#allocation15 + $0x1ac] sm:$0xf0] }
 0x550   :  { %4201 = vmatpush.bf16.msrb.mxu2 %v4152_v47  ;;  %v11037_v47 = vpack.c.bf16 %v10473_v17, %v10453_v10  ;;  %v7606_v10 = vld [vmem:[#allocation15 + $0x148] sm:$0xf]  ;;  %v8858_v43 = vld [vmem:[#allocation15 + $0x36c] sm:$0xf0] }
 0x551   :  { %4211 = vmatpush.bf16.msrb.mxu3 %v4165_v11  ;;  %v8793_v17 = vld [vmem:[#allocation15 + $0x164] sm:$0xf0] }
 0x552   :  { %v7607_v44 = vor.u32 %v8793_v17, %v7606_v10  ;;  %v8873_v11 = vld [vmem:[#allocation15 + $0x3e4] sm:$0xf0]  ;;  %v8773_v10 = vld [vmem:[#allocation15 + $0xcc] sm:$0xf] }
 0x553   :  { %v7927_v30 = vor.u32 %v8873_v11, %v7926_v56  ;;  %v7544_v17 = vld [vmem:[#allocation15 + $0xe8] sm:$0xf0]  ;;  %v8174_v56 = vld [vmem:[#allocation15 + $0x5c0] sm:$0xf] }
 0x554   :  { %4202 = vmatpush.bf16.msrb.mxu2 %v11033_v41  ;;  %v8825_v41 = vld [vmem:[#allocation15 + $0x264] sm:$0xf0]  ;;  %v8936_v11 = vld [vmem:[#allocation15 + $0x5dc] sm:$0xf0] }
 0x555   :  { %4212 = vmatpush.bf16.msrb.mxu3 %v11034_v48  ;;  %v8789_v48 = vld [vmem:[#allocation15 + $0x14c] sm:$0xf] }
 0x558   :  { %4203 = vmatpush.bf16.msrb.mxu2 %v11035_v59  ;;  %v7608_v59 = vld [vmem:[#allocation15 + $0x168] sm:$0xf0] }
 0x559   :  { %4213 = vmatpush.bf16.msrb.mxu3 %v11036_v26  ;;  %v7735_v26 = vor.u32 %v8825_v41, %v7734_v0  ;;  %v7611_v51 = vor.u32 %v8789_v48, %v7608_v59  ;;  %v8046_v0 = vld [vmem:[#allocation15 + $0x4c0] sm:$0xf]  ;;  %v7647_v59 = vor.u32 %v8802_v6, %v7646_v37  ;;  %v8924_v37 = vld [vmem:[#allocation15 + $0x584] sm:$0xf] }
 0x55a   :  { %v8904_v41 = vld [vmem:[#allocation15 + $0x4dc] sm:$0xf0]  ;;  %v8144_v6 = vld [vmem:[#allocation15 + $0x5a0] sm:$0xf0] }
 0x55b   :  { %v8398_v48 = vld [vmem:[#allocation15 + $0x780] sm:$0xf] }
 0x55c   :  { %v4180_v29 = vpop.f32.mrf.mxu0  ;;  %4204 = vmatpush.bf16.msrb.mxu2 %v11037_v47  ;;  %v8781_v47 = vld [vmem:[#allocation15 + $0x10c] sm:$0xf] }
 0x55d   :  { %v10701_v62 = vpack.c.bf16 %v4180_v29, %v4180_v29  ;;  %4214 = vmatpush.bf16.msrb.mxu3 %v11038_v5  ;;  %v8817_v29 = vld [vmem:[#allocation15 + $0x224] sm:$0xf0]  ;;  %v8869_v5 = vld [vmem:[#allocation15 + $0x3cc] sm:$0xf] }
 0x55e   :  { %v7703_v12 = vor.u32 %v8817_v29, %v7702_v28  ;;  %v8047_v28 = vor.u32 %v8904_v41, %v8046_v0  ;;  %v8992_v29 = vld [vmem:[#allocation15 + $0x79c] sm:$0xf0]  ;;  %v8850_v0 = vld [vmem:[#allocation15 + $0x32c] sm:$0xf0] }
 0x55f   :  { %4205 = vmatmul.bf16.vlgmr.msrb.gmra.mxu2 %v10518_v34  ;;  %5789 = vmatmul.bf16.vlgmr.msra.gmra.mxu0 %v10701_v62 }
 0x560   :  { %5885 = vmatpush.bf16.msra.mxu0 %v7671_v4  ;;  %v7576_v4 = vld [vmem:[#allocation15 + $0x128] sm:$0xf0] }
 0x561   :  { %4215 = vmatpush.bf16.msrb.mxu3 %v11039_v55  ;;  %v7931_v55 = vor.u32 %v8869_v5, %v7928_v35  ;;  %v8399_v5 = vor.u32 %v8992_v29, %v8398_v48  ;;  %v8813_v35 = vld [vmem:[#allocation15 + $0x20c] sm:$0xf]  ;;  %v8147_v48 = vor.u32 %v8924_v37, %v8144_v6  ;;  %v7454_v29 = vld [vmem:[#allocation15 + $0x10] sm:$0xf] }
 0x564   :  { %5886 = vmatpush.bf16.msra.mxu0 %v7639_v42  ;;  %v4182_v24 = vpop.f32.mrf.mxu0  ;;  %v7579_v42 = vor.u32 %v8781_v47, %v7576_v4  ;;  %v7614_v47 = vld [vmem:[#allocation15 + $0x150] sm:$0xf] }
 0x565   :  { %4216 = vmatpush.bf16.msrb.mxu3 %v11040_v2  ;;  %v7896_v24 = vld [vmem:[#allocation15 + $0x3a8] sm:$0xf0]  ;;  %v7547_v2 = vor.u32 %v8773_v10, %v7544_v17  ;;  %v8794_v4 = vld [vmem:[#allocation15 + $0x16c] sm:$0xf0]  ;;  %v8366_v10 = vld [vmem:[#allocation15 + $0x740] sm:$0xf] }
 0x566   :  { %v7615_v17 = vor.u32 %v8794_v4, %v7614_v47  ;;  %v8916_v47 = vld [vmem:[#allocation15 + $0x544] sm:$0xf] }
 0x567   :  { %v8112_v4 = vld [vmem:[#allocation15 + $0x560] sm:$0xf0] }
 0x568   :  { %5887 = vmatpush.bf16.msra.mxu0 %v7607_v44  ;;  %v8861_v44 = vld [vmem:[#allocation15 + $0x38c] sm:$0xf] }
 0x569   :  { %v4193_v39 = vpop.f32.mrf.mxu1  ;;  %4217 = vmatpush.bf16.msrb.mxu3 %v11041_v15  ;;  %v7899_v18 = vor.u32 %v8861_v44, %v7896_v24  ;;  %v8853_v15 = vld [vmem:[#allocation15 + $0x34c] sm:$0xf]  ;;  %v7582_v24 = vld [vmem:[#allocation15 + $0x110] sm:$0xf] }
 0x56a   :  { %v10717_v58 = vpack.c.bf16 %v4193_v39, %v4193_v39  ;;  %v7512_v39 = vld [vmem:[#allocation15 + $0xa8] sm:$0xf0] }
 0x56b   :  { %v7515_v1 = vor.u32 %v8765_v27, %v7512_v39  ;;  %v7704_v44 = vld [vmem:[#allocation15 + $0x228] sm:$0xf0]  ;;  %v8786_v27 = vld [vmem:[#allocation15 + $0x12c] sm:$0xf0] }
 0x56c   :  { %4218 = vmatmul.bf16.vlgmr.msrb.gmra.mxu3 %v10518_v34  ;;  %5802 = vmatmul.bf16.vlgmr.msra.gmra.mxu1 %v10717_v58  ;;  %v7830_v34 = vld [vmem:[#allocation15 + $0x308] sm:$0xf] }
 0x56d   :  { %5888 = vmatpush.bf16.msra.mxu0 %v7575_v57  ;;  %5898 = vmatpush.bf16.msra.mxu1 %v7927_v30  ;;  %v7831_v22 = vor.u32 %v8849_v14, %v7830_v34  ;;  %v7864_v57 = vld [vmem:[#allocation15 + $0x368] sm:$0xf0]  ;;  %v8175_v30 = vor.u32 %v8936_v11, %v8174_v56  ;;  %v7934_v56 = vld [vmem:[#allocation15 + $0x3d0] sm:$0xf] }
 0x56e   :  { %v7867_v13 = vor.u32 %v8853_v15, %v7864_v57  ;;  %v8837_v34 = vld [vmem:[#allocation15 + $0x2cc] sm:$0xf]  ;;  %v8874_v11 = vld [vmem:[#allocation15 + $0x3ec] sm:$0xf0]  ;;  %v7707_v15 = vor.u32 %v8813_v35, %v7704_v44  ;;  %v7982_v57 = vld [vmem:[#allocation15 + $0x440] sm:$0xf] }
 0x56f   :  { %5841 = vmatmul.bf16.vlgmr.msrb.gmra.mxu0 %v10701_v62  ;;  %5807 = vmatpush.bf16.msra.mxu2 %v8175_v30  ;;  %v7800_v14 = vld [vmem:[#allocation15 + $0x2e8] sm:$0xf0]  ;;  %v8888_v30 = vld [vmem:[#allocation15 + $0x45c] sm:$0xf0]  ;;  %v7806_v35 = vld [vmem:[#allocation15 + $0x2d0] sm:$0xf] }
 0x570   :  { %v7803_v63 = vor.u32 %v8837_v34, %v7800_v14  ;;  %v8206_v44 = vld [vmem:[#allocation15 + $0x600] sm:$0xf] }
 0x571   :  { %5889 = vmatpush.bf16.msra.mxu0 %v7543_v38  ;;  %5899 = vmatpush.bf16.msra.mxu1 %v7895_v20  ;;  %v4195_v53 = vpop.f32.mrf.mxu1  ;;  %v8928_v38 = vld [vmem:[#allocation15 + $0x59c] sm:$0xf0]  ;;  %v7480_v20 = vld [vmem:[#allocation15 + $0x68] sm:$0xf0] }
 0x572   :  { %v8143_v36 = vor.u32 %v8928_v38, %v8142_v8  ;;  %v7483_v31 = vor.u32 %v8757_v16, %v7480_v20  ;;  %v8920_v53 = vld [vmem:[#allocation15 + $0x55c] sm:$0xf0]  ;;  %v7550_v16 = vld [vmem:[#allocation15 + $0xd0] sm:$0xf]  ;;  %v7983_v8 = vor.u32 %v8888_v30, %v7982_v57 }
 0x573   :  { %v8334_v38 = vld [vmem:[#allocation15 + $0x700] sm:$0xf] }
 0x574   :  { %5808 = vmatpush.bf16.msra.mxu2 %v8143_v36  ;;  %v8976_v20 = vld [vmem:[#allocation15 + $0x71c] sm:$0xf0]  ;;  %v8866_v36 = vld [vmem:[#allocation15 + $0x3ac] sm:$0xf0] }
 0x575   :  { %5890 = vmatpush.bf16.msra.mxu0 %v7511_v19  ;;  %5900 = vmatpush.bf16.msra.mxu1 %v7863_v3  ;;  %v7835_v19 = vor.u32 %v8845_v60, %v7832_v9  ;;  %v8749_v3 = vld [vmem:[#allocation15 + $0xc] sm:$0xf]  ;;  %v8778_v60 = vld [vmem:[#allocation15 + $0xec] sm:$0xf0] }
 0x576   :  { %v7451_v61 = vor.u32 %v8749_v3, %v7448_v54  ;;  %v7902_v9 = vld [vmem:[#allocation15 + $0x390] sm:$0xf]  ;;  %v7950_v3 = vld [vmem:[#allocation15 + $0x400] sm:$0xf]  ;;  %v7551_v54 = vor.u32 %v8778_v60, %v7550_v16  ;;  %v8798_v16 = vld [vmem:[#allocation15 + $0x194] sm:$0xf] }
 0x577   :  { %v7903_v34 = vor.u32 %v8866_v36, %v7902_v9  ;;  %v8900_v60 = vld [vmem:[#allocation15 + $0x4c4] sm:$0xf] }
 0x578   :  { %v8048_v9 = vld [vmem:[#allocation15 + $0x4e0] sm:$0xf0] }
 0x579   :  { %5891 = vmatpush.bf16.msra.mxu0 %v7479_v40  ;;  %5901 = vmatpush.bf16.msra.mxu1 %v7831_v22  ;;  %v8111_v40 = vor.u32 %v8920_v53, %v8110_v46  ;;  %v7678_v22 = vld [vmem:[#allocation15 + $0x1d0] sm:$0xf]  ;;  %v8880_v46 = vld [vmem:[#allocation15 + $0x41c] sm:$0xf0]  ;;  %v8988_v36 = vld [vmem:[#allocation15 + $0x784] sm:$0xf] }
 0x57a   :  { %v8302_v53 = vld [vmem:[#allocation15 + $0x6c0] sm:$0xf]  ;;  %v7951_v14 = vor.u32 %v8880_v46, %v7950_v3  ;;  %v8826_v3 = vld [vmem:[#allocation15 + $0x26c] sm:$0xf0]  ;;  %v8051_v46 = vor.u32 %v8900_v60, %v8048_v9  ;;  %v8750_v9 = vld [vmem:[#allocation15 + $0x14] sm:$0xf] }
 0x57b   :  { %5809 = vmatpush.bf16.msra.mxu2 %v8111_v40  ;;  %v8968_v40 = vld [vmem:[#allocation15 + $0x6dc] sm:$0xf0] }
 0x57c   :  { %5854 = vmatmul.bf16.vlgmr.msrb.gmra.mxu1 %v10717_v58  ;;  %v8303_v33 = vor.u32 %v8968_v40, %v8302_v53  ;;  %v8400_v53 = vld [vmem:[#allocation15 + $0x7a0] sm:$0xf0]  ;;  %v7710_v40 = vld [vmem:[#allocation15 + $0x210] sm:$0xf] }
 0x57d   :  { %5892 = vmatpush.bf16.msra.mxu0 %v7447_v50  ;;  %5902 = vmatpush.bf16.msra.mxu1 %v7799_v32  ;;  %v7679_v50 = vor.u32 %v8810_v25, %v7678_v22  ;;  %v8829_v32 = vld [vmem:[#allocation15 + $0x28c] sm:$0xf]  ;;  %v8932_v22 = vld [vmem:[#allocation15 + $0x5c4] sm:$0xf] }
 0x57e   :  { %v8176_v25 = vld [vmem:[#allocation15 + $0x5e0] sm:$0xf0] }
 0x57f   :  { %5810 = vmatpush.bf16.msra.mxu2 %v8079_v7 }
 0x580   :  { %5893 = vmatmul.bf16.vlgmr.msra.gmra.mxu0 %v10701_v62 }
 0x581   :  { %5937 = vmatpush.bf16.msrb.mxu0 %v7675_v23  ;;  %5903 = vmatpush.bf16.msra.mxu1 %v7767_v45  ;;  %v7768_v23 = vld [vmem:[#allocation15 + $0x2a8] sm:$0xf0]  ;;  %v8431_v45 = vor.u32 %v9000_v21, %v8430_v49  ;;  %v8179_v49 = vor.u32 %v8932_v22, %v8176_v25  ;;  %v7486_v21 = vld [vmem:[#allocation15 + $0x50] sm:$0xf]  ;;  %v8892_v25 = vld [vmem:[#allocation15 + $0x484] sm:$0xf] }
 0x583   :  { %5820 = vmatpush.bf16.msra.mxu3 %v8431_v45  ;;  %5811 = vmatpush.bf16.msra.mxu2 %v8047_v28  ;;  %v8762_v45 = vld [vmem:[#allocation15 + $0x6c] sm:$0xf0] }
 0x585   :  { %5938 = vmatpush.bf16.msrb.mxu0 %v7643_v52  ;;  %5904 = vmatpush.bf16.msra.mxu1 %v7735_v26  ;;  %v7771_v52 = vor.u32 %v8829_v32, %v7768_v23  ;;  %v8821_v26 = vld [vmem:[#allocation15 + $0x24c] sm:$0xf]  ;;  %v8960_v32 = vld [vmem:[#allocation15 + $0x69c] sm:$0xf0] }
 0x587   :  { %5821 = vmatpush.bf16.msra.mxu3 %v8399_v5  ;;  %v8754_v5 = vld [vmem:[#allocation15 + $0x2c] sm:$0xf0] }
 0x589   :  { %5939 = vmatpush.bf16.msrb.mxu0 %v7611_v51  ;;  %5905 = vmatpush.bf16.msra.mxu1 %v7703_v12  ;;  %v7736_v51 = vld [vmem:[#allocation15 + $0x268] sm:$0xf0] }
 0x58a   :  { %v7739_v12 = vor.u32 %v8821_v26, %v7736_v51  ;;  %v8952_v26 = vld [vmem:[#allocation15 + $0x65c] sm:$0xf0]  ;;  %v7487_v51 = vor.u32 %v8762_v45, %v7486_v21  ;;  %v7936_v21 = vld [vmem:[#allocation15 + $0x3f0] sm:$0xf0]  ;;  %v8884_v45 = vld [vmem:[#allocation15 + $0x444] sm:$0xf] }
 0x58c   :  { %5906 = vmatmul.bf16.vlgmr.msra.gmra.mxu1 %v10717_v58 }
 0x58d   :  { %5940 = vmatpush.bf16.msrb.mxu0 %v7579_v42  ;;  %5950 = vmatpush.bf16.msrb.mxu1 %v7931_v55  ;;  %v8014_v42 = vld [vmem:[#allocation15 + $0x480] sm:$0xf] }
 0x58e   :  { %v8896_v55 = vld [vmem:[#allocation15 + $0x49c] sm:$0xf0] }
 0x591   :  { %5941 = vmatpush.bf16.msrb.mxu0 %v7547_v2  ;;  %5951 = vmatpush.bf16.msrb.mxu1 %v7899_v18  ;;  %v8015_v2 = vor.u32 %v8896_v55, %v8014_v42  ;;  %v8984_v18 = vld [vmem:[#allocation15 + $0x75c] sm:$0xf0]  ;;  %v8115_v55 = vor.u32 %v8916_v47, %v8112_v4  ;;  %v7904_v47 = vld [vmem:[#allocation15 + $0x3b0] sm:$0xf0] }
 0x592   :  { %v8367_v39 = vor.u32 %v8984_v18, %v8366_v10  ;;  %v8806_v10 = vld [vmem:[#allocation15 + $0x1d4] sm:$0xf] }
 0x593   :  { %5812 = vmatpush.bf16.msra.mxu2 %v8015_v2  ;;  %v7455_v2 = vor.u32 %v8754_v5, %v7454_v29  ;;  %v8862_v29 = vld [vmem:[#allocation15 + $0x394] sm:$0xf]  ;;  %v8876_v5 = vld [vmem:[#allocation15 + $0x404] sm:$0xf] }
 0x594   :  { %5822 = vmatpush.bf16.msra.mxu3 %v8367_v39 }
 0x595   :  { %5942 = vmatpush.bf16.msrb.mxu0 %v7515_v1  ;;  %5952 = vmatpush.bf16.msrb.mxu1 %v7867_v13  ;;  %v7583_v1 = vor.u32 %v8786_v27, %v7582_v24  ;;  %v7935_v13 = vor.u32 %v8874_v11, %v7934_v56  ;;  %v8944_v24 = vld [vmem:[#allocation15 + $0x61c] sm:$0xf0]  ;;  %v7774_v27 = vld [vmem:[#allocation15 + $0x290] sm:$0xf]  ;;  %v8908_v56 = vld [vmem:[#allocation15 + $0x504] sm:$0xf] }
 0x596   :  { %v8080_v11 = vld [vmem:[#allocation15 + $0x520] sm:$0xf0]  ;;  %v8207_v57 = vor.u32 %v8944_v24, %v8206_v44  ;;  %v7520_v24 = vld [vmem:[#allocation15 + $0xb0] sm:$0xf0] }
 0x597   :  { %5813 = vmatpush.bf16.msra.mxu2 %v7983_v8  ;;  %v8083_v30 = vor.u32 %v8908_v56, %v8080_v11  ;;  %v7648_v8 = vld [vmem:[#allocation15 + $0x1b0] sm:$0xf0]  ;;  %v8304_v44 = vld [vmem:[#allocation15 + $0x6e0] sm:$0xf0] }
 0x598   :  { %v8956_v56 = vld [vmem:[#allocation15 + $0x684] sm:$0xf] }
 0x599   :  { %5943 = vmatpush.bf16.msrb.mxu0 %v7483_v31  ;;  %5953 = vmatpush.bf16.msrb.mxu1 %v7835_v19  ;;  %v8335_v31 = vor.u32 %v8976_v20, %v8334_v38  ;;  %v7518_v19 = vld [vmem:[#allocation15 + $0x90] sm:$0xf]  ;;  %v8272_v11 = vld [vmem:[#allocation15 + $0x6a0] sm:$0xf0] }
 0x59b   :  { %5823 = vmatpush.bf16.msra.mxu3 %v8335_v31  ;;  %5814 = vmatpush.bf16.msra.mxu2 %v7951_v14  ;;  %v7651_v31 = vor.u32 %v8798_v16, %v7648_v8  ;;  %v8403_v14 = vor.u32 %v8988_v36, %v8400_v53  ;;  %v8275_v16 = vor.u32 %v8956_v56, %v8272_v11  ;;  %v8948_v8 = vld [vmem:[#allocation15 + $0x644] sm:$0xf]  ;;  %v7456_v36 = vld [vmem:[#allocation15 + $0x30] sm:$0xf0]  ;;  %v8811_v53 = vld [vmem:[#allocation15 + $0x1f4] sm:$0xf0] }
 0x59c   :  { %v8150_v56 = vld [vmem:[#allocation15 + $0x588] sm:$0xf] }
 0x59d   :  { %5944 = vmatpush.bf16.msrb.mxu0 %v7451_v61  ;;  %5954 = vmatpush.bf16.msrb.mxu1 %v7803_v63  ;;  %v8770_v61 = vld [vmem:[#allocation15 + $0xac] sm:$0xf0]  ;;  %v8929_v11 = vld [vmem:[#allocation15 + $0x5a4] sm:$0xf0] }
 0x59e   :  { %v7870_v63 = vld [vmem:[#allocation15 + $0x350] sm:$0xf]  ;;  %v7519_v23 = vor.u32 %v8770_v61, %v7518_v19  ;;  %v8016_v61 = vld [vmem:[#allocation15 + $0x4a0] sm:$0xf0] }
 0x59f   :  { %5859 = vmatpush.bf16.msrb.mxu2 %v8179_v49  ;;  %v7871_v7 = vor.u32 %v8858_v43, %v7870_v63  ;;  %5824 = vmatpush.bf16.msra.mxu3 %v8303_v33  ;;  %v7742_v19 = vld [vmem:[#allocation15 + $0x250] sm:$0xf]  ;;  %v8980_v63 = vld [vmem:[#allocation15 + $0x744] sm:$0xf]  ;;  %v8782_v49 = vld [vmem:[#allocation15 + $0x114] sm:$0xf] }
 0x5a0   :  { %5945 = vmatmul.bf16.vlgmr.msrb.gmra.mxu0 %v10701_v62  ;;  %v7743_v22 = vor.u32 %v8826_v3, %v7742_v19  ;;  %v8818_v33 = vld [vmem:[#allocation15 + $0x22c] sm:$0xf0]  ;;  %v7808_v19 = vld [vmem:[#allocation15 + $0x2f0] sm:$0xf0] }
 0x5a1   :  { %5989 = vmatpush.bf16.msra.mxu0 %v7679_v50  ;;  %5955 = vmatpush.bf16.msrb.mxu1 %v7771_v52  ;;  %v8270_v50 = vld [vmem:[#allocation15 + $0x680] sm:$0xf]  ;;  %v7838_v52 = vld [vmem:[#allocation15 + $0x310] sm:$0xf]  ;;  %v7711_v6 = vor.u32 %v8818_v33, %v7710_v40  ;;  %v8803_v33 = vld [vmem:[#allocation15 + $0x1b4] sm:$0xf0] }
 0x5a2   :  { %v8271_v41 = vor.u32 %v8960_v32, %v8270_v50  ;;  %v7839_v28 = vor.u32 %v8850_v0, %v7838_v52  ;;  %v8019_v50 = vor.u32 %v8892_v25, %v8016_v61  ;;  %v8368_v32 = vld [vmem:[#allocation15 + $0x760] sm:$0xf0]  ;;  %v8830_v25 = vld [vmem:[#allocation15 + $0x294] sm:$0xf] }
 0x5a3   :  { %5860 = vmatpush.bf16.msrb.mxu2 %v8147_v48  ;;  %v8371_v37 = vor.u32 %v8980_v63, %v8368_v32  ;;  %v7984_v52 = vld [vmem:[#allocation15 + $0x460] sm:$0xf0]  ;;  %v8774_v48 = vld [vmem:[#allocation15 + $0xd4] sm:$0xf] }
 0x5a4   :  { %5825 = vmatpush.bf16.msra.mxu3 %v8271_v41  ;;  %v7776_v61 = vld [vmem:[#allocation15 + $0x2b0] sm:$0xf0] }
 0x5a5   :  { %5990 = vmatpush.bf16.msra.mxu0 %v7647_v59  ;;  %5956 = vmatpush.bf16.msrb.mxu1 %v7739_v12  ;;  %v8238_v59 = vld [vmem:[#allocation15 + $0x640] sm:$0xf]  ;;  %v8842_v12 = vld [vmem:[#allocation15 + $0x2ec] sm:$0xf0]  ;;  %v8822_v32 = vld [vmem:[#allocation15 + $0x254] sm:$0xf] }
 0x5a6   :  { %v8239_v42 = vor.u32 %v8952_v26, %v8238_v59  ;;  %v7807_v18 = vor.u32 %v8842_v12, %v7806_v35  ;;  %v7987_v59 = vor.u32 %v8884_v45, %v7984_v52  ;;  %v8972_v26 = vld [vmem:[#allocation15 + $0x704] sm:$0xf]  ;;  %v8814_v45 = vld [vmem:[#allocation15 + $0x214] sm:$0xf] }
 0x5a7   :  { %5861 = vmatpush.bf16.msrb.mxu2 %v8115_v55  ;;  %v7952_v35 = vld [vmem:[#allocation15 + $0x420] sm:$0xf0]  ;;  %v8766_v55 = vld [vmem:[#allocation15 + $0x94] sm:$0xf] }
 0x5a8   :  { %5826 = vmatpush.bf16.msra.mxu3 %v8239_v42  ;;  %v7907_v42 = vor.u32 %v8862_v29, %v7904_v47  ;;  %v7712_v52 = vld [vmem:[#allocation15 + $0x230] sm:$0xf0]  ;;  %v7558_v29 = vld [vmem:[#allocation15 + $0xd8] sm:$0xf] }
 0x5a9   :  { %5991 = vmatpush.bf16.msra.mxu0 %v7615_v17  ;;  %5957 = vmatpush.bf16.msrb.mxu1 %v7707_v15  ;;  %v7680_v17 = vld [vmem:[#allocation15 + $0x1f0] sm:$0xf0]  ;;  %v8834_v15 = vld [vmem:[#allocation15 + $0x2ac] sm:$0xf0]  ;;  %v8779_v47 = vld [vmem:[#allocation15 + $0xf4] sm:$0xf0] }
 0x5aa   :  { %v7683_v39 = vor.u32 %v8806_v10, %v7680_v17  ;;  %v7775_v20 = vor.u32 %v8834_v15, %v7774_v27  ;;  %v7955_v10 = vor.u32 %v8876_v5, %v7952_v35  ;;  %v8964_v17 = vld [vmem:[#allocation15 + $0x6c4] sm:$0xf]  ;;  %v8867_v5 = vld [vmem:[#allocation15 + $0x3b4] sm:$0xf0]  ;;  %v8182_v35 = vld [vmem:[#allocation15 + $0x5c8] sm:$0xf] }
 0x5ab   :  { %5862 = vmatpush.bf16.msrb.mxu2 %v8083_v30  ;;  %v8307_v27 = vor.u32 %v8964_v17, %v8304_v44  ;;  %v7488_v30 = vld [vmem:[#allocation15 + $0x70] sm:$0xf0]  ;;  %v8771_v44 = vld [vmem:[#allocation15 + $0xb4] sm:$0xf0] }
 0x5ac   :  { %5958 = vmatmul.bf16.vlgmr.msrb.gmra.mxu1 %v10717_v58  ;;  %5827 = vmatpush.bf16.msra.mxu3 %v8207_v57  ;;  %v8758_v57 = vld [vmem:[#allocation15 + $0x54] sm:$0xf] }
 0x5ad   :  { %5992 = vmatpush.bf16.msra.mxu0 %v7583_v1  ;;  %6002 = vmatpush.bf16.msra.mxu1 %v7935_v13  ;;  %v8996_v1 = vld [vmem:[#allocation15 + $0x7c4] sm:$0xf] }
 0x5ae   :  { %v8432_v13 = vld [vmem:[#allocation15 + $0x7e0] sm:$0xf0] }
 0x5af   :  { %v8435_v38 = vor.u32 %v8996_v1, %v8432_v13  ;;  %5863 = vmatpush.bf16.msrb.mxu2 %v8051_v46  ;;  %v8846_v1 = vld [vmem:[#allocation15 + $0x314] sm:$0xf]  ;;  %v7686_v46 = vld [vmem:[#allocation15 + $0x1d8] sm:$0xf] }
 0x5b0   :  { %v7840_v13 = vld [vmem:[#allocation15 + $0x330] sm:$0xf0] }
 0x5b1   :  { %5993 = vmatpush.bf16.msra.mxu0 %v7551_v54  ;;  %6003 = vmatpush.bf16.msra.mxu1 %v7903_v34  ;;  %v8790_v54 = vld [vmem:[#allocation15 + $0x154] sm:$0xf]  ;;  %v7843_v60 = vor.u32 %v8846_v1, %v7840_v13  ;;  %v7846_v1 = vld [vmem:[#allocation15 + $0x318] sm:$0xf] }
 0x5b2   :  { %v7616_v34 = vld [vmem:[#allocation15 + $0x170] sm:$0xf0]  ;;  %5872 = vmatpush.bf16.msrb.mxu3 %v8435_v38  ;;  %v8240_v38 = vld [vmem:[#allocation15 + $0x660] sm:$0xf0]  ;;  %v8851_v13 = vld [vmem:[#allocation15 + $0x334] sm:$0xf0] }
 0x5b3   :  { %v7619_v43 = vor.u32 %v8790_v54, %v7616_v34  ;;  %5864 = vmatpush.bf16.msrb.mxu2 %v8019_v50  ;;  %v8243_v3 = vor.u32 %v8948_v8, %v8240_v38  ;;  %v8940_v54 = vld [vmem:[#allocation15 + $0x604] sm:$0xf]  ;;  %v8118_v8 = vld [vmem:[#allocation15 + $0x548] sm:$0xf] }
 0x5b4   :  { %v8208_v34 = vld [vmem:[#allocation15 + $0x620] sm:$0xf0]  ;;  %v8921_v38 = vld [vmem:[#allocation15 + $0x564] sm:$0xf0] }
 0x5b5   :  { %5994 = vmatpush.bf16.msra.mxu0 %v7519_v23  ;;  %6004 = vmatpush.bf16.msra.mxu1 %v7871_v7  ;;  %v7584_v23 = vld [vmem:[#allocation15 + $0x130] sm:$0xf0]  ;;  %v8211_v63 = vor.u32 %v8940_v54, %v8208_v34  ;;  %v7688_v54 = vld [vmem:[#allocation15 + $0x1f8] sm:$0xf0]  ;;  %v8086_v34 = vld [vmem:[#allocation15 + $0x508] sm:$0xf] }
 0x5b6   :  { %v8870_v7 = vld [vmem:[#allocation15 + $0x3d4] sm:$0xf]  ;;  %5873 = vmatpush.bf16.msrb.mxu3 %v8403_v14  ;;  %v7587_v0 = vor.u32 %v8782_v49, %v7584_v23  ;;  %v7459_v14 = vor.u32 %v8750_v9, %v7456_v36  ;;  %v7779_v49 = vor.u32 %v8830_v25, %v7776_v61  ;;  %v7462_v9 = vld [vmem:[#allocation15 + $0x18] sm:$0xf] }
 0x5b7   :  { %v7939_v41 = vor.u32 %v8870_v7, %v7936_v21  ;;  %5865 = vmatpush.bf16.msrb.mxu2 %v7987_v59  ;;  %v7744_v23 = vld [vmem:[#allocation15 + $0x270] sm:$0xf0]  ;;  %v7622_v7 = vld [vmem:[#allocation15 + $0x158] sm:$0xf] }
 0x5b8   :  { %v8795_v21 = vld [vmem:[#allocation15 + $0x174] sm:$0xf0] }
 0x5b9   :  { %5995 = vmatpush.bf16.msra.mxu0 %v7487_v51  ;;  %6005 = vmatpush.bf16.msra.mxu1 %v7839_v28  ;;  %v8336_v51 = vld [vmem:[#allocation15 + $0x720] sm:$0xf0]  ;;  %v7552_v28 = vld [vmem:[#allocation15 + $0xf0] sm:$0xf0]  ;;  %v8875_v59 = vld [vmem:[#allocation15 + $0x3f4] sm:$0xf0] }
 0x5ba   :  { %5874 = vmatpush.bf16.msrb.mxu3 %v8371_v37  ;;  %v8339_v4 = vor.u32 %v8972_v26, %v8336_v51  ;;  %v7555_v12 = vor.u32 %v8774_v48, %v7552_v28  ;;  %v7747_v37 = vor.u32 %v8822_v32, %v7744_v23  ;;  %v7942_v48 = vld [vmem:[#allocation15 + $0x3d8] sm:$0xf]  ;;  %v7715_v26 = vor.u32 %v8814_v45, %v7712_v52  ;;  %v8799_v23 = vld [vmem:[#allocation15 + $0x19c] sm:$0xf]  ;;  %v8406_v45 = vld [vmem:[#allocation15 + $0x788] sm:$0xf] }
 0x5bb   :  { %5866 = vmatpush.bf16.msrb.mxu2 %v7955_v10  ;;  %v7943_v28 = vor.u32 %v8875_v59, %v7942_v48  ;;  %v7526_v10 = vld [vmem:[#allocation15 + $0x98] sm:$0xf]  ;;  %v8993_v52 = vld [vmem:[#allocation15 + $0x7a4] sm:$0xf0] }
 0x5bc   :  { %v8755_v36 = vld [vmem:[#allocation15 + $0x34] sm:$0xf0] }
 0x5bd   :  { %5996 = vmatpush.bf16.msra.mxu0 %v7455_v2  ;;  %6006 = vmatpush.bf16.msra.mxu1 %v7807_v18  ;;  %v8854_v2 = vld [vmem:[#allocation15 + $0x354] sm:$0xf]  ;;  %v7463_v25 = vor.u32 %v8755_v36, %v7462_v9  ;;  %v7750_v48 = vld [vmem:[#allocation15 + $0x258] sm:$0xf]  ;;  %v7560_v36 = vld [vmem:[#allocation15 + $0xf8] sm:$0xf0] }
 0x5be   :  { %v7872_v18 = vld [vmem:[#allocation15 + $0x370] sm:$0xf0]  ;;  %5875 = vmatpush.bf16.msrb.mxu3 %v8339_v4  ;;  %v7910_v4 = vld [vmem:[#allocation15 + $0x398] sm:$0xf] }
 0x5bf   :  { %v7875_v15 = vor.u32 %v8854_v2, %v7872_v18  ;;  %v8859_v2 = vld [vmem:[#allocation15 + $0x374] sm:$0xf0] }
 0x5c0   :  { %5997 = vmatmul.bf16.vlgmr.msra.gmra.mxu0 %v10701_v62  ;;  %v8827_v59 = vld [vmem:[#allocation15 + $0x274] sm:$0xf0] }
 0x5c1   :  { %6041 = vmatpush.bf16.msrb.mxu0 %v7683_v39  ;;  %6007 = vmatpush.bf16.msra.mxu1 %v7775_v20  ;;  %v7523_v39 = vor.u32 %v8766_v55, %v7520_v24  ;;  %v7491_v20 = vor.u32 %v8758_v57, %v7488_v30  ;;  %v7911_v55 = vor.u32 %v8867_v5, %v7910_v4  ;;  %v7878_v24 = vld [vmem:[#allocation15 + $0x358] sm:$0xf]  ;;  %v8022_v4 = vld [vmem:[#allocation15 + $0x488] sm:$0xf] }
 0x5c2   :  { %5876 = vmatpush.bf16.msrb.mxu3 %v8307_v27  ;;  %v7494_v57 = vld [vmem:[#allocation15 + $0x58] sm:$0xf]  ;;  %v8897_v5 = vld [vmem:[#allocation15 + $0x4a4] sm:$0xf0] }
 0x5c3   :  { %v8763_v30 = vld [vmem:[#allocation15 + $0x74] sm:$0xf0] }
 0x5c5   :  { %6042 = vmatpush.bf16.msrb.mxu0 %v7651_v31  ;;  %6008 = vmatpush.bf16.msra.mxu1 %v7743_v22  ;;  %v8838_v31 = vld [vmem:[#allocation15 + $0x2d4] sm:$0xf]  ;;  %v7687_v22 = vor.u32 %v8811_v53, %v7686_v46  ;;  %v8119_v46 = vor.u32 %v8921_v38, %v8118_v8  ;;  %v8807_v53 = vld [vmem:[#allocation15 + $0x1dc] sm:$0xf] }
 0x5c6   :  { %5877 = vmatpush.bf16.msrb.mxu3 %v8275_v16  ;;  %v7811_v40 = vor.u32 %v8838_v31, %v7808_v19  ;;  %v8151_v16 = vor.u32 %v8929_v11, %v8150_v56  ;;  %v7814_v31 = vld [vmem:[#allocation15 + $0x2d8] sm:$0xf]  ;;  %v8871_v56 = vld [vmem:[#allocation15 + $0x3dc] sm:$0xf] }
 0x5c7   :  { %v8843_v19 = vld [vmem:[#allocation15 + $0x2f4] sm:$0xf0]  ;;  %v7944_v11 = vld [vmem:[#allocation15 + $0x3f8] sm:$0xf0] }
 0x5c8   :  { %v7815_v61 = vor.u32 %v8843_v19, %v7814_v31  ;;  %v7947_v8 = vor.u32 %v8871_v56, %v7944_v11  ;;  %v8775_v38 = vld [vmem:[#allocation15 + $0xdc] sm:$0xf] }
 0x5c9   :  { %6043 = vmatpush.bf16.msrb.mxu0 %v7619_v43  ;;  %6009 = vmatpush.bf16.msra.mxu1 %v7711_v6  ;;  %v7654_v43 = vld [vmem:[#allocation15 + $0x198] sm:$0xf]  ;;  %v7623_v6 = vor.u32 %v8795_v21, %v7622_v7  ;;  %v7656_v7 = vld [vmem:[#allocation15 + $0x1b8] sm:$0xf0]  ;;  %v8054_v21 = vld [vmem:[#allocation15 + $0x4c8] sm:$0xf] }
 0x5ca   :  { %5878 = vmatpush.bf16.msrb.mxu3 %v8243_v3  ;;  %v7655_v50 = vor.u32 %v8803_v33, %v7654_v43  ;;  %v7782_v43 = vld [vmem:[#allocation15 + $0x298] sm:$0xf]  ;;  %v8863_v31 = vld [vmem:[#allocation15 + $0x39c] sm:$0xf] }
 0x5cb   :  { %v8835_v33 = vld [vmem:[#allocation15 + $0x2b4] sm:$0xf0]  ;;  %v7912_v19 = vld [vmem:[#allocation15 + $0x3b8] sm:$0xf0] }
 0x5cc   :  { %6010 = vmatmul.bf16.vlgmr.msra.gmra.mxu1 %v10717_v58  ;;  %v7816_v56 = vld [vmem:[#allocation15 + $0x2f8] sm:$0xf0] }
 0x5cd   :  { %6044 = vmatpush.bf16.msrb.mxu0 %v7587_v0  ;;  %6054 = vmatpush.bf16.msrb.mxu1 %v7939_v41  ;;  %v7590_v0 = vld [vmem:[#allocation15 + $0x118] sm:$0xf] }
 0x5ce   :  { %5879 = vmatpush.bf16.msrb.mxu3 %v8211_v63  ;;  %v8787_v41 = vld [vmem:[#allocation15 + $0x134] sm:$0xf0]  ;;  %v7691_v63 = vor.u32 %v8807_v53, %v7688_v54  ;;  %v8881_v53 = vld [vmem:[#allocation15 + $0x424] sm:$0xf0] }
 0x5cf   :  { %v7591_v51 = vor.u32 %v8787_v41, %v7590_v0  ;;  %v7783_v0 = vor.u32 %v8835_v33, %v7782_v43  ;;  %v7659_v41 = vor.u32 %v8799_v23, %v7656_v7  ;;  %v8310_v54 = vld [vmem:[#allocation15 + $0x6c8] sm:$0xf]  ;;  %v7528_v33 = vld [vmem:[#allocation15 + $0xb8] sm:$0xf0] }
 0x5d0   :  { %v8278_v7 = vld [vmem:[#allocation15 + $0x688] sm:$0xf] }
 0x5d1   :  { %6045 = vmatpush.bf16.msrb.mxu0 %v7555_v12  ;;  %6055 = vmatpush.bf16.msrb.mxu1 %v7907_v42  ;;  %v8937_v12 = vld [vmem:[#allocation15 + $0x5e4] sm:$0xf0]  ;;  %v7559_v42 = vor.u32 %v8779_v47, %v7558_v29  ;;  %v8791_v29 = vld [vmem:[#allocation15 + $0x15c] sm:$0xf] }
 0x5d2   :  { %v8183_v27 = vor.u32 %v8937_v12, %v8182_v35  ;;  %v7624_v47 = vld [vmem:[#allocation15 + $0x178] sm:$0xf0]  ;;  %v8374_v35 = vld [vmem:[#allocation15 + $0x748] sm:$0xf] }
 0x5d3   :  { %v8985_v12 = vld [vmem:[#allocation15 + $0x764] sm:$0xf0] }
 0x5d5   :  { %6046 = vmatpush.bf16.msrb.mxu0 %v7523_v39  ;;  %6056 = vmatpush.bf16.msrb.mxu1 %v7875_v15  ;;  %v7527_v39 = vor.u32 %v8771_v44, %v7526_v10  ;;  %v7879_v15 = vor.u32 %v8859_v2, %v7878_v24  ;;  %v7627_v10 = vor.u32 %v8791_v29, %v7624_v47  ;;  %v8783_v44 = vld [vmem:[#allocation15 + $0x11c] sm:$0xf] }
 0x5d6   :  { %v7592_v24 = vld [vmem:[#allocation15 + $0x138] sm:$0xf0]  ;;  %v8023_v2 = vor.u32 %v8897_v5, %v8022_v4 }
 0x5d7   :  { %v7848_v29 = vld [vmem:[#allocation15 + $0x338] sm:$0xf0] }
 0x5d9   :  { %6047 = vmatpush.bf16.msrb.mxu0 %v7491_v20  ;;  %6057 = vmatpush.bf16.msrb.mxu1 %v7843_v60  ;;  %v7495_v20 = vor.u32 %v8763_v30, %v7494_v57  ;;  %v7847_v60 = vor.u32 %v8851_v13, %v7846_v1  ;;  %v8889_v57 = vld [vmem:[#allocation15 + $0x464] sm:$0xf0] }
 0x5da   :  { %v8342_v30 = vld [vmem:[#allocation15 + $0x708] sm:$0xf] }
 0x5db   :  { %v8977_v1 = vld [vmem:[#allocation15 + $0x724] sm:$0xf0] }
 0x5dc   :  { %v8343_v9 = vor.u32 %v8977_v1, %v8342_v30  ;;  %v8909_v30 = vld [vmem:[#allocation15 + $0x50c] sm:$0xf] }
 0x5dd   :  { %6048 = vmatpush.bf16.msrb.mxu0 %v7459_v14  ;;  %6058 = vmatpush.bf16.msrb.mxu1 %v7811_v40  ;;  %v8913_v14 = vld [vmem:[#allocation15 + $0x524] sm:$0xf0]  ;;  %v8088_v1 = vld [vmem:[#allocation15 + $0x528] sm:$0xf0] }
 0x5de   :  { %v8438_v40 = vld [vmem:[#allocation15 + $0x7c8] sm:$0xf] }
 0x5e0   :  { %6049 = vmatmul.bf16.vlgmr.msrb.gmra.mxu0 %v10701_v62 }
 0x5e1   :  { %6093 = vmatpush.bf16.msra.mxu0 %v7687_v22  ;;  %6059 = vmatpush.bf16.msrb.mxu1 %v7779_v49  ;;  %v9001_v22 = vld [vmem:[#allocation15 + $0x7e4] sm:$0xf0] }
 0x5e2   :  { %v4206_v17 = vpop.f32.mrf.mxu2  ;;  %v8439_v32 = vor.u32 %v9001_v22, %v8438_v40  ;;  %v8184_v40 = vld [vmem:[#allocation15 + $0x5e8] sm:$0xf0]  ;;  %v7563_v22 = vor.u32 %v8775_v38, %v7560_v36 }
 0x5e3   :  { %v10730_v18 = vpack.c.bf16 %v4206_v17, %v4206_v17  ;;  %v8819_v17 = vld [vmem:[#allocation15 + $0x234] sm:$0xf0]  ;;  %v8440_v38 = vld [vmem:[#allocation15 + $0x7e8] sm:$0xf0] }
 0x5e5   :  { %6094 = vmatpush.bf16.msra.mxu0 %v7655_v50  ;;  %6060 = vmatpush.bf16.msrb.mxu1 %v7747_v37  ;;  %v8087_v50 = vor.u32 %v8913_v14, %v8086_v34  ;;  %v8969_v34 = vld [vmem:[#allocation15 + $0x6e4] sm:$0xf0]  ;;  %v8933_v14 = vld [vmem:[#allocation15 + $0x5cc] sm:$0xf] }
 0x5e6   :  { %5815 = vmatmul.bf16.vlgmr.msra.gmra.mxu2 %v10730_v18  ;;  %v8187_v23 = vor.u32 %v8933_v14, %v8184_v40  ;;  %v8408_v14 = vld [vmem:[#allocation15 + $0x7a8] sm:$0xf0]  ;;  %v8823_v40 = vld [vmem:[#allocation15 + $0x25c] sm:$0xf] }
 0x5e7   :  { %5911 = vmatpush.bf16.msra.mxu2 %v8183_v27  ;;  %v8375_v27 = vor.u32 %v8985_v12, %v8374_v35  ;;  %v8246_v35 = vld [vmem:[#allocation15 + $0x648] sm:$0xf] }
 0x5e8   :  { %v8953_v12 = vld [vmem:[#allocation15 + $0x664] sm:$0xf0] }
 0x5e9   :  { %6095 = vmatpush.bf16.msra.mxu0 %v7623_v6  ;;  %6061 = vmatpush.bf16.msrb.mxu1 %v7715_v26  ;;  %v8905_v6 = vld [vmem:[#allocation15 + $0x4e4] sm:$0xf0]  ;;  %v10737_v26 = vpop.f32.mrf.mxu0  ;;  %v8247_v11 = vor.u32 %v8953_v12, %v8246_v35  ;;  %v7960_v35 = vld [vmem:[#allocation15 + $0x428] sm:$0xf0] }
 0x5ea   :  { %v4208_v3 = vpop.f32.mrf.mxu2  ;;  %v8965_v12 = vld [vmem:[#allocation15 + $0x6cc] sm:$0xf] }
 0x5eb   :  { %5912 = vmatpush.bf16.msra.mxu2 %v8151_v16  ;;  %v7595_v16 = vor.u32 %v8783_v44, %v7592_v24  ;;  %v10741_v3 = vpop.f32.mrf.mxu1  ;;  %v8751_v24 = vld [vmem:[#allocation15 + $0x1c] sm:$0xf] }
 0x5ec   :  { %6062 = vmatmul.bf16.vlgmr.msrb.gmra.mxu1 %v10717_v58 }
 0x5ed   :  { %6096 = vmatpush.bf16.msra.mxu0 %v7591_v51  ;;  %6106 = vmatpush.bf16.msra.mxu1 %v7943_v28  ;;  %v8055_v51 = vor.u32 %v8905_v6, %v8054_v21  ;;  %v8407_v28 = vor.u32 %v8993_v52, %v8406_v45  ;;  %v8961_v21 = vld [vmem:[#allocation15 + $0x6a4] sm:$0xf0]  ;;  %v8925_v6 = vld [vmem:[#allocation15 + $0x58c] sm:$0xf] }
 0x5ee   :  { %v8152_v45 = vld [vmem:[#allocation15 + $0x5a8] sm:$0xf0]  ;;  %v8279_v4 = vor.u32 %v8961_v21, %v8278_v7  ;;  %v8815_v21 = vld [vmem:[#allocation15 + $0x21c] sm:$0xf] }
 0x5ef   :  { %5913 = vmatpush.bf16.msra.mxu2 %v8119_v46  ;;  %v4219_v49 = vpop.f32.mrf.mxu3  ;;  %v7958_v46 = vld [vmem:[#allocation15 + $0x408] sm:$0xf]  ;;  %v8155_v5 = vor.u32 %v8925_v6, %v8152_v45  ;;  %v7720_v6 = vld [vmem:[#allocation15 + $0x238] sm:$0xf0] }
 0x5f0   :  { %v10734_v37 = vpack.c.bf16 %v4219_v49, %v4219_v49  ;;  %v7959_v43 = vor.u32 %v8881_v53, %v7958_v46  ;;  %v8855_v49 = vld [vmem:[#allocation15 + $0x35c] sm:$0xf]  ;;  %v8901_v53 = vld [vmem:[#allocation15 + $0x4cc] sm:$0xf] }
 0x5f1   :  { %6097 = vmatpush.bf16.msra.mxu0 %v7559_v42  ;;  %6107 = vmatpush.bf16.msra.mxu1 %v7911_v55  ;;  %v7751_v42 = vor.u32 %v8827_v59, %v7750_v48  ;;  %v7718_v55 = vld [vmem:[#allocation15 + $0x218] sm:$0xf]  ;;  %v8759_v48 = vld [vmem:[#allocation15 + $0x5c] sm:$0xf] }
 0x5f2   :  { %5828 = vmatmul.bf16.vlgmr.msra.gmra.mxu3 %v10734_v37  ;;  %v7719_v13 = vor.u32 %v8819_v17, %v7718_v55  ;;  %v8120_v55 = vld [vmem:[#allocation15 + $0x568] sm:$0xf0] }
 0x5f3   :  { %5914 = vmatpush.bf16.msra.mxu2 %v8087_v50  ;;  %5924 = vmatpush.bf16.msra.mxu3 %v8439_v32  ;;  %v7880_v50 = vld [vmem:[#allocation15 + $0x378] sm:$0xf0]  ;;  %v8311_v32 = vor.u32 %v8969_v34, %v8310_v54  ;;  %v5805_v47 = vpop.f32.mrf.mxu1  ;;  %v8056_v54 = vld [vmem:[#allocation15 + $0x4e8] sm:$0xf0] }
 0x5f4   :  { %v8989_v34 = vld [vmem:[#allocation15 + $0x78c] sm:$0xf] }
 0x5f5   :  { %6098 = vmatpush.bf16.msra.mxu0 %v7527_v39  ;;  %6108 = vmatpush.bf16.msra.mxu1 %v7879_v15  ;;  %v7990_v39 = vld [vmem:[#allocation15 + $0x448] sm:$0xf] }
 0x5f6   :  { %5867 = vmatmul.bf16.vlgmr.msrb.gmra.mxu2 %v10730_v18 }
 0x5f7   :  { %5915 = vmatpush.bf16.msra.mxu2 %v8055_v51  ;;  %5925 = vmatpush.bf16.msra.mxu3 %v8407_v28  ;;  %v4221_v15 = vpop.f32.mrf.mxu3  ;;  %v7496_v51 = vld [vmem:[#allocation15 + $0x78] sm:$0xf0] }
 0x5f8   :  { %v8847_v28 = vld [vmem:[#allocation15 + $0x31c] sm:$0xf]  ;;  %v7499_v17 = vor.u32 %v8759_v48, %v7496_v51  ;;  %v8214_v15 = vld [vmem:[#allocation15 + $0x608] sm:$0xf]  ;;  %v7723_v48 = vor.u32 %v8815_v21, %v7720_v6  ;;  %v8973_v51 = vld [vmem:[#allocation15 + $0x70c] sm:$0xf] }
 0x5f9   :  { %6099 = vmatpush.bf16.msra.mxu0 %v7495_v20  ;;  %6109 = vmatpush.bf16.msra.mxu1 %v7847_v60  ;;  %v5792_v20 = vpop.f32.mrf.mxu0  ;;  %v7991_v60 = vor.u32 %v8889_v57, %v7990_v39  ;;  %v7851_v44 = vor.u32 %v8847_v28, %v7848_v29  ;;  %v8945_v57 = vld [vmem:[#allocation15 + $0x624] sm:$0xf0]  ;;  %v8344_v28 = vld [vmem:[#allocation15 + $0x728] sm:$0xf0]  ;;  %v8898_v21 = vld [vmem:[#allocation15 + $0x4ac] sm:$0xf0] }
 0x5fa   :  { %v8382_v6 = vld [vmem:[#allocation15 + $0x750] sm:$0xf] }
 0x5fb   :  { %5916 = vmatpush.bf16.msra.mxu2 %v8023_v2  ;;  %5926 = vmatpush.bf16.msra.mxu3 %v8375_v27  ;;  %v7464_v2 = vld [vmem:[#allocation15 + $0x38] sm:$0xf0]  ;;  %v5855_v36 = vpop.f32.mrf.mxu1 }
 0x5fc   :  { %v8839_v27 = vld [vmem:[#allocation15 + $0x2dc] sm:$0xf] }
 0x5fd   :  { %6100 = vmatpush.bf16.msra.mxu0 %v7463_v25  ;;  %6110 = vmatpush.bf16.msra.mxu1 %v7815_v61  ;;  %v7915_v25 = vor.u32 %v8863_v31, %v7912_v19  ;;  %v8767_v61 = vld [vmem:[#allocation15 + $0x9c] sm:$0xf]  ;;  %v8215_v31 = vor.u32 %v8945_v57, %v8214_v15  ;;  %v8091_v19 = vor.u32 %v8909_v30, %v8088_v1  ;;  %v8930_v15 = vld [vmem:[#allocation15 + $0x5ac] sm:$0xf0]  ;;  %v8949_v1 = vld [vmem:[#allocation15 + $0x64c] sm:$0xf] }
 0x5ff   :  { %5917 = vmatpush.bf16.msra.mxu2 %v7991_v60  ;;  %5927 = vmatpush.bf16.msra.mxu3 %v8343_v9  ;;  %v8831_v60 = vld [vmem:[#allocation15 + $0x29c] sm:$0xf] }
 0x600   :  { %6101 = vmatmul.bf16.vlgmr.msra.gmra.mxu0 %v10701_v62  ;;  %v7784_v9 = vld [vmem:[#allocation15 + $0x2b8] sm:$0xf0] }
 0x601   :  { %6145 = vmatpush.bf16.msrb.mxu0 %v7691_v63  ;;  %6111 = vmatpush.bf16.msra.mxu1 %v7783_v0  ;;  %v10746_v63 = vld [vmem:[%s10828_s14] sm:$0xff]  ;;  %v7531_v0 = vor.u32 %v8767_v61, %v7528_v33  ;;  %v10750_v59 = vpop.f32.mrf.mxu0  ;;  %v8411_v61 = vor.u32 %v8989_v34, %v8408_v14  ;;  %v8024_v33 = vld [vmem:[#allocation15 + $0x4a8] sm:$0xf0] }
 0x602   :  { %v4485_v52 = vperm.slane %v10746_v63, 0  ;;  %5880 = vmatmul.bf16.vlgmr.msrb.gmra.mxu3 %v10734_v37 }
 0x603   :  { %5918 = vmatpush.bf16.msra.mxu2 %v7959_v43  ;;  %5928 = vmatpush.bf16.msra.mxu3 %v8311_v32  ;;  %v8893_v43 = vld [vmem:[#allocation15 + $0x48c] sm:$0xf]  ;;  %v5857_v45 = vpop.f32.mrf.mxu1 }
 0x604   :  { %v8376_v32 = vld [vmem:[#allocation15 + $0x768] sm:$0xf0]  ;;  %v8986_v45 = vld [vmem:[#allocation15 + $0x76c] sm:$0xf0] }
 0x605   :  { %6146 = vmatpush.bf16.msrb.mxu0 %v7659_v41  ;;  %6112 = vmatpush.bf16.msra.mxu1 %v7751_v42  ;;  %v7883_v41 = vor.u32 %v8855_v49, %v7880_v50  ;;  %v8917_v42 = vld [vmem:[#allocation15 + $0x54c] sm:$0xf] }
 0x606   :  { %5919 = vmatmul.bf16.vlgmr.msra.gmra.mxu2 %v10730_v18  ;;  %v8123_v39 = vor.u32 %v8917_v42, %v8120_v55  ;;  %v8981_v50 = vld [vmem:[#allocation15 + $0x74c] sm:$0xf]  ;;  %v8190_v55 = vld [vmem:[#allocation15 + $0x5d0] sm:$0xf] }
 0x607   :  { %5963 = vmatpush.bf16.msrb.mxu2 %v8187_v23  ;;  %5929 = vmatpush.bf16.msra.mxu3 %v8279_v4  ;;  %v4486_v23 = vperm.slane %v10746_v63, 1  ;;  %v8347_v4 = vor.u32 %v8973_v51, %v8344_v28  ;;  %v8312_v42 = vld [vmem:[#allocation15 + $0x6e8] sm:$0xf0]  ;;  %v8350_v51 = vld [vmem:[#allocation15 + $0x710] sm:$0xf] }
 0x608   :  { %v8978_v28 = vld [vmem:[#allocation15 + $0x72c] sm:$0xf0] }
 0x609   :  { %6147 = vmatpush.bf16.msrb.mxu0 %v7627_v10  ;;  %6113 = vmatpush.bf16.msra.mxu1 %v7719_v13  ;;  %v5791_v10 = vadd.f32 %v10737_v26, %v4485_v52  ;;  %v7467_v13 = vor.u32 %v8751_v24, %v7464_v2  ;;  %v5844_v20 = vpop.f32.mrf.mxu0  ;;  %v8027_v52 = vor.u32 %v8893_v43, %v8024_v33  ;;  %v8414_v33 = vld [vmem:[#allocation15 + $0x790] sm:$0xf] }
 0x60a   :  { %v5843_v29 = vadd.f32 %v10750_v59, %v4486_v23  ;;  %v8315_v59 = vor.u32 %v8965_v12, %v8312_v42  ;;  %v8882_v12 = vld [vmem:[#allocation15 + $0x42c] sm:$0xf0] }
 0x60b   :  { %5964 = vmatpush.bf16.msrb.mxu2 %v8155_v5  ;;  %v10756_v26 = vadd.f32 %v10741_v3, %v5791_v10  ;;  %5930 = vmatpush.bf16.msra.mxu3 %v8247_v11  ;;  %v7787_v3 = vor.u32 %v8831_v60, %v7784_v9  ;;  %v8877_v5 = vld [vmem:[#allocation15 + $0x40c] sm:$0xf]  ;;  %v8938_v10 = vld [vmem:[#allocation15 + $0x5ec] sm:$0xf0]  ;;  %v5907_v24 = vpop.f32.mrf.mxu1 }
 0x60c   :  { %6114 = vmatmul.bf16.vlgmr.msra.gmra.mxu1 %v10717_v58  ;;  %v7963_v2 = vor.u32 %v8877_v5, %v7960_v35  ;;  %v8280_v11 = vld [vmem:[#allocation15 + $0x6a8] sm:$0xf0]  ;;  %v8351_v5 = vor.u32 %v8978_v28, %v8350_v51  ;;  %v7966_v35 = vld [vmem:[#allocation15 + $0x410] sm:$0xf]  ;;  %v8974_v51 = vld [vmem:[#allocation15 + $0x714] sm:$0xf] }
 0x60d   :  { %6148 = vmatpush.bf16.msrb.mxu0 %v7595_v16  ;;  %6158 = vmatpush.bf16.msrb.mxu1 %v7947_v8  ;;  %v7819_v16 = vor.u32 %v8839_v27, %v7816_v56  ;;  %v8997_v8 = vld [vmem:[#allocation15 + $0x7cc] sm:$0xf]  ;;  %v8191_v27 = vor.u32 %v8938_v10, %v8190_v55  ;;  %v8318_v42 = vld [vmem:[#allocation15 + $0x6d0] sm:$0xf]  ;;  %v8934_v10 = vld [vmem:[#allocation15 + $0x5d4] sm:$0xf] }
 0x60e   :  { %v8443_v46 = vor.u32 %v8997_v8, %v8440_v38  ;;  %v8957_v56 = vld [vmem:[#allocation15 + $0x68c] sm:$0xf]  ;;  %v8922_v8 = vld [vmem:[#allocation15 + $0x56c] sm:$0xf0]  ;;  %v4487_v38 = vperm.slane %v10746_v63, 2 }
 0x60f   :  { %5965 = vmatpush.bf16.msrb.mxu2 %v8123_v39  ;;  %5931 = vmatpush.bf16.msra.mxu3 %v8215_v31  ;;  %v8158_v39 = vld [vmem:[#allocation15 + $0x590] sm:$0xf]  ;;  %v8283_v57 = vor.u32 %v8957_v56, %v8280_v11  ;;  %v8216_v31 = vld [vmem:[#allocation15 + $0x628] sm:$0xf0]  ;;  %v8352_v28 = vld [vmem:[#allocation15 + $0x730] sm:$0xf0] }
 0x610   :  { %v8159_v30 = vor.u32 %v8930_v15, %v8158_v39  ;;  %v8970_v55 = vld [vmem:[#allocation15 + $0x6ec] sm:$0xf0]  ;;  %v8926_v15 = vld [vmem:[#allocation15 + $0x594] sm:$0xf] }
 0x611   :  { %6149 = vmatpush.bf16.msrb.mxu0 %v7563_v22  ;;  %6159 = vmatpush.bf16.msrb.mxu1 %v7915_v25  ;;  %v7752_v22 = vld [vmem:[#allocation15 + $0x278] sm:$0xf0]  ;;  %v8059_v25 = vor.u32 %v8901_v53, %v8056_v54  ;;  %v5894_v7 = vpop.f32.mrf.mxu0  ;;  %v8446_v54 = vld [vmem:[#allocation15 + $0x7d0] sm:$0xf] }
 0x612   :  { %v7755_v49 = vor.u32 %v8823_v40, %v7752_v22  ;;  %5932 = vmatmul.bf16.vlgmr.msra.gmra.mxu3 %v10734_v37  ;;  %v5895_v53 = vadd.f32 %v5894_v7, %v4487_v38  ;;  %v8062_v22 = vld [vmem:[#allocation15 + $0x4d0] sm:$0xf]  ;;  %v8128_v38 = vld [vmem:[#allocation15 + $0x570] sm:$0xf0] }
 0x613   :  { %5966 = vmatpush.bf16.msrb.mxu2 %v8091_v19  ;;  %5976 = vmatpush.bf16.msrb.mxu3 %v8443_v46  ;;  %v8094_v19 = vld [vmem:[#allocation15 + $0x510] sm:$0xf] }
 0x614   :  { %v8914_v46 = vld [vmem:[#allocation15 + $0x52c] sm:$0xf0] }
 0x615   :  { %6150 = vmatpush.bf16.msrb.mxu0 %v7531_v0  ;;  %6160 = vmatpush.bf16.msrb.mxu1 %v7883_v41  ;;  %v8379_v0 = vor.u32 %v8981_v50, %v8376_v32  ;;  %v7992_v41 = vld [vmem:[#allocation15 + $0x468] sm:$0xf0]  ;;  %v8095_v14 = vor.u32 %v8914_v46, %v8094_v19  ;;  %v8030_v7 = vld [vmem:[#allocation15 + $0x490] sm:$0xf]  ;;  %v8910_v19 = vld [vmem:[#allocation15 + $0x514] sm:$0xf] }
 0x616   :  { %v8286_v11 = vld [vmem:[#allocation15 + $0x690] sm:$0xf]  ;;  %v8096_v46 = vld [vmem:[#allocation15 + $0x530] sm:$0xf0] }
 0x617   :  { %5967 = vmatpush.bf16.msrb.mxu2 %v8059_v25  ;;  %5977 = vmatpush.bf16.msrb.mxu3 %v8411_v61  ;;  %v8906_v25 = vld [vmem:[#allocation15 + $0x4ec] sm:$0xf0]  ;;  %v10767_v61 = vadd.f32 %v5907_v24, %v5895_v53 }
 0x618   :  { %v8063_v32 = vor.u32 %v8906_v25, %v8062_v22  ;;  %v8962_v39 = vld [vmem:[#allocation15 + $0x6ac] sm:$0xf0]  ;;  %v8902_v25 = vld [vmem:[#allocation15 + $0x4d4] sm:$0xf] }
 0x619   :  { %6151 = vmatpush.bf16.msrb.mxu0 %v7499_v17  ;;  %6161 = vmatpush.bf16.msrb.mxu1 %v7851_v44  ;;  %v10762_v17 = vadd.f32 %v5855_v36, %v5843_v29  ;;  %v5896_v44 = vpop.f32.mrf.mxu0  ;;  %v8941_v36 = vld [vmem:[#allocation15 + $0x60c] sm:$0xf] }
 0x61a   :  { %v8219_v34 = vor.u32 %v8941_v36, %v8216_v31  ;;  %v8192_v44 = vld [vmem:[#allocation15 + $0x5f0] sm:$0xf0]  ;;  %v4489_v36 = vperm.slane %v10746_v63, 4  ;;  %v8946_v31 = vld [vmem:[#allocation15 + $0x62c] sm:$0xf0] }
 0x61b   :  { %5968 = vmatpush.bf16.msrb.mxu2 %v8027_v52  ;;  %5978 = vmatpush.bf16.msrb.mxu3 %v8379_v0  ;;  %v4488_v52 = vperm.slane %v10746_v63, 3  ;;  %v8031_v0 = vor.u32 %v8898_v21, %v8030_v7  ;;  %v8195_v56 = vor.u32 %v8934_v10, %v8192_v44  ;;  %v8894_v7 = vld [vmem:[#allocation15 + $0x494] sm:$0xf] }
 0x61c   :  { %v8032_v21 = vld [vmem:[#allocation15 + $0x4b0] sm:$0xf0] }
 0x61d   :  { %6152 = vmatpush.bf16.msrb.mxu0 %v7467_v13  ;;  %6162 = vmatpush.bf16.msrb.mxu1 %v7819_v16  ;;  %v8248_v13 = vld [vmem:[#allocation15 + $0x668] sm:$0xf0]  ;;  %v8126_v16 = vld [vmem:[#allocation15 + $0x550] sm:$0xf] }
 0x61e   :  { %v8251_v60 = vor.u32 %v8949_v1, %v8248_v13  ;;  %v8127_v9 = vor.u32 %v8922_v8, %v8126_v16  ;;  %v8254_v13 = vld [vmem:[#allocation15 + $0x650] sm:$0xf]  ;;  %v8918_v8 = vld [vmem:[#allocation15 + $0x554] sm:$0xf] }
 0x61f   :  { %5979 = vmatpush.bf16.msrb.mxu3 %v8347_v4  ;;  %v8954_v16 = vld [vmem:[#allocation15 + $0x66c] sm:$0xf0] }
 0x620   :  { %6153 = vmatmul.bf16.vlgmr.msrb.gmra.mxu0 %v10701_v62  ;;  %v8885_v62 = vld [vmem:[#allocation15 + $0x44c] sm:$0xf] }
 0x621   :  { %6163 = vmatpush.bf16.msrb.mxu1 %v7787_v3  ;;  %v7995_v47 = vor.u32 %v8885_v62, %v7992_v41  ;;  %v5946_v20 = vpop.f32.mrf.mxu0  ;;  %v9002_v3 = vld [vmem:[#allocation15 + $0x7ec] sm:$0xf0]  ;;  %v8383_v62 = vor.u32 %v8986_v45, %v8382_v6  ;;  %v8982_v45 = vld [vmem:[#allocation15 + $0x754] sm:$0xf] }
 0x622   :  { %v8447_v40 = vor.u32 %v9002_v3, %v8446_v54  ;;  %v7998_v41 = vld [vmem:[#allocation15 + $0x450] sm:$0xf]  ;;  %v5947_v29 = vadd.f32 %v5946_v20, %v4488_v52  ;;  %v8998_v54 = vld [vmem:[#allocation15 + $0x7d4] sm:$0xf] }
 0x623   :  { %5969 = vmatpush.bf16.msrb.mxu2 %v7995_v47  ;;  %5980 = vmatpush.bf16.msrb.mxu3 %v8315_v59  ;;  %v7967_v59 = vor.u32 %v8882_v12, %v7966_v35  ;;  %v8448_v3 = vld [vmem:[#allocation15 + $0x7f0] sm:$0xf0] }
 0x624   :  { %v8451_v22 = vor.u32 %v8998_v54, %v8448_v3  ;;  %v8384_v52 = vld [vmem:[#allocation15 + $0x770] sm:$0xf0]  ;;  %v9003_v54 = vld [vmem:[#allocation15 + $0x7f4] sm:$0xf0] }
 0x625   :  { %6164 = vmatpush.bf16.msrb.mxu1 %v7755_v49  ;;  %v8994_v49 = vld [vmem:[#allocation15 + $0x7ac] sm:$0xf0]  ;;  %v8966_v35 = vld [vmem:[#allocation15 + $0x6d4] sm:$0xf] }
 0x626   :  { %v8415_v23 = vor.u32 %v8994_v49, %v8414_v33  ;;  %v8990_v33 = vld [vmem:[#allocation15 + $0x794] sm:$0xf] }
 0x627   :  { %5970 = vmatpush.bf16.msrb.mxu2 %v7963_v2  ;;  %5981 = vmatpush.bf16.msrb.mxu3 %v8283_v57  ;;  %v8160_v57 = vld [vmem:[#allocation15 + $0x5b0] sm:$0xf0] }
 0x628   :  { %v8163_v1 = vor.u32 %v8926_v15, %v8160_v57  ;;  %v8416_v49 = vld [vmem:[#allocation15 + $0x7b0] sm:$0xf0]  ;;  %v4490_v15 = vperm.slane %v10746_v63, 5 }
 0x629   :  { %6165 = vmatpush.bf16.msrb.mxu1 %v7723_v48  ;;  %v5948_v43 = vpop.f32.mrf.mxu0  ;;  %v8890_v48 = vld [vmem:[#allocation15 + $0x46c] sm:$0xf0]  ;;  %v8320_v12 = vld [vmem:[#allocation15 + $0x6f0] sm:$0xf0] }
 0x62a   :  { %5971 = vmatmul.bf16.vlgmr.msrb.gmra.mxu2 %v10730_v18  ;;  %v7999_v4 = vor.u32 %v8890_v48, %v7998_v41  ;;  %v8064_v43 = vld [vmem:[#allocation15 + $0x4f0] sm:$0xf0] }
 0x62b   :  { %6015 = vmatpush.bf16.msra.mxu2 %v8191_v27  ;;  %5982 = vmatpush.bf16.msrb.mxu3 %v8251_v60  ;;  %v8319_v27 = vor.u32 %v8970_v55, %v8318_v42  ;;  %v8131_v60 = vor.u32 %v8918_v8, %v8128_v38  ;;  %v8886_v41 = vld [vmem:[#allocation15 + $0x454] sm:$0xf]  ;;  %v8198_v42 = vld [vmem:[#allocation15 + $0x5d8] sm:$0xf] }
 0x62c   :  { %6166 = vmatmul.bf16.vlgmr.msrb.gmra.mxu1 %v10717_v58  ;;  %v5909_v58 = vpop.f32.mrf.mxu1  ;;  %v8000_v48 = vld [vmem:[#allocation15 + $0x470] sm:$0xf0]  ;;  %v8939_v55 = vld [vmem:[#allocation15 + $0x5f4] sm:$0xf0] }
 0x62d   :  { %v8255_v58 = vor.u32 %v8954_v16, %v8254_v13  ;;  %v8256_v13 = vld [vmem:[#allocation15 + $0x670] sm:$0xf0]  ;;  %v8134_v16 = vld [vmem:[#allocation15 + $0x558] sm:$0xf] }
 0x62e   :  { %v8923_v8 = vld [vmem:[#allocation15 + $0x574] sm:$0xf0] }
 0x62f   :  { %6016 = vmatpush.bf16.msra.mxu2 %v8159_v30  ;;  %5983 = vmatpush.bf16.msrb.mxu3 %v8219_v34  ;;  %v8287_v30 = vor.u32 %v8962_v39, %v8286_v11  ;;  %v8166_v11 = vld [vmem:[#allocation15 + $0x598] sm:$0xf] }
 0x630   :  { %v8931_v39 = vld [vmem:[#allocation15 + $0x5b4] sm:$0xf0] }
 0x632   :  { %5984 = vmatmul.bf16.vlgmr.msrb.gmra.mxu3 %v10734_v37 }
 0x633   :  { %6017 = vmatpush.bf16.msra.mxu2 %v8127_v9  ;;  %6028 = vmatpush.bf16.msra.mxu3 %v8447_v40  ;;  %v8222_v9 = vld [vmem:[#allocation15 + $0x610] sm:$0xf] }
 0x634   :  { %v5959_v50 = vpop.f32.mrf.mxu1  ;;  %v8223_v34 = vor.u32 %v8946_v31, %v8222_v9  ;;  %v8942_v9 = vld [vmem:[#allocation15 + $0x614] sm:$0xf]  ;;  %v8102_v31 = vld [vmem:[#allocation15 + $0x518] sm:$0xf] }
 0x635   :  { %v10771_v24 = vadd.f32 %v5959_v50, %v5947_v29  ;;  %v8067_v50 = vor.u32 %v8902_v25, %v8064_v43  ;;  %v8003_v29 = vor.u32 %v8886_v41, %v8000_v48  ;;  %v8907_v25 = vld [vmem:[#allocation15 + $0x4f4] sm:$0xf0] }
 0x636   :  { %v8422_v43 = vld [vmem:[#allocation15 + $0x798] sm:$0xf] }
 0x637   :  { %6018 = vmatpush.bf16.msra.mxu2 %v8095_v14  ;;  %6029 = vmatpush.bf16.msra.mxu3 %v8415_v23  ;;  %v8099_v14 = vor.u32 %v8910_v19, %v8096_v46  ;;  %v8419_v23 = vor.u32 %v8990_v33, %v8416_v49  ;;  %v8915_v19 = vld [vmem:[#allocation15 + $0x534] sm:$0xf0] }
 0x638   :  { %v8995_v33 = vld [vmem:[#allocation15 + $0x7b4] sm:$0xf0] }
 0x639   :  { %v8006_v41 = vld [vmem:[#allocation15 + $0x458] sm:$0xf] }
 0x63a   :  { %v8891_v48 = vld [vmem:[#allocation15 + $0x474] sm:$0xf0] }
 0x63b   :  { %6019 = vmatpush.bf16.msra.mxu2 %v8063_v32  ;;  %6030 = vmatpush.bf16.msra.mxu3 %v8383_v62  ;;  %v8387_v62 = vor.u32 %v8982_v45, %v8384_v52  ;;  %v8390_v45 = vld [vmem:[#allocation15 + $0x758] sm:$0xf] }
 0x63c   :  { %v5961_v47 = vpop.f32.mrf.mxu1  ;;  %v8987_v52 = vld [vmem:[#allocation15 + $0x774] sm:$0xf0] }
 0x63d   :  { %v5998_v2 = vpop.f32.mrf.mxu0  ;;  %v8355_v47 = vor.u32 %v8974_v51, %v8352_v28  ;;  %v8358_v51 = vld [vmem:[#allocation15 + $0x718] sm:$0xf] }
 0x63e   :  { %v5999_v40 = vadd.f32 %v5998_v2, %v4489_v36  ;;  %v8323_v2 = vor.u32 %v8966_v35, %v8320_v12  ;;  %v8224_v36 = vld [vmem:[#allocation15 + $0x630] sm:$0xf0]  ;;  %v8979_v28 = vld [vmem:[#allocation15 + $0x734] sm:$0xf0] }
 0x63f   :  { %6020 = vmatpush.bf16.msra.mxu2 %v8031_v0  ;;  %6031 = vmatpush.bf16.msra.mxu3 %v8351_v5  ;;  %v8035_v0 = vor.u32 %v8894_v7, %v8032_v21  ;;  %v7968_v5 = vld [vmem:[#allocation15 + $0x430] sm:$0xf0]  ;;  %v8899_v7 = vld [vmem:[#allocation15 + $0x4b4] sm:$0xf0] }
 0x640   :  { %v8326_v35 = vld [vmem:[#allocation15 + $0x6d8] sm:$0xf] }
 0x643   :  { %6021 = vmatpush.bf16.msra.mxu2 %v7999_v4  ;;  %6032 = vmatpush.bf16.msra.mxu3 %v8319_v27  ;;  %v8878_v4 = vld [vmem:[#allocation15 + $0x414] sm:$0xf] }
 0x644   :  { %v7971_v44 = vor.u32 %v8878_v4, %v7968_v5  ;;  %v8958_v27 = vld [vmem:[#allocation15 + $0x694] sm:$0xf]  ;;  %v7974_v4 = vld [vmem:[#allocation15 + $0x418] sm:$0xf] }
 0x645   :  { %v6000_v20 = vpop.f32.mrf.mxu0  ;;  %v8883_v5 = vld [vmem:[#allocation15 + $0x434] sm:$0xf0] }
 0x647   :  { %6022 = vmatpush.bf16.msra.mxu2 %v7967_v59  ;;  %6033 = vmatpush.bf16.msra.mxu3 %v8287_v30  ;;  %v8199_v59 = vor.u32 %v8939_v55, %v8198_v42  ;;  %v8167_v30 = vor.u32 %v8931_v39, %v8166_v11  ;;  %v8971_v42 = vld [vmem:[#allocation15 + $0x6f4] sm:$0xf0]  ;;  %v8935_v55 = vld [vmem:[#allocation15 + $0x5dc] sm:$0xf] }
 0x648   :  { %v8294_v11 = vld [vmem:[#allocation15 + $0x698] sm:$0xf] }
 0x649   :  { %v6011_v53 = vpop.f32.mrf.mxu1 }
 0x64a   :  { %6023 = vmatmul.bf16.vlgmr.msra.gmra.mxu2 %v10730_v18  ;;  %v10775_v32 = vadd.f32 %v6011_v53, %v5999_v40  ;;  %v8454_v53 = vld [vmem:[#allocation15 + $0x7d8] sm:$0xf] }
 0x64b   :  { %6067 = vmatpush.bf16.msrb.mxu2 %v8195_v56  ;;  %6034 = vmatpush.bf16.msra.mxu3 %v8255_v58  ;;  %v8288_v56 = vld [vmem:[#allocation15 + $0x6b0] sm:$0xf0]  ;;  %v8455_v40 = vor.u32 %v9003_v54, %v8454_v53 }
 0x64c   :  { %v8291_v57 = vor.u32 %v8958_v27, %v8288_v56  ;;  %v8327_v27 = vor.u32 %v8971_v42, %v8326_v35  ;;  %v8392_v42 = vld [vmem:[#allocation15 + $0x778] sm:$0xf0] }
 0x64f   :  { %6068 = vmatpush.bf16.msrb.mxu2 %v8163_v1  ;;  %6035 = vmatpush.bf16.msra.mxu3 %v8223_v34  ;;  %v8950_v1 = vld [vmem:[#allocation15 + $0x654] sm:$0xf]  ;;  %v8227_v34 = vor.u32 %v8942_v9, %v8224_v36  ;;  %v8919_v36 = vld [vmem:[#allocation15 + $0x55c] sm:$0xf] }
 0x650   :  { %v8259_v58 = vor.u32 %v8950_v1, %v8256_v13  ;;  %v10787_v13 = vstv %s10829_s15  ;;  %s9261_s15 = smov [#allocation17]  }
 0x651   :  { %v6013_v6 = vpop.f32.mrf.mxu1  ;;  %s6236_s5 = sshll.u32 %s9261_s15, 4  ;;  %s6237_s5 = int_to_ptr.vmem [resolvable:$true] %s6236_s5 }
 0x652   :  { %6036 = vmatmul.bf16.vlgmr.msra.gmra.mxu3 %v10734_v37 }
 0x653   :  { %6069 = vmatpush.bf16.msrb.mxu2 %v8131_v60  ;;  %6080 = vmatpush.bf16.msrb.mxu3 %v8451_v22  ;;  %v8135_v60 = vor.u32 %v8923_v8, %v8134_v16  ;;  %v8070_v22 = vld [vmem:[#allocation15 + $0x4d8] sm:$0xf] }
 0x654   :  { %v8071_v49 = vor.u32 %v8907_v25, %v8070_v22  ;;  %v8947_v25 = vld [vmem:[#allocation15 + $0x634] sm:$0xf0] }
 0x657   :  { %6070 = vmatpush.bf16.msrb.mxu2 %v8099_v14  ;;  %6081 = vmatpush.bf16.msrb.mxu3 %v8419_v23  ;;  %v8103_v14 = vor.u32 %v8915_v19, %v8102_v31  ;;  %v8038_v23 = vld [vmem:[#allocation15 + $0x498] sm:$0xf]  ;;  %v8136_v31 = vld [vmem:[#allocation15 + $0x578] sm:$0xf0] }
 0x65b   :  { %6071 = vmatpush.bf16.msrb.mxu2 %v8067_v50  ;;  %6082 = vmatpush.bf16.msrb.mxu3 %v8387_v62  ;;  %v8423_v50 = vor.u32 %v8995_v33, %v8422_v43  ;;  %v8391_v62 = vor.u32 %v8987_v52, %v8390_v45  ;;  %v8911_v43 = vld [vmem:[#allocation15 + $0x51c] sm:$0xf] }
 0x65c   :  { %v8104_v33 = vld [vmem:[#allocation15 + $0x538] sm:$0xf0] }
 0x65d   :  { %v6050_v10 = vpop.f32.mrf.mxu0 }
 0x65e   :  { %v6051_v20 = vadd.f32 %v6050_v10, %v4490_v15  ;;  %v8200_v10 = vld [vmem:[#allocation15 + $0x5f8] sm:$0xf0]  ;;  %v8963_v15 = vld [vmem:[#allocation15 + $0x6b4] sm:$0xf0] }
 0x65f   :  { %6072 = vmatpush.bf16.msrb.mxu2 %v8035_v0  ;;  %6083 = vmatpush.bf16.msrb.mxu3 %v8355_v47  ;;  %v8039_v0 = vor.u32 %v8899_v7, %v8038_v23  ;;  %v8359_v47 = vor.u32 %v8979_v28, %v8358_v51  ;;  %v8203_v56 = vor.u32 %v8935_v55, %v8200_v10  ;;  %v8456_v23 = vld [vmem:[#allocation15 + $0x7f8] sm:$0xf0] }
 0x663   :  { %6073 = vmatpush.bf16.msrb.mxu2 %v8003_v29  ;;  %6084 = vmatpush.bf16.msrb.mxu3 %v8323_v2  ;;  %v8007_v29 = vor.u32 %v8891_v48, %v8006_v41  ;;  %v8991_v41 = vld [vmem:[#allocation15 + $0x79c] sm:$0xf] }
 0x664   :  { %v8424_v48 = vld [vmem:[#allocation15 + $0x7b8] sm:$0xf0] }
 0x665   :  { %v6052_v38 = vpop.f32.mrf.mxu0 }
 0x666   :  { %v4491_v38 = vperm.slane %v10746_v63, 6 }
 0x667   :  { %6074 = vmatpush.bf16.msrb.mxu2 %v7971_v44  ;;  %6085 = vmatpush.bf16.msrb.mxu3 %v8291_v57  ;;  %v8927_v57 = vld [vmem:[#allocation15 + $0x59c] sm:$0xf] }
 0x669   :  { %v6063_v46 = vpop.f32.mrf.mxu1  ;;  %v5816_v6 = vpop.f32.mrf.mxu2 }
 0x66a   :  { %6075 = vmatmul.bf16.vlgmr.msrb.gmra.mxu2 %v10730_v18  ;;  %v10780_v3 = vadd.f32 %v6063_v46, %v6051_v20  ;;  %v5817_v2 = vadd.f32 %v5816_v6, %v10756_v26  ;;  %v8295_v26 = vor.u32 %v8963_v15, %v8294_v11  ;;  %v8262_v20 = vld [vmem:[#allocation15 + $0x658] sm:$0xf]  ;;  %v8107_v6 = vor.u32 %v8911_v43, %v8104_v33  ;;  %v8975_v11 = vld [vmem:[#allocation15 + $0x71c] sm:$0xf] }
 0x66b   :  { %6119 = vmatpush.bf16.msra.mxu2 %v8199_v59  ;;  %6086 = vmatpush.bf16.msrb.mxu3 %v8259_v58  ;;  %v7975_v59 = vor.u32 %v8883_v5, %v7974_v4  ;;  %v8955_v58 = vld [vmem:[#allocation15 + $0x674] sm:$0xf0]  ;;  %v8040_v4 = vld [vmem:[#allocation15 + $0x4b8] sm:$0xf0] }
 0x66c   :  { %v8263_v53 = vor.u32 %v8955_v58, %v8262_v20  ;;  %v8967_v20 = vld [vmem:[#allocation15 + $0x6dc] sm:$0xf] }
 0x66d   :  { %v8328_v58 = vld [vmem:[#allocation15 + $0x6f8] sm:$0xf0] }
 0x66f   :  { %6120 = vmatpush.bf16.msra.mxu2 %v8167_v30  ;;  %6087 = vmatpush.bf16.msrb.mxu3 %v8227_v34  ;;  %v8168_v30 = vld [vmem:[#allocation15 + $0x5b8] sm:$0xf0] }
 0x670   :  { %v8171_v8 = vor.u32 %v8927_v57, %v8168_v30 }
 0x671   :  { %v6065_v21 = vpop.f32.mrf.mxu1  ;;  %v5818_v12 = vpop.f32.mrf.mxu2 }
 0x672   :  { %6088 = vmatmul.bf16.vlgmr.msrb.gmra.mxu3 %v10734_v37  ;;  %v8983_v12 = vld [vmem:[#allocation15 + $0x75c] sm:$0xf] }
 0x673   :  { %6121 = vmatpush.bf16.msra.mxu2 %v8135_v60  ;;  %6132 = vmatpush.bf16.msra.mxu3 %v8455_v40  ;;  %v203_v60 = vld [vmem:[#allocation6] sm:$0xff]  ;;  %v8230_v40 = vld [vmem:[#allocation15 + $0x618] sm:$0xf] }
 0x674   :  { %v8231_v21 = vor.u32 %v8947_v25, %v8230_v40  ;;  %v8951_v40 = vld [vmem:[#allocation15 + $0x65c] sm:$0xf] }
 0x675   :  { %v5829_v39 = vpop.f32.mrf.mxu3 }
 0x676   :  { %v5830_v1 = vadd.f32 %v5829_v39, %v5817_v2  ;;  %v8395_v2 = vor.u32 %v8983_v12, %v8392_v42  ;;  %v8360_v39 = vld [vmem:[#allocation15 + $0x738] sm:$0xf0] }
 0x677   :  { %6122 = vmatpush.bf16.msra.mxu2 %v8103_v14  ;;  %6133 = vmatpush.bf16.msra.mxu3 %v8423_v50  ;;  %v8139_v14 = vor.u32 %v8919_v36, %v8136_v31  ;;  %v8999_v50 = vld [vmem:[#allocation15 + $0x7dc] sm:$0xf] }
 0x678   :  { %v6197_v16 = vmax.f32 %v5830_v1, 0.0  ;;  %v8459_v45 = vor.u32 %v8999_v50, %v8456_v23  ;;  %v8363_v1 = vor.u32 %v8975_v11, %v8360_v39  ;;  %v8959_v31 = vld [vmem:[#allocation15 + $0x69c] sm:$0xf]  ;;  %v205_v50 = vld [vmem:[#allocation6 + $0x10] sm:$0xff] }
 0x679   :  { %v5868_v9 = vpop.f32.mrf.mxu2 }
 0x67a   :  { %v6207_v46 = vmul.f32 %v10787_v13, %v6197_v16  ;;  %v5869_v28 = vadd.f32 %v5868_v9, %v10762_v17  ;;  %v8879_v16 = vld [vmem:[#allocation15 + $0x41c] sm:$0xf]  ;;  %v8331_v9 = vor.u32 %v8967_v20, %v8328_v58 }
 0x67b   :  { %6123 = vmatpush.bf16.msra.mxu2 %v8071_v49  ;;  %6134 = vmatpush.bf16.msra.mxu3 %v8391_v62  ;;  %v8072_v62 = vld [vmem:[#allocation15 + $0x4f8] sm:$0xf0] }
 0x67c   :  { %v6215_v54 = vadd.f32 %v6207_v46, %v203_v60 }
 0x67d   :  { %v6102_v44 = vpop.f32.mrf.mxu0  ;;  %v5831_v22 = vpop.f32.mrf.mxu3 }
 0x67e   :  { %v6103_v34 = vadd.f32 %v6102_v44, %v4491_v38  ;;  %6223 = vst [vmem:[#allocation17] sm:$0xff] %v6215_v54  ;;  %v8264_v22 = vld [vmem:[#allocation15 + $0x678] sm:$0xf0] }
 0x67f   :  { %6124 = vmatpush.bf16.msra.mxu2 %v8039_v0  ;;  %6135 = vmatpush.bf16.msra.mxu3 %v8359_v47  ;;  %v8903_v0 = vld [vmem:[#allocation15 + $0x4dc] sm:$0xf] }
 0x680   :  { %v8075_v51 = vor.u32 %v8903_v0, %v8072_v62  ;;  %v8895_v47 = vld [vmem:[#allocation15 + $0x49c] sm:$0xf] }
 0x681   :  { %v5870_v52 = vpop.f32.mrf.mxu2  ;;  %v8043_v10 = vor.u32 %v8895_v47, %v8040_v4  ;;  %v206_v47 = vld [vmem:[#allocation6 + $0x18] sm:$0xff] }
 0x683   :  { %6125 = vmatpush.bf16.msra.mxu2 %v8007_v29  ;;  %6136 = vmatpush.bf16.msra.mxu3 %v8327_v27  ;;  %v8427_v29 = vor.u32 %v8991_v41, %v8424_v48  ;;  %v8008_v27 = vld [vmem:[#allocation15 + $0x478] sm:$0xf0] }
 0x685   :  { %v6104_v19 = vpop.f32.mrf.mxu0  ;;  %v5881_v35 = vpop.f32.mrf.mxu3 }
 0x686   :  { %v5882_v55 = vadd.f32 %v5881_v35, %v5869_v28  ;;  %v8296_v19 = vld [vmem:[#allocation15 + $0x6b8] sm:$0xf0] }
 0x687   :  { %6126 = vmatpush.bf16.msra.mxu2 %v7975_v59  ;;  %6137 = vmatpush.bf16.msra.mxu3 %v8295_v26  ;;  %v8887_v59 = vld [vmem:[#allocation15 + $0x45c] sm:$0xf]  ;;  %v8299_v54 = vor.u32 %v8959_v31, %v8296_v19 }
 0x688   :  { %v6198_v44 = vmax.f32 %v5882_v55, 0.0  ;;  %v8011_v57 = vor.u32 %v8887_v59, %v8008_v27  ;;  %v7976_v26 = vld [vmem:[#allocation15 + $0x438] sm:$0xf0] }
 0x689   :  { %v6115_v49 = vpop.f32.mrf.mxu1  ;;  %v5920_v17 = vpop.f32.mrf.mxu2  ;;  %v7979_v60 = vor.u32 %v8879_v16, %v7976_v26 }
 0x68a   :  { %6127 = vmatmul.bf16.vlgmr.msra.gmra.mxu2 %v10730_v18  ;;  %v10792_v7 = vadd.f32 %v6115_v49, %v6103_v34  ;;  %v6208_v15 = vmul.f32 %v10787_v13, %v6198_v44  ;;  %v5921_v46 = vadd.f32 %v5920_v17, %v10767_v61  ;;  %v8267_v49 = vor.u32 %v8951_v40, %v8264_v22  ;;  %v210_v40 = vld [vmem:[#allocation6 + $0x38] sm:$0xff] }
 0x68b   :  { %6171 = vmatpush.bf16.msrb.mxu2 %v8203_v56  ;;  %6138 = vmatpush.bf16.msra.mxu3 %v8263_v53  ;;  %v204_v56 = vld [vmem:[#allocation6 + $0x8] sm:$0xff]  ;;  %v4492_v53 = vperm.slane %v10746_v63, 7 }
 0x68c   :  { %v6216_v30 = vadd.f32 %v6208_v15, %v204_v56 }
 0x68e   :  { %6224 = vst [vmem:[#allocation17 + $0x8] sm:$0xff] %v6216_v30  ;;  %v208_v30 = vld [vmem:[#allocation6 + $0x28] sm:$0xff] }
 0x68f   :  { %6172 = vmatpush.bf16.msrb.mxu2 %v8171_v8  ;;  %6139 = vmatpush.bf16.msra.mxu3 %v8231_v21  ;;  %v5883_v8 = vpop.f32.mrf.mxu3  ;;  %v8943_v21 = vld [vmem:[#allocation15 + $0x61c] sm:$0xf] }
 0x691   :  { %v6117_v5 = vpop.f32.mrf.mxu1  ;;  %v5922_v36 = vpop.f32.mrf.mxu2 }
 0x692   :  { %6140 = vmatmul.bf16.vlgmr.msra.gmra.mxu3 %v10734_v37 }
 0x693   :  { %6173 = vmatpush.bf16.msrb.mxu2 %v8139_v14  ;;  %6184 = vmatpush.bf16.msrb.mxu3 %v8459_v45 }
 0x697   :  { %6174 = vmatpush.bf16.msrb.mxu2 %v8107_v6  ;;  %6185 = vmatpush.bf16.msrb.mxu3 %v8427_v29  ;;  %v5933_v34 = vpop.f32.mrf.mxu3  ;;  %v8232_v6 = vld [vmem:[#allocation15 + $0x638] sm:$0xf0] }
 0x698   :  { %v5934_v25 = vadd.f32 %v5933_v34, %v5921_v46  ;;  %v8235_v52 = vor.u32 %v8943_v21, %v8232_v6 }
 0x69a   :  { %v6199_v33 = vmax.f32 %v5934_v25, 0.0 }
 0x69b   :  { %6175 = vmatpush.bf16.msrb.mxu2 %v8075_v51  ;;  %6186 = vmatpush.bf16.msrb.mxu3 %v8395_v2  ;;  %v207_v2 = vld [vmem:[#allocation6 + $0x20] sm:$0xff] }
 0x69c   :  { %v6209_v61 = vmul.f32 %v10787_v13, %v6199_v33 }
 0x69d   :  { %v6154_v38 = vpop.f32.mrf.mxu0 }
 0x69e   :  { %v6155_v43 = vadd.f32 %v6154_v38, %v4492_v53  ;;  %v6217_v45 = vadd.f32 %v6209_v61, %v205_v50 }
 0x69f   :  { %6176 = vmatpush.bf16.msrb.mxu2 %v8043_v10  ;;  %6187 = vmatpush.bf16.msrb.mxu3 %v8363_v1  ;;  %v5935_v0 = vpop.f32.mrf.mxu3 }
 0x6a0   :  { %6225 = vst [vmem:[#allocation17 + $0x10] sm:$0xff] %v6217_v45 }
 0x6a3   :  { %6177 = vmatpush.bf16.msrb.mxu2 %v8011_v57  ;;  %6188 = vmatpush.bf16.msrb.mxu3 %v8331_v9  ;;  %v209_v9 = vld [vmem:[#allocation6 + $0x30] sm:$0xff] }
 0x6a5   :  { %v6156_v14 = vpop.f32.mrf.mxu0 }
 0x6a7   :  { %6178 = vmatpush.bf16.msrb.mxu2 %v7979_v60  ;;  %6189 = vmatpush.bf16.msrb.mxu3 %v8299_v54 }
 0x6a9   :  { %v6167_v23 = vpop.f32.mrf.mxu1 }
 0x6aa   :  { %6179 = vmatmul.bf16.vlgmr.msrb.gmra.mxu2 %v10730_v18  ;;  %v6168_v63 = vadd.f32 %v6167_v23, %v6155_v43 }
 0x6ab   :  { %6190 = vmatpush.bf16.msrb.mxu3 %v8267_v49 }
 0x6ad   :  { %v5972_v18 = vpop.f32.mrf.mxu2 }
 0x6ae   :  { %v5973_v48 = vadd.f32 %v5972_v18, %v10771_v24 }
 0x6af   :  { %6191 = vmatpush.bf16.msrb.mxu3 %v8235_v52 }
 0x6b1   :  { %v6169_v62 = vpop.f32.mrf.mxu1 }
 0x6b2   :  { %6192 = vmatmul.bf16.vlgmr.msrb.gmra.mxu3 %v10734_v37 }
 0x6b5   :  { %v5974_v41 = vpop.f32.mrf.mxu2  ;;  %v5985_v51 = vpop.f32.mrf.mxu3 }
 0x6b6   :  { %v5986_v28 = vadd.f32 %v5985_v51, %v5973_v48 }
 0x6b8   :  { %v6200_v29 = vmax.f32 %v5986_v28, 0.0 }
 0x6ba   :  { %v6210_v4 = vmul.f32 %v10787_v13, %v6200_v29 }
 0x6bc   :  { %v6218_v5 = vadd.f32 %v6210_v4, %v206_v47 }
 0x6bd   :  { %v5987_v35 = vpop.f32.mrf.mxu3 }
 0x6be   :  { %6226 = vst [vmem:[#allocation17 + $0x18] sm:$0xff] %v6218_v5 }
 0x6cd   :  { %v6024_v12 = vpop.f32.mrf.mxu2 }
 0x6ce   :  { %v6025_v55 = vadd.f32 %v6024_v12, %v10775_v32 }
 0x6d5   :  { %v6026_v42 = vpop.f32.mrf.mxu2  ;;  %v6037_v10 = vpop.f32.mrf.mxu3 }
 0x6d6   :  { %v6038_v44 = vadd.f32 %v6037_v10, %v6025_v55 }
 0x6d8   :  { %v6201_v37 = vmax.f32 %v6038_v44, 0.0 }
 0x6da   :  { %v6211_v59 = vmul.f32 %v10787_v13, %v6201_v37 }
 0x6dc   :  { %v6219_v24 = vadd.f32 %v6211_v59, %v207_v2 }
 0x6dd   :  { %v6039_v27 = vpop.f32.mrf.mxu3 }
 0x6de   :  { %6227 = vst [vmem:[#allocation17 + $0x20] sm:$0xff] %v6219_v24 }
 0x6ed   :  { %v6076_v56 = vpop.f32.mrf.mxu2 }
 0x6ee   :  { %v6077_v11 = vadd.f32 %v6076_v56, %v10780_v3 }
 0x6f5   :  { %v6078_v17 = vpop.f32.mrf.mxu2  ;;  %v6089_v39 = vpop.f32.mrf.mxu3 }
 0x6f6   :  { %v6090_v15 = vadd.f32 %v6089_v39, %v6077_v11 }
 0x6f8   :  { %v6202_v57 = vmax.f32 %v6090_v15, 0.0 }
 0x6fa   :  { %v6212_v1 = vmul.f32 %v10787_v13, %v6202_v57 }
 0x6fc   :  { %v6220_v32 = vadd.f32 %v6212_v1, %v208_v30 }
 0x6fd   :  { %v6091_v16 = vpop.f32.mrf.mxu3 }
 0x6fe   :  { %6228 = vst [vmem:[#allocation17 + $0x28] sm:$0xff] %v6220_v32 }
 0x70d   :  { %v6128_v26 = vpop.f32.mrf.mxu2 }
 0x70e   :  { %v6129_v38 = vadd.f32 %v6128_v26, %v10792_v7 }
 0x715   :  { %v6130_v8 = vpop.f32.mrf.mxu2  ;;  %v6141_v20 = vpop.f32.mrf.mxu3 }
 0x716   :  { %v6142_v58 = vadd.f32 %v6141_v20, %v6129_v38 }
 0x718   :  { %v6203_v60 = vmax.f32 %v6142_v58, 0.0 }
 0x71a   :  { %v6213_v36 = vmul.f32 %v10787_v13, %v6203_v60 }
 0x71c   :  { %v6221_v3 = vadd.f32 %v6213_v36, %v209_v9 }
 0x71d   :  { %v6143_v31 = vpop.f32.mrf.mxu3 }
 0x71e   :  { %6229 = vst [vmem:[#allocation17 + $0x30] sm:$0xff] %v6221_v3 }
 0x72d   :  { %v6180_v19 = vpop.f32.mrf.mxu2 }
 0x72e   :  { %v6181_v53 = vadd.f32 %v6180_v19, %v6168_v63 }
 0x735   :  { %v6182_v46 = vpop.f32.mrf.mxu2  ;;  %v6193_v54 = vpop.f32.mrf.mxu3 }
 0x736   :  { %v6194_v34 = vadd.f32 %v6193_v54, %v6181_v53 }
 0x738   :  { %v6204_v14 = vmax.f32 %v6194_v34, 0.0 }
 0x73a   :  { %v6214_v7 = vmul.f32 %v10787_v13, %v6204_v14 }
 0x73c   :  { %v6222_v22 = vadd.f32 %v6214_v7, %v210_v40 }
 0x73d   :  { %v6195_v25 = vpop.f32.mrf.mxu3 }
 0x73e   :  { %6230 = vst [vmem:[#allocation17 + $0x38] sm:$0xff] %v6222_v22 }
 0x73f   :  { %6241 = dma.vmem_to_hbm [thread:$0]  %s6237_s5, 1024, %s6239_s22, [#allocation5]  }
 0x740   :  { %9245 = dma.done.wait [#allocation5], 1024  }
 0x741   :  { %9246 = vsyncadd [#allocation5], 4294966272 }
 0x742   :  { %6246 = vsyncpa [#allocation4], 1 }
 0x743   :  { %6247 = vsyncpa [#allocation7], 1 }
 0x744   :  { %6248 = vsyncpa [#allocation10], 1 }
 0x745   :  { %6249 = vsyncpa [#allocation13], 1 }
 0x746   :  { %6250 = vsyncpa [#allocation16], 1 }
 0x747   :  { %6251 = vsyncpa [#allocation5], 1 }

</bundles_post_ra>
